<compile_context>
chip_gen: v7x
topology: tpu7x:2x2x1
jax: 0.10.0
libtpu: 0.0.40
codegen_flags: <defaults>
</compile_context>

<pallas_src>
import functools

import jax
import jax.numpy as jnp
from jax.experimental import pallas as pl
from jax.experimental.pallas import tpu as pltpu

LANE = 128          # TPU lane width; conv Cout / fc2 N are padded to this
CONV3_OUT = 64      # real channel count of conv3 (before lane padding)


def _round_up(x, m):
    return (x + m - 1) // m * m


# ----------------------------- Pallas kernels --------------------------------
def _gemm_bias_act_kernel(x_ref, w_ref, b_ref, o_ref, *, relu):
    """o = act(x @ w + b); bf16 MXU matmul, f32 accumulation, fused bias/ReLU."""
    x = x_ref[...].astype(jnp.bfloat16)
    acc = jnp.dot(x, w_ref[...], preferred_element_type=jnp.float32)
    acc = acc + b_ref[...]
    if relu:
        acc = jnp.maximum(acc, 0.0)
    o_ref[...] = acc


def gemm_bias_act(x, w, b_row, *, relu=True, max_tm=512):
    """y = act(x @ w + b) with w pre-packed as (K, N) bf16, N % 128 == 0.

    Tiled over M so input/output DMAs pipeline with compute and the grid can
    shard across both v7x TensorCores.  M is zero-padded to the tile size;
    padded rows are sliced off on return.
    """
    M, K = x.shape
    Kw, N = w.shape
    assert K == Kw and N % LANE == 0, (K, Kw, N)
    tm = min(max_tm, _round_up(M, 8))
    m_pad = _round_up(M, tm)
    if m_pad != M:
        x = jnp.pad(x, ((0, m_pad - M), (0, 0)))
    out = pl.pallas_call(
        functools.partial(_gemm_bias_act_kernel, relu=relu),
        out_shape=jax.ShapeDtypeStruct((m_pad, N), jnp.float32),
        grid=(m_pad // tm,),
        in_specs=[
            pl.BlockSpec((tm, K), lambda i: (i, 0)),
            pl.BlockSpec((K, N), lambda i: (0, 0)),   # weight resident
            pl.BlockSpec((1, N), lambda i: (0, 0)),   # bias resident
        ],
        out_specs=pl.BlockSpec((tm, N), lambda i: (i, 0)),
        compiler_params=pltpu.CompilerParams(
            dimension_semantics=("parallel",)),
    )(x, w, b_row)
    return out[:M] if m_pad != M else out


def _head_kernel(x_ref, w4_ref, b4_ref, w5_ref, b5_ref, o_ref):
    """Fused fc1 (ReLU) + fc2: keeps the (B, 512) intermediate in-register/VMEM."""
    x = x_ref[...].astype(jnp.bfloat16)
    h = jnp.dot(x, w4_ref[...], preferred_element_type=jnp.float32)
    h = jnp.maximum(h + b4_ref[...], 0.0)
    q = jnp.dot(h.astype(jnp.bfloat16), w5_ref[...],
                preferred_element_type=jnp.float32)
    o_ref[...] = q + b5_ref[...]


def fused_head(x, w4, b4, w5, b5):
    """q = (relu(x @ w4 + b4)) @ w5 + b5 in a single pallas_call."""
    M, K = x.shape
    _, H = w4.shape
    _, N = w5.shape
    m_pad = _round_up(M, 8)
    if m_pad != M:
        x = jnp.pad(x, ((0, m_pad - M), (0, 0)))
    out = pl.pallas_call(
        _head_kernel,
        out_shape=jax.ShapeDtypeStruct((m_pad, N), jnp.float32),
        grid=(1,),
        in_specs=[
            pl.BlockSpec((m_pad, K), lambda i: (0, 0)),
            pl.BlockSpec((K, H), lambda i: (0, 0)),
            pl.BlockSpec((1, H), lambda i: (0, 0)),
            pl.BlockSpec((H, N), lambda i: (0, 0)),
            pl.BlockSpec((1, N), lambda i: (0, 0)),
        ],
        out_specs=pl.BlockSpec((m_pad, N), lambda i: (0, 0)),
        compiler_params=pltpu.CompilerParams(
            dimension_semantics=("arbitrary",)),
    )(x, w4, b4, w5, b5)
    return out[:M]


# ------------------------------ conv glue ------------------------------------
def _im2col_nhwc(x, kh, kw, stride):
    """Extract conv patches -> (B*OH*OW, KH*KW*Cin), patch order (kh, kw, cin)."""
    B, H, W, C = x.shape
    oh = (H - kh) // stride + 1
    ow = (W - kw) // stride + 1
    cols = []
    for i in range(kh):
        for j in range(kw):
            cols.append(x[:, i:i + stride * oh:stride, j:j + stride * ow:stride, :])
    patches = jnp.stack(cols, axis=3)               # (B, OH, OW, KH*KW, C)
    return patches.reshape(B * oh * ow, kh * kw * C), oh, ow


# ---------------------------- parameter init ---------------------------------
def _uniform(key, shape, bound):
    return jax.random.uniform(key, shape, jnp.float32, -bound, bound)


def init_dqn_params(key, in_channels=4, num_actions=2):
    """Raw PyTorch-layout params, U(+-1/sqrt(fan_in)) like nn.Conv2d/Linear."""
    ks = jax.random.split(key, 10)
    p = {}
    conv_defs = [("1", 32, in_channels, 8), ("2", 64, 32, 4), ("3", 64, 64, 3)]
    for idx, (name, cout, cin, k) in enumerate(conv_defs):
        bound = 1.0 / ((cin * k * k) ** 0.5)
        p["w" + name] = _uniform(ks[2 * idx], (cout, cin, k, k), bound)
        p["b" + name] = _uniform(ks[2 * idx + 1], (cout,), bound)
    lin_defs = [("4", 512, 64 * 7 * 7), ("5", num_actions, 512)]
    for idx, (name, dout, din) in enumerate(lin_defs):
        bound = 1.0 / (din ** 0.5)
        p["w" + name] = _uniform(ks[6 + 2 * idx], (dout, din), bound)
        p["b" + name] = _uniform(ks[7 + 2 * idx], (dout,), bound)
    return p


def pack_params(p):
    """One-time packing: pre-transpose, fold 1/255 + flatten permute, pad to
    128 lanes, cast weights to bf16 (biases stay f32)."""
    def pad_cols(w, n):
        return jnp.pad(w, ((0, 0), (0, n - w.shape[1])))

    packed = {}
    # conv1: (Cout,Cin,KH,KW) -> (KH*KW*Cin, Cout); fold 1/255; pad Cout->128.
    cout1 = p["w1"].shape[0]
    w1 = jnp.transpose(p["w1"], (2, 3, 1, 0)).reshape(-1, cout1) * (1.0 / 255.0)
    packed["w1"] = pad_cols(w1, LANE).astype(jnp.bfloat16)
    packed["b1"] = jnp.pad(p["b1"], (0, LANE - cout1)).reshape(1, LANE)

    # conv2 / conv3: pad Cin->128 with zero rows (padded input channels are
    # zero anyway, and zero rows make it exact), pad Cout->128 for lane-dense
    # output stores.
    for name in ("2", "3"):
        w = p["w" + name]                                   # (Cout, Cin, K, K)
        cout, cin, kh, kw = w.shape
        w = jnp.transpose(w, (2, 3, 1, 0))                  # (KH, KW, Cin, Cout)
        w = jnp.pad(w, ((0, 0), (0, 0), (0, LANE - cin), (0, 0)))
        w = w.reshape(kh * kw * LANE, cout)
        packed["w" + name] = pad_cols(w, LANE).astype(jnp.bfloat16)
        packed["b" + name] = jnp.pad(p["b" + name], (0, LANE - cout)).reshape(1, LANE)

    # fc1: PyTorch flatten order is (C=64, H=7, W=7); our features are flattened
    # as (H, W, C), so permute the K rows once at pack time.
    w4 = p["w4"].reshape(512, CONV3_OUT, 7, 7)              # (out, c, h, w)
    w4 = jnp.transpose(w4, (2, 3, 1, 0)).reshape(CONV3_OUT * 7 * 7, 512)
    packed["w4"] = w4.astype(jnp.bfloat16)
    packed["b4"] = p["b4"].reshape(1, -1)

    # fc2: (out, in) -> (in, out); pad N (num_actions) -> 128 lanes.
    num_actions = p["w5"].shape[0]
    w5 = pad_cols(p["w5"].T, LANE)
    packed["w5"] = w5.astype(jnp.bfloat16)
    packed["b5"] = jnp.pad(p["b5"], (0, LANE - num_actions)).reshape(1, LANE)
    return packed


# ------------------------------- forward --------------------------------------
@functools.partial(jax.jit, static_argnames=("num_actions",))
def dqn_forward(packed, x_nchw, *, num_actions=2):
    """Equivalent of DQN(network_type='cnn').forward(x) for NCHW float input."""
    x = jnp.transpose(x_nchw, (0, 2, 3, 1))                 # NCHW -> NHWC (once)
    B = x.shape[0]

    # conv1 (k=8, s=4): x/255 is folded into w1.
    cols, oh, ow = _im2col_nhwc(x, 8, 8, 4)
    h = gemm_bias_act(cols, packed["w1"], packed["b1"]).reshape(B, oh, ow, LANE)

    # conv2 (k=4, s=2): lane-padded channels carried through (zero weight rows).
    cols, oh, ow = _im2col_nhwc(h, 4, 4, 2)
    h = gemm_bias_act(cols, packed["w2"], packed["b2"]).reshape(B, oh, ow, LANE)

    # conv3 (k=3, s=1)
    cols, oh, ow = _im2col_nhwc(h, 3, 3, 1)
    h = gemm_bias_act(cols, packed["w3"], packed["b3"]).reshape(B, oh, ow, LANE)

    # Drop the channel padding and flatten in (H, W, C) order; fc1's rows were
    # permuted at pack time so this matches PyTorch's nn.Flatten on NCHW.
    feats = h[..., :CONV3_OUT].reshape(B, -1)               # (B, 3136)

    # Fused fc1 (ReLU) + fc2, N padded to 128 lanes inside the kernel.
    q = fused_head(feats, packed["w4"], packed["b4"], packed["w5"], packed["b5"])
    return q[:, :num_actions]                               # (B, num_actions)


if __name__ == "__main__":
    key = jax.random.PRNGKey(0)
    pkey, xkey = jax.random.split(key)
    raw_params = init_dqn_params(pkey, in_channels=4, num_actions=2)
    params = pack_params(raw_params)   # one-time packing (outside jit)
    # 84x84 input is required by the architecture (64*7*7 flatten in fc1).
    x = jax.random.uniform(xkey, (2, 4, 84, 84), jnp.float32, 0.0, 255.0)
    q = dqn_forward(params, x, num_actions=2)
    jax.block_until_ready(q)
    assert q.shape == (2, 2) and q.dtype == jnp.float32
    print("KERNEL_OK")
</pallas_src>

<mosaic_0001>
module attributes {stable_mosaic.version = 11 : i64} {
  func.func @_gemm_bias_act_kernel(%arg0: i32, %arg1: memref<512x256xf32, #tpu.memory_space<vmem>>, %arg2: memref<256x128xbf16, #tpu.memory_space<vmem>>, %arg3: memref<1x128xf32, #tpu.memory_space<vmem>>, %arg4: memref<512x128xf32, #tpu.memory_space<vmem>>) attributes {dimension_semantics = [#tpu.dimension_semantics<parallel>], iteration_bounds = array<i64: 2>, scalar_prefetch = 0 : i64, scratch_operands = 0 : i64, tpu.core_type = #tpu.core_type<tc>, window_params = [{transform_indices = @transform_0, window_bounds = array<i64: 512, 256>}, {pipeline_mode = #tpu.pipeline_mode<synchronous>, transform_indices = @transform_1, window_bounds = array<i64: 256, 128>}, {pipeline_mode = #tpu.pipeline_mode<synchronous>, transform_indices = @transform_2, window_bounds = array<i64: 1, 128>}, {transform_indices = @transform_3, window_bounds = array<i64: 512, 128>}]} {
    %c0 = arith.constant 0 : index
    %c0_0 = arith.constant 0 : index
    %0 = vector.load %arg1[%c0, %c0_0] : memref<512x256xf32, #tpu.memory_space<vmem>>, vector<512x256xf32>
    %1 = arith.truncf %0 : vector<512x256xf32> to vector<512x256xbf16>
    %c0_1 = arith.constant 0 : index
    %c0_2 = arith.constant 0 : index
    %2 = vector.load %arg2[%c0_1, %c0_2] : memref<256x128xbf16, #tpu.memory_space<vmem>>, vector<256x128xbf16>
    %cst = arith.constant dense<0.000000e+00> : vector<512x128xf32>
    %3 = tpu.matmul %1, %2, %cst {dimension_numbers = #tpu.dot_dimension_numbers<[1], [0], [0], [1], [0, 0, 1, 1], [], []>} : vector<512x256xbf16>, vector<256x128xbf16>, vector<512x128xf32> -> vector<512x128xf32>
    %c0_3 = arith.constant 0 : index
    %c0_4 = arith.constant 0 : index
    %4 = vector.load %arg3[%c0_3, %c0_4] : memref<1x128xf32, #tpu.memory_space<vmem>>, vector<1x128xf32>
    %5 = vector.broadcast %4 : vector<1x128xf32> to vector<512x128xf32>
    %6 = arith.addf %3, %5 : vector<512x128xf32>
    %cst_5 = arith.constant 0.000000e+00 : f32
    %7 = vector.broadcast %cst_5 : f32 to vector<512x128xf32>
    %8 = arith.maximumf %6, %7 : vector<512x128xf32>
    %c0_6 = arith.constant 0 : index
    %c0_7 = arith.constant 0 : index
    %9 = vector.load %arg4[%c0_6, %c0_7] : memref<512x128xf32, #tpu.memory_space<vmem>>, vector<512x128xf32>
    tpu.vector_store %arg4[%c0_6, %c0_7], %8 {strides = array<i32>} : memref<512x128xf32, #tpu.memory_space<vmem>>, vector<512x128xf32>,
    return
  }
  func.func @transform_0(%arg0: i32) -> (i32, i32) {
    %c0_i32 = arith.constant 0 : i32
    %c0_i32_0 = arith.constant 0 : i32
    return %arg0, %c0_i32 : i32, i32
  }
  func.func @transform_1(%arg0: i32) -> (i32, i32) {
    %c0_i32 = arith.constant 0 : i32
    %c0_i32_0 = arith.constant 0 : i32
    %c0_i32_1 = arith.constant 0 : i32
    return %c0_i32, %c0_i32_0 : i32, i32
  }
  func.func @transform_2(%arg0: i32) -> (i32, i32) {
    %c0_i32 = arith.constant 0 : i32
    %c0_i32_0 = arith.constant 0 : i32
    %c0_i32_1 = arith.constant 0 : i32
    return %c0_i32, %c0_i32_0 : i32, i32
  }
  func.func @transform_3(%arg0: i32) -> (i32, i32) {
    %c0_i32 = arith.constant 0 : i32
    %c0_i32_0 = arith.constant 0 : i32
    return %arg0, %c0_i32 : i32, i32
  }
}

module attributes {stable_mosaic.version = 11 : i64} {
  func.func @_gemm_bias_act_kernel(%arg0: i32, %arg1: memref<168x2048xf32, #tpu.memory_space<vmem>>, %arg2: memref<2048x128xbf16, #tpu.memory_space<vmem>>, %arg3: memref<1x128xf32, #tpu.memory_space<vmem>>, %arg4: memref<168x128xf32, #tpu.memory_space<vmem>>) attributes {dimension_semantics = [#tpu.dimension_semantics<parallel>], iteration_bounds = array<i64: 1>, scalar_prefetch = 0 : i64, scratch_operands = 0 : i64, tpu.core_type = #tpu.core_type<tc>, window_params = [{transform_indices = @transform_0, window_bounds = array<i64: 168, 2048>}, {pipeline_mode = #tpu.pipeline_mode<synchronous>, transform_indices = @transform_1, window_bounds = array<i64: 2048, 128>}, {pipeline_mode = #tpu.pipeline_mode<synchronous>, transform_indices = @transform_2, window_bounds = array<i64: 1, 128>}, {transform_indices = @transform_3, window_bounds = array<i64: 168, 128>}]} {
    %c0 = arith.constant 0 : index
    %c0_0 = arith.constant 0 : index
    %0 = vector.load %arg1[%c0, %c0_0] : memref<168x2048xf32, #tpu.memory_space<vmem>>, vector<168x2048xf32>
    %1 = arith.truncf %0 : vector<168x2048xf32> to vector<168x2048xbf16>
    %c0_1 = arith.constant 0 : index
    %c0_2 = arith.constant 0 : index
    %2 = vector.load %arg2[%c0_1, %c0_2] : memref<2048x128xbf16, #tpu.memory_space<vmem>>, vector<2048x128xbf16>
    %cst = arith.constant dense<0.000000e+00> : vector<168x128xf32>
    %3 = tpu.matmul %1, %2, %cst {dimension_numbers = #tpu.dot_dimension_numbers<[1], [0], [0], [1], [0, 0, 1, 1], [], []>} : vector<168x2048xbf16>, vector<2048x128xbf16>, vector<168x128xf32> -> vector<168x128xf32>
    %c0_3 = arith.constant 0 : index
    %c0_4 = arith.constant 0 : index
    %4 = vector.load %arg3[%c0_3, %c0_4] : memref<1x128xf32, #tpu.memory_space<vmem>>, vector<1x128xf32>
    %5 = vector.broadcast %4 : vector<1x128xf32> to vector<168x128xf32>
    %6 = arith.addf %3, %5 : vector<168x128xf32>
    %cst_5 = arith.constant 0.000000e+00 : f32
    %7 = vector.broadcast %cst_5 : f32 to vector<168x128xf32>
    %8 = arith.maximumf %6, %7 : vector<168x128xf32>
    %c0_6 = arith.constant 0 : index
    %c0_7 = arith.constant 0 : index
    %9 = vector.load %arg4[%c0_6, %c0_7] : memref<168x128xf32, #tpu.memory_space<vmem>>, vector<168x128xf32>
    tpu.vector_store %arg4[%c0_6, %c0_7], %8 {strides = array<i32>} : memref<168x128xf32, #tpu.memory_space<vmem>>, vector<168x128xf32>,
    return
  }
  func.func @transform_0(%arg0: i32) -> (i32, i32) {
    %c0_i32 = arith.constant 0 : i32
    %c0_i32_0 = arith.constant 0 : i32
    return %arg0, %c0_i32 : i32, i32
  }
  func.func @transform_1(%arg0: i32) -> (i32, i32) {
    %c0_i32 = arith.constant 0 : i32
    %c0_i32_0 = arith.constant 0 : i32
    %c0_i32_1 = arith.constant 0 : i32
    return %c0_i32, %c0_i32_0 : i32, i32
  }
  func.func @transform_2(%arg0: i32) -> (i32, i32) {
    %c0_i32 = arith.constant 0 : i32
    %c0_i32_0 = arith.constant 0 : i32
    %c0_i32_1 = arith.constant 0 : i32
    return %c0_i32, %c0_i32_0 : i32, i32
  }
  func.func @transform_3(%arg0: i32) -> (i32, i32) {
    %c0_i32 = arith.constant 0 : i32
    %c0_i32_0 = arith.constant 0 : i32
    return %arg0, %c0_i32 : i32, i32
  }
}

module attributes {stable_mosaic.version = 11 : i64} {
  func.func @_gemm_bias_act_kernel(%arg0: i32, %arg1: memref<104x1152xf32, #tpu.memory_space<vmem>>, %arg2: memref<1152x128xbf16, #tpu.memory_space<vmem>>, %arg3: memref<1x128xf32, #tpu.memory_space<vmem>>, %arg4: memref<104x128xf32, #tpu.memory_space<vmem>>) attributes {dimension_semantics = [#tpu.dimension_semantics<parallel>], iteration_bounds = array<i64: 1>, scalar_prefetch = 0 : i64, scratch_operands = 0 : i64, tpu.core_type = #tpu.core_type<tc>, window_params = [{transform_indices = @transform_0, window_bounds = array<i64: 104, 1152>}, {pipeline_mode = #tpu.pipeline_mode<synchronous>, transform_indices = @transform_1, window_bounds = array<i64: 1152, 128>}, {pipeline_mode = #tpu.pipeline_mode<synchronous>, transform_indices = @transform_2, window_bounds = array<i64: 1, 128>}, {transform_indices = @transform_3, window_bounds = array<i64: 104, 128>}]} {
    %c0 = arith.constant 0 : index
    %c0_0 = arith.constant 0 : index
    %0 = vector.load %arg1[%c0, %c0_0] : memref<104x1152xf32, #tpu.memory_space<vmem>>, vector<104x1152xf32>
    %1 = arith.truncf %0 : vector<104x1152xf32> to vector<104x1152xbf16>
    %c0_1 = arith.constant 0 : index
    %c0_2 = arith.constant 0 : index
    %2 = vector.load %arg2[%c0_1, %c0_2] : memref<1152x128xbf16, #tpu.memory_space<vmem>>, vector<1152x128xbf16>
    %cst = arith.constant dense<0.000000e+00> : vector<104x128xf32>
    %3 = tpu.matmul %1, %2, %cst {dimension_numbers = #tpu.dot_dimension_numbers<[1], [0], [0], [1], [0, 0, 1, 1], [], []>} : vector<104x1152xbf16>, vector<1152x128xbf16>, vector<104x128xf32> -> vector<104x128xf32>
    %c0_3 = arith.constant 0 : index
    %c0_4 = arith.constant 0 : index
    %4 = vector.load %arg3[%c0_3, %c0_4] : memref<1x128xf32, #tpu.memory_space<vmem>>, vector<1x128xf32>
    %5 = vector.broadcast %4 : vector<1x128xf32> to vector<104x128xf32>
    %6 = arith.addf %3, %5 : vector<104x128xf32>
    %cst_5 = arith.constant 0.000000e+00 : f32
    %7 = vector.broadcast %cst_5 : f32 to vector<104x128xf32>
    %8 = arith.maximumf %6, %7 : vector<104x128xf32>
    %c0_6 = arith.constant 0 : index
    %c0_7 = arith.constant 0 : index
    %9 = vector.load %arg4[%c0_6, %c0_7] : memref<104x128xf32, #tpu.memory_space<vmem>>, vector<104x128xf32>
    tpu.vector_store %arg4[%c0_6, %c0_7], %8 {strides = array<i32>} : memref<104x128xf32, #tpu.memory_space<vmem>>, vector<104x128xf32>,
    return
  }
  func.func @transform_0(%arg0: i32) -> (i32, i32) {
    %c0_i32 = arith.constant 0 : i32
    %c0_i32_0 = arith.constant 0 : i32
    return %arg0, %c0_i32 : i32, i32
  }
  func.func @transform_1(%arg0: i32) -> (i32, i32) {
    %c0_i32 = arith.constant 0 : i32
    %c0_i32_0 = arith.constant 0 : i32
    %c0_i32_1 = arith.constant 0 : i32
    return %c0_i32, %c0_i32_0 : i32, i32
  }
  func.func @transform_2(%arg0: i32) -> (i32, i32) {
    %c0_i32 = arith.constant 0 : i32
    %c0_i32_0 = arith.constant 0 : i32
    %c0_i32_1 = arith.constant 0 : i32
    return %c0_i32, %c0_i32_0 : i32, i32
  }
  func.func @transform_3(%arg0: i32) -> (i32, i32) {
    %c0_i32 = arith.constant 0 : i32
    %c0_i32_0 = arith.constant 0 : i32
    return %arg0, %c0_i32 : i32, i32
  }
}

module attributes {stable_mosaic.version = 11 : i64} {
  func.func @_head_kernel(%arg0: i32, %arg1: memref<8x3136xf32, #tpu.memory_space<vmem>>, %arg2: memref<3136x512xbf16, #tpu.memory_space<vmem>>, %arg3: memref<1x512xf32, #tpu.memory_space<vmem>>, %arg4: memref<512x128xbf16, #tpu.memory_space<vmem>>, %arg5: memref<1x128xf32, #tpu.memory_space<vmem>>, %arg6: memref<8x128xf32, #tpu.memory_space<vmem>>) attributes {dimension_semantics = [#tpu.dimension_semantics<arbitrary>], iteration_bounds = array<i64: 1>, scalar_prefetch = 0 : i64, scratch_operands = 0 : i64, tpu.core_type = #tpu.core_type<tc>, window_params = [{pipeline_mode = #tpu.pipeline_mode<synchronous>, transform_indices = @transform_0, window_bounds = array<i64: 8, 3136>}, {pipeline_mode = #tpu.pipeline_mode<synchronous>, transform_indices = @transform_1, window_bounds = array<i64: 3136, 512>}, {pipeline_mode = #tpu.pipeline_mode<synchronous>, transform_indices = @transform_2, window_bounds = array<i64: 1, 512>}, {pipeline_mode = #tpu.pipeline_mode<synchronous>, transform_indices = @transform_3, window_bounds = array<i64: 512, 128>}, {pipeline_mode = #tpu.pipeline_mode<synchronous>, transform_indices = @transform_4, window_bounds = array<i64: 1, 128>}, {pipeline_mode = #tpu.pipeline_mode<synchronous>, transform_indices = @transform_5, window_bounds = array<i64: 8, 128>}]} {
    %c0 = arith.constant 0 : index
    %c0_0 = arith.constant 0 : index
    %0 = vector.load %arg1[%c0, %c0_0] : memref<8x3136xf32, #tpu.memory_space<vmem>>, vector<8x3136xf32>
    %1 = arith.truncf %0 : vector<8x3136xf32> to vector<8x3136xbf16>
    %c0_1 = arith.constant 0 : index
    %c0_2 = arith.constant 0 : index
    %2 = vector.load %arg2[%c0_1, %c0_2] : memref<3136x512xbf16, #tpu.memory_space<vmem>>, vector<3136x512xbf16>
    %cst = arith.constant dense<0.000000e+00> : vector<8x512xf32>
    %3 = tpu.matmul %1, %2, %cst {dimension_numbers = #tpu.dot_dimension_numbers<[1], [0], [0], [1], [0, 0, 1, 1], [], []>} : vector<8x3136xbf16>, vector<3136x512xbf16>, vector<8x512xf32> -> vector<8x512xf32>
    %c0_3 = arith.constant 0 : index
    %c0_4 = arith.constant 0 : index
    %4 = vector.load %arg3[%c0_3, %c0_4] : memref<1x512xf32, #tpu.memory_space<vmem>>, vector<1x512xf32>
    %5 = vector.broadcast %4 : vector<1x512xf32> to vector<8x512xf32>
    %6 = arith.addf %3, %5 : vector<8x512xf32>
    %cst_5 = arith.constant 0.000000e+00 : f32
    %7 = vector.broadcast %cst_5 : f32 to vector<8x512xf32>
    %8 = arith.maximumf %6, %7 : vector<8x512xf32>
    %9 = arith.truncf %8 : vector<8x512xf32> to vector<8x512xbf16>
    %c0_6 = arith.constant 0 : index
    %c0_7 = arith.constant 0 : index
    %10 = vector.load %arg4[%c0_6, %c0_7] : memref<512x128xbf16, #tpu.memory_space<vmem>>, vector<512x128xbf16>
    %cst_8 = arith.constant dense<0.000000e+00> : vector<8x128xf32>
    %11 = tpu.matmul %9, %10, %cst_8 {dimension_numbers = #tpu.dot_dimension_numbers<[1], [0], [0], [1], [0, 0, 1, 1], [], []>} : vector<8x512xbf16>, vector<512x128xbf16>, vector<8x128xf32> -> vector<8x128xf32>
    %c0_9 = arith.constant 0 : index
    %c0_10 = arith.constant 0 : index
    %12 = vector.load %arg5[%c0_9, %c0_10] : memref<1x128xf32, #tpu.memory_space<vmem>>, vector<1x128xf32>
    %13 = vector.broadcast %12 : vector<1x128xf32> to vector<8x128xf32>
    %14 = arith.addf %11, %13 : vector<8x128xf32>
    %c0_11 = arith.constant 0 : index
    %c0_12 = arith.constant 0 : index
    %15 = vector.load %arg6[%c0_11, %c0_12] : memref<8x128xf32, #tpu.memory_space<vmem>>, vector<8x128xf32>
    tpu.vector_store %arg6[%c0_11, %c0_12], %14 {strides = array<i32>} : memref<8x128xf32, #tpu.memory_space<vmem>>, vector<8x128xf32>,
    return
  }
  func.func @transform_0(%arg0: i32) -> (i32, i32) {
    %c0_i32 = arith.constant 0 : i32
    %c0_i32_0 = arith.constant 0 : i32
    %c0_i32_1 = arith.constant 0 : i32
    return %c0_i32, %c0_i32_0 : i32, i32
  }
  func.func @transform_1(%arg0: i32) -> (i32, i32) {
    %c0_i32 = arith.constant 0 : i32
    %c0_i32_0 = arith.constant 0 : i32
    %c0_i32_1 = arith.constant 0 : i32
    return %c0_i32, %c0_i32_0 : i32, i32
  }
  func.func @transform_2(%arg0: i32) -> (i32, i32) {
    %c0_i32 = arith.constant 0 : i32
    %c0_i32_0 = arith.constant 0 : i32
    %c0_i32_1 = arith.constant 0 : i32
    return %c0_i32, %c0_i32_0 : i32, i32
  }
  func.func @transform_3(%arg0: i32) -> (i32, i32) {
    %c0_i32 = arith.constant 0 : i32
    %c0_i32_0 = arith.constant 0 : i32
    %c0_i32_1 = arith.constant 0 : i32
    return %c0_i32, %c0_i32_0 : i32, i32
  }
  func.func @transform_4(%arg0: i32) -> (i32, i32) {
    %c0_i32 = arith.constant 0 : i32
    %c0_i32_0 = arith.constant 0 : i32
    %c0_i32_1 = arith.constant 0 : i32
    return %c0_i32, %c0_i32_0 : i32, i32
  }
  func.func @transform_5(%arg0: i32) -> (i32, i32) {
    %c0_i32 = arith.constant 0 : i32
    %c0_i32_0 = arith.constant 0 : i32
    %c0_i32_1 = arith.constant 0 : i32
    return %c0_i32, %c0_i32_0 : i32, i32
  }
}

</mosaic_0001>

<bundles_post_ra>
// kernel: dqn_forward.4
= control target key start
LH: loop header
LB: loop body
LE: loop exit
PB: predicated region body
PF: predicated region fallthrough
CT: control target
= control target key end

     0   :  { %s1094_s12 = smov 0   ;;  %s1460_s0 = inlined_call_operand.vmem [shape: f32[1024,256], index: 0, kind: input, shape index: {}]   ;;  %s1461_s1 = inlined_call_operand.vmem [shape: bf16[256,128], index: 1, kind: input, shape index: {}]   ;;  %s1462_s2 = inlined_call_operand.vmem [shape: f32[1,128], index: 2, kind: input, shape index: {}]   ;;  %s1463_s3 = inlined_call_operand.vmem [shape: f32[1024,128], index: 3, kind: output, shape index: {}]  }
   0x1 LB: > { %s978_s13 = sadd.s32 4294967295, %s1071_s12   ;;  %p982_p0 = scmp.ge.s32.totalorder %s1071_s12, 1  ;;  %s1071_s12 = sphi %s1094_s12, %s13_s12  }
   0x2   : > { %p139_p1 = scmp.lt.s32.totalorder %s1071_s12, 3 }
   0x4   : > { %p140_p2 = pnand %p982_p0, %p139_p1 }
   0x5   : > { %v1049_v0 = vld [vmem:[%s1461_s1] sm:$0xff] (!%p140_p2)   ;;  %v1073_v1 = vmov (!%p140_p2), 0   ;;  %s983_s16 = sshll.u32 (!%p140_p2), %s978_s13, 6  ;;  %v1050_v2 = vld [vmem:[%s1461_s1 + $0x8] sm:$0xff] (!%p140_p2)   ;;  %v1051_v3 = vld [vmem:[%s1461_s1 + $0x10] sm:$0xff] (!%p140_p2)  }
   0x6   : > { %143 = sbr.rel (%p140_p2) target bundleno = 409 (0x199), region = 32  ;;  %505 = vmatprep.subr.bf16.mxu0 (!%p140_p2), %v1073_v1  ;;  %1008 = vmatprep.subr.bf16.mxu1 (!%p140_p2), %v1073_v1  ;;  %p165_p3 = scmp.lt.s32.totalorder (!%p140_p2), %s983_s16, 127  ;;  %v1052_v4 = vld [vmem:[%s1461_s1 + $0x18] sm:$0xff] (!%p140_p2)   ;;  %v1053_v5 = vld [vmem:[%s1461_s1 + $0x20] sm:$0xff] (!%p140_p2)   ;;  %v1054_v11 = vld [vmem:[%s1461_s1 + $0x28] sm:$0xff] (!%p140_p2)  }
   0x7   : > { %506 = vmatpush1.bf16.msra.mxu0 (!%p140_p2), %v1049_v0  ;;  %1024 = vmatpush1.bf16.msra.mxu1 (!%p140_p2), %v1049_v0  ;;  %v1055_v13 = vld [vmem:[%s1461_s1 + $0x30] sm:$0xff] (!%p140_p2)   ;;  %v1056_v14 = vld [vmem:[%s1461_s1 + $0x38] sm:$0xff] (!%p140_p2)   ;;  %v1057_v15 = vld [vmem:[%s1461_s1 + $0x40] sm:$0xff] (!%p140_p2)  }
   0x8   : > { %507 = vmatprep.subr.bf16.mxu0 (!%p140_p2), %v1073_v1  ;;  %1009 = vmatprep.subr.bf16.mxu1 (!%p140_p2), %v1073_v1  ;;  %v1058_v16 = vld [vmem:[%s1461_s1 + $0x48] sm:$0xff] (!%p140_p2)   ;;  %v1059_v17 = vld [vmem:[%s1461_s1 + $0x50] sm:$0xff] (!%p140_p2)   ;;  %v1060_v18 = vld [vmem:[%s1461_s1 + $0x58] sm:$0xff] (!%p140_p2)  }
   0x9   : > { %v1061_v19 = vld [vmem:[%s1461_s1 + $0x60] sm:$0xff] (!%p140_p2)   ;;  %v1062_v20 = vld [vmem:[%s1461_s1 + $0x68] sm:$0xff] (!%p140_p2)   ;;  %v1063_v21 = vld [vmem:[%s1461_s1 + $0x70] sm:$0xff] (!%p140_p2)  }
   0xa   : > { %v1064_v22 = vld [vmem:[%s1461_s1 + $0x78] sm:$0xff] (!%p140_p2)  }
   0xb   : > { %508 = vmatpush1.bf16.msra.mxu0 (!%p140_p2), %v1050_v2  ;;  %1025 = vmatpush1.bf16.msra.mxu1 (!%p140_p2), %v1050_v2 }
   0xc   : > { %509 = vmatprep.subr.bf16.mxu0 (!%p140_p2), %v1073_v1  ;;  %1010 = vmatprep.subr.bf16.mxu1 (!%p140_p2), %v1073_v1 }
   0xd   : > { %s1465_s16 = smov (!%p165_p3, %s983_s16), 127 }
   0xe   : > { %s1007_s23 = sshll.u32 %s1465_s16, 4  ;;  %s987_s29 = sshll.u32 %s1465_s16, 3 }
   0xf   : > { %510 = vmatpush1.bf16.msra.mxu0 %v1051_v3  ;;  %1026 = vmatpush1.bf16.msra.mxu1 %v1051_v3  ;;  %s1128_s26 = scalar_lea.vmem %s1460_s0, %s1007_s23  ;;  %s1329_s4 = scalar_lea.vmem %s1463_s3, %s987_s29 }
  0x10   : > { %511 = vmatprep.subr.bf16.mxu0 %v1073_v1  ;;  %1011 = vmatprep.subr.bf16.mxu1 %v1073_v1  ;;  %v179_v6 = vld [vmem:[%s1128_s26 + $0x8] sm:$0xff]  ;;  %v181_v7 = vld [vmem:[%s1128_s26 + $0x18] sm:$0xff]  ;;  %v178_v23 = vld [vmem:[%s1128_s26] sm:$0xff] }
  0x11   : > { %v243_v8 = vld [vmem:[%s1128_s26 + $0x208] sm:$0xff]  ;;  %v307_v9 = vpack.c.bf16 %v181_v7, %v179_v6  ;;  %v245_v10 = vld [vmem:[%s1128_s26 + $0x218] sm:$0xff]  ;;  %v180_v24 = vld [vmem:[%s1128_s26 + $0x10] sm:$0xff] }
  0x12   : > { %v339_v12 = vpack.c.bf16 %v245_v10, %v243_v8  ;;  %v242_v25 = vld [vmem:[%s1128_s26 + $0x200] sm:$0xff]  ;;  %v244_v26 = vld [vmem:[%s1128_s26 + $0x210] sm:$0xff]  ;;  %v183_v27 = vld [vmem:[%s1128_s26 + $0x28] sm:$0xff]  ;;  %v306_v31 = vpack.c.bf16 %v180_v24, %v178_v23 }
  0x13   : > { %512 = vmatpush1.bf16.msra.mxu0 %v1052_v4  ;;  %1027 = vmatpush1.bf16.msra.mxu1 %v1052_v4  ;;  %v185_v28 = vld [vmem:[%s1128_s26 + $0x38] sm:$0xff]  ;;  %v247_v29 = vld [vmem:[%s1128_s26 + $0x228] sm:$0xff]  ;;  %v338_v32 = vpack.c.bf16 %v244_v26, %v242_v25  ;;  %v182_v35 = vld [vmem:[%s1128_s26 + $0x20] sm:$0xff] }
  0x14   : > { %513 = vmatprep.subr.bf16.mxu0 %v1073_v1  ;;  %1012 = vmatprep.subr.bf16.mxu1 %v1073_v1  ;;  %v249_v30 = vld [vmem:[%s1128_s26 + $0x238] sm:$0xff]  ;;  %v309_v33 = vpack.c.bf16 %v185_v28, %v183_v27  ;;  %v184_v36 = vld [vmem:[%s1128_s26 + $0x30] sm:$0xff]  ;;  %v246_v37 = vld [vmem:[%s1128_s26 + $0x220] sm:$0xff] }
  0x15   : > { %537 = vmatprep.mubr.bf16.mxu0 %v307_v9  ;;  %665 = vmatprep.mubr.bf16.mxu1 %v339_v12  ;;  %v341_v34 = vpack.c.bf16 %v249_v30, %v247_v29  ;;  %v248_v38 = vld [vmem:[%s1128_s26 + $0x230] sm:$0xff]  ;;  %v187_v39 = vld [vmem:[%s1128_s26 + $0x48] sm:$0xff]  ;;  %v189_v40 = vld [vmem:[%s1128_s26 + $0x58] sm:$0xff]  ;;  %v308_v43 = vpack.c.bf16 %v184_v36, %v182_v35 }
  0x16   : > { %v251_v41 = vld [vmem:[%s1128_s26 + $0x248] sm:$0xff]  ;;  %v253_v42 = vld [vmem:[%s1128_s26 + $0x258] sm:$0xff]  ;;  %v340_v44 = vpack.c.bf16 %v248_v38, %v246_v37  ;;  %v311_v45 = vpack.c.bf16 %v189_v40, %v187_v39  ;;  %v186_v47 = vld [vmem:[%s1128_s26 + $0x40] sm:$0xff] }
  0x17   : > { %514 = vmatpush1.bf16.msra.mxu0 %v1053_v5  ;;  %1028 = vmatpush1.bf16.msra.mxu1 %v1053_v5  ;;  %v343_v46 = vpack.c.bf16 %v253_v42, %v251_v41  ;;  %v188_v48 = vld [vmem:[%s1128_s26 + $0x50] sm:$0xff]  ;;  %v250_v49 = vld [vmem:[%s1128_s26 + $0x240] sm:$0xff]  ;;  %v191_v51 = vld [vmem:[%s1128_s26 + $0x68] sm:$0xff] }
  0x18   : > { %515 = vmatprep.subr.bf16.mxu0 %v1073_v1  ;;  %1013 = vmatprep.subr.bf16.mxu1 %v1073_v1  ;;  %v252_v50 = vld [vmem:[%s1128_s26 + $0x250] sm:$0xff]  ;;  %v193_v52 = vld [vmem:[%s1128_s26 + $0x78] sm:$0xff]  ;;  %v255_v53 = vld [vmem:[%s1128_s26 + $0x268] sm:$0xff]  ;;  %v310_v55 = vpack.c.bf16 %v188_v48, %v186_v47 }
  0x19   : > { %v257_v54 = vld [vmem:[%s1128_s26 + $0x278] sm:$0xff]  ;;  %v342_v56 = vpack.c.bf16 %v252_v50, %v250_v49  ;;  %v313_v57 = vpack.c.bf16 %v193_v52, %v191_v51  ;;  %v190_v59 = vld [vmem:[%s1128_s26 + $0x60] sm:$0xff]  ;;  %v192_v60 = vld [vmem:[%s1128_s26 + $0x70] sm:$0xff] }
  0x1a   : > { %v345_v58 = vpack.c.bf16 %v257_v54, %v255_v53  ;;  %v254_v61 = vld [vmem:[%s1128_s26 + $0x260] sm:$0xff]  ;;  %v256_v62 = vld [vmem:[%s1128_s26 + $0x270] sm:$0xff]  ;;  %v195_v63 = vld [vmem:[%s1128_s26 + $0x88] sm:$0xff]  ;;  %v312_v3 = vpack.c.bf16 %v192_v60, %v190_v59 }
  0x1b   : > { %516 = vmatpush1.bf16.msra.mxu0 %v1054_v11  ;;  %1029 = vmatpush1.bf16.msra.mxu1 %v1054_v11  ;;  %v197_v0 = vld [vmem:[%s1128_s26 + $0x98] sm:$0xff]  ;;  %v344_v4 = vpack.c.bf16 %v256_v62, %v254_v61  ;;  %v194_v7 = vld [vmem:[%s1128_s26 + $0x80] sm:$0xff]  ;;  %v196_v8 = vld [vmem:[%s1128_s26 + $0x90] sm:$0xff] }
  0x1c   : > { %517 = vmatprep.subr.bf16.mxu0 %v1073_v1  ;;  %1014 = vmatprep.subr.bf16.mxu1 %v1073_v1  ;;  %v261_v2 = vld [vmem:[%s1128_s26 + $0x298] sm:$0xff]  ;;  %v315_v5 = vpack.c.bf16 %v197_v0, %v195_v63  ;;  %v258_v9 = vld [vmem:[%s1128_s26 + $0x280] sm:$0xff]  ;;  %v260_v10 = vld [vmem:[%s1128_s26 + $0x290] sm:$0xff] }
  0x1d   : > { %v199_v11 = vld [vmem:[%s1128_s26 + $0xa8] sm:$0xff]  ;;  %v201_v12 = vld [vmem:[%s1128_s26 + $0xb8] sm:$0xff] }
  0x1e   : > { %v203_v23 = vld [vmem:[%s1128_s26 + $0xc8] sm:$0xff]  ;;  %v205_v24 = vld [vmem:[%s1128_s26 + $0xd8] sm:$0xff] }
  0x1f   : > { %518 = vmatpush1.bf16.msra.mxu0 %v1055_v13  ;;  %1030 = vmatpush1.bf16.msra.mxu1 %v1055_v13  ;;  %v263_v13 = vld [vmem:[%s1128_s26 + $0x2a8] sm:$0xff]  ;;  %v269_v26 = vld [vmem:[%s1128_s26 + $0x2d8] sm:$0xff]  ;;  %v319_v29 = vpack.c.bf16 %v205_v24, %v203_v23 }
  0x20   : > { %519 = vmatprep.subr.bf16.mxu0 %v1073_v1  ;;  %1015 = vmatprep.subr.bf16.mxu1 %v1073_v1  ;;  %v267_v25 = vld [vmem:[%s1128_s26 + $0x2c8] sm:$0xff]  ;;  %v209_v36 = vld [vmem:[%s1128_s26 + $0xf8] sm:$0xff] }
  0x21   : > { %v351_v30 = vpack.c.bf16 %v269_v26, %v267_v25  ;;  %v207_v35 = vld [vmem:[%s1128_s26 + $0xe8] sm:$0xff]  ;;  %v273_v38 = vld [vmem:[%s1128_s26 + $0x2f8] sm:$0xff] }
  0x22   : > { %v271_v37 = vld [vmem:[%s1128_s26 + $0x2e8] sm:$0xff]  ;;  %v321_v41 = vpack.c.bf16 %v209_v36, %v207_v35  ;;  %v213_v48 = vld [vmem:[%s1128_s26 + $0x118] sm:$0xff] }
  0x23   : > { %520 = vmatpush1.bf16.msra.mxu0 %v1056_v14  ;;  %1031 = vmatpush1.bf16.msra.mxu1 %v1056_v14  ;;  %v265_v14 = vld [vmem:[%s1128_s26 + $0x2b8] sm:$0xff]  ;;  %v353_v42 = vpack.c.bf16 %v273_v38, %v271_v37  ;;  %v211_v47 = vld [vmem:[%s1128_s26 + $0x108] sm:$0xff] }
  0x24   : > { %521 = vmatprep.subr.bf16.mxu0 %v1073_v1  ;;  %1016 = vmatprep.subr.bf16.mxu1 %v1073_v1  ;;  %v275_v49 = vld [vmem:[%s1128_s26 + $0x308] sm:$0xff]  ;;  %v277_v50 = vld [vmem:[%s1128_s26 + $0x318] sm:$0xff]  ;;  %v323_v53 = vpack.c.bf16 %v213_v48, %v211_v47 }
  0x25   : > { %v355_v54 = vpack.c.bf16 %v277_v50, %v275_v49  ;;  %v215_v59 = vld [vmem:[%s1128_s26 + $0x128] sm:$0xff]  ;;  %v217_v60 = vld [vmem:[%s1128_s26 + $0x138] sm:$0xff] }
  0x26   : > { %v279_v61 = vld [vmem:[%s1128_s26 + $0x328] sm:$0xff]  ;;  %v281_v62 = vld [vmem:[%s1128_s26 + $0x338] sm:$0xff] }
  0x27   : > { %522 = vmatpush1.bf16.msra.mxu0 %v1057_v15  ;;  %1032 = vmatpush1.bf16.msra.mxu1 %v1057_v15  ;;  %v314_v15 = vpack.c.bf16 %v196_v8, %v194_v7  ;;  %v219_v7 = vld [vmem:[%s1128_s26 + $0x148] sm:$0xff]  ;;  %v221_v8 = vld [vmem:[%s1128_s26 + $0x158] sm:$0xff] }
  0x28   : > { %523 = vmatprep.subr.bf16.mxu0 %v1073_v1  ;;  %1017 = vmatprep.subr.bf16.mxu1 %v1073_v1 }
  0x2b   : > { %524 = vmatpush1.bf16.msra.mxu0 %v1058_v16  ;;  %1033 = vmatpush1.bf16.msra.mxu1 %v1058_v16  ;;  %v346_v16 = vpack.c.bf16 %v260_v10, %v258_v9  ;;  %v283_v9 = vld [vmem:[%s1128_s26 + $0x348] sm:$0xff]  ;;  %v285_v10 = vld [vmem:[%s1128_s26 + $0x358] sm:$0xff] }
  0x2c   : > { %525 = vmatprep.subr.bf16.mxu0 %v1073_v1  ;;  %1018 = vmatprep.subr.bf16.mxu1 %v1073_v1 }
  0x2f   : > { %526 = vmatpush1.bf16.msra.mxu0 %v1059_v17  ;;  %1034 = vmatpush1.bf16.msra.mxu1 %v1059_v17  ;;  %v317_v17 = vpack.c.bf16 %v201_v12, %v199_v11 }
  0x30   : > { %527 = vmatprep.subr.bf16.mxu0 %v1073_v1  ;;  %1019 = vmatprep.subr.bf16.mxu1 %v1073_v1 }
  0x33   : > { %528 = vmatpush1.bf16.msra.mxu0 %v1060_v18  ;;  %1035 = vmatpush1.bf16.msra.mxu1 %v1060_v18  ;;  %v349_v18 = vpack.c.bf16 %v265_v14, %v263_v13  ;;  %v327_v13 = vpack.c.bf16 %v221_v8, %v219_v7  ;;  %v359_v14 = vpack.c.bf16 %v285_v10, %v283_v9 }
  0x34   : > { %529 = vmatprep.subr.bf16.mxu0 %v1073_v1  ;;  %1020 = vmatprep.subr.bf16.mxu1 %v1073_v1 }
  0x37   : > { %530 = vmatpush1.bf16.msra.mxu0 %v1061_v19  ;;  %1036 = vmatpush1.bf16.msra.mxu1 %v1061_v19  ;;  %v198_v19 = vld [vmem:[%s1128_s26 + $0xa0] sm:$0xff] }
  0x38   : > { %531 = vmatprep.subr.bf16.mxu0 %v1073_v1  ;;  %1021 = vmatprep.subr.bf16.mxu1 %v1073_v1 }
  0x3b   : > { %532 = vmatpush1.bf16.msra.mxu0 %v1062_v20  ;;  %1037 = vmatpush1.bf16.msra.mxu1 %v1062_v20  ;;  %v200_v20 = vld [vmem:[%s1128_s26 + $0xb0] sm:$0xff] }
  0x3c   : > { %533 = vmatprep.subr.bf16.mxu0 %v1073_v1  ;;  %1022 = vmatprep.subr.bf16.mxu1 %v1073_v1  ;;  %v316_v27 = vpack.c.bf16 %v200_v20, %v198_v19  ;;  %v223_v19 = vld [vmem:[%s1128_s26 + $0x168] sm:$0xff]  ;;  %v225_v20 = vld [vmem:[%s1128_s26 + $0x178] sm:$0xff] }
  0x3d   : > { %v329_v25 = vpack.c.bf16 %v225_v20, %v223_v19 }
  0x3f   : > { %534 = vmatpush1.bf16.msra.mxu0 %v1063_v21  ;;  %1038 = vmatpush1.bf16.msra.mxu1 %v1063_v21  ;;  %v262_v21 = vld [vmem:[%s1128_s26 + $0x2a0] sm:$0xff] }
  0x40   : > { %535 = vmatprep.subr.bf16.mxu0 %v1073_v1  ;;  %1023 = vmatprep.subr.bf16.mxu1 %v1073_v1  ;;  %v259_v1 = vld [vmem:[%s1128_s26 + $0x288] sm:$0xff] }
  0x41   : > { %v347_v6 = vpack.c.bf16 %v261_v2, %v259_v1  ;;  %v325_v1 = vpack.c.bf16 %v217_v60, %v215_v59  ;;  %v357_v2 = vpack.c.bf16 %v281_v62, %v279_v61 }
  0x43   : > { %536 = vmatpush1.bf16.msra.mxu0 %v1064_v22  ;;  %1039 = vmatpush1.bf16.msra.mxu1 %v1064_v22  ;;  %v264_v22 = vld [vmem:[%s1128_s26 + $0x2b0] sm:$0xff] }
  0x44   : > { %v348_v28 = vpack.c.bf16 %v264_v22, %v262_v21  ;;  %v287_v21 = vld [vmem:[%s1128_s26 + $0x368] sm:$0xff]  ;;  %v289_v22 = vld [vmem:[%s1128_s26 + $0x378] sm:$0xff] }
  0x45   : > { %v361_v26 = vpack.c.bf16 %v289_v22, %v287_v21 }
  0x46   : > { %538 = vmatmul.mubr.bf16.vlgmr.msra.gmra.mrb[0].mxu0 %v306_v31  ;;  %666 = vmatmul.mubr.bf16.vlgmr.msra.gmra.mrb[0].mxu1 %v338_v32  ;;  %v202_v31 = vld [vmem:[%s1128_s26 + $0xc0] sm:$0xff]  ;;  %v204_v32 = vld [vmem:[%s1128_s26 + $0xd0] sm:$0xff] }
  0x47   : > { %545 = vmatprep.mubr.bf16.mxu0 %v309_v33  ;;  %673 = vmatprep.mubr.bf16.mxu1 %v341_v34  ;;  %v266_v33 = vld [vmem:[%s1128_s26 + $0x2c0] sm:$0xff]  ;;  %v268_v34 = vld [vmem:[%s1128_s26 + $0x2d0] sm:$0xff]  ;;  %v318_v39 = vpack.c.bf16 %v204_v32, %v202_v31  ;;  %v227_v31 = vld [vmem:[%s1128_s26 + $0x188] sm:$0xff] }
  0x48   : > { %v350_v40 = vpack.c.bf16 %v268_v34, %v266_v33  ;;  %v229_v32 = vld [vmem:[%s1128_s26 + $0x198] sm:$0xff]  ;;  %v291_v33 = vld [vmem:[%s1128_s26 + $0x388] sm:$0xff] }
  0x49   : > { %v293_v34 = vld [vmem:[%s1128_s26 + $0x398] sm:$0xff]  ;;  %v331_v37 = vpack.c.bf16 %v229_v32, %v227_v31 }
  0x4a   : > { %v363_v38 = vpack.c.bf16 %v293_v34, %v291_v33 }
  0x4e   : > { %546 = vmatmul.mubr.bf16.gmra.mrb[4].mxu0 %v308_v43  ;;  %674 = vmatmul.mubr.bf16.gmra.mrb[4].mxu1 %v340_v44  ;;  %v206_v43 = vld [vmem:[%s1128_s26 + $0xe0] sm:$0xff]  ;;  %v208_v44 = vld [vmem:[%s1128_s26 + $0xf0] sm:$0xff] }
  0x4f   : > { %553 = vmatprep.mubr.bf16.mxu0 %v311_v45  ;;  %681 = vmatprep.mubr.bf16.mxu1 %v343_v46  ;;  %v270_v45 = vld [vmem:[%s1128_s26 + $0x2e0] sm:$0xff]  ;;  %v272_v46 = vld [vmem:[%s1128_s26 + $0x2f0] sm:$0xff]  ;;  %v320_v51 = vpack.c.bf16 %v208_v44, %v206_v43  ;;  %v231_v43 = vld [vmem:[%s1128_s26 + $0x1a8] sm:$0xff] }
  0x50   : > { %v352_v52 = vpack.c.bf16 %v272_v46, %v270_v45  ;;  %v233_v44 = vld [vmem:[%s1128_s26 + $0x1b8] sm:$0xff]  ;;  %v295_v45 = vld [vmem:[%s1128_s26 + $0x3a8] sm:$0xff] }
  0x51   : > { %v297_v46 = vld [vmem:[%s1128_s26 + $0x3b8] sm:$0xff]  ;;  %v333_v49 = vpack.c.bf16 %v233_v44, %v231_v43 }
  0x52   : > { %v365_v50 = vpack.c.bf16 %v297_v46, %v295_v45 }
  0x56   : > { %554 = vmatmul.mubr.bf16.gmra.mrb[8].mxu0 %v310_v55  ;;  %682 = vmatmul.mubr.bf16.gmra.mrb[8].mxu1 %v342_v56  ;;  %v210_v55 = vld [vmem:[%s1128_s26 + $0x100] sm:$0xff]  ;;  %v212_v56 = vld [vmem:[%s1128_s26 + $0x110] sm:$0xff] }
  0x57   : > { %561 = vmatprep.mubr.bf16.mxu0 %v313_v57  ;;  %689 = vmatprep.mubr.bf16.mxu1 %v345_v58  ;;  %v274_v57 = vld [vmem:[%s1128_s26 + $0x300] sm:$0xff]  ;;  %v276_v58 = vld [vmem:[%s1128_s26 + $0x310] sm:$0xff]  ;;  %v322_v63 = vpack.c.bf16 %v212_v56, %v210_v55  ;;  %v235_v55 = vld [vmem:[%s1128_s26 + $0x1c8] sm:$0xff] }
  0x58   : > { %v354_v0 = vpack.c.bf16 %v276_v58, %v274_v57  ;;  %v237_v56 = vld [vmem:[%s1128_s26 + $0x1d8] sm:$0xff]  ;;  %v299_v57 = vld [vmem:[%s1128_s26 + $0x3c8] sm:$0xff] }
  0x59   : > { %v301_v58 = vld [vmem:[%s1128_s26 + $0x3d8] sm:$0xff]  ;;  %v335_v61 = vpack.c.bf16 %v237_v56, %v235_v55 }
  0x5a   : > { %v367_v62 = vpack.c.bf16 %v301_v58, %v299_v57 }
  0x5e   : > { %562 = vmatmul.mubr.bf16.gmra.mrb[12].mxu0 %v312_v3  ;;  %690 = vmatmul.mubr.bf16.gmra.mrb[12].mxu1 %v344_v4  ;;  %v214_v3 = vld [vmem:[%s1128_s26 + $0x120] sm:$0xff]  ;;  %v216_v4 = vld [vmem:[%s1128_s26 + $0x130] sm:$0xff] }
  0x5f   : > { %569 = vmatprep.mubr.bf16.mxu0 %v315_v5  ;;  %697 = vmatprep.mubr.bf16.mxu1 %v347_v6  ;;  %v278_v5 = vld [vmem:[%s1128_s26 + $0x320] sm:$0xff]  ;;  %v280_v6 = vld [vmem:[%s1128_s26 + $0x330] sm:$0xff]  ;;  %v324_v11 = vpack.c.bf16 %v216_v4, %v214_v3  ;;  %v239_v3 = vld [vmem:[%s1128_s26 + $0x1e8] sm:$0xff] }
  0x60   : > { %v356_v12 = vpack.c.bf16 %v280_v6, %v278_v5  ;;  %v241_v4 = vld [vmem:[%s1128_s26 + $0x1f8] sm:$0xff]  ;;  %v303_v5 = vld [vmem:[%s1128_s26 + $0x3e8] sm:$0xff] }
  0x61   : > { %v305_v6 = vld [vmem:[%s1128_s26 + $0x3f8] sm:$0xff]  ;;  %v337_v9 = vpack.c.bf16 %v241_v4, %v239_v3 }
  0x62   : > { %v369_v10 = vpack.c.bf16 %v305_v6, %v303_v5 }
  0x66   : > { %570 = vmatmul.mubr.bf16.gmra.mrb[16].mxu0 %v314_v15  ;;  %698 = vmatmul.mubr.bf16.gmra.mrb[16].mxu1 %v346_v16  ;;  %v218_v15 = vld [vmem:[%s1128_s26 + $0x140] sm:$0xff]  ;;  %v220_v16 = vld [vmem:[%s1128_s26 + $0x150] sm:$0xff] }
  0x67   : > { %577 = vmatprep.mubr.bf16.mxu0 %v317_v17  ;;  %705 = vmatprep.mubr.bf16.mxu1 %v349_v18  ;;  %v282_v17 = vld [vmem:[%s1128_s26 + $0x340] sm:$0xff]  ;;  %v284_v18 = vld [vmem:[%s1128_s26 + $0x350] sm:$0xff]  ;;  %v326_v23 = vpack.c.bf16 %v220_v16, %v218_v15 }
  0x68   : > { %v358_v24 = vpack.c.bf16 %v284_v18, %v282_v17  ;;  %v1321_v17 = vld [vmem:[%s1462_s2] ss:$0 sm:$0xff] }
  0x6e   : > { %578 = vmatmul.mubr.bf16.gmra.mrb[20].mxu0 %v316_v27  ;;  %706 = vmatmul.mubr.bf16.gmra.mrb[20].mxu1 %v348_v28  ;;  %v222_v27 = vld [vmem:[%s1128_s26 + $0x160] sm:$0xff]  ;;  %v224_v28 = vld [vmem:[%s1128_s26 + $0x170] sm:$0xff] }
  0x6f   : > { %585 = vmatprep.mubr.bf16.mxu0 %v319_v29  ;;  %713 = vmatprep.mubr.bf16.mxu1 %v351_v30  ;;  %v286_v29 = vld [vmem:[%s1128_s26 + $0x360] sm:$0xff]  ;;  %v288_v30 = vld [vmem:[%s1128_s26 + $0x370] sm:$0xff]  ;;  %v328_v35 = vpack.c.bf16 %v224_v28, %v222_v27 }
  0x70   : > { %v360_v36 = vpack.c.bf16 %v288_v30, %v286_v29 }
  0x76   : > { %586 = vmatmul.mubr.bf16.gmra.mrb[24].mxu0 %v318_v39  ;;  %714 = vmatmul.mubr.bf16.gmra.mrb[24].mxu1 %v350_v40  ;;  %v226_v39 = vld [vmem:[%s1128_s26 + $0x180] sm:$0xff]  ;;  %v228_v40 = vld [vmem:[%s1128_s26 + $0x190] sm:$0xff] }
  0x77   : > { %593 = vmatprep.mubr.bf16.mxu0 %v321_v41  ;;  %721 = vmatprep.mubr.bf16.mxu1 %v353_v42  ;;  %v290_v41 = vld [vmem:[%s1128_s26 + $0x380] sm:$0xff]  ;;  %v292_v42 = vld [vmem:[%s1128_s26 + $0x390] sm:$0xff]  ;;  %v330_v47 = vpack.c.bf16 %v228_v40, %v226_v39 }
  0x78   : > { %v362_v48 = vpack.c.bf16 %v292_v42, %v290_v41 }
  0x7e   : > { %594 = vmatmul.mubr.bf16.gmra.mrb[28].mxu0 %v320_v51  ;;  %722 = vmatmul.mubr.bf16.gmra.mrb[28].mxu1 %v352_v52  ;;  %v230_v51 = vld [vmem:[%s1128_s26 + $0x1a0] sm:$0xff]  ;;  %v232_v52 = vld [vmem:[%s1128_s26 + $0x1b0] sm:$0xff] }
  0x7f   : > { %601 = vmatprep.mubr.bf16.mxu0 %v323_v53  ;;  %729 = vmatprep.mubr.bf16.mxu1 %v355_v54  ;;  %v294_v53 = vld [vmem:[%s1128_s26 + $0x3a0] sm:$0xff]  ;;  %v296_v54 = vld [vmem:[%s1128_s26 + $0x3b0] sm:$0xff]  ;;  %v332_v59 = vpack.c.bf16 %v232_v52, %v230_v51 }
  0x80   : > { %v364_v60 = vpack.c.bf16 %v296_v54, %v294_v53 }
  0x86   : > { %602 = vmatmul.mubr.bf16.gmra.mrb[32].mxu0 %v322_v63  ;;  %730 = vmatmul.mubr.bf16.gmra.mrb[32].mxu1 %v354_v0  ;;  %v234_v63 = vld [vmem:[%s1128_s26 + $0x1c0] sm:$0xff]  ;;  %v236_v0 = vld [vmem:[%s1128_s26 + $0x1d0] sm:$0xff] }
  0x87   : > { %609 = vmatprep.mubr.bf16.mxu0 %v325_v1  ;;  %737 = vmatprep.mubr.bf16.mxu1 %v357_v2  ;;  %v298_v1 = vld [vmem:[%s1128_s26 + $0x3c0] sm:$0xff]  ;;  %v300_v2 = vld [vmem:[%s1128_s26 + $0x3d0] sm:$0xff]  ;;  %v334_v7 = vpack.c.bf16 %v236_v0, %v234_v63 }
  0x88   : > { %v366_v8 = vpack.c.bf16 %v300_v2, %v298_v1 }
  0x8e   : > { %610 = vmatmul.mubr.bf16.gmra.mrb[36].mxu0 %v324_v11  ;;  %738 = vmatmul.mubr.bf16.gmra.mrb[36].mxu1 %v356_v12  ;;  %v238_v11 = vld [vmem:[%s1128_s26 + $0x1e0] sm:$0xff]  ;;  %v240_v12 = vld [vmem:[%s1128_s26 + $0x1f0] sm:$0xff] }
  0x8f   : > { %617 = vmatprep.mubr.bf16.mxu0 %v327_v13  ;;  %745 = vmatprep.mubr.bf16.mxu1 %v359_v14  ;;  %v302_v13 = vld [vmem:[%s1128_s26 + $0x3e0] sm:$0xff]  ;;  %v304_v14 = vld [vmem:[%s1128_s26 + $0x3f0] sm:$0xff]  ;;  %v336_v15 = vpack.c.bf16 %v240_v12, %v238_v11 }
  0x90   : > { %v368_v16 = vpack.c.bf16 %v304_v14, %v302_v13 }
  0x96   : > { %618 = vmatmul.mubr.bf16.gmra.mrb[40].mxu0 %v326_v23  ;;  %746 = vmatmul.mubr.bf16.gmra.mrb[40].mxu1 %v358_v24 }
  0x97   : > { %625 = vmatprep.mubr.bf16.mxu0 %v329_v25  ;;  %753 = vmatprep.mubr.bf16.mxu1 %v361_v26 }
  0x9e   : > { %626 = vmatmul.mubr.bf16.gmra.mrb[44].mxu0 %v328_v35  ;;  %754 = vmatmul.mubr.bf16.gmra.mrb[44].mxu1 %v360_v36 }
  0x9f   : > { %633 = vmatprep.mubr.bf16.mxu0 %v331_v37  ;;  %761 = vmatprep.mubr.bf16.mxu1 %v363_v38 }
  0xa6   : > { %634 = vmatmul.mubr.bf16.gmra.mrb[48].mxu0 %v330_v47  ;;  %762 = vmatmul.mubr.bf16.gmra.mrb[48].mxu1 %v362_v48 }
  0xa7   : > { %641 = vmatprep.mubr.bf16.mxu0 %v333_v49  ;;  %769 = vmatprep.mubr.bf16.mxu1 %v365_v50 }
  0xae   : > { %642 = vmatmul.mubr.bf16.gmra.mrb[52].mxu0 %v332_v59  ;;  %770 = vmatmul.mubr.bf16.gmra.mrb[52].mxu1 %v364_v60 }
  0xaf   : > { %649 = vmatprep.mubr.bf16.mxu0 %v335_v61  ;;  %777 = vmatprep.mubr.bf16.mxu1 %v367_v62 }
  0xb6   : > { %650 = vmatmul.mubr.bf16.gmra.mrb[56].mxu0 %v334_v7  ;;  %778 = vmatmul.mubr.bf16.gmra.mrb[56].mxu1 %v366_v8 }
  0xb7   : > { %657 = vmatprep.mubr.bf16.mxu0 %v337_v9  ;;  %785 = vmatprep.mubr.bf16.mxu1 %v369_v10 }
  0xbe   : > { %658 = vmatmul.mubr.bf16.gmra.mrb[60].mxu0 %v336_v15  ;;  %786 = vmatmul.mubr.bf16.gmra.mrb[60].mxu1 %v368_v16 }
 0x119   : > { %v539_v18 = vpop.f32.mrb[0].mxu0  ;;  %v667_v19 = vpop.f32.mrb[0].mxu1 }
 0x11a   : > { %v540_v20 = vadd.f32 %v1321_v17, %v539_v18  ;;  %v668_v21 = vadd.f32 %v1321_v17, %v667_v19  ;;  %v541_v22 = vpop.f32.mrb[1].mxu0  ;;  %v669_v23 = vpop.f32.mrb[1].mxu1 }
 0x11b   : > { %v542_v24 = vpop.f32.mrb[2].mxu0  ;;  %v670_v25 = vpop.f32.mrb[2].mxu1 }
 0x11c   : > { %v794_v26 = vmax.f32 %v540_v20, 0.0  ;;  %v826_v27 = vmax.f32 %v668_v21, 0.0  ;;  %v543_v28 = vadd.f32 %v1321_v17, %v542_v24  ;;  %v671_v29 = vadd.f32 %v1321_v17, %v670_v25  ;;  %v544_v30 = vpop.f32.mrb[3].mxu0  ;;  %v672_v31 = vpop.f32.mrb[3].mxu1 }
 0x11e   : > { %858 = vst [vmem:[%s1329_s4] sm:$0xff] %v794_v26  ;;  %890 = vst [vmem:[%s1329_s4 + $0x100] sm:$0xff] %v826_v27  ;;  %v795_v32 = vmax.f32 %v543_v28, 0.0  ;;  %v827_v33 = vmax.f32 %v671_v29, 0.0 }
 0x120   : > { %859 = vst [vmem:[%s1329_s4 + $0x8] sm:$0xff] %v795_v32  ;;  %891 = vst [vmem:[%s1329_s4 + $0x108] sm:$0xff] %v827_v33 }
 0x121   : > { %v547_v34 = vpop.f32.mrb[4].mxu0  ;;  %v675_v35 = vpop.f32.mrb[4].mxu1 }
 0x122   : > { %v548_v36 = vadd.f32 %v1321_v17, %v547_v34  ;;  %v676_v37 = vadd.f32 %v1321_v17, %v675_v35  ;;  %v549_v38 = vpop.f32.mrb[5].mxu0  ;;  %v677_v39 = vpop.f32.mrb[5].mxu1 }
 0x123   : > { %v550_v40 = vpop.f32.mrb[6].mxu0  ;;  %v678_v41 = vpop.f32.mrb[6].mxu1 }
 0x124   : > { %v796_v42 = vmax.f32 %v548_v36, 0.0  ;;  %v828_v43 = vmax.f32 %v676_v37, 0.0  ;;  %v551_v44 = vadd.f32 %v1321_v17, %v550_v40  ;;  %v679_v45 = vadd.f32 %v1321_v17, %v678_v41  ;;  %v552_v46 = vpop.f32.mrb[7].mxu0  ;;  %v680_v47 = vpop.f32.mrb[7].mxu1 }
 0x126   : > { %860 = vst [vmem:[%s1329_s4 + $0x10] sm:$0xff] %v796_v42  ;;  %892 = vst [vmem:[%s1329_s4 + $0x110] sm:$0xff] %v828_v43  ;;  %v797_v48 = vmax.f32 %v551_v44, 0.0  ;;  %v829_v49 = vmax.f32 %v679_v45, 0.0 }
 0x128   : > { %861 = vst [vmem:[%s1329_s4 + $0x18] sm:$0xff] %v797_v48  ;;  %893 = vst [vmem:[%s1329_s4 + $0x118] sm:$0xff] %v829_v49 }
 0x129   : > { %v555_v50 = vpop.f32.mrb[8].mxu0  ;;  %v683_v51 = vpop.f32.mrb[8].mxu1 }
 0x12a   : > { %v556_v52 = vadd.f32 %v1321_v17, %v555_v50  ;;  %v684_v53 = vadd.f32 %v1321_v17, %v683_v51  ;;  %v557_v54 = vpop.f32.mrb[9].mxu0  ;;  %v685_v55 = vpop.f32.mrb[9].mxu1 }
 0x12b   : > { %v558_v56 = vpop.f32.mrb[10].mxu0  ;;  %v686_v57 = vpop.f32.mrb[10].mxu1 }
 0x12c   : > { %v798_v58 = vmax.f32 %v556_v52, 0.0  ;;  %v830_v59 = vmax.f32 %v684_v53, 0.0  ;;  %v559_v60 = vadd.f32 %v1321_v17, %v558_v56  ;;  %v687_v61 = vadd.f32 %v1321_v17, %v686_v57  ;;  %v560_v62 = vpop.f32.mrb[11].mxu0  ;;  %v688_v63 = vpop.f32.mrb[11].mxu1 }
 0x12e   : > { %862 = vst [vmem:[%s1329_s4 + $0x20] sm:$0xff] %v798_v58  ;;  %894 = vst [vmem:[%s1329_s4 + $0x120] sm:$0xff] %v830_v59  ;;  %v799_v0 = vmax.f32 %v559_v60, 0.0  ;;  %v831_v1 = vmax.f32 %v687_v61, 0.0 }
 0x130   : > { %863 = vst [vmem:[%s1329_s4 + $0x28] sm:$0xff] %v799_v0  ;;  %895 = vst [vmem:[%s1329_s4 + $0x128] sm:$0xff] %v831_v1 }
 0x131   : > { %v563_v2 = vpop.f32.mrb[12].mxu0  ;;  %v691_v3 = vpop.f32.mrb[12].mxu1 }
 0x132   : > { %v564_v4 = vadd.f32 %v1321_v17, %v563_v2  ;;  %v692_v5 = vadd.f32 %v1321_v17, %v691_v3  ;;  %v565_v6 = vpop.f32.mrb[13].mxu0  ;;  %v693_v7 = vpop.f32.mrb[13].mxu1 }
 0x133   : > { %v566_v8 = vpop.f32.mrb[14].mxu0  ;;  %v694_v9 = vpop.f32.mrb[14].mxu1 }
 0x134   : > { %v800_v10 = vmax.f32 %v564_v4, 0.0  ;;  %v832_v11 = vmax.f32 %v692_v5, 0.0  ;;  %v567_v12 = vadd.f32 %v1321_v17, %v566_v8  ;;  %v695_v13 = vadd.f32 %v1321_v17, %v694_v9  ;;  %v568_v14 = vpop.f32.mrb[15].mxu0  ;;  %v696_v15 = vpop.f32.mrb[15].mxu1 }
 0x136   : > { %864 = vst [vmem:[%s1329_s4 + $0x30] sm:$0xff] %v800_v10  ;;  %896 = vst [vmem:[%s1329_s4 + $0x130] sm:$0xff] %v832_v11  ;;  %v801_v16 = vmax.f32 %v567_v12, 0.0  ;;  %v833_v18 = vmax.f32 %v695_v13, 0.0 }
 0x138   : > { %865 = vst [vmem:[%s1329_s4 + $0x38] sm:$0xff] %v801_v16  ;;  %897 = vst [vmem:[%s1329_s4 + $0x138] sm:$0xff] %v833_v18 }
 0x139   : > { %v571_v19 = vpop.f32.mrb[16].mxu0  ;;  %v699_v20 = vpop.f32.mrb[16].mxu1 }
 0x13a   : > { %v572_v21 = vadd.f32 %v1321_v17, %v571_v19  ;;  %v700_v22 = vadd.f32 %v1321_v17, %v699_v20  ;;  %v573_v23 = vpop.f32.mrb[17].mxu0  ;;  %v701_v24 = vpop.f32.mrb[17].mxu1 }
 0x13b   : > { %v574_v25 = vpop.f32.mrb[18].mxu0  ;;  %v702_v26 = vpop.f32.mrb[18].mxu1 }
 0x13c   : > { %v802_v27 = vmax.f32 %v572_v21, 0.0  ;;  %v834_v28 = vmax.f32 %v700_v22, 0.0  ;;  %v575_v29 = vadd.f32 %v1321_v17, %v574_v25  ;;  %v703_v30 = vadd.f32 %v1321_v17, %v702_v26  ;;  %v576_v31 = vpop.f32.mrb[19].mxu0  ;;  %v704_v32 = vpop.f32.mrb[19].mxu1 }
 0x13e   : > { %866 = vst [vmem:[%s1329_s4 + $0x40] sm:$0xff] %v802_v27  ;;  %898 = vst [vmem:[%s1329_s4 + $0x140] sm:$0xff] %v834_v28  ;;  %v803_v33 = vmax.f32 %v575_v29, 0.0  ;;  %v835_v34 = vmax.f32 %v703_v30, 0.0 }
 0x140   : > { %867 = vst [vmem:[%s1329_s4 + $0x48] sm:$0xff] %v803_v33  ;;  %899 = vst [vmem:[%s1329_s4 + $0x148] sm:$0xff] %v835_v34 }
 0x141   : > { %v579_v35 = vpop.f32.mrb[20].mxu0  ;;  %v707_v36 = vpop.f32.mrb[20].mxu1 }
 0x142   : > { %v580_v37 = vadd.f32 %v1321_v17, %v579_v35  ;;  %v708_v38 = vadd.f32 %v1321_v17, %v707_v36  ;;  %v581_v39 = vpop.f32.mrb[21].mxu0  ;;  %v709_v40 = vpop.f32.mrb[21].mxu1 }
 0x143   : > { %v582_v41 = vpop.f32.mrb[22].mxu0  ;;  %v710_v42 = vpop.f32.mrb[22].mxu1 }
 0x144   : > { %v804_v43 = vmax.f32 %v580_v37, 0.0  ;;  %v836_v44 = vmax.f32 %v708_v38, 0.0  ;;  %v583_v45 = vadd.f32 %v1321_v17, %v582_v41  ;;  %v711_v46 = vadd.f32 %v1321_v17, %v710_v42  ;;  %v584_v47 = vpop.f32.mrb[23].mxu0  ;;  %v712_v48 = vpop.f32.mrb[23].mxu1 }
 0x146   : > { %868 = vst [vmem:[%s1329_s4 + $0x50] sm:$0xff] %v804_v43  ;;  %900 = vst [vmem:[%s1329_s4 + $0x150] sm:$0xff] %v836_v44  ;;  %v805_v49 = vmax.f32 %v583_v45, 0.0  ;;  %v837_v50 = vmax.f32 %v711_v46, 0.0 }
 0x148   : > { %869 = vst [vmem:[%s1329_s4 + $0x58] sm:$0xff] %v805_v49  ;;  %901 = vst [vmem:[%s1329_s4 + $0x158] sm:$0xff] %v837_v50 }
 0x149   : > { %v587_v51 = vpop.f32.mrb[24].mxu0  ;;  %v715_v52 = vpop.f32.mrb[24].mxu1 }
 0x14a   : > { %v588_v53 = vadd.f32 %v1321_v17, %v587_v51  ;;  %v716_v54 = vadd.f32 %v1321_v17, %v715_v52  ;;  %v589_v55 = vpop.f32.mrb[25].mxu0  ;;  %v717_v56 = vpop.f32.mrb[25].mxu1 }
 0x14b   : > { %v590_v57 = vpop.f32.mrb[26].mxu0  ;;  %v718_v58 = vpop.f32.mrb[26].mxu1 }
 0x14c   : > { %v806_v59 = vmax.f32 %v588_v53, 0.0  ;;  %v838_v60 = vmax.f32 %v716_v54, 0.0  ;;  %v591_v61 = vadd.f32 %v1321_v17, %v590_v57  ;;  %v719_v62 = vadd.f32 %v1321_v17, %v718_v58  ;;  %v592_v63 = vpop.f32.mrb[27].mxu0  ;;  %v720_v0 = vpop.f32.mrb[27].mxu1 }
 0x14e   : > { %870 = vst [vmem:[%s1329_s4 + $0x60] sm:$0xff] %v806_v59  ;;  %902 = vst [vmem:[%s1329_s4 + $0x160] sm:$0xff] %v838_v60  ;;  %v807_v1 = vmax.f32 %v591_v61, 0.0  ;;  %v839_v2 = vmax.f32 %v719_v62, 0.0 }
 0x150   : > { %871 = vst [vmem:[%s1329_s4 + $0x68] sm:$0xff] %v807_v1  ;;  %903 = vst [vmem:[%s1329_s4 + $0x168] sm:$0xff] %v839_v2 }
 0x151   : > { %v595_v3 = vpop.f32.mrb[28].mxu0  ;;  %v723_v4 = vpop.f32.mrb[28].mxu1 }
 0x152   : > { %v596_v5 = vadd.f32 %v1321_v17, %v595_v3  ;;  %v724_v6 = vadd.f32 %v1321_v17, %v723_v4  ;;  %v597_v7 = vpop.f32.mrb[29].mxu0  ;;  %v725_v8 = vpop.f32.mrb[29].mxu1 }
 0x153   : > { %v598_v9 = vpop.f32.mrb[30].mxu0  ;;  %v726_v10 = vpop.f32.mrb[30].mxu1 }
 0x154   : > { %v808_v11 = vmax.f32 %v596_v5, 0.0  ;;  %v840_v12 = vmax.f32 %v724_v6, 0.0  ;;  %v599_v13 = vadd.f32 %v1321_v17, %v598_v9  ;;  %v727_v14 = vadd.f32 %v1321_v17, %v726_v10  ;;  %v600_v15 = vpop.f32.mrb[31].mxu0  ;;  %v728_v16 = vpop.f32.mrb[31].mxu1 }
 0x156   : > { %872 = vst [vmem:[%s1329_s4 + $0x70] sm:$0xff] %v808_v11  ;;  %904 = vst [vmem:[%s1329_s4 + $0x170] sm:$0xff] %v840_v12  ;;  %v809_v18 = vmax.f32 %v599_v13, 0.0  ;;  %v841_v19 = vmax.f32 %v727_v14, 0.0 }
 0x158   : > { %873 = vst [vmem:[%s1329_s4 + $0x78] sm:$0xff] %v809_v18  ;;  %905 = vst [vmem:[%s1329_s4 + $0x178] sm:$0xff] %v841_v19 }
 0x159   : > { %v603_v20 = vpop.f32.mrb[32].mxu0  ;;  %v731_v21 = vpop.f32.mrb[32].mxu1 }
 0x15a   : > { %v604_v22 = vadd.f32 %v1321_v17, %v603_v20  ;;  %v732_v23 = vadd.f32 %v1321_v17, %v731_v21  ;;  %v605_v24 = vpop.f32.mrb[33].mxu0  ;;  %v733_v25 = vpop.f32.mrb[33].mxu1 }
 0x15b   : > { %v606_v26 = vpop.f32.mrb[34].mxu0  ;;  %v734_v27 = vpop.f32.mrb[34].mxu1 }
 0x15c   : > { %v810_v28 = vmax.f32 %v604_v22, 0.0  ;;  %v842_v29 = vmax.f32 %v732_v23, 0.0  ;;  %v607_v30 = vadd.f32 %v1321_v17, %v606_v26  ;;  %v735_v31 = vadd.f32 %v1321_v17, %v734_v27  ;;  %v608_v32 = vpop.f32.mrb[35].mxu0  ;;  %v736_v33 = vpop.f32.mrb[35].mxu1 }
 0x15e   : > { %874 = vst [vmem:[%s1329_s4 + $0x80] sm:$0xff] %v810_v28  ;;  %906 = vst [vmem:[%s1329_s4 + $0x180] sm:$0xff] %v842_v29  ;;  %v811_v34 = vmax.f32 %v607_v30, 0.0  ;;  %v843_v35 = vmax.f32 %v735_v31, 0.0 }
 0x160   : > { %875 = vst [vmem:[%s1329_s4 + $0x88] sm:$0xff] %v811_v34  ;;  %907 = vst [vmem:[%s1329_s4 + $0x188] sm:$0xff] %v843_v35 }
 0x161   : > { %v611_v36 = vpop.f32.mrb[36].mxu0  ;;  %v739_v37 = vpop.f32.mrb[36].mxu1 }
 0x162   : > { %v612_v38 = vadd.f32 %v1321_v17, %v611_v36  ;;  %v740_v39 = vadd.f32 %v1321_v17, %v739_v37  ;;  %v613_v40 = vpop.f32.mrb[37].mxu0  ;;  %v741_v41 = vpop.f32.mrb[37].mxu1 }
 0x163   : > { %v614_v42 = vpop.f32.mrb[38].mxu0  ;;  %v742_v43 = vpop.f32.mrb[38].mxu1 }
 0x164   : > { %v812_v44 = vmax.f32 %v612_v38, 0.0  ;;  %v844_v45 = vmax.f32 %v740_v39, 0.0  ;;  %v615_v46 = vadd.f32 %v1321_v17, %v614_v42  ;;  %v743_v47 = vadd.f32 %v1321_v17, %v742_v43  ;;  %v616_v48 = vpop.f32.mrb[39].mxu0  ;;  %v744_v49 = vpop.f32.mrb[39].mxu1 }
 0x166   : > { %876 = vst [vmem:[%s1329_s4 + $0x90] sm:$0xff] %v812_v44  ;;  %908 = vst [vmem:[%s1329_s4 + $0x190] sm:$0xff] %v844_v45  ;;  %v813_v50 = vmax.f32 %v615_v46, 0.0  ;;  %v845_v51 = vmax.f32 %v743_v47, 0.0 }
 0x168   : > { %877 = vst [vmem:[%s1329_s4 + $0x98] sm:$0xff] %v813_v50  ;;  %909 = vst [vmem:[%s1329_s4 + $0x198] sm:$0xff] %v845_v51 }
 0x169   : > { %v619_v52 = vpop.f32.mrb[40].mxu0  ;;  %v747_v53 = vpop.f32.mrb[40].mxu1 }
 0x16a   : > { %v620_v54 = vadd.f32 %v1321_v17, %v619_v52  ;;  %v748_v55 = vadd.f32 %v1321_v17, %v747_v53  ;;  %v621_v56 = vpop.f32.mrb[41].mxu0  ;;  %v749_v57 = vpop.f32.mrb[41].mxu1 }
 0x16b   : > { %v622_v58 = vpop.f32.mrb[42].mxu0  ;;  %v750_v59 = vpop.f32.mrb[42].mxu1 }
 0x16c   : > { %v814_v60 = vmax.f32 %v620_v54, 0.0  ;;  %v846_v61 = vmax.f32 %v748_v55, 0.0  ;;  %v623_v62 = vadd.f32 %v1321_v17, %v622_v58  ;;  %v751_v63 = vadd.f32 %v1321_v17, %v750_v59  ;;  %v624_v0 = vpop.f32.mrb[43].mxu0  ;;  %v752_v1 = vpop.f32.mrb[43].mxu1 }
 0x16e   : > { %878 = vst [vmem:[%s1329_s4 + $0xa0] sm:$0xff] %v814_v60  ;;  %910 = vst [vmem:[%s1329_s4 + $0x1a0] sm:$0xff] %v846_v61  ;;  %v815_v2 = vmax.f32 %v623_v62, 0.0  ;;  %v847_v3 = vmax.f32 %v751_v63, 0.0 }
 0x170   : > { %879 = vst [vmem:[%s1329_s4 + $0xa8] sm:$0xff] %v815_v2  ;;  %911 = vst [vmem:[%s1329_s4 + $0x1a8] sm:$0xff] %v847_v3 }
 0x171   : > { %v627_v4 = vpop.f32.mrb[44].mxu0  ;;  %v755_v5 = vpop.f32.mrb[44].mxu1 }
 0x172   : > { %v628_v6 = vadd.f32 %v1321_v17, %v627_v4  ;;  %v756_v7 = vadd.f32 %v1321_v17, %v755_v5  ;;  %v629_v8 = vpop.f32.mrb[45].mxu0  ;;  %v757_v9 = vpop.f32.mrb[45].mxu1 }
 0x173   : > { %v630_v10 = vpop.f32.mrb[46].mxu0  ;;  %v758_v11 = vpop.f32.mrb[46].mxu1 }
 0x174   : > { %v816_v12 = vmax.f32 %v628_v6, 0.0  ;;  %v848_v13 = vmax.f32 %v756_v7, 0.0  ;;  %v631_v14 = vadd.f32 %v1321_v17, %v630_v10  ;;  %v759_v15 = vadd.f32 %v1321_v17, %v758_v11  ;;  %v632_v16 = vpop.f32.mrb[47].mxu0  ;;  %v760_v18 = vpop.f32.mrb[47].mxu1 }
 0x176   : > { %880 = vst [vmem:[%s1329_s4 + $0xb0] sm:$0xff] %v816_v12  ;;  %912 = vst [vmem:[%s1329_s4 + $0x1b0] sm:$0xff] %v848_v13  ;;  %v817_v19 = vmax.f32 %v631_v14, 0.0  ;;  %v849_v20 = vmax.f32 %v759_v15, 0.0 }
 0x178   : > { %881 = vst [vmem:[%s1329_s4 + $0xb8] sm:$0xff] %v817_v19  ;;  %913 = vst [vmem:[%s1329_s4 + $0x1b8] sm:$0xff] %v849_v20 }
 0x179   : > { %v635_v21 = vpop.f32.mrb[48].mxu0  ;;  %v763_v22 = vpop.f32.mrb[48].mxu1 }
 0x17a   : > { %v636_v23 = vadd.f32 %v1321_v17, %v635_v21  ;;  %v764_v24 = vadd.f32 %v1321_v17, %v763_v22  ;;  %v637_v25 = vpop.f32.mrb[49].mxu0  ;;  %v765_v26 = vpop.f32.mrb[49].mxu1 }
 0x17b   : > { %v638_v27 = vpop.f32.mrb[50].mxu0  ;;  %v766_v28 = vpop.f32.mrb[50].mxu1 }
 0x17c   : > { %v818_v29 = vmax.f32 %v636_v23, 0.0  ;;  %v850_v30 = vmax.f32 %v764_v24, 0.0  ;;  %v639_v31 = vadd.f32 %v1321_v17, %v638_v27  ;;  %v767_v32 = vadd.f32 %v1321_v17, %v766_v28  ;;  %v640_v33 = vpop.f32.mrb[51].mxu0  ;;  %v768_v34 = vpop.f32.mrb[51].mxu1 }
 0x17e   : > { %882 = vst [vmem:[%s1329_s4 + $0xc0] sm:$0xff] %v818_v29  ;;  %914 = vst [vmem:[%s1329_s4 + $0x1c0] sm:$0xff] %v850_v30  ;;  %v819_v35 = vmax.f32 %v639_v31, 0.0  ;;  %v851_v36 = vmax.f32 %v767_v32, 0.0 }
 0x180   : > { %883 = vst [vmem:[%s1329_s4 + $0xc8] sm:$0xff] %v819_v35  ;;  %915 = vst [vmem:[%s1329_s4 + $0x1c8] sm:$0xff] %v851_v36 }
 0x181   : > { %v643_v37 = vpop.f32.mrb[52].mxu0  ;;  %v771_v38 = vpop.f32.mrb[52].mxu1 }
 0x182   : > { %v644_v39 = vadd.f32 %v1321_v17, %v643_v37  ;;  %v772_v40 = vadd.f32 %v1321_v17, %v771_v38  ;;  %v645_v41 = vpop.f32.mrb[53].mxu0  ;;  %v773_v42 = vpop.f32.mrb[53].mxu1 }
 0x183   : > { %v646_v43 = vpop.f32.mrb[54].mxu0  ;;  %v774_v44 = vpop.f32.mrb[54].mxu1 }
 0x184   : > { %v820_v45 = vmax.f32 %v644_v39, 0.0  ;;  %v852_v46 = vmax.f32 %v772_v40, 0.0  ;;  %v647_v47 = vadd.f32 %v1321_v17, %v646_v43  ;;  %v775_v48 = vadd.f32 %v1321_v17, %v774_v44  ;;  %v648_v49 = vpop.f32.mrb[55].mxu0  ;;  %v776_v50 = vpop.f32.mrb[55].mxu1 }
 0x186   : > { %884 = vst [vmem:[%s1329_s4 + $0xd0] sm:$0xff] %v820_v45  ;;  %916 = vst [vmem:[%s1329_s4 + $0x1d0] sm:$0xff] %v852_v46  ;;  %v821_v51 = vmax.f32 %v647_v47, 0.0  ;;  %v853_v52 = vmax.f32 %v775_v48, 0.0 }
 0x188   : > { %885 = vst [vmem:[%s1329_s4 + $0xd8] sm:$0xff] %v821_v51  ;;  %917 = vst [vmem:[%s1329_s4 + $0x1d8] sm:$0xff] %v853_v52 }
 0x189   : > { %v651_v53 = vpop.f32.mrb[56].mxu0  ;;  %v779_v54 = vpop.f32.mrb[56].mxu1 }
 0x18a   : > { %v652_v55 = vadd.f32 %v1321_v17, %v651_v53  ;;  %v780_v56 = vadd.f32 %v1321_v17, %v779_v54  ;;  %v653_v57 = vpop.f32.mrb[57].mxu0  ;;  %v781_v58 = vpop.f32.mrb[57].mxu1 }
 0x18b   : > { %v654_v59 = vpop.f32.mrb[58].mxu0  ;;  %v782_v60 = vpop.f32.mrb[58].mxu1 }
 0x18c   : > { %v822_v61 = vmax.f32 %v652_v55, 0.0  ;;  %v854_v62 = vmax.f32 %v780_v56, 0.0  ;;  %v655_v63 = vadd.f32 %v1321_v17, %v654_v59  ;;  %v783_v0 = vadd.f32 %v1321_v17, %v782_v60  ;;  %v656_v1 = vpop.f32.mrb[59].mxu0  ;;  %v784_v2 = vpop.f32.mrb[59].mxu1 }
 0x18e   : > { %886 = vst [vmem:[%s1329_s4 + $0xe0] sm:$0xff] %v822_v61  ;;  %918 = vst [vmem:[%s1329_s4 + $0x1e0] sm:$0xff] %v854_v62  ;;  %v823_v3 = vmax.f32 %v655_v63, 0.0  ;;  %v855_v4 = vmax.f32 %v783_v0, 0.0 }
 0x190   : > { %887 = vst [vmem:[%s1329_s4 + $0xe8] sm:$0xff] %v823_v3  ;;  %919 = vst [vmem:[%s1329_s4 + $0x1e8] sm:$0xff] %v855_v4 }
 0x191   : > { %v659_v5 = vpop.f32.mrb[60].mxu0  ;;  %v787_v6 = vpop.f32.mrb[60].mxu1 }
 0x192   : > { %v660_v7 = vadd.f32 %v1321_v17, %v659_v5  ;;  %v788_v8 = vadd.f32 %v1321_v17, %v787_v6  ;;  %v661_v9 = vpop.f32.mrb[61].mxu0  ;;  %v789_v10 = vpop.f32.mrb[61].mxu1 }
 0x193   : > { %v662_v11 = vpop.f32.mrb[62].mxu0  ;;  %v790_v12 = vpop.f32.mrb[62].mxu1 }
 0x194   : > { %v824_v13 = vmax.f32 %v660_v7, 0.0  ;;  %v856_v14 = vmax.f32 %v788_v8, 0.0  ;;  %v663_v15 = vadd.f32 %v1321_v17, %v662_v11  ;;  %v791_v16 = vadd.f32 %v1321_v17, %v790_v12  ;;  %v664_v18 = vpop.f32.mrb[63].mxu0  ;;  %v792_v19 = vpop.f32.mrb[63].mxu1 }
 0x196   : > { %888 = vst [vmem:[%s1329_s4 + $0xf0] sm:$0xff] %v824_v13  ;;  %920 = vst [vmem:[%s1329_s4 + $0x1f0] sm:$0xff] %v856_v14  ;;  %v825_v20 = vmax.f32 %v663_v15, 0.0  ;;  %v857_v21 = vmax.f32 %v791_v16, 0.0 }
 0x198   : > { %889 = vst [vmem:[%s1329_s4 + $0xf8] sm:$0xff] %v825_v20  ;;  %921 = vst [vmem:[%s1329_s4 + $0x1f8] sm:$0xff] %v857_v21 }
 0x199 PF: > { %s13_s12 = sadd.s32 1, %s1071_s12  }
 0x19a   : > { %p10_p4 = scmp.ge.s32.totalorder %s13_s12, 4  }
 0x19c   :  { %12 = sbr.rel (!%p10_p4) target bundleno = 1 (0x1), region = 62 }

// kernel: dqn_forward.5
= control target key start
LH: loop header
LB: loop body
LE: loop exit
PB: predicated region body
PF: predicated region fallthrough
CT: control target
= control target key end

     0   :  { %s5167_s1 = inlined_call_operand.vmem [shape: bf16[2048,128], index: 1, kind: input, shape index: {}]   ;;  %s5168_s0 = inlined_call_operand.vmem [shape: f32[168,2048], index: 0, kind: input, shape index: {}]   ;;  %s5169_s2 = inlined_call_operand.vmem [shape: f32[1,128], index: 2, kind: input, shape index: {}]   ;;  %s5170_s3 = inlined_call_operand.vmem [shape: f32[168,128], index: 3, kind: output, shape index: {}]  }
   0x1   :  { %v3349_v0 = vld [vmem:[%s5167_s1 + $0x40] sm:$0xff]   ;;  %v3353_v4 = vld [vmem:[%s5167_s1 + $0x48] sm:$0xff]   ;;  %v3357_v8 = vld [vmem:[%s5167_s1 + $0x50] sm:$0xff]  }
   0x2   :  { %v3350_v1 = vld [vmem:[%s5167_s1 + $0xc0] sm:$0xff]   ;;  %2693 = vmatprep.subr.bf16.mxu0 %v3349_v0  ;;  %v3354_v5 = vld [vmem:[%s5167_s1 + $0xc8] sm:$0xff]   ;;  %v3358_v9 = vld [vmem:[%s5167_s1 + $0xd0] sm:$0xff]  }
   0x3   :  { %v3351_v2 = vld [vmem:[%s5167_s1] sm:$0xff]   ;;  %2775 = vmatprep.subr.bf16.mxu1 %v3350_v1  ;;  %v3355_v6 = vld [vmem:[%s5167_s1 + $0x8] sm:$0xff]   ;;  %v3359_v10 = vld [vmem:[%s5167_s1 + $0x10] sm:$0xff]  }
   0x4   :  { %v3352_v3 = vld [vmem:[%s5167_s1 + $0x80] sm:$0xff]   ;;  %2694 = vmatpush3.bf16.msra.mxu0 %v3351_v2  ;;  %v3356_v7 = vld [vmem:[%s5167_s1 + $0x88] sm:$0xff]   ;;  %v3360_v11 = vld [vmem:[%s5167_s1 + $0x90] sm:$0xff]  }
   0x5   :  { %2776 = vmatpush3.bf16.msra.mxu1 %v3352_v3  ;;  %2695 = vmatprep.subr.bf16.mxu0 %v3353_v4  ;;  %v3361_v12 = vld [vmem:[%s5167_s1 + $0x58] sm:$0xff]   ;;  %v3365_v16 = vld [vmem:[%s5167_s1 + $0x60] sm:$0xff]   ;;  %v3369_v20 = vld [vmem:[%s5167_s1 + $0x68] sm:$0xff]  }
   0x6   :  { %2777 = vmatprep.subr.bf16.mxu1 %v3354_v5  ;;  %v3362_v13 = vld [vmem:[%s5167_s1 + $0xd8] sm:$0xff]   ;;  %v3366_v17 = vld [vmem:[%s5167_s1 + $0xe0] sm:$0xff]   ;;  %v3370_v21 = vld [vmem:[%s5167_s1 + $0xe8] sm:$0xff]  }
   0x7   :  { %v3363_v14 = vld [vmem:[%s5167_s1 + $0x18] sm:$0xff]   ;;  %v3367_v18 = vld [vmem:[%s5167_s1 + $0x20] sm:$0xff]   ;;  %v3371_v22 = vld [vmem:[%s5167_s1 + $0x28] sm:$0xff]  }
   0x8   :  { %2696 = vmatpush3.bf16.msra.mxu0 %v3355_v6  ;;  %v3364_v15 = vld [vmem:[%s5167_s1 + $0x98] sm:$0xff]   ;;  %v3368_v19 = vld [vmem:[%s5167_s1 + $0xa0] sm:$0xff]   ;;  %v3372_v23 = vld [vmem:[%s5167_s1 + $0xa8] sm:$0xff]  }
   0x9   :  { %2778 = vmatpush3.bf16.msra.mxu1 %v3356_v7  ;;  %2697 = vmatprep.subr.bf16.mxu0 %v3357_v8  ;;  %v3373_v24 = vld [vmem:[%s5167_s1 + $0x70] sm:$0xff]   ;;  %v3377_v28 = vld [vmem:[%s5167_s1 + $0x78] sm:$0xff]   ;;  %v16_v32 = vld [vmem:[%s5168_s0 + $0x8] sm:$0xff] }
   0xa   :  { %2779 = vmatprep.subr.bf16.mxu1 %v3358_v9  ;;  %v3374_v25 = vld [vmem:[%s5167_s1 + $0xf0] sm:$0xff]   ;;  %v3378_v29 = vld [vmem:[%s5167_s1 + $0xf8] sm:$0xff]   ;;  %v32_v33 = vld [vmem:[%s5168_s0 + $0x88] sm:$0xff] }
   0xb   :  { %v3375_v26 = vld [vmem:[%s5167_s1 + $0x30] sm:$0xff]   ;;  %v3379_v30 = vld [vmem:[%s5167_s1 + $0x38] sm:$0xff]   ;;  %v352_v35 = vpack.c.bf16 %v32_v33, %v16_v32  ;;  %v15_v37 = vld [vmem:[%s5168_s0] sm:$0xff] }
   0xc   :  { %2698 = vmatpush3.bf16.msra.mxu0 %v3359_v10  ;;  %v3376_v27 = vld [vmem:[%s5167_s1 + $0xb0] sm:$0xff]   ;;  %v3380_v31 = vld [vmem:[%s5167_s1 + $0xb8] sm:$0xff]   ;;  %v31_v38 = vld [vmem:[%s5168_s0 + $0x80] sm:$0xff] }
   0xd   :  { %2780 = vmatpush3.bf16.msra.mxu1 %v3360_v11  ;;  %2699 = vmatprep.subr.bf16.mxu0 %v3361_v12  ;;  %v18_v34 = vld [vmem:[%s5168_s0 + $0x18] sm:$0xff]  ;;  %v351_v40 = vpack.c.bf16 %v31_v38, %v15_v37  ;;  %v17_v41 = vld [vmem:[%s5168_s0 + $0x10] sm:$0xff]  ;;  %v3381_v44 = vld [vmem:[%s5167_s1 + $0x140] sm:$0xff]  }
   0xe   :  { %2781 = vmatprep.subr.bf16.mxu1 %v3362_v13  ;;  %v34_v36 = vld [vmem:[%s5168_s0 + $0x98] sm:$0xff]  ;;  %v33_v42 = vld [vmem:[%s5168_s0 + $0x90] sm:$0xff]  ;;  %1590 = vmatprep.mubr.bf16.mxu0 %v352_v35  ;;  %v3382_v45 = vld [vmem:[%s5167_s1 + $0x100] sm:$0xff]  }
   0xf   :  { %v354_v39 = vpack.c.bf16 %v34_v36, %v18_v34  ;;  %v353_v43 = vpack.c.bf16 %v33_v42, %v17_v41  ;;  %v3383_v46 = vld [vmem:[%s5167_s1 + $0x1c0] sm:$0xff]   ;;  %v48_v48 = vld [vmem:[%s5168_s0 + $0x108] sm:$0xff]  ;;  %v50_v50 = vld [vmem:[%s5168_s0 + $0x118] sm:$0xff] }
  0x10   :  { %2700 = vmatpush3.bf16.msra.mxu0 %v3363_v14  ;;  %v3384_v47 = vld [vmem:[%s5167_s1 + $0x180] sm:$0xff]   ;;  %v64_v49 = vld [vmem:[%s5168_s0 + $0x188] sm:$0xff]  ;;  %v66_v51 = vld [vmem:[%s5168_s0 + $0x198] sm:$0xff] }
  0x11   :  { %2782 = vmatpush3.bf16.msra.mxu1 %v3364_v15  ;;  %2701 = vmatprep.subr.bf16.mxu0 %v3365_v16  ;;  %v368_v52 = vpack.c.bf16 %v64_v49, %v48_v48  ;;  %v370_v53 = vpack.c.bf16 %v66_v51, %v50_v50  ;;  %v47_v54 = vld [vmem:[%s5168_s0 + $0x100] sm:$0xff]  ;;  %v49_v56 = vld [vmem:[%s5168_s0 + $0x110] sm:$0xff]  ;;  %v3385_v60 = vld [vmem:[%s5167_s1 + $0x148] sm:$0xff]  }
  0x12   :  { %2783 = vmatprep.subr.bf16.mxu1 %v3366_v17  ;;  %1710 = vmatprep.mubr.bf16.mxu1 %v354_v39  ;;  %v63_v55 = vld [vmem:[%s5168_s0 + $0x180] sm:$0xff]  ;;  %v65_v58 = vld [vmem:[%s5168_s0 + $0x190] sm:$0xff]  ;;  %v3386_v61 = vld [vmem:[%s5167_s1 + $0x108] sm:$0xff]  }
  0x13   :  { %v367_v57 = vpack.c.bf16 %v63_v55, %v47_v54  ;;  %v369_v59 = vpack.c.bf16 %v65_v58, %v49_v56  ;;  %v3387_v62 = vld [vmem:[%s5167_s1 + $0x1c8] sm:$0xff]   ;;  %v82_v3 = vld [vmem:[%s5168_s0 + $0x218] sm:$0xff]  ;;  %v79_v5 = vld [vmem:[%s5168_s0 + $0x200] sm:$0xff] }
  0x14   :  { %2702 = vmatpush3.bf16.msra.mxu0 %v3367_v18  ;;  %v3388_v63 = vld [vmem:[%s5167_s1 + $0x188] sm:$0xff]   ;;  %v98_v4 = vld [vmem:[%s5168_s0 + $0x298] sm:$0xff]  ;;  %v95_v7 = vld [vmem:[%s5168_s0 + $0x280] sm:$0xff] }
  0x15   :  { %2784 = vmatpush3.bf16.msra.mxu1 %v3368_v19  ;;  %2703 = vmatprep.subr.bf16.mxu0 %v3369_v20  ;;  %v80_v0 = vld [vmem:[%s5168_s0 + $0x208] sm:$0xff]  ;;  %v386_v6 = vpack.c.bf16 %v98_v4, %v82_v3  ;;  %v81_v8 = vld [vmem:[%s5168_s0 + $0x210] sm:$0xff]  ;;  %v383_v10 = vpack.c.bf16 %v95_v7, %v79_v5  ;;  %v114_v15 = vld [vmem:[%s5168_s0 + $0x318] sm:$0xff] }
  0x16   :  { %2785 = vmatprep.subr.bf16.mxu1 %v3370_v21  ;;  %v96_v1 = vld [vmem:[%s5168_s0 + $0x288] sm:$0xff]  ;;  %v97_v9 = vld [vmem:[%s5168_s0 + $0x290] sm:$0xff]  ;;  %v130_v17 = vld [vmem:[%s5168_s0 + $0x398] sm:$0xff] }
  0x17   :  { %v384_v2 = vpack.c.bf16 %v96_v1, %v80_v0  ;;  %v3389_v11 = vld [vmem:[%s5167_s1 + $0x150] sm:$0xff]   ;;  %v385_v12 = vpack.c.bf16 %v97_v9, %v81_v8  ;;  %v112_v13 = vld [vmem:[%s5168_s0 + $0x308] sm:$0xff]  ;;  %v402_v18 = vpack.c.bf16 %v130_v17, %v114_v15  ;;  %v111_v20 = vld [vmem:[%s5168_s0 + $0x300] sm:$0xff] }
  0x18   :  { %2704 = vmatpush3.bf16.msra.mxu0 %v3371_v22  ;;  %v128_v14 = vld [vmem:[%s5168_s0 + $0x388] sm:$0xff]  ;;  %v3390_v19 = vld [vmem:[%s5167_s1 + $0x110] sm:$0xff]   ;;  %v127_v21 = vld [vmem:[%s5168_s0 + $0x380] sm:$0xff] }
  0x19   :  { %2786 = vmatpush3.bf16.msra.mxu1 %v3372_v23  ;;  %2705 = vmatprep.subr.bf16.mxu0 %v3373_v24  ;;  %v400_v16 = vpack.c.bf16 %v128_v14, %v112_v13  ;;  %v113_v22 = vld [vmem:[%s5168_s0 + $0x310] sm:$0xff]  ;;  %v3393_v34 = vld [vmem:[%s5167_s1 + $0x158] sm:$0xff]   ;;  %v143_v35 = vld [vmem:[%s5168_s0 + $0x400] sm:$0xff] }
  0x1a   :  { %2787 = vmatprep.subr.bf16.mxu1 %v3374_v25  ;;  %v129_v23 = vld [vmem:[%s5168_s0 + $0x390] sm:$0xff]  ;;  %v3394_v36 = vld [vmem:[%s5167_s1 + $0x118] sm:$0xff]   ;;  %v159_v38 = vld [vmem:[%s5168_s0 + $0x480] sm:$0xff] }
  0x1b   :  { %v3391_v24 = vld [vmem:[%s5167_s1 + $0x1d0] sm:$0xff]   ;;  %v3395_v37 = vld [vmem:[%s5167_s1 + $0x1d8] sm:$0xff]   ;;  %v176_v42 = vld [vmem:[%s5168_s0 + $0x508] sm:$0xff] }
  0x1c   :  { %2706 = vmatpush3.bf16.msra.mxu0 %v3375_v26  ;;  %v3392_v25 = vld [vmem:[%s5167_s1 + $0x190] sm:$0xff]   ;;  %v144_v26 = vld [vmem:[%s5168_s0 + $0x408] sm:$0xff]  ;;  %v3398_v50 = vld [vmem:[%s5167_s1 + $0x120] sm:$0xff]  }
  0x1d   :  { %2788 = vmatpush3.bf16.msra.mxu1 %v3376_v27  ;;  %2707 = vmatprep.subr.bf16.mxu0 %v3377_v28  ;;  %v160_v27 = vld [vmem:[%s5168_s0 + $0x488] sm:$0xff]  ;;  %v146_v28 = vld [vmem:[%s5168_s0 + $0x418] sm:$0xff]  ;;  %v145_v39 = vld [vmem:[%s5168_s0 + $0x410] sm:$0xff] }
  0x1e   :  { %2789 = vmatprep.subr.bf16.mxu1 %v3378_v29  ;;  %v162_v29 = vld [vmem:[%s5168_s0 + $0x498] sm:$0xff]  ;;  %v416_v32 = vpack.c.bf16 %v160_v27, %v144_v26  ;;  %v161_v41 = vld [vmem:[%s5168_s0 + $0x490] sm:$0xff]  ;;  %v191_v54 = vld [vmem:[%s5168_s0 + $0x580] sm:$0xff] }
  0x1f   :  { %v418_v33 = vpack.c.bf16 %v162_v29, %v146_v28  ;;  %v417_v48 = vpack.c.bf16 %v161_v41, %v145_v39  ;;  %v177_v55 = vld [vmem:[%s5168_s0 + $0x510] sm:$0xff]  ;;  %v3400_v56 = vld [vmem:[%s5167_s1 + $0x1a0] sm:$0xff]   ;;  %v208_v58 = vld [vmem:[%s5168_s0 + $0x608] sm:$0xff] }
  0x20   :  { %2708 = vmatpush3.bf16.msra.mxu0 %v3379_v30  ;;  %v399_v30 = vpack.c.bf16 %v127_v21, %v111_v20  ;;  %v207_v3 = vld [vmem:[%s5168_s0 + $0x600] sm:$0xff]  ;;  %v3402_v4 = vld [vmem:[%s5167_s1 + $0x128] sm:$0xff]   ;;  %v209_v7 = vld [vmem:[%s5168_s0 + $0x610] sm:$0xff] }
  0x21   :  { %2790 = vmatpush3.bf16.msra.mxu1 %v3380_v31  ;;  %2857 = vmatprep.subr.bf16.mxu0 %v3381_v44  ;;  %v401_v31 = vpack.c.bf16 %v129_v23, %v113_v22  ;;  %v178_v44 = vld [vmem:[%s5168_s0 + $0x518] sm:$0xff]  ;;  %v3403_v5 = vld [vmem:[%s5167_s1 + $0x1e8] sm:$0xff]   ;;  %v225_v9 = vld [vmem:[%s5168_s0 + $0x690] sm:$0xff] }
  0x22   :  { %2939 = vmatprep.subr.bf16.mxu1 %v3383_v46  ;;  %v415_v46 = vpack.c.bf16 %v159_v38, %v143_v35  ;;  %v3404_v8 = vld [vmem:[%s5167_s1 + $0x1a8] sm:$0xff]   ;;  %v258_v13 = vld [vmem:[%s5168_s0 + $0x798] sm:$0xff]  ;;  %v3405_v15 = vld [vmem:[%s5167_s1 + $0x170] sm:$0xff]  }
  0x23   :  { %1591 = vmatmul.mubr.bf16.vlgmr.msra.gmra.mrb[0].mxu0 %v351_v40  ;;  %v3396_v40 = vld [vmem:[%s5167_s1 + $0x198] sm:$0xff]   ;;  %v3407_v20 = vld [vmem:[%s5167_s1 + $0x1f0] sm:$0xff]   ;;  %v239_v22 = vld [vmem:[%s5168_s0 + $0x700] sm:$0xff] }
  0x24   :  { %1711 = vmatmul.mubr.bf16.vlgmr.msra.gmra.mrb[0].mxu1 %v353_v43  ;;  %2858 = vmatpush3.bf16.msra.mxu0 %v3382_v45  ;;  %v192_v43 = vld [vmem:[%s5168_s0 + $0x588] sm:$0xff]  ;;  %v194_v45 = vld [vmem:[%s5168_s0 + $0x598] sm:$0xff]  ;;  %v3408_v21 = vld [vmem:[%s5167_s1 + $0x1b0] sm:$0xff]  }
  0x25   :  { %2940 = vmatpush3.bf16.msra.mxu1 %v3384_v47  ;;  %1598 = vmatprep.mubr.bf16.mxu0 %v368_v52  ;;  %v3397_v47 = vld [vmem:[%s5167_s1 + $0x160] sm:$0xff]   ;;  %v432_v49 = vpack.c.bf16 %v192_v43, %v176_v42  ;;  %v434_v51 = vpack.c.bf16 %v194_v45, %v178_v44  ;;  %v272_v26 = vld [vmem:[%s5168_s0 + $0x808] sm:$0xff]  ;;  %v274_v28 = vld [vmem:[%s5168_s0 + $0x818] sm:$0xff] }
  0x26   :  { %1718 = vmatprep.mubr.bf16.mxu1 %v370_v53  ;;  %2859 = vmatprep.subr.bf16.mxu0 %v3385_v60  ;;  %v3399_v52 = vld [vmem:[%s5167_s1 + $0x1e0] sm:$0xff]   ;;  %v210_v60 = vld [vmem:[%s5168_s0 + $0x618] sm:$0xff]  ;;  %v288_v27 = vld [vmem:[%s5168_s0 + $0x888] sm:$0xff] }
  0x27   :  { %2941 = vmatprep.subr.bf16.mxu1 %v3387_v62  ;;  %v175_v53 = vld [vmem:[%s5168_s0 + $0x500] sm:$0xff]  ;;  %v290_v29 = vld [vmem:[%s5168_s0 + $0x898] sm:$0xff]  ;;  %v289_v41 = vld [vmem:[%s5168_s0 + $0x890] sm:$0xff] }
  0x28   :  { %2860 = vmatpush3.bf16.msra.mxu0 %v3386_v61  ;;  %v226_v61 = vld [vmem:[%s5168_s0 + $0x698] sm:$0xff]  ;;  %v431_v62 = vpack.c.bf16 %v191_v54, %v175_v53  ;;  %v255_v23 = vld [vmem:[%s5168_s0 + $0x780] sm:$0xff]  ;;  %v482_v35 = vpack.c.bf16 %v290_v29, %v274_v28  ;;  %v304_v42 = vld [vmem:[%s5168_s0 + $0x908] sm:$0xff] }
  0x29   :  { %2942 = vmatpush3.bf16.msra.mxu1 %v3388_v63  ;;  %2861 = vmatprep.subr.bf16.mxu0 %v3389_v11  ;;  %v3401_v63 = vld [vmem:[%s5167_s1 + $0x168] sm:$0xff]   ;;  %v271_v38 = vld [vmem:[%s5168_s0 + $0x800] sm:$0xff]  ;;  %v306_v44 = vld [vmem:[%s5168_s0 + $0x918] sm:$0xff] }
  0x2a   :  { %2943 = vmatprep.subr.bf16.mxu1 %v3391_v24  ;;  %v256_v11 = vld [vmem:[%s5168_s0 + $0x788] sm:$0xff]  ;;  %v241_v24 = vld [vmem:[%s5168_s0 + $0x710] sm:$0xff]  ;;  %v287_v39 = vld [vmem:[%s5168_s0 + $0x880] sm:$0xff] }
  0x2b   :  { %1599 = vmatmul.mubr.bf16.gmra.mrb[4].mxu0 %v367_v57  ;;  %v193_v57 = vld [vmem:[%s5168_s0 + $0x590] sm:$0xff]  ;;  %v320_v43 = vld [vmem:[%s5168_s0 + $0x988] sm:$0xff]  ;;  %v322_v45 = vld [vmem:[%s5168_s0 + $0x998] sm:$0xff] }
  0x2c   :  { %1719 = vmatmul.mubr.bf16.gmra.mrb[4].mxu1 %v369_v59  ;;  %1606 = vmatprep.mubr.bf16.mxu0 %v384_v2  ;;  %v224_v59 = vld [vmem:[%s5168_s0 + $0x688] sm:$0xff]  ;;  %v433_v0 = vpack.c.bf16 %v193_v57, %v177_v55  ;;  %v450_v2 = vpack.c.bf16 %v226_v61, %v210_v60  ;;  %v319_v53 = vld [vmem:[%s5168_s0 + $0x980] sm:$0xff]  ;;  %v305_v54 = vld [vmem:[%s5168_s0 + $0x910] sm:$0xff] }
  0x2d   :  { %1726 = vmatprep.mubr.bf16.mxu1 %v386_v6  ;;  %2862 = vmatpush3.bf16.msra.mxu0 %v3390_v19  ;;  %v448_v1 = vpack.c.bf16 %v224_v59, %v208_v58  ;;  %v223_v6 = vld [vmem:[%s5168_s0 + $0x680] sm:$0xff]  ;;  %v321_v55 = vld [vmem:[%s5168_s0 + $0x990] sm:$0xff]  ;;  %v338_v57 = vld [vmem:[%s5168_s0 + $0xa18] sm:$0xff] }
  0x2e   :  { %2944 = vmatpush3.bf16.msra.mxu1 %v3392_v25  ;;  %2863 = vmatprep.subr.bf16.mxu0 %v3393_v34  ;;  %v447_v14 = vpack.c.bf16 %v223_v6, %v207_v3  ;;  %v257_v25 = vld [vmem:[%s5168_s0 + $0x790] sm:$0xff]  ;;  %v480_v34 = vpack.c.bf16 %v288_v27, %v272_v26  ;;  %v497_v59 = vpack.c.bf16 %v321_v55, %v305_v54  ;;  %v38_v3 = vld [vmem:[%s5168_s0 + $0xb8] sm:$0xff]  ;;  %v3419_v26 = vld [vmem:[%s5167_s1 + $0x2c8] sm:$0xff]  }
  0x2f   :  { %2945 = vmatprep.subr.bf16.mxu1 %v3395_v37  ;;  %v3412_v37 = vld [vmem:[%s5167_s1 + $0x1b8] sm:$0xff]   ;;  %v514_v61 = vpack.c.bf16 %v338_v57, %v338_v57  ;;  %v53_v27 = vld [vmem:[%s5168_s0 + $0x130] sm:$0xff]  ;;  %v3420_v29 = vld [vmem:[%s5167_s1 + $0x288] sm:$0xff]  }
  0x30   :  { %v69_v28 = vld [vmem:[%s5168_s0 + $0x1b0] sm:$0xff]  ;;  %v3429_v54 = vld [vmem:[%s5167_s1 + $0x260] sm:$0xff]  }
  0x31   :  { %2864 = vmatpush3.bf16.msra.mxu0 %v3394_v36  ;;  %v3411_v36 = vld [vmem:[%s5167_s1 + $0x1f8] sm:$0xff]  }
  0x32   :  { %2946 = vmatpush3.bf16.msra.mxu1 %v3396_v40  ;;  %2865 = vmatprep.subr.bf16.mxu0 %v3397_v47  ;;  %v273_v40 = vld [vmem:[%s5168_s0 + $0x810] sm:$0xff]  ;;  %v479_v47 = vpack.c.bf16 %v287_v39, %v271_v38 }
  0x33   :  { %1607 = vmatmul.mubr.bf16.gmra.mrb[8].mxu0 %v383_v10  ;;  %2947 = vmatprep.subr.bf16.mxu1 %v3399_v52  ;;  %v240_v10 = vld [vmem:[%s5168_s0 + $0x708] sm:$0xff]  ;;  %v303_v52 = vld [vmem:[%s5168_s0 + $0x900] sm:$0xff] }
  0x34   :  { %1727 = vmatmul.mubr.bf16.gmra.mrb[8].mxu1 %v385_v12  ;;  %1614 = vmatprep.mubr.bf16.mxu0 %v400_v16  ;;  %v242_v12 = vld [vmem:[%s5168_s0 + $0x718] sm:$0xff]  ;;  %v449_v16 = vpack.c.bf16 %v225_v9, %v209_v7  ;;  %v464_v17 = vpack.c.bf16 %v256_v11, %v240_v10  ;;  %v495_v58 = vpack.c.bf16 %v319_v53, %v303_v52  ;;  %v35_v9 = vld [vmem:[%s5168_s0 + $0xa0] sm:$0xff]  ;;  %v21_v10 = vld [vmem:[%s5168_s0 + $0x30] sm:$0xff] }
  0x35   :  { %1734 = vmatprep.mubr.bf16.mxu1 %v402_v18  ;;  %2866 = vmatpush3.bf16.msra.mxu0 %v3398_v50  ;;  %v3406_v18 = vld [vmem:[%s5167_s1 + $0x130] sm:$0xff]   ;;  %v466_v19 = vpack.c.bf16 %v258_v13, %v242_v12  ;;  %v3415_v50 = vld [vmem:[%s5167_s1 + $0x2c0] sm:$0xff]   ;;  %v52_v12 = vld [vmem:[%s5168_s0 + $0x128] sm:$0xff] }
  0x36   :  { %2948 = vmatpush3.bf16.msra.mxu1 %v3400_v56  ;;  %2867 = vmatprep.subr.bf16.mxu0 %v3401_v63  ;;  %v336_v56 = vld [vmem:[%s5168_s0 + $0xa08] sm:$0xff]  ;;  %v337_v63 = vld [vmem:[%s5168_s0 + $0xa10] sm:$0xff]  ;;  %v3426_v52 = vld [vmem:[%s5167_s1 + $0x218] sm:$0xff]  }
  0x37   :  { %2949 = vmatprep.subr.bf16.mxu1 %v3403_v5  ;;  %v512_v60 = vpack.c.bf16 %v336_v56, %v336_v56  ;;  %v513_v5 = vpack.c.bf16 %v337_v63, %v337_v63  ;;  %v37_v11 = vld [vmem:[%s5168_s0 + $0xb0] sm:$0xff]  ;;  %v68_v13 = vld [vmem:[%s5168_s0 + $0x1a8] sm:$0xff]  ;;  %v3428_v53 = vld [vmem:[%s5167_s1 + $0x298] sm:$0xff]  }
  0x38   :  { %v3431_v56 = vld [vmem:[%s5167_s1 + $0x2e0] sm:$0xff]  }
  0x39   :  { %2868 = vmatpush3.bf16.msra.mxu0 %v3402_v4  ;;  %v3432_v63 = vld [vmem:[%s5167_s1 + $0x2a0] sm:$0xff]  }
  0x3a   :  { %2950 = vmatpush3.bf16.msra.mxu1 %v3404_v8  ;;  %2869 = vmatprep.subr.bf16.mxu0 %v3405_v15  ;;  %v19_v8 = vld [vmem:[%s5168_s0 + $0x20] sm:$0xff] }
  0x3b   :  { %1615 = vmatmul.mubr.bf16.gmra.mrb[12].mxu0 %v399_v30  ;;  %2951 = vmatprep.subr.bf16.mxu1 %v3407_v20  ;;  %v3409_v30 = vld [vmem:[%s5167_s1 + $0x178] sm:$0xff]   ;;  %v355_v15 = vpack.c.bf16 %v35_v9, %v19_v8  ;;  %v372_v20 = vpack.c.bf16 %v68_v13, %v52_v12  ;;  %v3434_v8 = vld [vmem:[%s5167_s1 + $0x228] sm:$0xff]   ;;  %v3439_v12 = vld [vmem:[%s5167_s1 + $0x2f0] sm:$0xff]  }
  0x3c   :  { %1735 = vmatmul.mubr.bf16.gmra.mrb[12].mxu1 %v401_v31  ;;  %1622 = vmatprep.mubr.bf16.mxu0 %v416_v32  ;;  %v463_v31 = vpack.c.bf16 %v255_v23, %v239_v22  ;;  %v3410_v32 = vld [vmem:[%s5167_s1 + $0x138] sm:$0xff]   ;;  %v51_v22 = vld [vmem:[%s5168_s0 + $0x120] sm:$0xff]  ;;  %v3436_v9 = vld [vmem:[%s5167_s1 + $0x2a8] sm:$0xff]  }
  0x3d   :  { %1742 = vmatprep.mubr.bf16.mxu1 %v418_v33  ;;  %2870 = vmatpush3.bf16.msra.mxu0 %v3406_v18  ;;  %v465_v33 = vpack.c.bf16 %v257_v25, %v241_v24  ;;  %v3414_v18 = vld [vmem:[%s5167_s1 + $0x200] sm:$0xff]   ;;  %v3417_v24 = vld [vmem:[%s5167_s1 + $0x248] sm:$0xff]  }
  0x3e   :  { %2952 = vmatpush3.bf16.msra.mxu1 %v3408_v21  ;;  %2871 = vmatprep.subr.bf16.mxu0 %v3409_v30  ;;  %v67_v23 = vld [vmem:[%s5168_s0 + $0x1a0] sm:$0xff]  ;;  %v3418_v25 = vld [vmem:[%s5167_s1 + $0x208] sm:$0xff]  }
  0x3f   :  { %2953 = vmatprep.subr.bf16.mxu1 %v3411_v36  ;;  %v84_v30 = vld [vmem:[%s5168_s0 + $0x228] sm:$0xff]  ;;  %v371_v36 = vpack.c.bf16 %v67_v23, %v51_v22  ;;  %v165_v22 = vld [vmem:[%s5168_s0 + $0x4b0] sm:$0xff] }
  0x40   :  { %v180_v23 = vld [vmem:[%s5168_s0 + $0x528] sm:$0xff] }
  0x41   :  { %2872 = vmatpush3.bf16.msra.mxu0 %v3410_v32  ;;  %v3421_v32 = vld [vmem:[%s5167_s1 + $0x250] sm:$0xff]  }
  0x42   :  { %2954 = vmatpush3.bf16.msra.mxu1 %v3412_v37  ;;  %v373_v37 = vpack.c.bf16 %v69_v28, %v53_v27  ;;  %v3442_v27 = vld [vmem:[%s5167_s1 + $0x238] sm:$0xff]  }
  0x43   :  { %1623 = vmatmul.mubr.bf16.gmra.mrb[16].mxu0 %v415_v46  ;;  %v3413_v46 = vld [vmem:[%s5167_s1 + $0x240] sm:$0xff]   ;;  %3103 = vmatprep.subr.bf16.mxu1 %v3415_v50  ;;  %v118_v50 = vld [vmem:[%s5168_s0 + $0x338] sm:$0xff] }
  0x44   :  { %1743 = vmatmul.mubr.bf16.gmra.mrb[16].mxu1 %v417_v48  ;;  %1630 = vmatprep.mubr.bf16.mxu0 %v432_v49  ;;  %v481_v48 = vpack.c.bf16 %v289_v41, %v273_v40  ;;  %v496_v49 = vpack.c.bf16 %v320_v43, %v304_v42  ;;  %v3422_v40 = vld [vmem:[%s5167_s1 + $0x210] sm:$0xff]   ;;  %v83_v41 = vld [vmem:[%s5168_s0 + $0x220] sm:$0xff]  ;;  %v3443_v28 = vld [vmem:[%s5167_s1 + $0x2f8] sm:$0xff]  }
  0x45   :  { %1750 = vmatprep.mubr.bf16.mxu1 %v434_v51  ;;  %3021 = vmatprep.subr.bf16.mxu0 %v3413_v46  ;;  %v498_v51 = vpack.c.bf16 %v322_v45, %v306_v44  ;;  %v99_v42 = vld [vmem:[%s5168_s0 + $0x2a0] sm:$0xff]  ;;  %v3424_v43 = vld [vmem:[%s5167_s1 + $0x290] sm:$0xff]   ;;  %v3425_v44 = vld [vmem:[%s5167_s1 + $0x258] sm:$0xff]  }
  0x46   :  { %v85_v45 = vld [vmem:[%s5168_s0 + $0x230] sm:$0xff]  ;;  %v387_v55 = vpack.c.bf16 %v99_v42, %v83_v41  ;;  %v228_v41 = vld [vmem:[%s5168_s0 + $0x6a8] sm:$0xff]  ;;  %v214_v42 = vld [vmem:[%s5168_s0 + $0x638] sm:$0xff] }
  0x47   :  { %v101_v46 = vld [vmem:[%s5168_s0 + $0x2b0] sm:$0xff] }
  0x48   :  { %v389_v57 = vpack.c.bf16 %v101_v46, %v85_v45 }
  0x4b   :  { %1631 = vmatmul.mubr.bf16.gmra.mrb[20].mxu0 %v431_v62  ;;  %v335_v62 = vld [vmem:[%s5168_s0 + $0xa00] sm:$0xff] }
  0x4c   :  { %1751 = vmatmul.mubr.bf16.gmra.mrb[20].mxu1 %v433_v0  ;;  %1638 = vmatprep.mubr.bf16.mxu0 %v448_v1  ;;  %v20_v0 = vld [vmem:[%s5168_s0 + $0x28] sm:$0xff]  ;;  %v511_v4 = vpack.c.bf16 %v335_v62, %v335_v62  ;;  %v131_v62 = vld [vmem:[%s5168_s0 + $0x3a0] sm:$0xff] }
  0x4d   :  { %1758 = vmatprep.mubr.bf16.mxu1 %v450_v2  ;;  %v36_v1 = vld [vmem:[%s5168_s0 + $0xa8] sm:$0xff]  ;;  %v22_v2 = vld [vmem:[%s5168_s0 + $0x38] sm:$0xff] }
  0x4e   :  { %v356_v6 = vpack.c.bf16 %v36_v1, %v20_v0  ;;  %v358_v7 = vpack.c.bf16 %v38_v3, %v22_v2  ;;  %v3433_v0 = vld [vmem:[%s5167_s1 + $0x268] sm:$0xff]   ;;  %v117_v1 = vld [vmem:[%s5168_s0 + $0x330] sm:$0xff] }
  0x4f   :  { %v133_v2 = vld [vmem:[%s5168_s0 + $0x3b0] sm:$0xff]  ;;  %v148_v3 = vld [vmem:[%s5168_s0 + $0x428] sm:$0xff] }
  0x50   :  { %v405_v13 = vpack.c.bf16 %v133_v2, %v117_v1  ;;  %v292_v1 = vld [vmem:[%s5168_s0 + $0x8a8] sm:$0xff]  ;;  %v278_v2 = vld [vmem:[%s5168_s0 + $0x838] sm:$0xff] }
  0x53   :  { %1639 = vmatmul.mubr.bf16.gmra.mrb[24].mxu0 %v447_v14  ;;  %v54_v14 = vld [vmem:[%s5168_s0 + $0x138] sm:$0xff] }
  0x54   :  { %1759 = vmatmul.mubr.bf16.gmra.mrb[24].mxu1 %v449_v16  ;;  %1646 = vmatprep.mubr.bf16.mxu0 %v464_v17  ;;  %v70_v16 = vld [vmem:[%s5168_s0 + $0x1b8] sm:$0xff]  ;;  %v357_v17 = vpack.c.bf16 %v37_v11, %v21_v10  ;;  %v3437_v10 = vld [vmem:[%s5167_s1 + $0x270] sm:$0xff]  }
  0x55   :  { %1766 = vmatprep.mubr.bf16.mxu1 %v466_v19  ;;  %v3416_v19 = vld [vmem:[%s5167_s1 + $0x280] sm:$0xff]   ;;  %v374_v21 = vpack.c.bf16 %v70_v16, %v54_v14  ;;  %v3438_v16 = vld [vmem:[%s5167_s1 + $0x230] sm:$0xff]  }
  0x5b   :  { %1647 = vmatmul.mubr.bf16.gmra.mrb[28].mxu0 %v463_v31  ;;  %v100_v31 = vld [vmem:[%s5168_s0 + $0x2a8] sm:$0xff] }
  0x5c   :  { %1767 = vmatmul.mubr.bf16.gmra.mrb[28].mxu1 %v465_v33  ;;  %1654 = vmatprep.mubr.bf16.mxu0 %v480_v34  ;;  %v86_v33 = vld [vmem:[%s5168_s0 + $0x238] sm:$0xff]  ;;  %v388_v38 = vpack.c.bf16 %v100_v31, %v84_v30 }
  0x5d   :  { %1774 = vmatprep.mubr.bf16.mxu1 %v482_v35  ;;  %v102_v34 = vld [vmem:[%s5168_s0 + $0x2b8] sm:$0xff]  ;;  %v3423_v35 = vld [vmem:[%s5167_s1 + $0x2d0] sm:$0xff]  }
  0x5e   :  { %v390_v39 = vpack.c.bf16 %v102_v34, %v86_v33  ;;  %v179_v34 = vld [vmem:[%s5168_s0 + $0x520] sm:$0xff] }
  0x63   :  { %1655 = vmatmul.mubr.bf16.gmra.mrb[32].mxu0 %v479_v47  ;;  %v116_v47 = vld [vmem:[%s5168_s0 + $0x328] sm:$0xff] }
  0x64   :  { %1775 = vmatmul.mubr.bf16.gmra.mrb[32].mxu1 %v481_v48  ;;  %1662 = vmatprep.mubr.bf16.mxu0 %v496_v49  ;;  %v132_v48 = vld [vmem:[%s5168_s0 + $0x3a8] sm:$0xff]  ;;  %v3427_v49 = vld [vmem:[%s5167_s1 + $0x2d8] sm:$0xff]  }
  0x65   :  { %1782 = vmatprep.mubr.bf16.mxu1 %v498_v51  ;;  %v134_v51 = vld [vmem:[%s5168_s0 + $0x3b8] sm:$0xff] }
  0x6b   :  { %1663 = vmatmul.mubr.bf16.gmra.mrb[36].mxu0 %v495_v58  ;;  %v404_v58 = vpack.c.bf16 %v132_v48, %v116_v47  ;;  %v211_v48 = vld [vmem:[%s5168_s0 + $0x620] sm:$0xff] }
  0x6c   :  { %1783 = vmatmul.mubr.bf16.gmra.mrb[36].mxu1 %v497_v59  ;;  %1670 = vmatprep.mubr.bf16.mxu0 %v512_v60  ;;  %v406_v59 = vpack.c.bf16 %v134_v51, %v118_v50  ;;  %v3430_v60 = vld [vmem:[%s5167_s1 + $0x220] sm:$0xff]   ;;  %v213_v50 = vld [vmem:[%s5168_s0 + $0x630] sm:$0xff] }
  0x6d   :  { %1790 = vmatprep.mubr.bf16.mxu1 %v514_v61  ;;  %v115_v61 = vld [vmem:[%s5168_s0 + $0x320] sm:$0xff]  ;;  %v229_v51 = vld [vmem:[%s5168_s0 + $0x6b0] sm:$0xff] }
  0x6e   :  { %v403_v11 = vpack.c.bf16 %v131_v62, %v115_v61  ;;  %v259_v61 = vld [vmem:[%s5168_s0 + $0x7a0] sm:$0xff]  ;;  %v245_v62 = vld [vmem:[%s5168_s0 + $0x730] sm:$0xff] }
  0x73   :  { %1671 = vmatmul.mubr.bf16.gmra.mrb[40].mxu0 %v511_v4  ;;  %v164_v4 = vld [vmem:[%s5168_s0 + $0x4a8] sm:$0xff] }
  0x74   :  { %1791 = vmatmul.mubr.bf16.gmra.mrb[40].mxu1 %v513_v5  ;;  %1830 = vmatprep.mubr.bf16.mxu0 %v356_v6  ;;  %v3435_v5 = vld [vmem:[%s5167_s1 + $0x2e8] sm:$0xff]   ;;  %v150_v6 = vld [vmem:[%s5168_s0 + $0x438] sm:$0xff]  ;;  %v420_v14 = vpack.c.bf16 %v164_v4, %v148_v3 }
  0x75   :  { %1950 = vmatprep.mubr.bf16.mxu1 %v358_v7  ;;  %v166_v7 = vld [vmem:[%s5168_s0 + $0x4b8] sm:$0xff] }
  0x76   :  { %v294_v3 = vld [vmem:[%s5168_s0 + $0x8b8] sm:$0xff] }
  0x7b   :  { %1831 = vmatmul.mubr.bf16.vlgmr.msra.gmra.mrb[44].mxu0 %v355_v15  ;;  %v422_v15 = vpack.c.bf16 %v166_v7, %v150_v6  ;;  %v486_v7 = vpack.c.bf16 %v294_v3, %v278_v2  ;;  %v106_v2 = vld [vmem:[%s5168_s0 + $0x2d8] sm:$0xff]  ;;  %v3455_v3 = vld [vmem:[%s5167_s1 + $0x3d0] sm:$0xff]  }
  0x7c   :  { %1951 = vmatmul.mubr.bf16.vlgmr.msra.gmra.mrb[44].mxu1 %v357_v17  ;;  %3022 = vmatpush3.bf16.msra.mxu0 %v3414_v18  ;;  %v3440_v17 = vld [vmem:[%s5167_s1 + $0x2b0] sm:$0xff]   ;;  %v147_v18 = vld [vmem:[%s5168_s0 + $0x420] sm:$0xff] }
  0x7d   :  { %3104 = vmatpush3.bf16.msra.mxu1 %v3416_v19  ;;  %1838 = vmatprep.mubr.bf16.mxu0 %v372_v20  ;;  %v163_v19 = vld [vmem:[%s5168_s0 + $0x4a0] sm:$0xff]  ;;  %v3441_v20 = vld [vmem:[%s5167_s1 + $0x278] sm:$0xff]  }
  0x7e   :  { %1958 = vmatprep.mubr.bf16.mxu1 %v374_v21  ;;  %3023 = vmatprep.subr.bf16.mxu0 %v3417_v24  ;;  %v149_v21 = vld [vmem:[%s5168_s0 + $0x430] sm:$0xff]  ;;  %v196_v24 = vld [vmem:[%s5168_s0 + $0x5a8] sm:$0xff]  ;;  %v419_v30 = vpack.c.bf16 %v163_v19, %v147_v18 }
  0x7f   :  { %3105 = vmatprep.subr.bf16.mxu1 %v3419_v26  ;;  %v198_v26 = vld [vmem:[%s5168_s0 + $0x5b8] sm:$0xff]  ;;  %v421_v31 = vpack.c.bf16 %v165_v22, %v149_v21  ;;  %v323_v21 = vld [vmem:[%s5168_s0 + $0x9a0] sm:$0xff]  ;;  %v309_v22 = vld [vmem:[%s5168_s0 + $0x930] sm:$0xff] }
  0x80   :  { %3024 = vmatpush3.bf16.msra.mxu0 %v3418_v25  ;;  %v182_v25 = vld [vmem:[%s5168_s0 + $0x538] sm:$0xff] }
  0x81   :  { %3106 = vmatpush3.bf16.msra.mxu1 %v3420_v29  ;;  %3025 = vmatprep.subr.bf16.mxu0 %v3421_v32  ;;  %v3444_v29 = vld [vmem:[%s5167_s1 + $0x2b8] sm:$0xff]   ;;  %v436_v32 = vpack.c.bf16 %v196_v24, %v180_v23  ;;  %v438_v33 = vpack.c.bf16 %v198_v26, %v182_v25  ;;  %v325_v23 = vld [vmem:[%s5168_s0 + $0x9b0] sm:$0xff]  ;;  %v340_v24 = vld [vmem:[%s5168_s0 + $0xa28] sm:$0xff] }
  0x82   :  { %3107 = vmatprep.subr.bf16.mxu1 %v3423_v35  ;;  %v195_v35 = vld [vmem:[%s5168_s0 + $0x5a0] sm:$0xff]  ;;  %v342_v25 = vld [vmem:[%s5168_s0 + $0xa38] sm:$0xff] }
  0x83   :  { %1839 = vmatmul.mubr.bf16.gmra.mrb[48].mxu0 %v371_v36  ;;  %v3445_v36 = vld [vmem:[%s5167_s1 + $0x340] sm:$0xff]  }
  0x84   :  { %1959 = vmatmul.mubr.bf16.gmra.mrb[48].mxu1 %v373_v37  ;;  %1846 = vmatprep.mubr.bf16.mxu0 %v388_v38  ;;  %v181_v37 = vld [vmem:[%s5168_s0 + $0x530] sm:$0xff] }
  0x85   :  { %1966 = vmatprep.mubr.bf16.mxu1 %v390_v39  ;;  %3026 = vmatpush3.bf16.msra.mxu0 %v3422_v40  ;;  %v197_v38 = vld [vmem:[%s5168_s0 + $0x5b0] sm:$0xff]  ;;  %v3447_v39 = vld [vmem:[%s5167_s1 + $0x3c0] sm:$0xff]   ;;  %v212_v40 = vld [vmem:[%s5168_s0 + $0x628] sm:$0xff] }
  0x86   :  { %3108 = vmatpush3.bf16.msra.mxu1 %v3424_v43  ;;  %3027 = vmatprep.subr.bf16.mxu0 %v3425_v44  ;;  %v230_v43 = vld [vmem:[%s5168_s0 + $0x6b8] sm:$0xff]  ;;  %v435_v44 = vpack.c.bf16 %v195_v35, %v179_v34  ;;  %v437_v45 = vpack.c.bf16 %v197_v38, %v181_v37  ;;  %v452_v46 = vpack.c.bf16 %v228_v41, %v212_v40  ;;  %v23_v40 = vld [vmem:[%s5168_s0 + $0x40] sm:$0xff] }
  0x87   :  { %3109 = vmatprep.subr.bf16.mxu1 %v3427_v49  ;;  %v454_v47 = vpack.c.bf16 %v230_v43, %v214_v42  ;;  %v227_v49 = vld [vmem:[%s5168_s0 + $0x6a0] sm:$0xff]  ;;  %v26_v34 = vld [vmem:[%s5168_s0 + $0x58] sm:$0xff]  ;;  %v25_v42 = vld [vmem:[%s5168_s0 + $0x50] sm:$0xff] }
  0x88   :  { %v42_v35 = vld [vmem:[%s5168_s0 + $0xd8] sm:$0xff]  ;;  %v39_v41 = vld [vmem:[%s5168_s0 + $0xc0] sm:$0xff]  ;;  %v41_v43 = vld [vmem:[%s5168_s0 + $0xd0] sm:$0xff] }
  0x89   :  { %3028 = vmatpush3.bf16.msra.mxu0 %v3426_v52  ;;  %v244_v52 = vld [vmem:[%s5168_s0 + $0x728] sm:$0xff] }
  0x8a   :  { %3110 = vmatpush3.bf16.msra.mxu1 %v3428_v53  ;;  %3029 = vmatprep.subr.bf16.mxu0 %v3429_v54  ;;  %v260_v53 = vld [vmem:[%s5168_s0 + $0x7a8] sm:$0xff]  ;;  %v246_v54 = vld [vmem:[%s5168_s0 + $0x738] sm:$0xff] }
  0x8b   :  { %1847 = vmatmul.mubr.bf16.gmra.mrb[52].mxu0 %v387_v55  ;;  %3111 = vmatprep.subr.bf16.mxu1 %v3431_v56  ;;  %v262_v55 = vld [vmem:[%s5168_s0 + $0x7b8] sm:$0xff]  ;;  %v451_v56 = vpack.c.bf16 %v227_v49, %v211_v48  ;;  %v361_v49 = vpack.c.bf16 %v41_v43, %v25_v42  ;;  %v3469_v42 = vld [vmem:[%s5167_s1 + $0x370] sm:$0xff]  }
  0x8c   :  { %1967 = vmatmul.mubr.bf16.gmra.mrb[52].mxu1 %v389_v57  ;;  %1854 = vmatprep.mubr.bf16.mxu0 %v404_v58  ;;  %v453_v57 = vpack.c.bf16 %v229_v51, %v213_v50  ;;  %v468_v58 = vpack.c.bf16 %v260_v53, %v244_v52  ;;  %v74_v48 = vld [vmem:[%s5168_s0 + $0x1d8] sm:$0xff]  ;;  %v3446_v50 = vld [vmem:[%s5167_s1 + $0x300] sm:$0xff]  }
  0x8d   :  { %1974 = vmatprep.mubr.bf16.mxu1 %v406_v59  ;;  %3030 = vmatpush3.bf16.msra.mxu0 %v3430_v60  ;;  %v470_v59 = vpack.c.bf16 %v262_v55, %v246_v54  ;;  %v243_v60 = vld [vmem:[%s5168_s0 + $0x720] sm:$0xff]  ;;  %v3449_v55 = vld [vmem:[%s5167_s1 + $0x348] sm:$0xff]  }
  0x8e   :  { %3112 = vmatpush3.bf16.msra.mxu1 %v3432_v63  ;;  %3031 = vmatprep.subr.bf16.mxu0 %v3433_v0  ;;  %v261_v63 = vld [vmem:[%s5168_s0 + $0x7b0] sm:$0xff]  ;;  %v276_v0 = vld [vmem:[%s5168_s0 + $0x828] sm:$0xff]  ;;  %v467_v4 = vpack.c.bf16 %v259_v61, %v243_v60  ;;  %v3448_v51 = vld [vmem:[%s5167_s1 + $0x380] sm:$0xff]  }
  0x8f   :  { %3113 = vmatprep.subr.bf16.mxu1 %v3435_v5  ;;  %v469_v5 = vpack.c.bf16 %v261_v63, %v245_v62  ;;  %v484_v6 = vpack.c.bf16 %v292_v1, %v276_v0  ;;  %v55_v54 = vld [vmem:[%s5168_s0 + $0x140] sm:$0xff]  ;;  %v3450_v60 = vld [vmem:[%s5167_s1 + $0x308] sm:$0xff]   ;;  %v3453_v0 = vld [vmem:[%s5167_s1 + $0x350] sm:$0xff]  }
  0x90   :  { %v3452_v61 = vld [vmem:[%s5167_s1 + $0x388] sm:$0xff]   ;;  %v90_v1 = vld [vmem:[%s5168_s0 + $0x258] sm:$0xff] }
  0x91   :  { %3032 = vmatpush3.bf16.msra.mxu0 %v3434_v8  ;;  %v275_v8 = vld [vmem:[%s5168_s0 + $0x820] sm:$0xff]  ;;  %v88_v62 = vld [vmem:[%s5168_s0 + $0x248] sm:$0xff] }
  0x92   :  { %3114 = vmatpush3.bf16.msra.mxu1 %v3436_v9  ;;  %3033 = vmatprep.subr.bf16.mxu0 %v3437_v10  ;;  %v291_v9 = vld [vmem:[%s5168_s0 + $0x8a0] sm:$0xff]  ;;  %v277_v10 = vld [vmem:[%s5168_s0 + $0x830] sm:$0xff]  ;;  %v104_v63 = vld [vmem:[%s5168_s0 + $0x2c8] sm:$0xff] }
  0x93   :  { %1855 = vmatmul.mubr.bf16.gmra.mrb[56].mxu0 %v403_v11  ;;  %3115 = vmatprep.subr.bf16.mxu1 %v3439_v12  ;;  %v293_v11 = vld [vmem:[%s5168_s0 + $0x8b0] sm:$0xff]  ;;  %v308_v12 = vld [vmem:[%s5168_s0 + $0x928] sm:$0xff] }
  0x94   :  { %1975 = vmatmul.mubr.bf16.gmra.mrb[56].mxu1 %v405_v13  ;;  %1862 = vmatprep.mubr.bf16.mxu0 %v420_v14  ;;  %v324_v13 = vld [vmem:[%s5168_s0 + $0x9a8] sm:$0xff]  ;;  %v310_v14 = vld [vmem:[%s5168_s0 + $0x938] sm:$0xff] }
  0x95   :  { %1982 = vmatprep.mubr.bf16.mxu1 %v422_v15  ;;  %3034 = vmatpush3.bf16.msra.mxu0 %v3438_v16  ;;  %v326_v15 = vld [vmem:[%s5168_s0 + $0x9b8] sm:$0xff]  ;;  %v483_v16 = vpack.c.bf16 %v291_v9, %v275_v8  ;;  %v500_v18 = vpack.c.bf16 %v324_v13, %v308_v12  ;;  %v3454_v8 = vld [vmem:[%s5167_s1 + $0x310] sm:$0xff]   ;;  %v103_v12 = vld [vmem:[%s5168_s0 + $0x2c0] sm:$0xff] }
  0x96   :  { %3116 = vmatpush3.bf16.msra.mxu1 %v3440_v17  ;;  %3035 = vmatprep.subr.bf16.mxu0 %v3441_v20  ;;  %v485_v17 = vpack.c.bf16 %v293_v11, %v277_v10  ;;  %v502_v19 = vpack.c.bf16 %v326_v15, %v310_v14  ;;  %v307_v20 = vld [vmem:[%s5168_s0 + $0x920] sm:$0xff]  ;;  %v3456_v9 = vld [vmem:[%s5167_s1 + $0x390] sm:$0xff]   ;;  %v3457_v10 = vld [vmem:[%s5167_s1 + $0x358] sm:$0xff]  }
  0x97   :  { %3117 = vmatprep.subr.bf16.mxu1 %v3443_v28  ;;  %v499_v26 = vpack.c.bf16 %v323_v21, %v307_v20  ;;  %v516_v28 = vpack.c.bf16 %v340_v24, %v340_v24  ;;  %v87_v11 = vld [vmem:[%s5168_s0 + $0x240] sm:$0xff]  ;;  %v3459_v13 = vld [vmem:[%s5167_s1 + $0x3d8] sm:$0xff]   ;;  %v89_v14 = vld [vmem:[%s5168_s0 + $0x250] sm:$0xff] }
  0x98   :  { %v105_v15 = vld [vmem:[%s5168_s0 + $0x2d0] sm:$0xff]  ;;  %v138_v20 = vld [vmem:[%s5168_s0 + $0x3d8] sm:$0xff]  ;;  %v3463_v24 = vld [vmem:[%s5167_s1 + $0x3e0] sm:$0xff]  }
  0x99   :  { %3036 = vmatpush3.bf16.msra.mxu0 %v3442_v27  ;;  %v501_v27 = vpack.c.bf16 %v325_v23, %v309_v22  ;;  %v3460_v21 = vld [vmem:[%s5167_s1 + $0x398] sm:$0xff]   ;;  %v3461_v22 = vld [vmem:[%s5167_s1 + $0x360] sm:$0xff]   ;;  %v391_v23 = vpack.c.bf16 %v103_v12, %v87_v11 }
  0x9a   :  { %3118 = vmatpush3.bf16.msra.mxu1 %v3444_v29  ;;  %3185 = vmatprep.subr.bf16.mxu0 %v3445_v36  ;;  %v518_v29 = vpack.c.bf16 %v342_v25, %v342_v25  ;;  %v393_v25 = vpack.c.bf16 %v105_v15, %v89_v14  ;;  %v4544_v12 = vld [vmem:[%s5169_s2] ss:$0 sm:$0xff] }
  0x9b   :  { %1863 = vmatmul.mubr.bf16.gmra.mrb[60].mxu0 %v419_v30  ;;  %3267 = vmatprep.subr.bf16.mxu1 %v3447_v39  ;;  %v339_v30 = vld [vmem:[%s5168_s0 + $0xa20] sm:$0xff]  ;;  %v362_v39 = vpack.c.bf16 %v42_v35, %v26_v34  ;;  %v121_v34 = vld [vmem:[%s5168_s0 + $0x350] sm:$0xff] }
  0x9c   :  { %1983 = vmatmul.mubr.bf16.gmra.mrb[60].mxu1 %v421_v31  ;;  %1870 = vmatprep.mubr.bf16.mxu0 %v436_v32  ;;  %v341_v31 = vld [vmem:[%s5168_s0 + $0xa30] sm:$0xff]  ;;  %v24_v32 = vld [vmem:[%s5168_s0 + $0x48] sm:$0xff]  ;;  %v515_v36 = vpack.c.bf16 %v339_v30, %v339_v30 }
  0x9d   :  { %1990 = vmatprep.mubr.bf16.mxu1 %v438_v33  ;;  %v40_v33 = vld [vmem:[%s5168_s0 + $0xc8] sm:$0xff]  ;;  %v517_v37 = vpack.c.bf16 %v341_v31, %v341_v31  ;;  %v119_v31 = vld [vmem:[%s5168_s0 + $0x340] sm:$0xff]  ;;  %v137_v35 = vld [vmem:[%s5168_s0 + $0x3d0] sm:$0xff] }
  0x9e   :  { %v360_v38 = vpack.c.bf16 %v40_v33, %v24_v32  ;;  %v3465_v30 = vld [vmem:[%s5167_s1 + $0x368] sm:$0xff]   ;;  %v135_v32 = vld [vmem:[%s5168_s0 + $0x3c0] sm:$0xff] }
  0x9f   :  { %v3467_v33 = vld [vmem:[%s5167_s1 + $0x3e8] sm:$0xff]   ;;  %v407_v43 = vpack.c.bf16 %v135_v32, %v119_v31  ;;  %v231_v31 = vld [vmem:[%s5168_s0 + $0x6c0] sm:$0xff]  ;;  %v217_v32 = vld [vmem:[%s5168_s0 + $0x650] sm:$0xff] }
  0xa3   :  { %1871 = vmatmul.mubr.bf16.gmra.mrb[64].mxu0 %v435_v44  ;;  %v56_v44 = vld [vmem:[%s5168_s0 + $0x148] sm:$0xff] }
  0xa4   :  { %1991 = vmatmul.mubr.bf16.gmra.mrb[64].mxu1 %v437_v45  ;;  %1878 = vmatprep.mubr.bf16.mxu0 %v452_v46  ;;  %v72_v45 = vld [vmem:[%s5168_s0 + $0x1c8] sm:$0xff]  ;;  %v58_v46 = vld [vmem:[%s5168_s0 + $0x158] sm:$0xff] }
  0xa5   :  { %1998 = vmatprep.mubr.bf16.mxu1 %v454_v47  ;;  %v359_v47 = vpack.c.bf16 %v39_v41, %v23_v40  ;;  %v376_v52 = vpack.c.bf16 %v72_v45, %v56_v44  ;;  %v378_v53 = vpack.c.bf16 %v74_v48, %v58_v46  ;;  %v170_v40 = vld [vmem:[%s5168_s0 + $0x4d8] sm:$0xff]  ;;  %v3468_v41 = vld [vmem:[%s5167_s1 + $0x3a8] sm:$0xff]   ;;  %v3471_v44 = vld [vmem:[%s5167_s1 + $0x3f0] sm:$0xff]   ;;  %v409_v45 = vpack.c.bf16 %v137_v35, %v121_v34 }
  0xa6   :  { %v3470_v48 = vld [vmem:[%s5167_s1 + $0x330] sm:$0xff]   ;;  %v248_v34 = vld [vmem:[%s5168_s0 + $0x748] sm:$0xff] }
  0xa7   :  { %v264_v35 = vld [vmem:[%s5168_s0 + $0x7c8] sm:$0xff] }
  0xab   :  { %1879 = vmatmul.mubr.bf16.gmra.mrb[68].mxu0 %v451_v56  ;;  %v71_v56 = vld [vmem:[%s5168_s0 + $0x1c0] sm:$0xff] }
  0xac   :  { %1999 = vmatmul.mubr.bf16.gmra.mrb[68].mxu1 %v453_v57  ;;  %1886 = vmatprep.mubr.bf16.mxu0 %v468_v58  ;;  %v57_v57 = vld [vmem:[%s5168_s0 + $0x150] sm:$0xff]  ;;  %v3451_v58 = vld [vmem:[%s5167_s1 + $0x3c8] sm:$0xff]  }
  0xad   :  { %2006 = vmatprep.mubr.bf16.mxu1 %v470_v59  ;;  %v73_v59 = vld [vmem:[%s5168_s0 + $0x1d0] sm:$0xff] }
  0xb3   :  { %1887 = vmatmul.mubr.bf16.gmra.mrb[72].mxu0 %v467_v4  ;;  %v375_v4 = vpack.c.bf16 %v71_v56, %v55_v54  ;;  %v153_v54 = vld [vmem:[%s5168_s0 + $0x450] sm:$0xff]  ;;  %v184_v56 = vld [vmem:[%s5168_s0 + $0x548] sm:$0xff] }
  0xb4   :  { %2007 = vmatmul.mubr.bf16.gmra.mrb[72].mxu1 %v469_v5  ;;  %1894 = vmatprep.mubr.bf16.mxu0 %v484_v6  ;;  %v377_v5 = vpack.c.bf16 %v73_v59, %v57_v57  ;;  %v392_v6 = vpack.c.bf16 %v104_v63, %v88_v62  ;;  %v200_v57 = vld [vmem:[%s5168_s0 + $0x5c8] sm:$0xff]  ;;  %v186_v59 = vld [vmem:[%s5168_s0 + $0x558] sm:$0xff] }
  0xb5   :  { %2014 = vmatprep.mubr.bf16.mxu1 %v486_v7  ;;  %v394_v7 = vpack.c.bf16 %v106_v2, %v90_v1  ;;  %v183_v2 = vld [vmem:[%s5168_s0 + $0x540] sm:$0xff] }
  0xbb   :  { %1895 = vmatmul.mubr.bf16.gmra.mrb[76].mxu0 %v483_v16  ;;  %v120_v16 = vld [vmem:[%s5168_s0 + $0x348] sm:$0xff] }
  0xbc   :  { %2015 = vmatmul.mubr.bf16.gmra.mrb[76].mxu1 %v485_v17  ;;  %1902 = vmatprep.mubr.bf16.mxu0 %v500_v18  ;;  %v136_v17 = vld [vmem:[%s5168_s0 + $0x3c8] sm:$0xff]  ;;  %v122_v18 = vld [vmem:[%s5168_s0 + $0x358] sm:$0xff] }
  0xbd   :  { %2022 = vmatprep.mubr.bf16.mxu1 %v502_v19  ;;  %v3458_v19 = vld [vmem:[%s5167_s1 + $0x318] sm:$0xff]  }
  0xc3   :  { %1903 = vmatmul.mubr.bf16.gmra.mrb[80].mxu0 %v499_v26  ;;  %v408_v26 = vpack.c.bf16 %v136_v17, %v120_v16 }
  0xc4   :  { %2023 = vmatmul.mubr.bf16.gmra.mrb[80].mxu1 %v501_v27  ;;  %1910 = vmatprep.mubr.bf16.mxu0 %v516_v28  ;;  %v410_v27 = vpack.c.bf16 %v138_v20, %v122_v18  ;;  %v3462_v28 = vld [vmem:[%s5167_s1 + $0x320] sm:$0xff]  }
  0xc5   :  { %2030 = vmatprep.mubr.bf16.mxu1 %v518_v29  ;;  %v3464_v29 = vld [vmem:[%s5167_s1 + $0x3a0] sm:$0xff]  }
  0xcb   :  { %1911 = vmatmul.mubr.bf16.gmra.mrb[84].mxu0 %v515_v36  ;;  %v152_v36 = vld [vmem:[%s5168_s0 + $0x448] sm:$0xff] }
  0xcc   :  { %2031 = vmatmul.mubr.bf16.gmra.mrb[84].mxu1 %v517_v37  ;;  %2070 = vmatprep.mubr.bf16.mxu0 %v360_v38  ;;  %v168_v37 = vld [vmem:[%s5168_s0 + $0x4c8] sm:$0xff]  ;;  %v154_v38 = vld [vmem:[%s5168_s0 + $0x458] sm:$0xff] }
  0xcd   :  { %2190 = vmatprep.mubr.bf16.mxu1 %v362_v39  ;;  %v3466_v39 = vld [vmem:[%s5167_s1 + $0x328] sm:$0xff]   ;;  %v424_v46 = vpack.c.bf16 %v168_v37, %v152_v36 }
  0xd3   :  { %2071 = vmatmul.mubr.bf16.vlgmr.msra.gmra.mrb[88].mxu0 %v359_v47  ;;  %v426_v47 = vpack.c.bf16 %v170_v40, %v154_v38  ;;  %v250_v38 = vld [vmem:[%s5168_s0 + $0x758] sm:$0xff] }
  0xd4   :  { %2191 = vmatmul.mubr.bf16.vlgmr.msra.gmra.mrb[88].mxu1 %v361_v49  ;;  %3186 = vmatpush3.bf16.msra.mxu0 %v3446_v50  ;;  %v3472_v49 = vld [vmem:[%s5167_s1 + $0x3b0] sm:$0xff]   ;;  %v3473_v50 = vld [vmem:[%s5167_s1 + $0x378] sm:$0xff]  }
  0xd5   :  { %3268 = vmatpush3.bf16.msra.mxu1 %v3448_v51  ;;  %2078 = vmatprep.mubr.bf16.mxu0 %v376_v52  ;;  %v151_v51 = vld [vmem:[%s5168_s0 + $0x440] sm:$0xff]  ;;  %v3475_v52 = vld [vmem:[%s5167_s1 + $0x3f8] sm:$0xff]  }
  0xd6   :  { %2198 = vmatprep.mubr.bf16.mxu1 %v378_v53  ;;  %3187 = vmatprep.subr.bf16.mxu0 %v3449_v55  ;;  %v167_v53 = vld [vmem:[%s5168_s0 + $0x4c0] sm:$0xff]  ;;  %v169_v55 = vld [vmem:[%s5168_s0 + $0x4d0] sm:$0xff] }
  0xd7   :  { %3269 = vmatprep.subr.bf16.mxu1 %v3451_v58  ;;  %v3474_v58 = vld [vmem:[%s5167_s1 + $0x338] sm:$0xff]   ;;  %v423_v62 = vpack.c.bf16 %v167_v53, %v151_v51  ;;  %v425_v63 = vpack.c.bf16 %v169_v55, %v153_v54 }
  0xd8   :  { %3188 = vmatpush3.bf16.msra.mxu0 %v3450_v60  ;;  %v202_v60 = vld [vmem:[%s5168_s0 + $0x5d8] sm:$0xff] }
  0xd9   :  { %3270 = vmatpush3.bf16.msra.mxu1 %v3452_v61  ;;  %3189 = vmatprep.subr.bf16.mxu0 %v3453_v0  ;;  %v3476_v61 = vld [vmem:[%s5167_s1 + $0x3b8] sm:$0xff]   ;;  %v440_v0 = vpack.c.bf16 %v200_v57, %v184_v56  ;;  %v442_v1 = vpack.c.bf16 %v202_v60, %v186_v59  ;;  %v263_v59 = vld [vmem:[%s5168_s0 + $0x7c0] sm:$0xff]  ;;  %v249_v60 = vld [vmem:[%s5168_s0 + $0x750] sm:$0xff] }
  0xda   :  { %3271 = vmatprep.subr.bf16.mxu1 %v3455_v3  ;;  %v199_v3 = vld [vmem:[%s5168_s0 + $0x5c0] sm:$0xff] }
  0xdb   :  { %2079 = vmatmul.mubr.bf16.gmra.mrb[92].mxu0 %v375_v4  ;;  %v185_v4 = vld [vmem:[%s5168_s0 + $0x550] sm:$0xff]  ;;  %v439_v14 = vpack.c.bf16 %v199_v3, %v183_v2  ;;  %v282_v2 = vld [vmem:[%s5168_s0 + $0x858] sm:$0xff] }
  0xdc   :  { %2199 = vmatmul.mubr.bf16.gmra.mrb[92].mxu1 %v377_v5  ;;  %2086 = vmatprep.mubr.bf16.mxu0 %v392_v6  ;;  %v201_v5 = vld [vmem:[%s5168_s0 + $0x5d0] sm:$0xff]  ;;  %v216_v6 = vld [vmem:[%s5168_s0 + $0x648] sm:$0xff]  ;;  %v298_v3 = vld [vmem:[%s5168_s0 + $0x8d8] sm:$0xff] }
  0xdd   :  { %2206 = vmatprep.mubr.bf16.mxu1 %v394_v7  ;;  %3190 = vmatpush3.bf16.msra.mxu0 %v3454_v8  ;;  %v232_v7 = vld [vmem:[%s5168_s0 + $0x6c8] sm:$0xff]  ;;  %v441_v18 = vpack.c.bf16 %v201_v5, %v185_v4 }
  0xde   :  { %3272 = vmatpush3.bf16.msra.mxu1 %v3456_v9  ;;  %3191 = vmatprep.subr.bf16.mxu0 %v3457_v10  ;;  %v218_v9 = vld [vmem:[%s5168_s0 + $0x658] sm:$0xff] }
  0xdf   :  { %3273 = vmatprep.subr.bf16.mxu1 %v3459_v13  ;;  %v234_v10 = vld [vmem:[%s5168_s0 + $0x6d8] sm:$0xff] }
  0xe1   :  { %3192 = vmatpush3.bf16.msra.mxu0 %v3458_v19  ;;  %v456_v19 = vpack.c.bf16 %v232_v7, %v216_v6 }
  0xe2   :  { %3274 = vmatpush3.bf16.msra.mxu1 %v3460_v21  ;;  %3193 = vmatprep.subr.bf16.mxu0 %v3461_v22 }
  0xe3   :  { %2087 = vmatmul.mubr.bf16.gmra.mrb[96].mxu0 %v391_v23  ;;  %3275 = vmatprep.subr.bf16.mxu1 %v3463_v24  ;;  %v458_v23 = vpack.c.bf16 %v234_v10, %v218_v9 }
  0xe4   :  { %2207 = vmatmul.mubr.bf16.gmra.mrb[96].mxu1 %v393_v25  ;;  %2094 = vmatprep.mubr.bf16.mxu0 %v408_v26 }
  0xe5   :  { %2214 = vmatprep.mubr.bf16.mxu1 %v410_v27  ;;  %3194 = vmatpush3.bf16.msra.mxu0 %v3462_v28 }
  0xe6   :  { %3276 = vmatpush3.bf16.msra.mxu1 %v3464_v29  ;;  %3195 = vmatprep.subr.bf16.mxu0 %v3465_v30  ;;  %v215_v30 = vld [vmem:[%s5168_s0 + $0x640] sm:$0xff] }
  0xe7   :  { %3277 = vmatprep.subr.bf16.mxu1 %v3467_v33  ;;  %v233_v33 = vld [vmem:[%s5168_s0 + $0x6d0] sm:$0xff] }
  0xe9   :  { %3196 = vmatpush3.bf16.msra.mxu0 %v3466_v39  ;;  %v266_v39 = vld [vmem:[%s5168_s0 + $0x7d8] sm:$0xff] }
  0xea   :  { %3278 = vmatpush3.bf16.msra.mxu1 %v3468_v41  ;;  %3197 = vmatprep.subr.bf16.mxu0 %v3469_v42  ;;  %v455_v42 = vpack.c.bf16 %v231_v31, %v215_v30  ;;  %v474_v51 = vpack.c.bf16 %v266_v39, %v250_v38 }
  0xeb   :  { %2095 = vmatmul.mubr.bf16.gmra.mrb[100].mxu0 %v407_v43  ;;  %3279 = vmatprep.subr.bf16.mxu1 %v3471_v44 }
  0xec   :  { %2215 = vmatmul.mubr.bf16.gmra.mrb[100].mxu1 %v409_v45  ;;  %2102 = vmatprep.mubr.bf16.mxu0 %v424_v46  ;;  %v457_v46 = vpack.c.bf16 %v233_v33, %v217_v32  ;;  %v314_v32 = vld [vmem:[%s5168_s0 + $0x958] sm:$0xff] }
  0xed   :  { %2222 = vmatprep.mubr.bf16.mxu1 %v426_v47  ;;  %3198 = vmatpush3.bf16.msra.mxu0 %v3470_v48  ;;  %v472_v47 = vpack.c.bf16 %v264_v35, %v248_v34  ;;  %v330_v33 = vld [vmem:[%s5168_s0 + $0x9d8] sm:$0xff] }
  0xee   :  { %3280 = vmatpush3.bf16.msra.mxu1 %v3472_v49  ;;  %3199 = vmatprep.subr.bf16.mxu0 %v3473_v50 }
  0xef   :  { %3281 = vmatprep.subr.bf16.mxu1 %v3475_v52 }
  0xf1   :  { %3200 = vmatpush3.bf16.msra.mxu0 %v3474_v58  ;;  %v247_v58 = vld [vmem:[%s5168_s0 + $0x740] sm:$0xff] }
  0xf2   :  { %3282 = vmatpush3.bf16.msra.mxu1 %v3476_v61  ;;  %v265_v61 = vld [vmem:[%s5168_s0 + $0x7d0] sm:$0xff]  ;;  %v471_v6 = vpack.c.bf16 %v263_v59, %v247_v58  ;;  %v344_v58 = vld [vmem:[%s5168_s0 + $0xa48] sm:$0xff] }
  0xf3   :  { %2103 = vmatmul.mubr.bf16.gmra.mrb[104].mxu0 %v423_v62  ;;  %v280_v62 = vld [vmem:[%s5168_s0 + $0x848] sm:$0xff]  ;;  %v473_v10 = vpack.c.bf16 %v265_v61, %v249_v60  ;;  %v346_v61 = vld [vmem:[%s5168_s0 + $0xa58] sm:$0xff] }
  0xf4   :  { %2223 = vmatmul.mubr.bf16.gmra.mrb[104].mxu1 %v425_v63  ;;  %2110 = vmatprep.mubr.bf16.mxu0 %v440_v0  ;;  %v296_v63 = vld [vmem:[%s5168_s0 + $0x8c8] sm:$0xff] }
  0xf5   :  { %2230 = vmatprep.mubr.bf16.mxu1 %v442_v1 }
  0xf6   :  { %v2709_v8 = vpop.f32.mrb[0].mxu0 }
  0xf7   :  { %v2791_v11 = vpop.f32.mrb[0].mxu1  ;;  %v2710_v13 = vpop.f32.mrb[1].mxu0 }
  0xf8   :  { %v2711_v15 = vadd.f32 %v2710_v13, %v2709_v8  ;;  %v2792_v16 = vpop.f32.mrb[1].mxu1  ;;  %v2712_v17 = vpop.f32.mrb[2].mxu0 }
  0xf9   :  { %v2793_v20 = vadd.f32 %v2792_v16, %v2791_v11  ;;  %v2794_v21 = vpop.f32.mrb[2].mxu1  ;;  %v2713_v22 = vpop.f32.mrb[3].mxu0  ;;  %v488_v11 = vpack.c.bf16 %v296_v63, %v280_v62  ;;  %v490_v16 = vpack.c.bf16 %v298_v3, %v282_v2 }
  0xfa   :  { %v1593_v24 = vadd.f32 %v2711_v15, %v4544_v12  ;;  %v2714_v25 = vadd.f32 %v2713_v22, %v2712_v17  ;;  %v2795_v26 = vpop.f32.mrb[3].mxu1 }
  0xfb   :  { %v2796_v27 = vadd.f32 %v2795_v26, %v2794_v21  ;;  %2111 = vmatmul.mubr.bf16.gmra.mrb[108].mxu0 %v439_v14  ;;  %v297_v26 = vld [vmem:[%s5168_s0 + $0x8d0] sm:$0xff] }
  0xfc   :  { %v4547_v28 = vadd.f32 %v2793_v20, %v1593_v24  ;;  %v1596_v29 = vadd.f32 %v2714_v25, %v4544_v12  ;;  %2231 = vmatmul.mubr.bf16.gmra.mrb[108].mxu1 %v441_v18  ;;  %2118 = vmatprep.mubr.bf16.mxu0 %v456_v19  ;;  %v295_v24 = vld [vmem:[%s5168_s0 + $0x8c0] sm:$0xff]  ;;  %v281_v25 = vld [vmem:[%s5168_s0 + $0x850] sm:$0xff] }
  0xfd   :  { %2238 = vmatprep.mubr.bf16.mxu1 %v458_v23  ;;  %v279_v23 = vld [vmem:[%s5168_s0 + $0x840] sm:$0xff] }
  0xfe   :  { %v4568_v36 = vadd.f32 %v2796_v27, %v1596_v29  ;;  %v2715_v37 = vpop.f32.mrb[4].mxu0  ;;  %v312_v27 = vld [vmem:[%s5168_s0 + $0x948] sm:$0xff] }
  0xff   :  { %v2797_v40 = vpop.f32.mrb[4].mxu1  ;;  %v2716_v41 = vpop.f32.mrb[5].mxu0  ;;  %v328_v29 = vld [vmem:[%s5168_s0 + $0x9c8] sm:$0xff] }
 0x100   :  { %v2717_v43 = vadd.f32 %v2716_v41, %v2715_v37  ;;  %v2798_v44 = vpop.f32.mrb[5].mxu1  ;;  %v2718_v45 = vpop.f32.mrb[6].mxu0  ;;  %v487_v37 = vpack.c.bf16 %v295_v24, %v279_v23  ;;  %v489_v41 = vpack.c.bf16 %v297_v26, %v281_v25  ;;  %v30_v25 = vld [vmem:[%s5168_s0 + $0x78] sm:$0xff] }
 0x101   :  { %v2799_v48 = vadd.f32 %v2798_v44, %v2797_v40  ;;  %v2800_v49 = vpop.f32.mrb[6].mxu1  ;;  %v2719_v50 = vpop.f32.mrb[7].mxu0  ;;  %v46_v26 = vld [vmem:[%s5168_s0 + $0xf8] sm:$0xff] }
 0x102   :  { %v1601_v52 = vadd.f32 %v2717_v43, %v4544_v12  ;;  %v2720_v53 = vadd.f32 %v2719_v50, %v2718_v45  ;;  %v2801_v54 = vpop.f32.mrb[7].mxu1 }
 0x103   :  { %v2802_v55 = vadd.f32 %v2801_v54, %v2800_v49  ;;  %2119 = vmatmul.mubr.bf16.gmra.mrb[112].mxu0 %v455_v42  ;;  %v504_v42 = vpack.c.bf16 %v328_v29, %v312_v27  ;;  %v327_v54 = vld [vmem:[%s5168_s0 + $0x9c0] sm:$0xff] }
 0x104   :  { %v4577_v56 = vadd.f32 %v2799_v48, %v1601_v52  ;;  %v1604_v57 = vadd.f32 %v2720_v53, %v4544_v12  ;;  %2239 = vmatmul.mubr.bf16.gmra.mrb[112].mxu1 %v457_v46  ;;  %2126 = vmatprep.mubr.bf16.mxu0 %v472_v47  ;;  %v506_v46 = vpack.c.bf16 %v330_v33, %v314_v32  ;;  %v311_v53 = vld [vmem:[%s5168_s0 + $0x940] sm:$0xff] }
 0x105   :  { %2246 = vmatprep.mubr.bf16.mxu1 %v474_v51 }
 0x106   :  { %v4598_v0 = vadd.f32 %v2802_v55, %v1604_v57  ;;  %v2721_v1 = vpop.f32.mrb[8].mxu0  ;;  %v313_v55 = vld [vmem:[%s5168_s0 + $0x950] sm:$0xff] }
 0x107   :  { %v2803_v4 = vpop.f32.mrb[8].mxu1  ;;  %v2722_v5 = vpop.f32.mrb[9].mxu0  ;;  %v329_v57 = vld [vmem:[%s5168_s0 + $0x9d0] sm:$0xff] }
 0x108   :  { %v2723_v7 = vadd.f32 %v2722_v5, %v2721_v1  ;;  %v2804_v8 = vpop.f32.mrb[9].mxu1  ;;  %v2724_v9 = vpop.f32.mrb[10].mxu0  ;;  %v503_v1 = vpack.c.bf16 %v327_v54, %v311_v53  ;;  %v505_v5 = vpack.c.bf16 %v329_v57, %v313_v55  ;;  %v60_v53 = vld [vmem:[%s5168_s0 + $0x168] sm:$0xff] }
 0x109   :  { %v2805_v13 = vadd.f32 %v2804_v8, %v2803_v4  ;;  %v2806_v14 = vpop.f32.mrb[10].mxu1  ;;  %v2725_v15 = vpop.f32.mrb[11].mxu0  ;;  %v76_v54 = vld [vmem:[%s5168_s0 + $0x1e8] sm:$0xff] }
 0x10a   :  { %v1609_v17 = vadd.f32 %v2723_v7, %v4544_v12  ;;  %v2726_v18 = vadd.f32 %v2725_v15, %v2724_v9  ;;  %v2807_v19 = vpop.f32.mrb[11].mxu1 }
 0x10b   :  { %v2808_v20 = vadd.f32 %v2807_v19, %v2806_v14  ;;  %2127 = vmatmul.mubr.bf16.gmra.mrb[116].mxu0 %v471_v6  ;;  %v520_v6 = vpack.c.bf16 %v344_v58, %v344_v58  ;;  %v345_v19 = vld [vmem:[%s5168_s0 + $0xa50] sm:$0xff]  ;;  %v62_v58 = vld [vmem:[%s5168_s0 + $0x178] sm:$0xff] }
 0x10c   :  { %v4607_v21 = vadd.f32 %v2805_v13, %v1609_v17  ;;  %v1612_v22 = vadd.f32 %v2726_v18, %v4544_v12  ;;  %2247 = vmatmul.mubr.bf16.gmra.mrb[116].mxu1 %v473_v10  ;;  %2134 = vmatprep.mubr.bf16.mxu0 %v488_v11  ;;  %v522_v10 = vpack.c.bf16 %v346_v61, %v346_v61  ;;  %v343_v18 = vld [vmem:[%s5168_s0 + $0xa40] sm:$0xff] }
 0x10d   :  { %2254 = vmatprep.mubr.bf16.mxu1 %v490_v16 }
 0x10e   :  { %v4628_v30 = vadd.f32 %v2808_v20, %v1612_v22  ;;  %v2727_v31 = vpop.f32.mrb[12].mxu0  ;;  %v28_v20 = vld [vmem:[%s5168_s0 + $0x68] sm:$0xff] }
 0x10f   :  { %v2809_v34 = vpop.f32.mrb[12].mxu1  ;;  %v2728_v35 = vpop.f32.mrb[13].mxu0  ;;  %v44_v22 = vld [vmem:[%s5168_s0 + $0xe8] sm:$0xff] }
 0x110   :  { %v2729_v38 = vadd.f32 %v2728_v35, %v2727_v31  ;;  %v2810_v39 = vpop.f32.mrb[13].mxu1  ;;  %v2730_v40 = vpop.f32.mrb[14].mxu0  ;;  %v519_v31 = vpack.c.bf16 %v343_v18, %v343_v18  ;;  %v521_v35 = vpack.c.bf16 %v345_v19, %v345_v19  ;;  %v59_v18 = vld [vmem:[%s5168_s0 + $0x160] sm:$0xff] }
 0x111   :  { %v2811_v43 = vadd.f32 %v2810_v39, %v2809_v34  ;;  %v2812_v44 = vpop.f32.mrb[14].mxu1  ;;  %v2731_v45 = vpop.f32.mrb[15].mxu0  ;;  %v75_v19 = vld [vmem:[%s5168_s0 + $0x1e0] sm:$0xff] }
 0x112   :  { %v1617_v47 = vadd.f32 %v2729_v38, %v4544_v12  ;;  %v2732_v48 = vadd.f32 %v2731_v45, %v2730_v40  ;;  %v2813_v49 = vpop.f32.mrb[15].mxu1 }
 0x113   :  { %v2814_v50 = vadd.f32 %v2813_v49, %v2812_v44  ;;  %2135 = vmatmul.mubr.bf16.gmra.mrb[120].mxu0 %v487_v37  ;;  %v364_v37 = vpack.c.bf16 %v44_v22, %v28_v20  ;;  %v43_v49 = vld [vmem:[%s5168_s0 + $0xe0] sm:$0xff]  ;;  %v61_v20 = vld [vmem:[%s5168_s0 + $0x170] sm:$0xff] }
 0x114   :  { %v4637_v51 = vadd.f32 %v2811_v43, %v1617_v47  ;;  %v1620_v52 = vadd.f32 %v2732_v48, %v4544_v12  ;;  %2255 = vmatmul.mubr.bf16.gmra.mrb[120].mxu1 %v489_v41  ;;  %2142 = vmatprep.mubr.bf16.mxu0 %v504_v42  ;;  %v366_v41 = vpack.c.bf16 %v46_v26, %v30_v25  ;;  %v27_v48 = vld [vmem:[%s5168_s0 + $0x60] sm:$0xff]  ;;  %v77_v22 = vld [vmem:[%s5168_s0 + $0x1f0] sm:$0xff]  ;;  %v108_v25 = vld [vmem:[%s5168_s0 + $0x2e8] sm:$0xff] }
 0x115   :  { %2262 = vmatprep.mubr.bf16.mxu1 %v506_v46 }
 0x116   :  { %v4655_v59 = vadd.f32 %v2814_v50, %v1620_v52  ;;  %v2733_v60 = vpop.f32.mrb[16].mxu0  ;;  %v29_v50 = vld [vmem:[%s5168_s0 + $0x70] sm:$0xff] }
 0x117   :  { %v2815_v62 = vpop.f32.mrb[16].mxu1  ;;  %v2734_v63 = vpop.f32.mrb[17].mxu0  ;;  %v45_v52 = vld [vmem:[%s5168_s0 + $0xf0] sm:$0xff] }
 0x118   :  { %v2735_v2 = vadd.f32 %v2734_v63, %v2733_v60  ;;  %v2816_v3 = vpop.f32.mrb[17].mxu1  ;;  %v2736_v4 = vpop.f32.mrb[18].mxu0  ;;  %v78_v60 = vld [vmem:[%s5168_s0 + $0x1f8] sm:$0xff]  ;;  %v363_v63 = vpack.c.bf16 %v43_v49, %v27_v48 }
 0x119   :  { %v2817_v7 = vadd.f32 %v2816_v3, %v2815_v62  ;;  %v2818_v8 = vpop.f32.mrb[18].mxu1  ;;  %v2737_v9 = vpop.f32.mrb[19].mxu0 }
 0x11a   :  { %v1625_v11 = vadd.f32 %v2735_v2, %v4544_v12  ;;  %v2738_v13 = vadd.f32 %v2737_v9, %v2736_v4  ;;  %v2819_v14 = vpop.f32.mrb[19].mxu1  ;;  %v365_v4 = vpack.c.bf16 %v45_v52, %v29_v50  ;;  %v382_v9 = vpack.c.bf16 %v78_v60, %v62_v58  ;;  %v109_v58 = vld [vmem:[%s5168_s0 + $0x2f0] sm:$0xff]  ;;  %v124_v60 = vld [vmem:[%s5168_s0 + $0x368] sm:$0xff] }
 0x11b   :  { %v2820_v15 = vadd.f32 %v2819_v14, %v2818_v8  ;;  %2143 = vmatmul.mubr.bf16.gmra.mrb[124].mxu0 %v503_v1 }
 0x11c   :  { %v4661_v16 = vadd.f32 %v2817_v7, %v1625_v11  ;;  %v1628_v17 = vadd.f32 %v2738_v13, %v4544_v12  ;;  %2263 = vmatmul.mubr.bf16.gmra.mrb[124].mxu1 %v505_v5  ;;  %2150 = vmatprep.mubr.bf16.mxu0 %v520_v6  ;;  %v380_v5 = vpack.c.bf16 %v76_v54, %v60_v53  ;;  %v91_v53 = vld [vmem:[%s5168_s0 + $0x260] sm:$0xff] }
 0x11d   :  { %2270 = vmatprep.mubr.bf16.mxu1 %v522_v10  ;;  %v107_v54 = vld [vmem:[%s5168_s0 + $0x2e0] sm:$0xff] }
 0x11e   :  { %v4676_v23 = vadd.f32 %v2820_v15, %v1628_v17  ;;  %v2739_v24 = vpop.f32.mrb[20].mxu0 }
 0x11f   :  { %v2821_v27 = vpop.f32.mrb[20].mxu1  ;;  %v2740_v29 = vpop.f32.mrb[21].mxu0 }
 0x120   :  { %v2741_v32 = vadd.f32 %v2740_v29, %v2739_v24  ;;  %v2822_v33 = vpop.f32.mrb[21].mxu1  ;;  %v2742_v34 = vpop.f32.mrb[22].mxu0  ;;  %v92_v24 = vld [vmem:[%s5168_s0 + $0x268] sm:$0xff]  ;;  %v94_v29 = vld [vmem:[%s5168_s0 + $0x278] sm:$0xff] }
 0x121   :  { %v2823_v38 = vadd.f32 %v2822_v33, %v2821_v27  ;;  %v2824_v39 = vpop.f32.mrb[22].mxu1  ;;  %v2743_v40 = vpop.f32.mrb[23].mxu0 }
 0x122   :  { %v1633_v42 = vadd.f32 %v2741_v32, %v4544_v12  ;;  %v2744_v43 = vadd.f32 %v2743_v40, %v2742_v34  ;;  %v2825_v44 = vpop.f32.mrb[23].mxu1  ;;  %v379_v34 = vpack.c.bf16 %v75_v19, %v59_v18  ;;  %v396_v40 = vpack.c.bf16 %v108_v25, %v92_v24 }
 0x123   :  { %v2826_v45 = vadd.f32 %v2825_v44, %v2824_v39  ;;  %2151 = vmatmul.mubr.bf16.gmra.mrb[128].mxu0 %v519_v31  ;;  %v110_v31 = vld [vmem:[%s5168_s0 + $0x2f8] sm:$0xff]  ;;  %v381_v39 = vpack.c.bf16 %v77_v22, %v61_v20 }
 0x124   :  { %v4685_v46 = vadd.f32 %v2823_v38, %v1633_v42  ;;  %v1636_v47 = vadd.f32 %v2744_v43, %v4544_v12  ;;  %2271 = vmatmul.mubr.bf16.gmra.mrb[128].mxu1 %v521_v35  ;;  %2310 = vmatprep.mubr.bf16.mxu0 %v364_v37  ;;  %v398_v44 = vpack.c.bf16 %v110_v31, %v94_v29  ;;  %v139_v29 = vld [vmem:[%s5168_s0 + $0x3e0] sm:$0xff]  ;;  %v125_v31 = vld [vmem:[%s5168_s0 + $0x370] sm:$0xff] }
 0x125   :  { %2430 = vmatprep.mubr.bf16.mxu1 %v366_v41 }
 0x126   :  { %v4706_v55 = vadd.f32 %v2826_v45, %v1636_v47  ;;  %v2745_v57 = vpop.f32.mrb[24].mxu0 }
 0x127   :  { %v2827_v61 = vpop.f32.mrb[24].mxu1  ;;  %v2746_v62 = vpop.f32.mrb[25].mxu0 }
 0x128   :  { %v2747_v1 = vadd.f32 %v2746_v62, %v2745_v57  ;;  %v2828_v2 = vpop.f32.mrb[25].mxu1  ;;  %v2748_v3 = vpop.f32.mrb[26].mxu0  ;;  %v93_v57 = vld [vmem:[%s5168_s0 + $0x270] sm:$0xff] }
 0x129   :  { %v2829_v6 = vadd.f32 %v2828_v2, %v2827_v61  ;;  %v2830_v7 = vpop.f32.mrb[26].mxu1  ;;  %v2749_v8 = vpop.f32.mrb[27].mxu0  ;;  %v140_v61 = vld [vmem:[%s5168_s0 + $0x3e8] sm:$0xff]  ;;  %v142_v2 = vld [vmem:[%s5168_s0 + $0x3f8] sm:$0xff] }
 0x12a   :  { %v1641_v10 = vadd.f32 %v2747_v1, %v4544_v12  ;;  %v2750_v11 = vadd.f32 %v2749_v8, %v2748_v3  ;;  %v2831_v13 = vpop.f32.mrb[27].mxu1  ;;  %v126_v1 = vld [vmem:[%s5168_s0 + $0x378] sm:$0xff] }
 0x12b   :  { %v2832_v14 = vadd.f32 %v2831_v13, %v2830_v7  ;;  %2311 = vmatmul.mubr.bf16.vlgmr.msra.gmra.mrb[132].mxu0 %v363_v63 }
 0x12c   :  { %v4715_v15 = vadd.f32 %v2829_v6, %v1641_v10  ;;  %v1644_v17 = vadd.f32 %v2750_v11, %v4544_v12  ;;  %2431 = vmatmul.mubr.bf16.vlgmr.msra.gmra.mrb[132].mxu1 %v365_v4  ;;  %2318 = vmatprep.mubr.bf16.mxu0 %v380_v5  ;;  %v395_v5 = vpack.c.bf16 %v107_v54, %v91_v53 }
 0x12d   :  { %2438 = vmatprep.mubr.bf16.mxu1 %v382_v9  ;;  %v397_v9 = vpack.c.bf16 %v109_v58, %v93_v57  ;;  %v412_v10 = vpack.c.bf16 %v140_v61, %v124_v60 }
 0x12e   :  { %v4736_v26 = vadd.f32 %v2832_v14, %v1644_v17  ;;  %v2751_v27 = vpop.f32.mrb[28].mxu0  ;;  %v414_v17 = vpack.c.bf16 %v142_v2, %v126_v1  ;;  %v155_v2 = vld [vmem:[%s5168_s0 + $0x460] sm:$0xff] }
 0x12f   :  { %v2833_v32 = vpop.f32.mrb[28].mxu1  ;;  %v2752_v33 = vpop.f32.mrb[29].mxu0 }
 0x130   :  { %v2753_v35 = vadd.f32 %v2752_v33, %v2751_v27  ;;  %v2834_v37 = vpop.f32.mrb[29].mxu1  ;;  %v2754_v38 = vpop.f32.mrb[30].mxu0  ;;  %v123_v27 = vld [vmem:[%s5168_s0 + $0x360] sm:$0xff]  ;;  %v156_v33 = vld [vmem:[%s5168_s0 + $0x468] sm:$0xff] }
 0x131   :  { %v2835_v41 = vadd.f32 %v2834_v37, %v2833_v32  ;;  %v2836_v42 = vpop.f32.mrb[30].mxu1  ;;  %v2755_v43 = vpop.f32.mrb[31].mxu0  ;;  %v141_v32 = vld [vmem:[%s5168_s0 + $0x3f0] sm:$0xff] }
 0x132   :  { %v1649_v45 = vadd.f32 %v2753_v35, %v4544_v12  ;;  %v2756_v47 = vadd.f32 %v2755_v43, %v2754_v38  ;;  %v2837_v48 = vpop.f32.mrb[31].mxu1  ;;  %v158_v38 = vld [vmem:[%s5168_s0 + $0x478] sm:$0xff] }
 0x133   :  { %v2838_v49 = vadd.f32 %v2837_v48, %v2836_v42  ;;  %2319 = vmatmul.mubr.bf16.gmra.mrb[136].mxu0 %v379_v34  ;;  %v172_v34 = vld [vmem:[%s5168_s0 + $0x4e8] sm:$0xff]  ;;  %v411_v42 = vpack.c.bf16 %v139_v29, %v123_v27 }
 0x134   :  { %v4745_v50 = vadd.f32 %v2835_v41, %v1649_v45  ;;  %v1652_v52 = vadd.f32 %v2756_v47, %v4544_v12  ;;  %2439 = vmatmul.mubr.bf16.gmra.mrb[136].mxu1 %v381_v39  ;;  %2326 = vmatprep.mubr.bf16.mxu0 %v396_v40  ;;  %v174_v39 = vld [vmem:[%s5168_s0 + $0x4f8] sm:$0xff]  ;;  %v413_v47 = vpack.c.bf16 %v141_v32, %v125_v31 }
 0x135   :  { %2446 = vmatprep.mubr.bf16.mxu1 %v398_v44  ;;  %v428_v48 = vpack.c.bf16 %v172_v34, %v156_v33  ;;  %v430_v54 = vpack.c.bf16 %v174_v39, %v158_v38  ;;  %v187_v38 = vld [vmem:[%s5168_s0 + $0x560] sm:$0xff] }
 0x136   :  { %v4766_v62 = vadd.f32 %v2838_v49, %v1652_v52  ;;  %v2757_v63 = vpop.f32.mrb[32].mxu0  ;;  %v203_v39 = vld [vmem:[%s5168_s0 + $0x5e0] sm:$0xff] }
 0x137   :  { %v2839_v3 = vpop.f32.mrb[32].mxu1  ;;  %v2758_v4 = vpop.f32.mrb[33].mxu0 }
 0x138   :  { %v2759_v6 = vadd.f32 %v2758_v4, %v2757_v63  ;;  %v2840_v7 = vpop.f32.mrb[33].mxu1  ;;  %v2760_v8 = vpop.f32.mrb[34].mxu0  ;;  %v157_v4 = vld [vmem:[%s5168_s0 + $0x470] sm:$0xff] }
 0x139   :  { %v2841_v11 = vadd.f32 %v2840_v7, %v2839_v3  ;;  %v2842_v13 = vpop.f32.mrb[34].mxu1  ;;  %v2761_v14 = vpop.f32.mrb[35].mxu0  ;;  %v171_v3 = vld [vmem:[%s5168_s0 + $0x4e0] sm:$0xff]  ;;  %v204_v7 = vld [vmem:[%s5168_s0 + $0x5e8] sm:$0xff] }
 0x13a   :  { %v1657_v18 = vadd.f32 %v2759_v6, %v4544_v12  ;;  %v2762_v19 = vadd.f32 %v2761_v14, %v2760_v8  ;;  %v2843_v20 = vpop.f32.mrb[35].mxu1  ;;  %v188_v6 = vld [vmem:[%s5168_s0 + $0x568] sm:$0xff] }
 0x13b   :  { %v2844_v22 = vadd.f32 %v2843_v20, %v2842_v13  ;;  %2327 = vmatmul.mubr.bf16.gmra.mrb[140].mxu0 %v395_v5  ;;  %v173_v5 = vld [vmem:[%s5168_s0 + $0x4f0] sm:$0xff] }
 0x13c   :  { %v4775_v24 = vadd.f32 %v2841_v11, %v1657_v18  ;;  %v1660_v25 = vadd.f32 %v2762_v19, %v4544_v12  ;;  %2447 = vmatmul.mubr.bf16.gmra.mrb[140].mxu1 %v397_v9  ;;  %2334 = vmatprep.mubr.bf16.mxu0 %v412_v10  ;;  %v190_v10 = vld [vmem:[%s5168_s0 + $0x578] sm:$0xff] }
 0x13d   :  { %2454 = vmatprep.mubr.bf16.mxu1 %v414_v17  ;;  %v206_v11 = vld [vmem:[%s5168_s0 + $0x5f8] sm:$0xff]  ;;  %v427_v17 = vpack.c.bf16 %v171_v3, %v155_v2 }
 0x13e   :  { %v4796_v35 = vadd.f32 %v2844_v22, %v1660_v25  ;;  %v2763_v37 = vpop.f32.mrb[36].mxu0  ;;  %v429_v22 = vpack.c.bf16 %v173_v5, %v157_v4  ;;  %v444_v25 = vpack.c.bf16 %v204_v7, %v188_v6  ;;  %v446_v32 = vpack.c.bf16 %v206_v11, %v190_v10  ;;  %v219_v10 = vld [vmem:[%s5168_s0 + $0x660] sm:$0xff] }
 0x13f   :  { %v2845_v40 = vpop.f32.mrb[36].mxu1  ;;  %v2764_v41 = vpop.f32.mrb[37].mxu0  ;;  %v235_v11 = vld [vmem:[%s5168_s0 + $0x6e0] sm:$0xff] }
 0x140   :  { %v2765_v43 = vadd.f32 %v2764_v41, %v2763_v37  ;;  %v2846_v44 = vpop.f32.mrb[37].mxu1  ;;  %v2766_v45 = vpop.f32.mrb[38].mxu0  ;;  %v220_v41 = vld [vmem:[%s5168_s0 + $0x668] sm:$0xff] }
 0x141   :  { %v2847_v49 = vadd.f32 %v2846_v44, %v2845_v40  ;;  %v2848_v52 = vpop.f32.mrb[38].mxu1  ;;  %v2767_v53 = vpop.f32.mrb[39].mxu0  ;;  %v189_v40 = vld [vmem:[%s5168_s0 + $0x570] sm:$0xff]  ;;  %v222_v44 = vld [vmem:[%s5168_s0 + $0x678] sm:$0xff] }
 0x142   :  { %v1665_v57 = vadd.f32 %v2765_v43, %v4544_v12  ;;  %v2768_v58 = vadd.f32 %v2767_v53, %v2766_v45  ;;  %v2849_v60 = vpop.f32.mrb[39].mxu1  ;;  %v238_v45 = vld [vmem:[%s5168_s0 + $0x6f8] sm:$0xff] }
 0x143   :  { %v2850_v61 = vadd.f32 %v2849_v60, %v2848_v52  ;;  %2335 = vmatmul.mubr.bf16.gmra.mrb[144].mxu0 %v411_v42  ;;  %v236_v42 = vld [vmem:[%s5168_s0 + $0x6e8] sm:$0xff]  ;;  %v462_v2 = vpack.c.bf16 %v238_v45, %v222_v44 }
 0x144   :  { %v4805_v63 = vadd.f32 %v2847_v49, %v1665_v57  ;;  %v1668_v1 = vadd.f32 %v2768_v58, %v4544_v12  ;;  %2455 = vmatmul.mubr.bf16.gmra.mrb[144].mxu1 %v413_v47  ;;  %2342 = vmatprep.mubr.bf16.mxu0 %v428_v48  ;;  %v443_v49 = vpack.c.bf16 %v203_v39, %v187_v38 }
 0x145   :  { %2462 = vmatprep.mubr.bf16.mxu1 %v430_v54  ;;  %v460_v58 = vpack.c.bf16 %v236_v42, %v220_v41 }
 0x146   :  { %v4826_v8 = vadd.f32 %v2850_v61, %v1668_v1  ;;  %v2769_v9 = vpop.f32.mrb[40].mxu0 }
 0x147   :  { %v2851_v13 = vpop.f32.mrb[40].mxu1  ;;  %v2770_v14 = vpop.f32.mrb[41].mxu0 }
 0x148   :  { %v2771_v18 = vadd.f32 %v2770_v14, %v2769_v9  ;;  %v2852_v19 = vpop.f32.mrb[41].mxu1  ;;  %v2772_v20 = vpop.f32.mrb[42].mxu0  ;;  %v268_v14 = vld [vmem:[%s5168_s0 + $0x7e8] sm:$0xff] }
 0x149   :  { %v2853_v27 = vadd.f32 %v2852_v19, %v2851_v13  ;;  %v2854_v29 = vpop.f32.mrb[42].mxu1  ;;  %v2773_v31 = vpop.f32.mrb[43].mxu0  ;;  %v237_v13 = vld [vmem:[%s5168_s0 + $0x6f0] sm:$0xff]  ;;  %v254_v19 = vld [vmem:[%s5168_s0 + $0x778] sm:$0xff] }
 0x14a   :  { %v1673_v33 = vadd.f32 %v2771_v18, %v4544_v12  ;;  %v2855_v34 = vpop.f32.mrb[43].mxu1  ;;  %v205_v12 = vld [vmem:[%s5168_s0 + $0x5f0] sm:$0xff]  ;;  %v270_v20 = vld [vmem:[%s5168_s0 + $0x7f8] sm:$0xff] }
 0x14b   :  { %2343 = vmatmul.mubr.bf16.gmra.mrb[148].mxu0 %v427_v17  ;;  %v445_v57 = vpack.c.bf16 %v205_v12, %v189_v40  ;;  %v478_v12 = vpack.c.bf16 %v270_v20, %v254_v19 }
 0x14c   :  { %v4835_v37 = vadd.f32 %v2853_v27, %v1673_v33  ;;  %2463 = vmatmul.mubr.bf16.gmra.mrb[148].mxu1 %v429_v22  ;;  %2350 = vmatprep.mubr.bf16.mxu0 %v444_v25  ;;  %v459_v27 = vpack.c.bf16 %v235_v11, %v219_v10 }
 0x14d   :  { %2470 = vmatprep.mubr.bf16.mxu1 %v446_v32 }
 0x14e   :  { %v2873_v43 = vpop.f32.mrb[44].mxu0 }
 0x14f   :  { %v2955_v47 = vpop.f32.mrb[44].mxu1  ;;  %v2874_v48 = vpop.f32.mrb[45].mxu0 }
 0x150   :  { %v2875_v52 = vadd.f32 %v2874_v48, %v2873_v43  ;;  %v2956_v53 = vpop.f32.mrb[45].mxu1  ;;  %v2876_v54 = vpop.f32.mrb[46].mxu0  ;;  %v251_v48 = vld [vmem:[%s5168_s0 + $0x760] sm:$0xff] }
 0x151   :  { %v2957_v60 = vadd.f32 %v2956_v53, %v2955_v47  ;;  %v2958_v61 = vpop.f32.mrb[46].mxu1  ;;  %v2877_v1 = vpop.f32.mrb[47].mxu0  ;;  %v300_v53 = vld [vmem:[%s5168_s0 + $0x8e8] sm:$0xff] }
 0x152   :  { %v1833_v3 = vadd.f32 %v2875_v52, %v4547_v28  ;;  %v2878_v4 = vadd.f32 %v2877_v1, %v2876_v54  ;;  %v2959_v5 = vpop.f32.mrb[47].mxu1  ;;  %v221_v28 = vld [vmem:[%s5168_s0 + $0x670] sm:$0xff] }
 0x153   :  { %v2960_v6 = vadd.f32 %v2959_v5, %v2958_v61  ;;  %2351 = vmatmul.mubr.bf16.gmra.mrb[152].mxu0 %v443_v49  ;;  %v461_v33 = vpack.c.bf16 %v237_v13, %v221_v28  ;;  %v267_v49 = vld [vmem:[%s5168_s0 + $0x7e0] sm:$0xff]  ;;  %v269_v52 = vld [vmem:[%s5168_s0 + $0x7f0] sm:$0xff] }
 0x154   :  { %v4862_v7 = vadd.f32 %v2957_v60, %v1833_v3  ;;  %v1836_v9 = vadd.f32 %v2878_v4, %v4568_v36  ;;  %2471 = vmatmul.mubr.bf16.gmra.mrb[152].mxu1 %v445_v57  ;;  %2358 = vmatprep.mubr.bf16.mxu0 %v460_v58  ;;  %v252_v36 = vld [vmem:[%s5168_s0 + $0x768] sm:$0xff]  ;;  %v286_v58 = vld [vmem:[%s5168_s0 + $0x878] sm:$0xff] }
 0x155   :  { %2478 = vmatprep.mubr.bf16.mxu1 %v462_v2  ;;  %v476_v34 = vpack.c.bf16 %v268_v14, %v252_v36  ;;  %v302_v60 = vld [vmem:[%s5168_s0 + $0x8f8] sm:$0xff]  ;;  %v475_v2 = vpack.c.bf16 %v267_v49, %v251_v48 }
 0x156   :  { %v4883_v17 = vadd.f32 %v2960_v6, %v1836_v9  ;;  %v2879_v18 = vpop.f32.mrb[48].mxu0  ;;  %v494_v13 = vpack.c.bf16 %v302_v60, %v286_v58 }
 0x157   :  { %v2961_v22 = vpop.f32.mrb[48].mxu1  ;;  %v2880_v25 = vpop.f32.mrb[49].mxu0 }
 0x158   :  { %v2881_v29 = vadd.f32 %v2880_v25, %v2879_v18  ;;  %v2962_v31 = vpop.f32.mrb[49].mxu1  ;;  %v2882_v32 = vpop.f32.mrb[50].mxu0  ;;  %v283_v25 = vld [vmem:[%s5168_s0 + $0x860] sm:$0xff] }
 0x159   :  { %v2963_v38 = vadd.f32 %v2962_v31, %v2961_v22  ;;  %v2964_v39 = vpop.f32.mrb[50].mxu1  ;;  %v2883_v40 = vpop.f32.mrb[51].mxu0  ;;  %v332_v31 = vld [vmem:[%s5168_s0 + $0x9e8] sm:$0xff] }
 0x15a   :  { %v1841_v41 = vadd.f32 %v2881_v29, %v4577_v56  ;;  %v2884_v42 = vadd.f32 %v2883_v40, %v2882_v32  ;;  %v2965_v43 = vpop.f32.mrb[51].mxu1  ;;  %v253_v56 = vld [vmem:[%s5168_s0 + $0x770] sm:$0xff] }
 0x15b   :  { %v2966_v44 = vadd.f32 %v2965_v43, %v2964_v39  ;;  %2359 = vmatmul.mubr.bf16.gmra.mrb[156].mxu0 %v459_v27  ;;  %v477_v6 = vpack.c.bf16 %v269_v52, %v253_v56  ;;  %v299_v27 = vld [vmem:[%s5168_s0 + $0x8e0] sm:$0xff]  ;;  %v301_v29 = vld [vmem:[%s5168_s0 + $0x8f0] sm:$0xff] }
 0x15c   :  { %v4892_v45 = vadd.f32 %v2963_v38, %v1841_v41  ;;  %v1844_v47 = vadd.f32 %v2884_v42, %v4598_v0  ;;  %2479 = vmatmul.mubr.bf16.gmra.mrb[156].mxu1 %v461_v33  ;;  %2366 = vmatprep.mubr.bf16.mxu0 %v476_v34  ;;  %v284_v0 = vld [vmem:[%s5168_s0 + $0x868] sm:$0xff]  ;;  %v318_v34 = vld [vmem:[%s5168_s0 + $0x978] sm:$0xff] }
 0x15d   :  { %2486 = vmatprep.mubr.bf16.mxu1 %v478_v12  ;;  %v492_v9 = vpack.c.bf16 %v300_v53, %v284_v0  ;;  %v334_v38 = vld [vmem:[%s5168_s0 + $0x9f8] sm:$0xff]  ;;  %v491_v12 = vpack.c.bf16 %v299_v27, %v283_v25 }
 0x15e   :  { %v4913_v54 = vadd.f32 %v2966_v44, %v1844_v47  ;;  %v2885_v57 = vpop.f32.mrb[52].mxu0  ;;  %v510_v52 = vpack.c.bf16 %v334_v38, %v318_v34  ;;  %v347_v38 = vld [vmem:[%s5168_s0 + $0xa60] sm:$0xff] }
 0x15f   :  { %v2967_v61 = vpop.f32.mrb[52].mxu1  ;;  %v2886_v1 = vpop.f32.mrb[53].mxu0 }
 0x160   :  { %v2887_v3 = vadd.f32 %v2886_v1, %v2885_v57  ;;  %v2968_v4 = vpop.f32.mrb[53].mxu1  ;;  %v2888_v5 = vpop.f32.mrb[54].mxu0  ;;  %v315_v1 = vld [vmem:[%s5168_s0 + $0x960] sm:$0xff] }
 0x161   :  { %v2969_v10 = vadd.f32 %v2968_v4, %v2967_v61  ;;  %v2970_v11 = vpop.f32.mrb[54].mxu1  ;;  %v2889_v28 = vpop.f32.mrb[55].mxu0 }
 0x162   :  { %v1849_v36 = vadd.f32 %v2887_v3, %v4607_v21  ;;  %v2890_v14 = vadd.f32 %v2889_v28, %v2888_v5  ;;  %v2971_v18 = vpop.f32.mrb[55].mxu1  ;;  %v285_v21 = vld [vmem:[%s5168_s0 + $0x870] sm:$0xff] }
 0x163   :  { %v2972_v19 = vadd.f32 %v2971_v18, %v2970_v11  ;;  %2367 = vmatmul.mubr.bf16.gmra.mrb[160].mxu0 %v475_v2  ;;  %v493_v44 = vpack.c.bf16 %v301_v29, %v285_v21  ;;  %v331_v2 = vld [vmem:[%s5168_s0 + $0x9e0] sm:$0xff]  ;;  %v333_v3 = vld [vmem:[%s5168_s0 + $0x9f0] sm:$0xff] }
 0x164   :  { %v4922_v20 = vadd.f32 %v2969_v10, %v1849_v36  ;;  %v1852_v22 = vadd.f32 %v2890_v14, %v4628_v30  ;;  %2487 = vmatmul.mubr.bf16.gmra.mrb[160].mxu1 %v477_v6  ;;  %2374 = vmatprep.mubr.bf16.mxu0 %v492_v9  ;;  %v316_v30 = vld [vmem:[%s5168_s0 + $0x968] sm:$0xff]  ;;  %v350_v6 = vld [vmem:[%s5168_s0 + $0xa78] sm:$0xff]  ;;  %v507_v11 = vpack.c.bf16 %v331_v2, %v315_v1 }
 0x165   :  { %2494 = vmatprep.mubr.bf16.mxu1 %v494_v13  ;;  %v508_v47 = vpack.c.bf16 %v332_v31, %v316_v30  ;;  %v526_v27 = vpack.c.bf16 %v350_v6, %v350_v6 }
 0x166   :  { %v4943_v32 = vadd.f32 %v2972_v19, %v1852_v22  ;;  %v2891_v33 = vpop.f32.mrb[56].mxu0 }
 0x167   :  { %v2973_v39 = vpop.f32.mrb[56].mxu1  ;;  %v2892_v40 = vpop.f32.mrb[57].mxu0 }
 0x168   :  { %v2893_v41 = vadd.f32 %v2892_v40, %v2891_v33  ;;  %v2974_v42 = vpop.f32.mrb[57].mxu1  ;;  %v2894_v43 = vpop.f32.mrb[58].mxu0 }
 0x169   :  { %v2975_v48 = vadd.f32 %v2974_v42, %v2973_v39  ;;  %v2976_v49 = vpop.f32.mrb[58].mxu1  ;;  %v2895_v56 = vpop.f32.mrb[59].mxu0  ;;  %v349_v39 = vld [vmem:[%s5168_s0 + $0xa70] sm:$0xff]  ;;  %v523_v42 = vpack.c.bf16 %v347_v38, %v347_v38 }
 0x16a   :  { %v1857_v0 = vadd.f32 %v2893_v41, %v4637_v51  ;;  %v2896_v53 = vadd.f32 %v2895_v56, %v2894_v43  ;;  %v2977_v57 = vpop.f32.mrb[59].mxu1  ;;  %v317_v51 = vld [vmem:[%s5168_s0 + $0x970] sm:$0xff] }
 0x16b   :  { %v2978_v58 = vadd.f32 %v2977_v57, %v2976_v49  ;;  %2375 = vmatmul.mubr.bf16.gmra.mrb[164].mxu0 %v491_v12  ;;  %v509_v14 = vpack.c.bf16 %v333_v3, %v317_v51 }
 0x16c   :  { %v4952_v60 = vadd.f32 %v2975_v48, %v1857_v0  ;;  %v1860_v61 = vadd.f32 %v2896_v53, %v4655_v59  ;;  %2495 = vmatmul.mubr.bf16.gmra.mrb[164].mxu1 %v493_v44  ;;  %2382 = vmatprep.mubr.bf16.mxu0 %v508_v47  ;;  %v348_v59 = vld [vmem:[%s5168_s0 + $0xa68] sm:$0xff]  ;;  %v525_v47 = vpack.c.bf16 %v349_v39, %v349_v39 }
 0x16d   :  { %2502 = vmatprep.mubr.bf16.mxu1 %v510_v52  ;;  %v524_v18 = vpack.c.bf16 %v348_v59, %v348_v59 }
 0x16e   :  { %v4970_v4 = vadd.f32 %v2978_v58, %v1860_v61  ;;  %v2897_v5 = vpop.f32.mrb[60].mxu0 }
 0x16f   :  { %v2979_v9 = vpop.f32.mrb[60].mxu1  ;;  %v2898_v10 = vpop.f32.mrb[61].mxu0 }
 0x170   :  { %v2899_v28 = vadd.f32 %v2898_v10, %v2897_v5  ;;  %v2980_v13 = vpop.f32.mrb[61].mxu1  ;;  %v2900_v36 = vpop.f32.mrb[62].mxu0 }
 0x171   :  { %v2981_v19 = vadd.f32 %v2980_v13, %v2979_v9  ;;  %v2982_v22 = vpop.f32.mrb[62].mxu1  ;;  %v2901_v25 = vpop.f32.mrb[63].mxu0 }
 0x172   :  { %v1865_v21 = vadd.f32 %v2899_v28, %v4661_v16  ;;  %v2902_v29 = vadd.f32 %v2901_v25, %v2900_v36  ;;  %v2983_v30 = vpop.f32.mrb[63].mxu1 }
 0x173   :  { %v2984_v31 = vadd.f32 %v2983_v30, %v2982_v22  ;;  %2383 = vmatmul.mubr.bf16.gmra.mrb[168].mxu0 %v507_v11 }
 0x174   :  { %v4976_v33 = vadd.f32 %v2981_v19, %v1865_v21  ;;  %v1868_v34 = vadd.f32 %v2902_v29, %v4676_v23  ;;  %2503 = vmatmul.mubr.bf16.gmra.mrb[168].mxu1 %v509_v14  ;;  %2390 = vmatprep.mubr.bf16.mxu0 %v524_v18 }
 0x175   :  { %2510 = vmatprep.mubr.bf16.mxu1 %v526_v27 }
 0x176   :  { %v4985_v16 = vadd.f32 %v2984_v31, %v1868_v34  ;;  %v2903_v40 = vpop.f32.mrb[64].mxu0 }
 0x177   :  { %v2985_v12 = vpop.f32.mrb[64].mxu1  ;;  %v2904_v41 = vpop.f32.mrb[65].mxu0 }
 0x178   :  { %v2905_v43 = vadd.f32 %v2904_v41, %v2903_v40  ;;  %v2986_v44 = vpop.f32.mrb[65].mxu1  ;;  %v2906_v23 = vpop.f32.mrb[66].mxu0 }
 0x179   :  { %v2987_v48 = vadd.f32 %v2986_v44, %v2985_v12  ;;  %v2988_v49 = vpop.f32.mrb[66].mxu1  ;;  %v2907_v56 = vpop.f32.mrb[67].mxu0 }
 0x17a   :  { %v1873_v52 = vadd.f32 %v2905_v43, %v4685_v46  ;;  %v2908_v0 = vadd.f32 %v2907_v56, %v2906_v23  ;;  %v2989_v53 = vpop.f32.mrb[67].mxu1 }
 0x17b   :  { %v2990_v57 = vadd.f32 %v2989_v53, %v2988_v49  ;;  %2391 = vmatmul.mubr.bf16.gmra.mrb[172].mxu0 %v523_v42 }
 0x17c   :  { %v4988_v58 = vadd.f32 %v2987_v48, %v1873_v52  ;;  %v1876_v61 = vadd.f32 %v2908_v0, %v4706_v55  ;;  %2511 = vmatmul.mubr.bf16.gmra.mrb[172].mxu1 %v525_v47 }
 0x17e   :  { %v4991_v1 = vadd.f32 %v2990_v57, %v1876_v61  ;;  %v2909_v2 = vpop.f32.mrb[68].mxu0 }
 0x17f   :  { %v2991_v51 = vpop.f32.mrb[68].mxu1  ;;  %v2910_v3 = vpop.f32.mrb[69].mxu0 }
 0x180   :  { %v2911_v59 = vadd.f32 %v2910_v3, %v2909_v2  ;;  %v2992_v5 = vpop.f32.mrb[69].mxu1  ;;  %v2912_v6 = vpop.f32.mrb[70].mxu0 }
 0x181   :  { %v2993_v9 = vadd.f32 %v2992_v5, %v2991_v51  ;;  %v2994_v10 = vpop.f32.mrb[70].mxu1  ;;  %v2913_v46 = vpop.f32.mrb[71].mxu0 }
 0x182   :  { %v1881_v11 = vadd.f32 %v2911_v59, %v4715_v15  ;;  %v2914_v28 = vadd.f32 %v2913_v46, %v2912_v6  ;;  %v2995_v13 = vpop.f32.mrb[71].mxu1 }
 0x183   :  { %v2996_v36 = vadd.f32 %v2995_v13, %v2994_v10 }
 0x184   :  { %v4994_v14 = vadd.f32 %v2993_v9, %v1881_v11  ;;  %v1884_v55 = vadd.f32 %v2914_v28, %v4736_v26 }
 0x186   :  { %v4997_v18 = vadd.f32 %v2996_v36, %v1884_v55  ;;  %v2915_v19 = vpop.f32.mrb[72].mxu0 }
 0x187   :  { %v2997_v22 = vpop.f32.mrb[72].mxu1  ;;  %v2916_v25 = vpop.f32.mrb[73].mxu0 }
 0x188   :  { %v2917_v27 = vadd.f32 %v2916_v25, %v2915_v19  ;;  %v2998_v21 = vpop.f32.mrb[73].mxu1  ;;  %v2918_v29 = vpop.f32.mrb[74].mxu0 }
 0x189   :  { %v2999_v30 = vadd.f32 %v2998_v21, %v2997_v22  ;;  %v3000_v31 = vpop.f32.mrb[74].mxu1  ;;  %v2919_v34 = vpop.f32.mrb[75].mxu0 }
 0x18a   :  { %v1889_v15 = vadd.f32 %v2917_v27, %v4745_v50  ;;  %v2920_v38 = vadd.f32 %v2919_v34, %v2918_v29  ;;  %v3001_v39 = vpop.f32.mrb[75].mxu1 }
 0x18b   :  { %v3002_v40 = vadd.f32 %v3001_v39, %v3000_v31 }
 0x18c   :  { %v5000_v12 = vadd.f32 %v2999_v30, %v1889_v15  ;;  %v1892_v26 = vadd.f32 %v2920_v38, %v4766_v62 }
 0x18e   :  { %v5003_v41 = vadd.f32 %v3002_v40, %v1892_v26  ;;  %v2921_v42 = vpop.f32.mrb[76].mxu0 }
 0x18f   :  { %v3003_v43 = vpop.f32.mrb[76].mxu1  ;;  %v2922_v44 = vpop.f32.mrb[77].mxu0 }
 0x190   :  { %v2923_v23 = vadd.f32 %v2922_v44, %v2921_v42  ;;  %v3004_v47 = vpop.f32.mrb[77].mxu1  ;;  %v2924_v48 = vpop.f32.mrb[78].mxu0 }
 0x191   :  { %v3005_v49 = vadd.f32 %v3004_v47, %v3003_v43  ;;  %v3006_v56 = vpop.f32.mrb[78].mxu1  ;;  %v2925_v52 = vpop.f32.mrb[79].mxu0 }
 0x192   :  { %v1897_v50 = vadd.f32 %v2923_v23, %v4775_v24  ;;  %v2926_v0 = vadd.f32 %v2925_v52, %v2924_v48  ;;  %v3007_v53 = vpop.f32.mrb[79].mxu1 }
 0x193   :  { %v3008_v57 = vadd.f32 %v3007_v53, %v3006_v56 }
 0x194   :  { %v5006_v61 = vadd.f32 %v3005_v49, %v1897_v50  ;;  %v1900_v62 = vadd.f32 %v2926_v0, %v4796_v35 }
 0x196   :  { %v5009_v2 = vadd.f32 %v3008_v57, %v1900_v62  ;;  %v2927_v51 = vpop.f32.mrb[80].mxu0 }
 0x197   :  { %v3009_v3 = vpop.f32.mrb[80].mxu1  ;;  %v2928_v59 = vpop.f32.mrb[81].mxu0 }
 0x198   :  { %v2929_v5 = vadd.f32 %v2928_v59, %v2927_v51  ;;  %v3010_v6 = vpop.f32.mrb[81].mxu1  ;;  %v2930_v9 = vpop.f32.mrb[82].mxu0 }
 0x199   :  { %v3011_v10 = vadd.f32 %v3010_v6, %v3009_v3  ;;  %v3012_v46 = vpop.f32.mrb[82].mxu1  ;;  %v2931_v11 = vpop.f32.mrb[83].mxu0 }
 0x19a   :  { %v1905_v24 = vadd.f32 %v2929_v5, %v4805_v63  ;;  %v2932_v28 = vadd.f32 %v2931_v11, %v2930_v9  ;;  %v3013_v13 = vpop.f32.mrb[83].mxu1 }
 0x19b   :  { %v3014_v36 = vadd.f32 %v3013_v13, %v3012_v46 }
 0x19c   :  { %v5012_v55 = vadd.f32 %v3011_v10, %v1905_v24  ;;  %v1908_v35 = vadd.f32 %v2932_v28, %v4826_v8 }
 0x19e   :  { %v5015_v19 = vadd.f32 %v3014_v36, %v1908_v35  ;;  %v2933_v22 = vpop.f32.mrb[84].mxu0 }
 0x19f   :  { %v3015_v25 = vpop.f32.mrb[84].mxu1  ;;  %v2934_v27 = vpop.f32.mrb[85].mxu0 }
 0x1a0   :  { %v2935_v21 = vadd.f32 %v2934_v27, %v2933_v22  ;;  %v3016_v29 = vpop.f32.mrb[85].mxu1  ;;  %v2936_v30 = vpop.f32.mrb[86].mxu0 }
 0x1a1   :  { %v3017_v31 = vadd.f32 %v3016_v29, %v3015_v25  ;;  %v3018_v34 = vpop.f32.mrb[86].mxu1  ;;  %v2937_v15 = vpop.f32.mrb[87].mxu0 }
 0x1a2   :  { %v1913_v63 = vadd.f32 %v2935_v21, %v4835_v37  ;;  %v3019_v38 = vpop.f32.mrb[87].mxu1 }
 0x1a4   :  { %v5018_v39 = vadd.f32 %v3017_v31, %v1913_v63 }
 0x1a6   :  { %v3037_v40 = vpop.f32.mrb[88].mxu0 }
 0x1a7   :  { %v3119_v26 = vpop.f32.mrb[88].mxu1  ;;  %v3038_v42 = vpop.f32.mrb[89].mxu0 }
 0x1a8   :  { %v3039_v8 = vadd.f32 %v3038_v42, %v3037_v40  ;;  %v3120_v43 = vpop.f32.mrb[89].mxu1  ;;  %v3040_v44 = vpop.f32.mrb[90].mxu0 }
 0x1a9   :  { %v3121_v23 = vadd.f32 %v3120_v43, %v3119_v26  ;;  %v3122_v47 = vpop.f32.mrb[90].mxu1  ;;  %v3041_v48 = vpop.f32.mrb[91].mxu0 }
 0x1aa   :  { %v2073_v49 = vadd.f32 %v3039_v8, %v4862_v7  ;;  %v3042_v56 = vadd.f32 %v3041_v48, %v3040_v44  ;;  %v3123_v52 = vpop.f32.mrb[91].mxu1 }
 0x1ab   :  { %v3124_v50 = vadd.f32 %v3123_v52, %v3122_v47 }
 0x1ac   :  { %v5021_v0 = vadd.f32 %v3121_v23, %v2073_v49  ;;  %v2076_v37 = vadd.f32 %v3042_v56, %v4883_v17 }
 0x1ae   :  { %v5024_v53 = vadd.f32 %v3124_v50, %v2076_v37  ;;  %v3043_v57 = vpop.f32.mrb[92].mxu0 }
 0x1af   :  { %v3125_v62 = vpop.f32.mrb[92].mxu1  ;;  %v3044_v51 = vpop.f32.mrb[93].mxu0 }
 0x1b0   :  { %v3045_v3 = vadd.f32 %v3044_v51, %v3043_v57  ;;  %v3126_v59 = vpop.f32.mrb[93].mxu1  ;;  %v3046_v5 = vpop.f32.mrb[94].mxu0 }
 0x1b1   :  { %v3127_v6 = vadd.f32 %v3126_v59, %v3125_v62  ;;  %v3128_v9 = vpop.f32.mrb[94].mxu1  ;;  %v3047_v10 = vpop.f32.mrb[95].mxu0 }
 0x1b2   :  { %v2081_v7 = vadd.f32 %v3045_v3, %v4892_v45  ;;  %v3048_v46 = vadd.f32 %v3047_v10, %v3046_v5  ;;  %v3129_v11 = vpop.f32.mrb[95].mxu1 }
 0x1b3   :  { %v3130_v24 = vadd.f32 %v3129_v11, %v3128_v9 }
 0x1b4   :  { %v5027_v28 = vadd.f32 %v3127_v6, %v2081_v7  ;;  %v2084_v17 = vadd.f32 %v3048_v46, %v4913_v54 }
 0x1b6   :  { %v5030_v13 = vadd.f32 %v3130_v24, %v2084_v17  ;;  %v3049_v36 = vpop.f32.mrb[96].mxu0 }
 0x1b7   :  { %v3131_v35 = vpop.f32.mrb[96].mxu1  ;;  %v3050_v22 = vpop.f32.mrb[97].mxu0 }
 0x1b8   :  { %v3051_v25 = vadd.f32 %v3050_v22, %v3049_v36  ;;  %v3132_v27 = vpop.f32.mrb[97].mxu1  ;;  %v3052_v21 = vpop.f32.mrb[98].mxu0 }
 0x1b9   :  { %v3133_v29 = vadd.f32 %v3132_v27, %v3131_v35  ;;  %v3134_v30 = vpop.f32.mrb[98].mxu1  ;;  %v3053_v31 = vpop.f32.mrb[99].mxu0 }
 0x1ba   :  { %v2089_v45 = vadd.f32 %v3051_v25, %v4922_v20  ;;  %v3054_v34 = vadd.f32 %v3053_v31, %v3052_v21  ;;  %v3135_v15 = vpop.f32.mrb[99].mxu1 }
 0x1bb   :  { %v3136_v63 = vadd.f32 %v3135_v15, %v3134_v30 }
 0x1bc   :  { %v5033_v38 = vadd.f32 %v3133_v29, %v2089_v45  ;;  %v2092_v54 = vadd.f32 %v3054_v34, %v4943_v32 }
 0x1be   :  { %v5036_v40 = vadd.f32 %v3136_v63, %v2092_v54  ;;  %v3055_v26 = vpop.f32.mrb[100].mxu0 }
 0x1bf   :  { %v3137_v42 = vpop.f32.mrb[100].mxu1  ;;  %v3056_v8 = vpop.f32.mrb[101].mxu0 }
 0x1c0   :  { %v3057_v43 = vadd.f32 %v3056_v8, %v3055_v26  ;;  %v3138_v44 = vpop.f32.mrb[101].mxu1  ;;  %v3058_v23 = vpop.f32.mrb[102].mxu0 }
 0x1c1   :  { %v3139_v47 = vadd.f32 %v3138_v44, %v3137_v42  ;;  %v3140_v48 = vpop.f32.mrb[102].mxu1  ;;  %v3059_v49 = vpop.f32.mrb[103].mxu0 }
 0x1c2   :  { %v2097_v20 = vadd.f32 %v3057_v43, %v4952_v60  ;;  %v3060_v56 = vadd.f32 %v3059_v49, %v3058_v23  ;;  %v3141_v52 = vpop.f32.mrb[103].mxu1 }
 0x1c3   :  { %v3142_v50 = vadd.f32 %v3141_v52, %v3140_v48 }
 0x1c4   :  { %v5039_v37 = vadd.f32 %v3139_v47, %v2097_v20  ;;  %v2100_v32 = vadd.f32 %v3060_v56, %v4970_v4 }
 0x1c6   :  { %v5042_v57 = vadd.f32 %v3142_v50, %v2100_v32  ;;  %v3061_v62 = vpop.f32.mrb[104].mxu0 }
 0x1c7   :  { %v3143_v51 = vpop.f32.mrb[104].mxu1  ;;  %v3062_v3 = vpop.f32.mrb[105].mxu0 }
 0x1c8   :  { %v3063_v59 = vadd.f32 %v3062_v3, %v3061_v62  ;;  %v3144_v5 = vpop.f32.mrb[105].mxu1  ;;  %v3064_v6 = vpop.f32.mrb[106].mxu0 }
 0x1c9   :  { %v3145_v9 = vadd.f32 %v3144_v5, %v3143_v51  ;;  %v3146_v10 = vpop.f32.mrb[106].mxu1  ;;  %v3065_v7 = vpop.f32.mrb[107].mxu0 }
 0x1ca   :  { %v2105_v60 = vadd.f32 %v3063_v59, %v4976_v33  ;;  %v3066_v46 = vadd.f32 %v3065_v7, %v3064_v6  ;;  %v3147_v11 = vpop.f32.mrb[107].mxu1 }
 0x1cb   :  { %v3148_v24 = vadd.f32 %v3147_v11, %v3146_v10 }
 0x1cc   :  { %v5045_v17 = vadd.f32 %v3145_v9, %v2105_v60  ;;  %v2108_v4 = vadd.f32 %v3066_v46, %v4985_v16 }
 0x1ce   :  { %v5048_v36 = vadd.f32 %v3148_v24, %v2108_v4  ;;  %v3067_v35 = vpop.f32.mrb[108].mxu0 }
 0x1cf   :  { %v3149_v22 = vpop.f32.mrb[108].mxu1  ;;  %v3068_v25 = vpop.f32.mrb[109].mxu0 }
 0x1d0   :  { %v3069_v27 = vadd.f32 %v3068_v25, %v3067_v35  ;;  %v3150_v21 = vpop.f32.mrb[109].mxu1  ;;  %v3070_v29 = vpop.f32.mrb[110].mxu0 }
 0x1d1   :  { %v3151_v30 = vadd.f32 %v3150_v21, %v3149_v22  ;;  %v3152_v31 = vpop.f32.mrb[110].mxu1  ;;  %v3071_v45 = vpop.f32.mrb[111].mxu0 }
 0x1d2   :  { %v2113_v33 = vadd.f32 %v3069_v27, %v4988_v58  ;;  %v3072_v34 = vadd.f32 %v3071_v45, %v3070_v29  ;;  %v3153_v15 = vpop.f32.mrb[111].mxu1 }
 0x1d3   :  { %v3154_v63 = vadd.f32 %v3153_v15, %v3152_v31 }
 0x1d4   :  { %v5051_v54 = vadd.f32 %v3151_v30, %v2113_v33  ;;  %v2116_v16 = vadd.f32 %v3072_v34, %v4991_v1 }
 0x1d6   :  { %v5054_v26 = vadd.f32 %v3154_v63, %v2116_v16  ;;  %v3073_v42 = vpop.f32.mrb[112].mxu0 }
 0x1d7   :  { %v3155_v8 = vpop.f32.mrb[112].mxu1  ;;  %v3074_v43 = vpop.f32.mrb[113].mxu0 }
 0x1d8   :  { %v3075_v44 = vadd.f32 %v3074_v43, %v3073_v42  ;;  %v3156_v23 = vpop.f32.mrb[113].mxu1  ;;  %v3076_v47 = vpop.f32.mrb[114].mxu0 }
 0x1d9   :  { %v3157_v48 = vadd.f32 %v3156_v23, %v3155_v8  ;;  %v3158_v49 = vpop.f32.mrb[114].mxu1  ;;  %v3077_v20 = vpop.f32.mrb[115].mxu0 }
 0x1da   :  { %v2121_v58 = vadd.f32 %v3075_v44, %v4994_v14  ;;  %v3078_v56 = vadd.f32 %v3077_v20, %v3076_v47  ;;  %v3159_v52 = vpop.f32.mrb[115].mxu1 }
 0x1db   :  { %v3160_v50 = vadd.f32 %v3159_v52, %v3158_v49 }
 0x1dc   :  { %v5057_v32 = vadd.f32 %v3157_v48, %v2121_v58  ;;  %v2124_v1 = vadd.f32 %v3078_v56, %v4997_v18 }
 0x1de   :  { %v5060_v62 = vadd.f32 %v3160_v50, %v2124_v1  ;;  %v3079_v51 = vpop.f32.mrb[116].mxu0 }
 0x1df   :  { %v3161_v3 = vpop.f32.mrb[116].mxu1  ;;  %v3080_v59 = vpop.f32.mrb[117].mxu0 }
 0x1e0   :  { %v3081_v5 = vadd.f32 %v3080_v59, %v3079_v51  ;;  %v3162_v6 = vpop.f32.mrb[117].mxu1  ;;  %v3082_v9 = vpop.f32.mrb[118].mxu0 }
 0x1e1   :  { %v3163_v10 = vadd.f32 %v3162_v6, %v3161_v3  ;;  %v3164_v7 = vpop.f32.mrb[118].mxu1  ;;  %v3083_v60 = vpop.f32.mrb[119].mxu0 }
 0x1e2   :  { %v2129_v14 = vadd.f32 %v3081_v5, %v5000_v12  ;;  %v3084_v46 = vadd.f32 %v3083_v60, %v3082_v9  ;;  %v3165_v11 = vpop.f32.mrb[119].mxu1 }
 0x1e3   :  { %v3166_v24 = vadd.f32 %v3165_v11, %v3164_v7 }
 0x1e4   :  { %v5063_v4 = vadd.f32 %v3163_v10, %v2129_v14  ;;  %v2132_v18 = vadd.f32 %v3084_v46, %v5003_v41 }
 0x1e6   :  { %v5066_v35 = vadd.f32 %v3166_v24, %v2132_v18  ;;  %v3085_v22 = vpop.f32.mrb[120].mxu0 }
 0x1e7   :  { %v3167_v25 = vpop.f32.mrb[120].mxu1  ;;  %v3086_v27 = vpop.f32.mrb[121].mxu0 }
 0x1e8   :  { %v3087_v21 = vadd.f32 %v3086_v27, %v3085_v22  ;;  %v3168_v29 = vpop.f32.mrb[121].mxu1  ;;  %v3088_v30 = vpop.f32.mrb[122].mxu0 }
 0x1e9   :  { %v3169_v31 = vadd.f32 %v3168_v29, %v3167_v25  ;;  %v3170_v45 = vpop.f32.mrb[122].mxu1  ;;  %v3089_v33 = vpop.f32.mrb[123].mxu0 }
 0x1ea   :  { %v2137_v12 = vadd.f32 %v3087_v21, %v5006_v61  ;;  %v3090_v34 = vadd.f32 %v3089_v33, %v3088_v30  ;;  %v3171_v15 = vpop.f32.mrb[123].mxu1 }
 0x1eb   :  { %v3172_v63 = vadd.f32 %v3171_v15, %v3170_v45 }
 0x1ec   :  { %v5069_v16 = vadd.f32 %v3169_v31, %v2137_v12  ;;  %v2140_v41 = vadd.f32 %v3090_v34, %v5009_v2 }
 0x1ee   :  { %v5072_v42 = vadd.f32 %v3172_v63, %v2140_v41  ;;  %v3091_v8 = vpop.f32.mrb[124].mxu0 }
 0x1ef   :  { %v3173_v43 = vpop.f32.mrb[124].mxu1  ;;  %v3092_v44 = vpop.f32.mrb[125].mxu0 }
 0x1f0   :  { %v3093_v23 = vadd.f32 %v3092_v44, %v3091_v8  ;;  %v3174_v47 = vpop.f32.mrb[125].mxu1  ;;  %v3094_v48 = vpop.f32.mrb[126].mxu0 }
 0x1f1   :  { %v3175_v49 = vadd.f32 %v3174_v47, %v3173_v43  ;;  %v3176_v20 = vpop.f32.mrb[126].mxu1  ;;  %v3095_v58 = vpop.f32.mrb[127].mxu0 }
 0x1f2   :  { %v2145_v61 = vadd.f32 %v3093_v23, %v5012_v55  ;;  %v3096_v56 = vadd.f32 %v3095_v58, %v3094_v48  ;;  %v3177_v52 = vpop.f32.mrb[127].mxu1 }
 0x1f3   :  { %v3178_v50 = vadd.f32 %v3177_v52, %v3176_v20 }
 0x1f4   :  { %v5075_v1 = vadd.f32 %v3175_v49, %v2145_v61  ;;  %v2148_v2 = vadd.f32 %v3096_v56, %v5015_v19 }
 0x1f6   :  { %v5078_v51 = vadd.f32 %v3178_v50, %v2148_v2  ;;  %v3097_v3 = vpop.f32.mrb[128].mxu0 }
 0x1f7   :  { %v3179_v59 = vpop.f32.mrb[128].mxu1  ;;  %v3098_v5 = vpop.f32.mrb[129].mxu0 }
 0x1f8   :  { %v3099_v6 = vadd.f32 %v3098_v5, %v3097_v3  ;;  %v3180_v9 = vpop.f32.mrb[129].mxu1  ;;  %v3100_v10 = vpop.f32.mrb[130].mxu0 }
 0x1f9   :  { %v3181_v7 = vadd.f32 %v3180_v9, %v3179_v59  ;;  %v3182_v60 = vpop.f32.mrb[130].mxu1  ;;  %v3101_v14 = vpop.f32.mrb[131].mxu0 }
 0x1fa   :  { %v2153_v55 = vadd.f32 %v3099_v6, %v5018_v39  ;;  %v3183_v46 = vpop.f32.mrb[131].mxu1 }
 0x1fc   :  { %v5081_v11 = vadd.f32 %v3181_v7, %v2153_v55 }
 0x1fe   :  { %v3201_v24 = vpop.f32.mrb[132].mxu0 }
 0x1ff   :  { %v3283_v18 = vpop.f32.mrb[132].mxu1  ;;  %v3202_v22 = vpop.f32.mrb[133].mxu0 }
 0x200   :  { %v3203_v19 = vadd.f32 %v3202_v22, %v3201_v24  ;;  %v3284_v25 = vpop.f32.mrb[133].mxu1  ;;  %v3204_v27 = vpop.f32.mrb[134].mxu0 }
 0x201   :  { %v3285_v21 = vadd.f32 %v3284_v25, %v3283_v18  ;;  %v3286_v29 = vpop.f32.mrb[134].mxu1  ;;  %v3205_v30 = vpop.f32.mrb[135].mxu0 }
 0x202   :  { %v2313_v31 = vadd.f32 %v3203_v19, %v5021_v0  ;;  %v3206_v45 = vadd.f32 %v3205_v30, %v3204_v27  ;;  %v3287_v33 = vpop.f32.mrb[135].mxu1 }
 0x203   :  { %v3288_v12 = vadd.f32 %v3287_v33, %v3286_v29 }
 0x204   :  { %v2433_v34 = vadd.f32 %v3285_v21, %v2313_v31  ;;  %v2316_v39 = vadd.f32 %v3206_v45, %v5024_v53 }
 0x206   :  { %v2518_v15 = vmax.f32 %v2433_v34, 0.0  ;;  %v2436_v63 = vadd.f32 %v3288_v12, %v2316_v39  ;;  %v3207_v41 = vpop.f32.mrb[136].mxu0 }
 0x207   :  { %v3289_v8 = vpop.f32.mrb[136].mxu1  ;;  %v3208_v43 = vpop.f32.mrb[137].mxu0 }
 0x208   :  { %2539 = vst [vmem:[%s5170_s3] sm:$0xff] %v2518_v15  ;;  %v2519_v44 = vmax.f32 %v2436_v63, 0.0  ;;  %v3209_v23 = vadd.f32 %v3208_v43, %v3207_v41  ;;  %v3290_v47 = vpop.f32.mrb[137].mxu1  ;;  %v3210_v48 = vpop.f32.mrb[138].mxu0 }
 0x209   :  { %v3291_v0 = vadd.f32 %v3290_v47, %v3289_v8  ;;  %v3292_v49 = vpop.f32.mrb[138].mxu1  ;;  %v3211_v20 = vpop.f32.mrb[139].mxu0 }
 0x20a   :  { %2540 = vst [vmem:[%s5170_s3 + $0x8] sm:$0xff] %v2519_v44  ;;  %v2321_v53 = vadd.f32 %v3209_v23, %v5027_v28  ;;  %v3212_v58 = vadd.f32 %v3211_v20, %v3210_v48  ;;  %v3293_v61 = vpop.f32.mrb[139].mxu1 }
 0x20b   :  { %v3294_v56 = vadd.f32 %v3293_v61, %v3292_v49 }
 0x20c   :  { %v2441_v52 = vadd.f32 %v3291_v0, %v2321_v53  ;;  %v2324_v50 = vadd.f32 %v3212_v58, %v5030_v13 }
 0x20e   :  { %v2520_v2 = vmax.f32 %v2441_v52, 0.0  ;;  %v2444_v3 = vadd.f32 %v3294_v56, %v2324_v50  ;;  %v3213_v59 = vpop.f32.mrb[140].mxu0 }
 0x20f   :  { %v3295_v5 = vpop.f32.mrb[140].mxu1  ;;  %v3214_v6 = vpop.f32.mrb[141].mxu0 }
 0x210   :  { %2541 = vst [vmem:[%s5170_s3 + $0x10] sm:$0xff] %v2520_v2  ;;  %v2521_v9 = vmax.f32 %v2444_v3, 0.0  ;;  %v3215_v10 = vadd.f32 %v3214_v6, %v3213_v59  ;;  %v3296_v7 = vpop.f32.mrb[141].mxu1  ;;  %v3216_v60 = vpop.f32.mrb[142].mxu0 }
 0x211   :  { %v3297_v28 = vadd.f32 %v3296_v7, %v3295_v5  ;;  %v3298_v14 = vpop.f32.mrb[142].mxu1  ;;  %v3217_v55 = vpop.f32.mrb[143].mxu0 }
 0x212   :  { %2542 = vst [vmem:[%s5170_s3 + $0x18] sm:$0xff] %v2521_v9  ;;  %v2329_v13 = vadd.f32 %v3215_v10, %v5033_v38  ;;  %v3218_v46 = vadd.f32 %v3217_v55, %v3216_v60  ;;  %v3299_v24 = vpop.f32.mrb[143].mxu1 }
 0x213   :  { %v3300_v18 = vadd.f32 %v3299_v24, %v3298_v14 }
 0x214   :  { %v2449_v22 = vadd.f32 %v3297_v28, %v2329_v13  ;;  %v2332_v19 = vadd.f32 %v3218_v46, %v5036_v40 }
 0x216   :  { %v2522_v25 = vmax.f32 %v2449_v22, 0.0  ;;  %v2452_v27 = vadd.f32 %v3300_v18, %v2332_v19  ;;  %v3219_v21 = vpop.f32.mrb[144].mxu0 }
 0x217   :  { %v3301_v29 = vpop.f32.mrb[144].mxu1  ;;  %v3220_v30 = vpop.f32.mrb[145].mxu0 }
 0x218   :  { %2543 = vst [vmem:[%s5170_s3 + $0x20] sm:$0xff] %v2522_v25  ;;  %v2523_v31 = vmax.f32 %v2452_v27, 0.0  ;;  %v3221_v45 = vadd.f32 %v3220_v30, %v3219_v21  ;;  %v3302_v33 = vpop.f32.mrb[145].mxu1  ;;  %v3222_v12 = vpop.f32.mrb[146].mxu0 }
 0x219   :  { %v3303_v38 = vadd.f32 %v3302_v33, %v3301_v29  ;;  %v3304_v34 = vpop.f32.mrb[146].mxu1  ;;  %v3223_v39 = vpop.f32.mrb[147].mxu0 }
 0x21a   :  { %2544 = vst [vmem:[%s5170_s3 + $0x28] sm:$0xff] %v2523_v31  ;;  %v2337_v40 = vadd.f32 %v3221_v45, %v5039_v37  ;;  %v3224_v15 = vadd.f32 %v3223_v39, %v3222_v12  ;;  %v3305_v63 = vpop.f32.mrb[147].mxu1 }
 0x21b   :  { %v3306_v41 = vadd.f32 %v3305_v63, %v3304_v34 }
 0x21c   :  { %v2457_v8 = vadd.f32 %v3303_v38, %v2337_v40  ;;  %v2340_v43 = vadd.f32 %v3224_v15, %v5042_v57 }
 0x21e   :  { %v2524_v44 = vmax.f32 %v2457_v8, 0.0  ;;  %v2460_v23 = vadd.f32 %v3306_v41, %v2340_v43  ;;  %v3225_v47 = vpop.f32.mrb[148].mxu0 }
 0x21f   :  { %v3307_v48 = vpop.f32.mrb[148].mxu1  ;;  %v3226_v0 = vpop.f32.mrb[149].mxu0 }
 0x220   :  { %2545 = vst [vmem:[%s5170_s3 + $0x30] sm:$0xff] %v2524_v44  ;;  %v2525_v49 = vmax.f32 %v2460_v23, 0.0  ;;  %v3227_v20 = vadd.f32 %v3226_v0, %v3225_v47  ;;  %v3308_v53 = vpop.f32.mrb[149].mxu1  ;;  %v3228_v58 = vpop.f32.mrb[150].mxu0 }
 0x221   :  { %v3309_v37 = vadd.f32 %v3308_v53, %v3307_v48  ;;  %v3310_v61 = vpop.f32.mrb[150].mxu1  ;;  %v3229_v56 = vpop.f32.mrb[151].mxu0 }
 0x222   :  { %2546 = vst [vmem:[%s5170_s3 + $0x38] sm:$0xff] %v2525_v49  ;;  %v2345_v57 = vadd.f32 %v3227_v20, %v5045_v17  ;;  %v3230_v52 = vadd.f32 %v3229_v56, %v3228_v58  ;;  %v3311_v50 = vpop.f32.mrb[151].mxu1 }
 0x223   :  { %v3312_v2 = vadd.f32 %v3311_v50, %v3310_v61 }
 0x224   :  { %v2465_v3 = vadd.f32 %v3309_v37, %v2345_v57  ;;  %v2348_v59 = vadd.f32 %v3230_v52, %v5048_v36 }
 0x226   :  { %v2526_v5 = vmax.f32 %v2465_v3, 0.0  ;;  %v2468_v6 = vadd.f32 %v3312_v2, %v2348_v59  ;;  %v3231_v9 = vpop.f32.mrb[152].mxu0 }
 0x227   :  { %v3313_v10 = vpop.f32.mrb[152].mxu1  ;;  %v3232_v7 = vpop.f32.mrb[153].mxu0 }
 0x228   :  { %2547 = vst [vmem:[%s5170_s3 + $0x40] sm:$0xff] %v2526_v5  ;;  %v2527_v60 = vmax.f32 %v2468_v6, 0.0  ;;  %v3233_v28 = vadd.f32 %v3232_v7, %v3231_v9  ;;  %v3314_v14 = vpop.f32.mrb[153].mxu1  ;;  %v3234_v55 = vpop.f32.mrb[154].mxu0 }
 0x229   :  { %v3315_v17 = vadd.f32 %v3314_v14, %v3313_v10  ;;  %v3316_v13 = vpop.f32.mrb[154].mxu1  ;;  %v3235_v46 = vpop.f32.mrb[155].mxu0 }
 0x22a   :  { %2548 = vst [vmem:[%s5170_s3 + $0x48] sm:$0xff] %v2527_v60  ;;  %v2353_v36 = vadd.f32 %v3233_v28, %v5051_v54  ;;  %v3236_v24 = vadd.f32 %v3235_v46, %v3234_v55  ;;  %v3317_v18 = vpop.f32.mrb[155].mxu1 }
 0x22b   :  { %v3318_v22 = vadd.f32 %v3317_v18, %v3316_v13 }
 0x22c   :  { %v2473_v19 = vadd.f32 %v3315_v17, %v2353_v36  ;;  %v2356_v25 = vadd.f32 %v3236_v24, %v5054_v26 }
 0x22e   :  { %v2528_v27 = vmax.f32 %v2473_v19, 0.0  ;;  %v2476_v21 = vadd.f32 %v3318_v22, %v2356_v25  ;;  %v3237_v29 = vpop.f32.mrb[156].mxu0 }
 0x22f   :  { %v3319_v30 = vpop.f32.mrb[156].mxu1  ;;  %v3238_v31 = vpop.f32.mrb[157].mxu0 }
 0x230   :  { %2549 = vst [vmem:[%s5170_s3 + $0x50] sm:$0xff] %v2528_v27  ;;  %v2529_v45 = vmax.f32 %v2476_v21, 0.0  ;;  %v3239_v33 = vadd.f32 %v3238_v31, %v3237_v29  ;;  %v3320_v12 = vpop.f32.mrb[157].mxu1  ;;  %v3240_v38 = vpop.f32.mrb[158].mxu0 }
 0x231   :  { %v3321_v54 = vadd.f32 %v3320_v12, %v3319_v30  ;;  %v3322_v34 = vpop.f32.mrb[158].mxu1  ;;  %v3241_v39 = vpop.f32.mrb[159].mxu0 }
 0x232   :  { %2550 = vst [vmem:[%s5170_s3 + $0x58] sm:$0xff] %v2529_v45  ;;  %v2361_v26 = vadd.f32 %v3239_v33, %v5057_v32  ;;  %v3242_v40 = vadd.f32 %v3241_v39, %v3240_v38  ;;  %v3323_v15 = vpop.f32.mrb[159].mxu1 }
 0x233   :  { %v3324_v63 = vadd.f32 %v3323_v15, %v3322_v34 }
 0x234   :  { %v2481_v41 = vadd.f32 %v3321_v54, %v2361_v26  ;;  %v2364_v8 = vadd.f32 %v3242_v40, %v5060_v62 }
 0x236   :  { %v2530_v43 = vmax.f32 %v2481_v41, 0.0  ;;  %v2484_v44 = vadd.f32 %v3324_v63, %v2364_v8  ;;  %v3243_v23 = vpop.f32.mrb[160].mxu0 }
 0x237   :  { %v3325_v47 = vpop.f32.mrb[160].mxu1  ;;  %v3244_v48 = vpop.f32.mrb[161].mxu0 }
 0x238   :  { %2551 = vst [vmem:[%s5170_s3 + $0x60] sm:$0xff] %v2530_v43  ;;  %v2531_v0 = vmax.f32 %v2484_v44, 0.0  ;;  %v3245_v49 = vadd.f32 %v3244_v48, %v3243_v23  ;;  %v3326_v20 = vpop.f32.mrb[161].mxu1  ;;  %v3246_v53 = vpop.f32.mrb[162].mxu0 }
 0x239   :  { %v3327_v32 = vadd.f32 %v3326_v20, %v3325_v47  ;;  %v3328_v58 = vpop.f32.mrb[162].mxu1  ;;  %v3247_v37 = vpop.f32.mrb[163].mxu0 }
 0x23a   :  { %2552 = vst [vmem:[%s5170_s3 + $0x68] sm:$0xff] %v2531_v0  ;;  %v2369_v62 = vadd.f32 %v3245_v49, %v5063_v4  ;;  %v3248_v61 = vadd.f32 %v3247_v37, %v3246_v53  ;;  %v3329_v56 = vpop.f32.mrb[163].mxu1 }
 0x23b   :  { %v3330_v57 = vadd.f32 %v3329_v56, %v3328_v58 }
 0x23c   :  { %v2489_v52 = vadd.f32 %v3327_v32, %v2369_v62  ;;  %v2372_v50 = vadd.f32 %v3248_v61, %v5066_v35 }
 0x23e   :  { %v2532_v2 = vmax.f32 %v2489_v52, 0.0  ;;  %v2492_v3 = vadd.f32 %v3330_v57, %v2372_v50  ;;  %v3249_v59 = vpop.f32.mrb[164].mxu0 }
 0x23f   :  { %v3331_v5 = vpop.f32.mrb[164].mxu1  ;;  %v3250_v6 = vpop.f32.mrb[165].mxu0 }
 0x240   :  { %2553 = vst [vmem:[%s5170_s3 + $0x70] sm:$0xff] %v2532_v2  ;;  %v2533_v9 = vmax.f32 %v2492_v3, 0.0  ;;  %v3251_v10 = vadd.f32 %v3250_v6, %v3249_v59  ;;  %v3332_v7 = vpop.f32.mrb[165].mxu1  ;;  %v3252_v60 = vpop.f32.mrb[166].mxu0 }
 0x241   :  { %v3333_v4 = vadd.f32 %v3332_v7, %v3331_v5  ;;  %v3334_v28 = vpop.f32.mrb[166].mxu1  ;;  %v3253_v14 = vpop.f32.mrb[167].mxu0 }
 0x242   :  { %2554 = vst [vmem:[%s5170_s3 + $0x78] sm:$0xff] %v2533_v9  ;;  %v2377_v35 = vadd.f32 %v3251_v10, %v5069_v16  ;;  %v3254_v55 = vadd.f32 %v3253_v14, %v3252_v60  ;;  %v3335_v17 = vpop.f32.mrb[167].mxu1 }
 0x243   :  { %v3336_v13 = vadd.f32 %v3335_v17, %v3334_v28 }
 0x244   :  { %v2497_v46 = vadd.f32 %v3333_v4, %v2377_v35  ;;  %v2380_v36 = vadd.f32 %v3254_v55, %v5072_v42 }
 0x246   :  { %v2534_v24 = vmax.f32 %v2497_v46, 0.0  ;;  %v2500_v18 = vadd.f32 %v3336_v13, %v2380_v36  ;;  %v3255_v22 = vpop.f32.mrb[168].mxu0 }
 0x247   :  { %v3337_v19 = vpop.f32.mrb[168].mxu1  ;;  %v3256_v25 = vpop.f32.mrb[169].mxu0 }
 0x248   :  { %2555 = vst [vmem:[%s5170_s3 + $0x80] sm:$0xff] %v2534_v24  ;;  %v2535_v27 = vmax.f32 %v2500_v18, 0.0  ;;  %v3257_v21 = vadd.f32 %v3256_v25, %v3255_v22  ;;  %v3338_v29 = vpop.f32.mrb[169].mxu1  ;;  %v3258_v30 = vpop.f32.mrb[170].mxu0 }
 0x249   :  { %v3339_v16 = vadd.f32 %v3338_v29, %v3337_v19  ;;  %v3340_v31 = vpop.f32.mrb[170].mxu1  ;;  %v3259_v45 = vpop.f32.mrb[171].mxu0 }
 0x24a   :  { %2556 = vst [vmem:[%s5170_s3 + $0x88] sm:$0xff] %v2535_v27  ;;  %v2385_v42 = vadd.f32 %v3257_v21, %v5075_v1  ;;  %v3260_v33 = vadd.f32 %v3259_v45, %v3258_v30  ;;  %v3341_v12 = vpop.f32.mrb[171].mxu1 }
 0x24b   :  { %v3342_v38 = vadd.f32 %v3341_v12, %v3340_v31 }
 0x24c   :  { %v2505_v54 = vadd.f32 %v3339_v16, %v2385_v42  ;;  %v2388_v34 = vadd.f32 %v3260_v33, %v5078_v51 }
 0x24e   :  { %v2536_v39 = vmax.f32 %v2505_v54, 0.0  ;;  %v2508_v26 = vadd.f32 %v3342_v38, %v2388_v34  ;;  %v3261_v40 = vpop.f32.mrb[172].mxu0 }
 0x24f   :  { %v3343_v15 = vpop.f32.mrb[172].mxu1  ;;  %v3262_v63 = vpop.f32.mrb[173].mxu0 }
 0x250   :  { %2557 = vst [vmem:[%s5170_s3 + $0x90] sm:$0xff] %v2536_v39  ;;  %v2537_v41 = vmax.f32 %v2508_v26, 0.0  ;;  %v3263_v8 = vadd.f32 %v3262_v63, %v3261_v40  ;;  %v3344_v43 = vpop.f32.mrb[173].mxu1  ;;  %v3264_v44 = vpop.f32.mrb[174].mxu0 }
 0x251   :  { %v3345_v1 = vadd.f32 %v3344_v43, %v3343_v15  ;;  %v3346_v23 = vpop.f32.mrb[174].mxu1  ;;  %v3265_v47 = vpop.f32.mrb[175].mxu0 }
 0x252   :  { %2558 = vst [vmem:[%s5170_s3 + $0x98] sm:$0xff] %v2537_v41  ;;  %v2393_v51 = vadd.f32 %v3263_v8, %v5081_v11  ;;  %v3347_v48 = vpop.f32.mrb[175].mxu1 }
 0x254   :  { %v2513_v0 = vadd.f32 %v3345_v1, %v2393_v51 }
 0x256   :  { %v2538_v49 = vmax.f32 %v2513_v0, 0.0 }
 0x258   :  { %2559 = vst [vmem:[%s5170_s3 + $0xa0] sm:$0xff] %v2538_v49 }

// kernel: dqn_forward.6
= control target key start
LH: loop header
LB: loop body
LE: loop exit
PB: predicated region body
PF: predicated region fallthrough
CT: control target
= control target key end

     0   :  { %vm1703_vm0 = vmmov 0   ;;  %s2430_s1 = inlined_call_operand.vmem [shape: bf16[1152,128], index: 1, kind: input, shape index: {}]   ;;  %s2431_s0 = inlined_call_operand.vmem [shape: f32[104,1152], index: 0, kind: input, shape index: {}]   ;;  %s2432_s2 = inlined_call_operand.vmem [shape: f32[1,128], index: 2, kind: input, shape index: {}]   ;;  %s2433_s3 = inlined_call_operand.vmem [shape: f32[104,128], index: 3, kind: output, shape index: {}]  }
   0x1   :  { %v1630_v0 = vld [vmem:[%s2430_s1 + $0x40] sm:$0xff]   ;;  %v1632_v2 = vld [vmem:[%s2430_s1 + $0x48] sm:$0xff]   ;;  %v1634_v4 = vld [vmem:[%s2430_s1 + $0x50] sm:$0xff]  }
   0x2   :  { %v1631_v1 = vld [vmem:[%s2430_s1] sm:$0xff]   ;;  %1612 = vmatprep.subr.bf16.mxu1 %v1630_v0  ;;  %1321 = vmatprep.subr.bf16.mxu0 %v1630_v0  ;;  %v1633_v3 = vld [vmem:[%s2430_s1 + $0x8] sm:$0xff]   ;;  %v1635_v5 = vld [vmem:[%s2430_s1 + $0x10] sm:$0xff]  }
   0x3   :  { %1620 = vmatpush3.bf16.msra.mxu1 %v1631_v1  ;;  %1322 = vmatpush3.bf16.msra.mxu0 %v1631_v1  ;;  %v1636_v6 = vld [vmem:[%s2430_s1 + $0x58] sm:$0xff]   ;;  %v1638_v8 = vld [vmem:[%s2430_s1 + $0x60] sm:$0xff]   ;;  %v1640_v10 = vld [vmem:[%s2430_s1 + $0x68] sm:$0xff]  }
   0x4   :  { %1613 = vmatprep.subr.bf16.mxu1 %v1632_v2  ;;  %1323 = vmatprep.subr.bf16.mxu0 %v1632_v2  ;;  %v1637_v7 = vld [vmem:[%s2430_s1 + $0x18] sm:$0xff]   ;;  %v1639_v9 = vld [vmem:[%s2430_s1 + $0x20] sm:$0xff]   ;;  %v88_v11 = vld [vmem:[%s2431_s0 + $0x248] sm:$0xff] }
   0x5   :  { %v97_v12 = vld [vmem:[%s2431_s0 + $0x290] sm:$0xff]  ;;  %v16_v14 = vld [vmem:[%s2431_s0 + $0x8] sm:$0xff]  ;;  %v1644_v20 = vld [vmem:[%s2430_s1 + $0x78] sm:$0xff]  }
   0x6   :  { %v169_v13 = vpack.c.bf16 %v97_v12, %v88_v11  ;;  %v25_v15 = vld [vmem:[%s2431_s0 + $0x50] sm:$0xff]  ;;  %v1641_v16 = vld [vmem:[%s2430_s1 + $0x28] sm:$0xff]   ;;  %v1645_v21 = vld [vmem:[%s2430_s1 + $0x38] sm:$0xff]  }
   0x7   :  { %1621 = vmatpush3.bf16.msra.mxu1 %v1633_v3  ;;  %1324 = vmatpush3.bf16.msra.mxu0 %v1633_v3  ;;  %v133_v17 = vpack.c.bf16 %v25_v15, %v16_v14  ;;  %v1642_v18 = vld [vmem:[%s2430_s1 + $0x70] sm:$0xff]   ;;  %v87_v22 = vld [vmem:[%s2431_s0 + $0x240] sm:$0xff]  ;;  %v96_v23 = vld [vmem:[%s2431_s0 + $0x288] sm:$0xff] }
   0x8   :  { %1614 = vmatprep.subr.bf16.mxu1 %v1634_v4  ;;  %1325 = vmatprep.subr.bf16.mxu0 %v1634_v4  ;;  %v1643_v19 = vld [vmem:[%s2430_s1 + $0x30] sm:$0xff]   ;;  %v1646_v24 = vld [vmem:[%s2430_s1 + $0xc0] sm:$0xff]   ;;  %v24_v26 = vld [vmem:[%s2431_s0 + $0x48] sm:$0xff]  ;;  %v168_v31 = vpack.c.bf16 %v96_v23, %v87_v22 }
   0x9   :  { %842 = vmatprep.mubr.bf16.mxu1 %v169_v13  ;;  %810 = vmatprep.mubr.bf16.mxu0 %v133_v17  ;;  %v15_v25 = vld [vmem:[%s2431_s0] sm:$0xff]  ;;  %v34_v30 = vld [vmem:[%s2431_s0 + $0x98] sm:$0xff]  ;;  %v1650_v34 = vld [vmem:[%s2430_s1 + $0xc8] sm:$0xff]  }
   0xa   :  { %v1648_v27 = vld [vmem:[%s2430_s1 + $0x140] sm:$0xff]   ;;  %v132_v32 = vpack.c.bf16 %v24_v26, %v15_v25  ;;  %v1652_v35 = vld [vmem:[%s2430_s1 + $0x148] sm:$0xff]   ;;  %v33_v39 = vld [vmem:[%s2431_s0 + $0x90] sm:$0xff] }
   0xb   :  { %1622 = vmatpush3.bf16.msra.mxu1 %v1635_v5  ;;  %1326 = vmatpush3.bf16.msra.mxu0 %v1635_v5  ;;  %v1647_v28 = vld [vmem:[%s2430_s1 + $0x80] sm:$0xff]   ;;  %v1651_v36 = vld [vmem:[%s2430_s1 + $0x88] sm:$0xff]   ;;  %v106_v40 = vld [vmem:[%s2431_s0 + $0x2d8] sm:$0xff] }
   0xc   :  { %1615 = vmatprep.subr.bf16.mxu1 %v1636_v6  ;;  %1327 = vmatprep.subr.bf16.mxu0 %v1636_v6  ;;  %v1649_v29 = vld [vmem:[%s2430_s1 + $0x100] sm:$0xff]   ;;  %v1653_v37 = vld [vmem:[%s2430_s1 + $0x108] sm:$0xff]   ;;  %v1654_v42 = vld [vmem:[%s2430_s1 + $0xd0] sm:$0xff]  }
   0xd   :  { %v43_v33 = vld [vmem:[%s2431_s0 + $0xe0] sm:$0xff]  ;;  %v42_v43 = vld [vmem:[%s2431_s0 + $0xd8] sm:$0xff]  ;;  %v105_v45 = vld [vmem:[%s2431_s0 + $0x2d0] sm:$0xff] }
   0xe   :  { %v142_v38 = vpack.c.bf16 %v43_v33, %v34_v30  ;;  %v115_v41 = vld [vmem:[%s2431_s0 + $0x320] sm:$0xff]  ;;  %v114_v46 = vld [vmem:[%s2431_s0 + $0x318] sm:$0xff]  ;;  %v1656_v47 = vld [vmem:[%s2430_s1 + $0x150] sm:$0xff]   ;;  %v141_v49 = vpack.c.bf16 %v42_v43, %v33_v39 }
   0xf   :  { %1623 = vmatpush3.bf16.msra.mxu1 %v1637_v7  ;;  %1328 = vmatpush3.bf16.msra.mxu0 %v1637_v7  ;;  %v178_v44 = vpack.c.bf16 %v115_v41, %v106_v40  ;;  %v1655_v48 = vld [vmem:[%s2430_s1 + $0x90] sm:$0xff]   ;;  %v177_v50 = vpack.c.bf16 %v114_v46, %v105_v45  ;;  %v52_v51 = vld [vmem:[%s2431_s0 + $0x128] sm:$0xff]  ;;  %v1658_v54 = vld [vmem:[%s2430_s1 + $0xd8] sm:$0xff]   ;;  %v1702_v41 = vmov 0.0  }
  0x10   :  { %1616 = vmatprep.subr.bf16.mxu1 %v1638_v8  ;;  %1329 = vmatprep.subr.bf16.mxu0 %v1638_v8  ;;  %v61_v52 = vld [vmem:[%s2431_s0 + $0x170] sm:$0xff]  ;;  %v1660_v55 = vld [vmem:[%s2430_s1 + $0x158] sm:$0xff]   ;;  %v1662_v59 = vld [vmem:[%s2430_s1 + $0xe0] sm:$0xff]  }
  0x11   :  { %v1657_v53 = vld [vmem:[%s2430_s1 + $0x110] sm:$0xff]   ;;  %v1659_v56 = vld [vmem:[%s2430_s1 + $0x98] sm:$0xff]   ;;  %v151_v58 = vpack.c.bf16 %v61_v52, %v52_v51  ;;  %v51_v60 = vld [vmem:[%s2431_s0 + $0x120] sm:$0xff] }
  0x12   :  { %v1661_v57 = vld [vmem:[%s2430_s1 + $0x118] sm:$0xff]   ;;  %v60_v61 = vld [vmem:[%s2431_s0 + $0x168] sm:$0xff]  ;;  %v1664_v63 = vld [vmem:[%s2430_s1 + $0x160] sm:$0xff]  }
  0x13   :  { %1624 = vmatpush3.bf16.msra.mxu1 %v1639_v9  ;;  %1330 = vmatpush3.bf16.msra.mxu0 %v1639_v9  ;;  %v124_v62 = vld [vmem:[%s2431_s0 + $0x368] sm:$0xff]  ;;  %v1663_v1 = vld [vmem:[%s2430_s1 + $0xa0] sm:$0xff]   ;;  %v150_v3 = vpack.c.bf16 %v60_v61, %v51_v60  ;;  %v70_v8 = vld [vmem:[%s2431_s0 + $0x1b8] sm:$0xff] }
  0x14   :  { %1617 = vmatprep.subr.bf16.mxu1 %v1640_v10  ;;  %1331 = vmatprep.subr.bf16.mxu0 %v1640_v10  ;;  %v187_v0 = vpack.c.bf16 %v124_v62, %v124_v62  ;;  %v123_v2 = vld [vmem:[%s2431_s0 + $0x360] sm:$0xff]  ;;  %v1666_v6 = vld [vmem:[%s2430_s1 + $0xe8] sm:$0xff]   ;;  %v1670_v13 = vld [vmem:[%s2430_s1 + $0xf0] sm:$0xff]  }
  0x15   :  { %v1665_v4 = vld [vmem:[%s2430_s1 + $0x120] sm:$0xff]   ;;  %v186_v5 = vpack.c.bf16 %v123_v2, %v123_v2  ;;  %v1668_v7 = vld [vmem:[%s2430_s1 + $0x168] sm:$0xff]   ;;  %v69_v14 = vld [vmem:[%s2431_s0 + $0x1b0] sm:$0xff] }
  0x16   :  { %v79_v9 = vld [vmem:[%s2431_s0 + $0x200] sm:$0xff]  ;;  %v1667_v10 = vld [vmem:[%s2430_s1 + $0xa8] sm:$0xff]   ;;  %v78_v15 = vld [vmem:[%s2431_s0 + $0x1f8] sm:$0xff] }
  0x17   :  { %1625 = vmatpush3.bf16.msra.mxu1 %v1641_v16  ;;  %1332 = vmatpush3.bf16.msra.mxu0 %v1641_v16  ;;  %v1669_v11 = vld [vmem:[%s2430_s1 + $0x128] sm:$0xff]   ;;  %v160_v12 = vpack.c.bf16 %v79_v9, %v70_v8  ;;  %v1672_v16 = vld [vmem:[%s2430_s1 + $0x170] sm:$0xff]   ;;  %v18_v22 = vld [vmem:[%s2431_s0 + $0x18] sm:$0xff] }
  0x18   :  { %1618 = vmatprep.subr.bf16.mxu1 %v1642_v18  ;;  %1333 = vmatprep.subr.bf16.mxu0 %v1642_v18  ;;  %v1671_v17 = vld [vmem:[%s2430_s1 + $0xb0] sm:$0xff]   ;;  %v27_v23 = vld [vmem:[%s2431_s0 + $0x60] sm:$0xff]  ;;  %v1677_v26 = vld [vmem:[%s2430_s1 + $0x138] sm:$0xff]  }
  0x19   :  { %v1673_v18 = vld [vmem:[%s2430_s1 + $0x130] sm:$0xff]   ;;  %v135_v25 = vpack.c.bf16 %v27_v23, %v18_v22  ;;  %v19_v33 = vld [vmem:[%s2431_s0 + $0x20] sm:$0xff]  ;;  %v1681_v43 = vld [vmem:[%s2430_s1 + $0x1c8] sm:$0xff]  }
  0x1a   :  { %v29_v30 = vld [vmem:[%s2431_s0 + $0x70] sm:$0xff]  ;;  %v1680_v40 = vld [vmem:[%s2430_s1 + $0x200] sm:$0xff]   ;;  %v44_v45 = vld [vmem:[%s2431_s0 + $0xe8] sm:$0xff] }
  0x1b   :  { %1626 = vmatpush3.bf16.msra.mxu1 %v1643_v19  ;;  %1334 = vmatpush3.bf16.msra.mxu0 %v1643_v19  ;;  %v159_v19 = vpack.c.bf16 %v78_v15, %v69_v14  ;;  %v45_v39 = vld [vmem:[%s2431_s0 + $0xf0] sm:$0xff]  ;;  %v1682_v46 = vld [vmem:[%s2430_s1 + $0x188] sm:$0xff]   ;;  %v74_v8 = vld [vmem:[%s2431_s0 + $0x1d8] sm:$0xff] }
  0x1c   :  { %1619 = vmatprep.subr.bf16.mxu1 %v1644_v20  ;;  %1335 = vmatprep.subr.bf16.mxu0 %v1644_v20  ;;  %v1674_v20 = vld [vmem:[%s2430_s1 + $0xf8] sm:$0xff]   ;;  %v1683_v52 = vld [vmem:[%s2430_s1 + $0x208] sm:$0xff]   ;;  %v65_v61 = vld [vmem:[%s2431_s0 + $0x190] sm:$0xff] }
  0x1d   :  { %v56_v60 = vld [vmem:[%s2431_s0 + $0x148] sm:$0xff]  ;;  %v1686_v2 = vld [vmem:[%s2430_s1 + $0x210] sm:$0xff]   ;;  %v83_v9 = vld [vmem:[%s2431_s0 + $0x220] sm:$0xff] }
  0x1e   :  { %v155_v62 = vpack.c.bf16 %v65_v61, %v56_v60  ;;  %v1689_v14 = vld [vmem:[%s2430_s1 + $0x218] sm:$0xff]   ;;  %v1690_v15 = vld [vmem:[%s2430_s1 + $0x1e0] sm:$0xff]   ;;  %v92_v23 = vld [vmem:[%s2431_s0 + $0x268] sm:$0xff] }
  0x1f   :  { %1627 = vmatpush3.bf16.msra.mxu1 %v1645_v21  ;;  %1336 = vmatpush3.bf16.msra.mxu0 %v1645_v21  ;;  %v1676_v21 = vld [vmem:[%s2430_s1 + $0x178] sm:$0xff]   ;;  %v99_v22 = vld [vmem:[%s2431_s0 + $0x2a0] sm:$0xff] }
  0x20   :  { %1379 = vmatprep.subr.bf16.mxu1 %v1646_v24  ;;  %1437 = vmatprep.subr.bf16.mxu0 %v1648_v27  ;;  %v1675_v24 = vld [vmem:[%s2430_s1 + $0xb8] sm:$0xff]   ;;  %v17_v27 = vld [vmem:[%s2431_s0 + $0x10] sm:$0xff] }
  0x22   :  { %843 = vmatmul.mubr.bf16.vlgmr.msra.gmra.mrb[0].mxu1 %v168_v31  ;;  %811 = vmatmul.mubr.bf16.vlgmr.msra.gmra.mrb[0].mxu0 %v132_v32  ;;  %v1678_v31 = vld [vmem:[%s2430_s1 + $0x1c0] sm:$0xff]  }
  0x23   :  { %1380 = vmatpush3.bf16.msra.mxu1 %v1647_v28  ;;  %1438 = vmatpush3.bf16.msra.mxu0 %v1649_v29  ;;  %v26_v28 = vld [vmem:[%s2431_s0 + $0x58] sm:$0xff]  ;;  %v20_v29 = vld [vmem:[%s2431_s0 + $0x28] sm:$0xff] }
  0x24   :  { %1381 = vmatprep.subr.bf16.mxu1 %v1650_v34  ;;  %1439 = vmatprep.subr.bf16.mxu0 %v1652_v35  ;;  %v137_v32 = vpack.c.bf16 %v29_v30, %v20_v29  ;;  %v28_v34 = vld [vmem:[%s2431_s0 + $0x68] sm:$0xff]  ;;  %v134_v35 = vpack.c.bf16 %v26_v28, %v17_v27 }
  0x25   :  { %818 = vmatprep.mubr.bf16.mxu0 %v142_v38  ;;  %850 = vmatprep.mubr.bf16.mxu1 %v178_v44  ;;  %v36_v38 = vld [vmem:[%s2431_s0 + $0xa8] sm:$0xff]  ;;  %v35_v44 = vld [vmem:[%s2431_s0 + $0xa0] sm:$0xff] }
  0x26   :  { %v1694_v29 = vld [vmem:[%s2430_s1 + $0x1a8] sm:$0xff]  }
  0x27   :  { %1382 = vmatpush3.bf16.msra.mxu1 %v1651_v36  ;;  %1440 = vmatpush3.bf16.msra.mxu0 %v1653_v37  ;;  %v1679_v36 = vld [vmem:[%s2430_s1 + $0x180] sm:$0xff]   ;;  %v136_v37 = vpack.c.bf16 %v28_v34, %v19_v33  ;;  %v98_v33 = vld [vmem:[%s2431_s0 + $0x298] sm:$0xff] }
  0x28   :  { %1383 = vmatprep.subr.bf16.mxu1 %v1654_v42  ;;  %1441 = vmatprep.subr.bf16.mxu0 %v1656_v47  ;;  %v144_v42 = vpack.c.bf16 %v45_v39, %v36_v38  ;;  %v38_v47 = vld [vmem:[%s2431_s0 + $0xb8] sm:$0xff]  ;;  %v91_v34 = vld [vmem:[%s2431_s0 + $0x260] sm:$0xff]  ;;  %v117_v38 = vld [vmem:[%s2431_s0 + $0x330] sm:$0xff] }
  0x29   :  { %v110_v39 = vld [vmem:[%s2431_s0 + $0x2f8] sm:$0xff] }
  0x2a   :  { %819 = vmatmul.mubr.bf16.gmra.mrb[4].mxu0 %v141_v49  ;;  %851 = vmatmul.mubr.bf16.gmra.mrb[4].mxu1 %v177_v50  ;;  %v37_v49 = vld [vmem:[%s2431_s0 + $0xb0] sm:$0xff]  ;;  %v46_v50 = vld [vmem:[%s2431_s0 + $0xf8] sm:$0xff] }
  0x2b   :  { %1384 = vmatpush3.bf16.msra.mxu1 %v1655_v48  ;;  %1442 = vmatpush3.bf16.msra.mxu0 %v1657_v53  ;;  %v47_v48 = vld [vmem:[%s2431_s0 + $0x100] sm:$0xff]  ;;  %v1684_v53 = vld [vmem:[%s2430_s1 + $0x1d0] sm:$0xff]  }
  0x2c   :  { %1385 = vmatprep.subr.bf16.mxu1 %v1658_v54  ;;  %1443 = vmatprep.subr.bf16.mxu0 %v1660_v55  ;;  %v146_v51 = vpack.c.bf16 %v47_v48, %v38_v47  ;;  %v54_v54 = vld [vmem:[%s2431_s0 + $0x138] sm:$0xff]  ;;  %v63_v55 = vld [vmem:[%s2431_s0 + $0x180] sm:$0xff] }
  0x2d   :  { %826 = vmatprep.mubr.bf16.mxu0 %v151_v58  ;;  %858 = vmatprep.mubr.bf16.mxu1 %v187_v0  ;;  %v153_v58 = vpack.c.bf16 %v63_v55, %v54_v54  ;;  %v62_v0 = vld [vmem:[%s2431_s0 + $0x178] sm:$0xff]  ;;  %v109_v54 = vld [vmem:[%s2431_s0 + $0x2f0] sm:$0xff] }
  0x2e   :  { %v118_v55 = vld [vmem:[%s2431_s0 + $0x338] sm:$0xff] }
  0x2f   :  { %1386 = vmatpush3.bf16.msra.mxu1 %v1659_v56  ;;  %1444 = vmatpush3.bf16.msra.mxu0 %v1661_v57  ;;  %v143_v56 = vpack.c.bf16 %v44_v45, %v35_v44  ;;  %v145_v57 = vpack.c.bf16 %v46_v50, %v37_v49  ;;  %v1699_v49 = vld [vmem:[%s2430_s1 + $0x1f8] sm:$0xff]  }
  0x30   :  { %1387 = vmatprep.subr.bf16.mxu1 %v1662_v59  ;;  %1445 = vmatprep.subr.bf16.mxu0 %v1664_v63  ;;  %v1685_v59 = vld [vmem:[%s2430_s1 + $0x190] sm:$0xff]   ;;  %v1700_v50 = vld [vmem:[%s2430_s1 + $0x1b8] sm:$0xff]  }
  0x31   :  { %v53_v63 = vld [vmem:[%s2431_s0 + $0x130] sm:$0xff] }
  0x32   :  { %827 = vmatmul.mubr.bf16.gmra.mrb[8].mxu0 %v150_v3  ;;  %859 = vmatmul.mubr.bf16.gmra.mrb[8].mxu1 %v186_v5  ;;  %v1687_v3 = vld [vmem:[%s2430_s1 + $0x1d8] sm:$0xff]  }
  0x33   :  { %1388 = vmatpush3.bf16.msra.mxu1 %v1663_v1  ;;  %1446 = vmatpush3.bf16.msra.mxu0 %v1665_v4  ;;  %v55_v1 = vld [vmem:[%s2431_s0 + $0x140] sm:$0xff]  ;;  %v64_v4 = vld [vmem:[%s2431_s0 + $0x188] sm:$0xff]  ;;  %v1688_v5 = vld [vmem:[%s2430_s1 + $0x198] sm:$0xff]  }
  0x34   :  { %1389 = vmatprep.subr.bf16.mxu1 %v1666_v6  ;;  %1447 = vmatprep.subr.bf16.mxu0 %v1668_v7  ;;  %v72_v6 = vld [vmem:[%s2431_s0 + $0x1c8] sm:$0xff]  ;;  %v81_v7 = vld [vmem:[%s2431_s0 + $0x210] sm:$0xff] }
  0x35   :  { %834 = vmatprep.mubr.bf16.mxu0 %v160_v12  ;;  %898 = vmatprep.mubr.bf16.mxu1 %v135_v25  ;;  %v162_v12 = vpack.c.bf16 %v81_v7, %v72_v6  ;;  %v1692_v25 = vld [vmem:[%s2430_s1 + $0x220] sm:$0xff]   ;;  %v30_v6 = vld [vmem:[%s2431_s0 + $0x78] sm:$0xff] }
  0x36   :  { %v23_v7 = vld [vmem:[%s2431_s0 + $0x40] sm:$0xff] }
  0x37   :  { %1390 = vmatpush3.bf16.msra.mxu1 %v1667_v10  ;;  %1448 = vmatpush3.bf16.msra.mxu0 %v1669_v11  ;;  %v152_v10 = vpack.c.bf16 %v62_v0, %v53_v63  ;;  %v154_v11 = vpack.c.bf16 %v64_v4, %v55_v1  ;;  %v127_v63 = vld [vmem:[%s2431_s0 + $0x380] sm:$0xff]  ;;  %v22_v0 = vld [vmem:[%s2431_s0 + $0x38] sm:$0xff] }
  0x38   :  { %1391 = vmatprep.subr.bf16.mxu1 %v1670_v13  ;;  %1449 = vmatprep.subr.bf16.mxu0 %v1672_v16  ;;  %v164_v13 = vpack.c.bf16 %v83_v9, %v74_v8  ;;  %v71_v16 = vld [vmem:[%s2431_s0 + $0x1c0] sm:$0xff]  ;;  %v32_v8 = vld [vmem:[%s2431_s0 + $0x88] sm:$0xff] }
  0x39   :  { %v31_v1 = vld [vmem:[%s2431_s0 + $0x80] sm:$0xff]  ;;  %v40_v9 = vld [vmem:[%s2431_s0 + $0xc8] sm:$0xff] }
  0x3a   :  { %835 = vmatmul.mubr.bf16.gmra.mrb[12].mxu0 %v159_v19  ;;  %v73_v19 = vld [vmem:[%s2431_s0 + $0x1d0] sm:$0xff]  ;;  %v139_v4 = vpack.c.bf16 %v31_v1, %v22_v0 }
  0x3b   :  { %1392 = vmatpush3.bf16.msra.mxu1 %v1671_v17  ;;  %1450 = vmatpush3.bf16.msra.mxu0 %v1673_v18  ;;  %v80_v17 = vld [vmem:[%s2431_s0 + $0x208] sm:$0xff]  ;;  %v1691_v18 = vld [vmem:[%s2430_s1 + $0x1a0] sm:$0xff]  }
  0x3c   :  { %1393 = vmatprep.subr.bf16.mxu1 %v1674_v20  ;;  %1451 = vmatprep.subr.bf16.mxu0 %v1676_v21  ;;  %v82_v20 = vld [vmem:[%s2431_s0 + $0x218] sm:$0xff]  ;;  %v161_v27 = vpack.c.bf16 %v80_v17, %v71_v16  ;;  %v41_v16 = vld [vmem:[%s2431_s0 + $0xd0] sm:$0xff] }
  0x3d   :  { %986 = vmatprep.mubr.bf16.mxu0 %v137_v32  ;;  %v90_v21 = vld [vmem:[%s2431_s0 + $0x258] sm:$0xff]  ;;  %v163_v28 = vpack.c.bf16 %v82_v20, %v73_v19  ;;  %v89_v32 = vld [vmem:[%s2431_s0 + $0x250] sm:$0xff]  ;;  %v67_v19 = vld [vmem:[%s2431_s0 + $0x1a0] sm:$0xff] }
  0x3e   :  { %v171_v30 = vpack.c.bf16 %v99_v22, %v90_v21  ;;  %v170_v44 = vpack.c.bf16 %v98_v33, %v89_v32  ;;  %v50_v17 = vld [vmem:[%s2431_s0 + $0x118] sm:$0xff]  ;;  %v75_v32 = vld [vmem:[%s2431_s0 + $0x1e0] sm:$0xff]  ;;  %v84_v33 = vld [vmem:[%s2431_s0 + $0x228] sm:$0xff] }
  0x3f   :  { %1394 = vmatpush3.bf16.msra.mxu1 %v1675_v24  ;;  %1452 = vmatpush3.bf16.msra.mxu0 %v1677_v26  ;;  %v101_v24 = vld [vmem:[%s2431_s0 + $0x2b0] sm:$0xff]  ;;  %v1693_v26 = vld [vmem:[%s2430_s1 + $0x1e8] sm:$0xff]   ;;  %v149_v21 = vpack.c.bf16 %v50_v17, %v41_v16 }
  0x40   :  { %1495 = vmatprep.subr.bf16.mxu1 %v1678_v31  ;;  %1568 = vmatprep.subr.bf16.mxu0 %v1702_v41  ;;  %v173_v31 = vpack.c.bf16 %v101_v24, %v92_v23  ;;  %v57_v23 = vld [vmem:[%s2431_s0 + $0x150] sm:$0xff]  ;;  %v66_v24 = vld [vmem:[%s2431_s0 + $0x198] sm:$0xff] }
  0x42   :  { %899 = vmatmul.mubr.bf16.vlgmr.msra.gmra.mrb[12].mxu1 %v134_v35  ;;  %987 = vmatmul.mubr.bf16.vlgmr.msra.gmra.mrb[16].mxu0 %v136_v37  ;;  %v100_v35 = vld [vmem:[%s2431_s0 + $0x2a8] sm:$0xff] }
  0x43   :  { %1496 = vmatpush3.bf16.msra.mxu1 %v1679_v36  ;;  %1569 = vmatpush3.bf16.msra.mxu0 %v1680_v40  ;;  %v1695_v36 = vld [vmem:[%s2430_s1 + $0x228] sm:$0xff]   ;;  %v1696_v40 = vld [vmem:[%s2430_s1 + $0x1f0] sm:$0xff]   ;;  %v172_v45 = vpack.c.bf16 %v100_v35, %v91_v34  ;;  %v86_v35 = vld [vmem:[%s2431_s0 + $0x238] sm:$0xff] }
  0x44   :  { %906 = vmatprep.mubr.bf16.mxu1 %v144_v42  ;;  %1497 = vmatprep.subr.bf16.mxu1 %v1681_v43  ;;  %v108_v37 = vld [vmem:[%s2431_s0 + $0x2e8] sm:$0xff]  ;;  %v119_v42 = vld [vmem:[%s2431_s0 + $0x340] sm:$0xff]  ;;  %v1697_v43 = vld [vmem:[%s2430_s1 + $0x1b0] sm:$0xff]  }
  0x45   :  { %994 = vmatprep.mubr.bf16.mxu0 %v146_v51  ;;  %1570 = vmatprep.subr.bf16.mxu0 %v1702_v41  ;;  %v180_v47 = vpack.c.bf16 %v117_v38, %v108_v37  ;;  %v182_v48 = vpack.c.bf16 %v119_v42, %v110_v39  ;;  %v107_v51 = vld [vmem:[%s2431_s0 + $0x2e0] sm:$0xff]  ;;  %v77_v34 = vld [vmem:[%s2431_s0 + $0x1f0] sm:$0xff]  ;;  %v165_v38 = vpack.c.bf16 %v84_v33, %v75_v32 }
  0x46   :  { %v103_v37 = vld [vmem:[%s2431_s0 + $0x2c0] sm:$0xff]  ;;  %v167_v39 = vpack.c.bf16 %v86_v35, %v77_v34  ;;  %v93_v42 = vld [vmem:[%s2431_s0 + $0x270] sm:$0xff] }
  0x47   :  { %1498 = vmatpush3.bf16.msra.mxu1 %v1682_v46  ;;  %1571 = vmatpush3.bf16.msra.mxu0 %v1683_v52  ;;  %v1698_v46 = vld [vmem:[%s2430_s1 + $0x230] sm:$0xff]   ;;  %v1701_v52 = vld [vmem:[%s2430_s1 + $0x238] sm:$0xff]  }
  0x48   :  { %1499 = vmatprep.subr.bf16.mxu1 %v1684_v53  ;;  %1572 = vmatprep.subr.bf16.mxu0 %v1702_v41  ;;  %v116_v53 = vld [vmem:[%s2431_s0 + $0x328] sm:$0xff] }
  0x4a   :  { %907 = vmatmul.mubr.bf16.gmra.mrb[16].mxu1 %v143_v56  ;;  %995 = vmatmul.mubr.bf16.gmra.mrb[20].mxu0 %v145_v57  ;;  %v126_v56 = vld [vmem:[%s2431_s0 + $0x378] sm:$0xff]  ;;  %v128_v57 = vld [vmem:[%s2431_s0 + $0x388] sm:$0xff] }
  0x4b   :  { %914 = vmatprep.mubr.bf16.mxu1 %v153_v58  ;;  %1500 = vmatpush3.bf16.msra.mxu1 %v1685_v59  ;;  %v179_v58 = vpack.c.bf16 %v116_v53, %v107_v51  ;;  %v181_v59 = vpack.c.bf16 %v118_v55, %v109_v54  ;;  %v189_v60 = vpack.c.bf16 %v126_v56, %v126_v56  ;;  %v111_v51 = vld [vmem:[%s2431_s0 + $0x300] sm:$0xff]  ;;  %v113_v53 = vld [vmem:[%s2431_s0 + $0x310] sm:$0xff]  ;;  %v122_v54 = vld [vmem:[%s2431_s0 + $0x358] sm:$0xff] }
  0x4c   :  { %1002 = vmatprep.mubr.bf16.mxu0 %v155_v62  ;;  %1573 = vmatpush3.bf16.msra.mxu0 %v1686_v2  ;;  %v191_v61 = vpack.c.bf16 %v128_v57, %v128_v57  ;;  %v125_v62 = vld [vmem:[%s2431_s0 + $0x370] sm:$0xff]  ;;  %v130_v55 = vld [vmem:[%s2431_s0 + $0x398] sm:$0xff]  ;;  %v185_v57 = vpack.c.bf16 %v122_v54, %v113_v53 }
  0x4d   :  { %1501 = vmatprep.subr.bf16.mxu1 %v1687_v3  ;;  %1574 = vmatprep.subr.bf16.mxu0 %v1702_v41  ;;  %v188_v2 = vpack.c.bf16 %v125_v62, %v125_v62  ;;  %v190_v3 = vpack.c.bf16 %v127_v63, %v127_v63 }
  0x4f   :  { %1502 = vmatpush3.bf16.msra.mxu1 %v1688_v5  ;;  %v21_v5 = vld [vmem:[%s2431_s0 + $0x30] sm:$0xff] }
  0x50   :  { %1575 = vmatpush3.bf16.msra.mxu0 %v1689_v14  ;;  %1503 = vmatprep.subr.bf16.mxu1 %v1690_v15  ;;  %v39_v14 = vld [vmem:[%s2431_s0 + $0xc0] sm:$0xff]  ;;  %v48_v15 = vld [vmem:[%s2431_s0 + $0x108] sm:$0xff] }
  0x51   :  { %1576 = vmatprep.subr.bf16.mxu0 %v1702_v41  ;;  %v147_v20 = vpack.c.bf16 %v48_v15, %v39_v14 }
  0x52   :  { %915 = vmatmul.mubr.bf16.gmra.mrb[20].mxu1 %v152_v10  ;;  %1003 = vmatmul.mubr.bf16.gmra.mrb[24].mxu0 %v154_v11  ;;  %v49_v10 = vld [vmem:[%s2431_s0 + $0x110] sm:$0xff]  ;;  %v138_v11 = vpack.c.bf16 %v30_v6, %v21_v5 }
  0x53   :  { %922 = vmatprep.mubr.bf16.mxu1 %v162_v12  ;;  %1010 = vmatprep.mubr.bf16.mxu0 %v164_v13  ;;  %v140_v12 = vpack.c.bf16 %v32_v8, %v23_v7  ;;  %v148_v13 = vpack.c.bf16 %v49_v10, %v40_v9 }
  0x54   :  { %1504 = vmatpush3.bf16.msra.mxu1 %v1691_v18  ;;  %1577 = vmatpush3.bf16.msra.mxu0 %v1692_v25  ;;  %v58_v18 = vld [vmem:[%s2431_s0 + $0x158] sm:$0xff]  ;;  %v59_v25 = vld [vmem:[%s2431_s0 + $0x160] sm:$0xff] }
  0x55   :  { %1505 = vmatprep.subr.bf16.mxu1 %v1693_v26  ;;  %1578 = vmatprep.subr.bf16.mxu0 %v1702_v41  ;;  %v157_v22 = vpack.c.bf16 %v67_v19, %v58_v18  ;;  %v68_v26 = vld [vmem:[%s2431_s0 + $0x1a8] sm:$0xff] }
  0x58   :  { %1506 = vmatpush3.bf16.msra.mxu1 %v1694_v29  ;;  %1579 = vmatpush3.bf16.msra.mxu0 %v1695_v36  ;;  %v156_v29 = vpack.c.bf16 %v66_v24, %v57_v23  ;;  %v94_v36 = vld [vmem:[%s2431_s0 + $0x278] sm:$0xff] }
  0x59   :  { %1507 = vmatprep.subr.bf16.mxu1 %v1696_v40  ;;  %1580 = vmatprep.subr.bf16.mxu0 %v1702_v41  ;;  %v175_v40 = vpack.c.bf16 %v103_v37, %v94_v36 }
  0x5a   :  { %923 = vmatmul.mubr.bf16.gmra.mrb[24].mxu1 %v161_v27  ;;  %1011 = vmatmul.mubr.bf16.gmra.mrb[28].mxu0 %v163_v28  ;;  %v76_v27 = vld [vmem:[%s2431_s0 + $0x1e8] sm:$0xff]  ;;  %v85_v28 = vld [vmem:[%s2431_s0 + $0x230] sm:$0xff] }
  0x5b   :  { %930 = vmatprep.mubr.bf16.mxu1 %v171_v30  ;;  %1018 = vmatprep.mubr.bf16.mxu0 %v173_v31  ;;  %v158_v30 = vpack.c.bf16 %v68_v26, %v59_v25  ;;  %v166_v31 = vpack.c.bf16 %v85_v28, %v76_v27 }
  0x5c   :  { %1508 = vmatpush3.bf16.msra.mxu1 %v1697_v43  ;;  %1581 = vmatpush3.bf16.msra.mxu0 %v1698_v46  ;;  %v102_v43 = vld [vmem:[%s2431_s0 + $0x2b8] sm:$0xff]  ;;  %v112_v46 = vld [vmem:[%s2431_s0 + $0x308] sm:$0xff] }
  0x5d   :  { %1509 = vmatprep.subr.bf16.mxu1 %v1699_v49  ;;  %1582 = vmatprep.subr.bf16.mxu0 %v1702_v41 }
  0x60   :  { %1510 = vmatpush3.bf16.msra.mxu1 %v1700_v50  ;;  %1583 = vmatpush3.bf16.msra.mxu0 %v1701_v52  ;;  %v120_v52 = vld [vmem:[%s2431_s0 + $0x348] sm:$0xff] }
  0x61   :  { %v183_v56 = vpack.c.bf16 %v120_v52, %v111_v51 }
  0x62   :  { %931 = vmatmul.mubr.bf16.gmra.mrb[28].mxu1 %v170_v44  ;;  %1019 = vmatmul.mubr.bf16.gmra.mrb[32].mxu0 %v172_v45  ;;  %v95_v44 = vld [vmem:[%s2431_s0 + $0x280] sm:$0xff]  ;;  %v104_v45 = vld [vmem:[%s2431_s0 + $0x2c8] sm:$0xff] }
  0x63   :  { %938 = vmatprep.mubr.bf16.mxu1 %v180_v47  ;;  %1026 = vmatprep.mubr.bf16.mxu0 %v182_v48  ;;  %v121_v47 = vld [vmem:[%s2431_s0 + $0x350] sm:$0xff]  ;;  %v174_v48 = vpack.c.bf16 %v102_v43, %v93_v42  ;;  %v176_v49 = vpack.c.bf16 %v104_v45, %v95_v44  ;;  %v2330_v42 = vld [vmem:[%s2432_s2] ss:$0 sm:$0xff] }
  0x64   :  { %v184_v50 = vpack.c.bf16 %v121_v47, %v112_v46 }
  0x6a   :  { %939 = vmatmul.mubr.bf16.gmra.mrb[32].mxu1 %v179_v58  ;;  %1027 = vmatmul.mubr.bf16.gmra.mrb[36].mxu0 %v181_v59  ;;  %v193_v58 = vpack.c.bf16 %v130_v55, %v130_v55  ;;  %v129_v59 = vld [vmem:[%s2431_s0 + $0x390] sm:$0xff] }
  0x6b   :  { %946 = vmatprep.mubr.bf16.mxu1 %v189_v60  ;;  %1034 = vmatprep.mubr.bf16.mxu0 %v191_v61  ;;  %v131_v60 = vld [vmem:[%s2431_s0 + $0x3a0] sm:$0xff]  ;;  %v192_v61 = vpack.c.bf16 %v129_v59, %v129_v59 }
  0x6c   :  { %v194_v62 = vpack.c.bf16 %v131_v60, %v131_v60 }
  0x72   :  { %947 = vmatmul.mubr.bf16.gmra.mrb[36].mxu1 %v188_v2  ;;  %1035 = vmatmul.mubr.bf16.gmra.mrb[40].mxu0 %v190_v3 }
  0x73   :  { %1074 = vmatprep.mubr.bf16.mxu1 %v139_v4  ;;  %1584 = vmatprep.mubr.msk.bf16.mxu0 %vm1703_vm0, %v1702_v41 }
  0x7a   :  { %1075 = vmatmul.mubr.bf16.vlgmr.msra.gmra.mrb[40].mxu1 %v138_v11  ;;  %1585 = vmatmul.mubr.bf16.vlgmr.msra.gmra.mrb[44].mxu0 %v140_v12 }
  0x7b   :  { %1082 = vmatprep.mubr.bf16.mxu1 %v148_v13  ;;  %1588 = vmatprep.mubr.msk.bf16.mxu0 %vm1703_vm0, %v1702_v41 }
  0x82   :  { %1083 = vmatmul.mubr.bf16.gmra.mrb[44].mxu1 %v147_v20  ;;  %1589 = vmatmul.mubr.bf16.gmra.mrb[48].mxu0 %v149_v21 }
  0x83   :  { %1090 = vmatprep.mubr.bf16.mxu1 %v157_v22  ;;  %1592 = vmatprep.mubr.msk.bf16.mxu0 %vm1703_vm0, %v1702_v41 }
  0x8a   :  { %1091 = vmatmul.mubr.bf16.gmra.mrb[48].mxu1 %v156_v29  ;;  %1593 = vmatmul.mubr.bf16.gmra.mrb[52].mxu0 %v158_v30 }
  0x8b   :  { %1098 = vmatprep.mubr.bf16.mxu1 %v166_v31  ;;  %1596 = vmatprep.mubr.msk.bf16.mxu0 %vm1703_vm0, %v1702_v41 }
  0x92   :  { %1099 = vmatmul.mubr.bf16.gmra.mrb[52].mxu1 %v165_v38  ;;  %1597 = vmatmul.mubr.bf16.gmra.mrb[56].mxu0 %v167_v39 }
  0x93   :  { %1106 = vmatprep.mubr.bf16.mxu1 %v175_v40  ;;  %1600 = vmatprep.mubr.msk.bf16.mxu0 %vm1703_vm0, %v1702_v41 }
  0x9a   :  { %1107 = vmatmul.mubr.bf16.gmra.mrb[56].mxu1 %v174_v48  ;;  %1601 = vmatmul.mubr.bf16.gmra.mrb[60].mxu0 %v176_v49 }
  0x9b   :  { %1114 = vmatprep.mubr.bf16.mxu1 %v184_v50  ;;  %1604 = vmatprep.mubr.msk.bf16.mxu0 %vm1703_vm0, %v1702_v41 }
  0xa2   :  { %1115 = vmatmul.mubr.bf16.gmra.mrb[60].mxu1 %v183_v56  ;;  %1605 = vmatmul.mubr.bf16.gmra.mrb[64].mxu0 %v185_v57 }
  0xa3   :  { %1122 = vmatprep.mubr.bf16.mxu1 %v193_v58  ;;  %1608 = vmatprep.mubr.msk.bf16.mxu0 %vm1703_vm0, %v1702_v41 }
  0xaa   :  { %1123 = vmatmul.mubr.bf16.gmra.mrb[64].mxu1 %v192_v61  ;;  %1609 = vmatmul.mubr.bf16.gmra.mrb[68].mxu0 %v194_v62 }
  0xf5   :  { %v1361_v63 = vpop.f32.mrb[0].mxu1  ;;  %v1337_v0 = vpop.f32.mrb[0].mxu0 }
  0xf6   :  { %v1362_v1 = vpop.f32.mrb[1].mxu1  ;;  %v1338_v2 = vpop.f32.mrb[1].mxu0 }
  0xf7   :  { %v2313_v3 = vadd.f32 %v1362_v1, %v1361_v63  ;;  %v1364_v4 = vpop.f32.mrb[2].mxu1  ;;  %v1339_v5 = vadd.f32 %v1338_v2, %v1337_v0  ;;  %v1340_v6 = vpop.f32.mrb[2].mxu0 }
  0xf8   :  { %v1365_v7 = vpop.f32.mrb[3].mxu1  ;;  %v1341_v8 = vpop.f32.mrb[3].mxu0 }
  0xf9   :  { %v2315_v41 = vadd.f32 %v1365_v7, %v1364_v4  ;;  %v1342_v9 = vadd.f32 %v1341_v8, %v1340_v6  ;;  %v813_v45 = vadd.f32 %v1339_v5, %v2330_v42 }
  0xfb   :  { %v816_v52 = vadd.f32 %v1342_v9, %v2330_v42 }
  0xfd   :  { %v1343_v10 = vpop.f32.mrb[4].mxu0  ;;  %v1367_v11 = vpop.f32.mrb[4].mxu1 }
  0xfe   :  { %v1344_v12 = vpop.f32.mrb[5].mxu0  ;;  %v1368_v13 = vpop.f32.mrb[5].mxu1 }
  0xff   :  { %v1345_v14 = vadd.f32 %v1344_v12, %v1343_v10  ;;  %v1346_v15 = vpop.f32.mrb[6].mxu0  ;;  %v2317_v16 = vadd.f32 %v1368_v13, %v1367_v11  ;;  %v1370_v17 = vpop.f32.mrb[6].mxu1 }
 0x100   :  { %v1347_v18 = vpop.f32.mrb[7].mxu0  ;;  %v1371_v19 = vpop.f32.mrb[7].mxu1 }
 0x101   :  { %v1348_v20 = vadd.f32 %v1347_v18, %v1346_v15  ;;  %v2319_v21 = vadd.f32 %v1371_v19, %v1370_v17  ;;  %v821_v63 = vadd.f32 %v1345_v14, %v2330_v42 }
 0x103   :  { %v824_v7 = vadd.f32 %v1348_v20, %v2330_v42 }
 0x105   :  { %v1349_v22 = vpop.f32.mrb[8].mxu0  ;;  %v1373_v23 = vpop.f32.mrb[8].mxu1 }
 0x106   :  { %v1350_v24 = vpop.f32.mrb[9].mxu0  ;;  %v1374_v25 = vpop.f32.mrb[9].mxu1 }
 0x107   :  { %v1351_v26 = vadd.f32 %v1350_v24, %v1349_v22  ;;  %v1352_v27 = vpop.f32.mrb[10].mxu0  ;;  %v2321_v28 = vadd.f32 %v1374_v25, %v1373_v23  ;;  %v1376_v29 = vpop.f32.mrb[10].mxu1 }
 0x108   :  { %v1353_v30 = vpop.f32.mrb[11].mxu0  ;;  %v1377_v31 = vpop.f32.mrb[11].mxu1 }
 0x109   :  { %v1354_v32 = vadd.f32 %v1353_v30, %v1352_v27  ;;  %v829_v19 = vadd.f32 %v1351_v26, %v2330_v42 }
 0x10b   :  { %v832_v29 = vadd.f32 %v1354_v32, %v2330_v42 }
 0x10d   :  { %v1355_v33 = vpop.f32.mrb[12].mxu0 }
 0x10e   :  { %v1356_v34 = vpop.f32.mrb[13].mxu0 }
 0x10f   :  { %v2323_v35 = vadd.f32 %v1356_v34, %v1355_v33  ;;  %v1358_v36 = vpop.f32.mrb[14].mxu0 }
 0x110   :  { %v1359_v37 = vpop.f32.mrb[15].mxu0 }
 0x111   :  { %v2325_v38 = vadd.f32 %v1359_v37, %v1358_v36 }
 0x115   :  { %v1395_v39 = vpop.f32.mrb[12].mxu1  ;;  %v1453_v40 = vpop.f32.mrb[16].mxu0 }
 0x116   :  { %v1396_v43 = vpop.f32.mrb[13].mxu1  ;;  %v1454_v44 = vpop.f32.mrb[17].mxu0 }
 0x117   :  { %v1397_v46 = vadd.f32 %v1396_v43, %v1395_v39  ;;  %v1398_v47 = vpop.f32.mrb[14].mxu1  ;;  %v1455_v48 = vadd.f32 %v1454_v44, %v1453_v40  ;;  %v1456_v49 = vpop.f32.mrb[18].mxu0  ;;  %v837_v44 = vadd.f32 %v2323_v35, %v2330_v42 }
 0x118   :  { %v1399_v50 = vpop.f32.mrb[15].mxu1  ;;  %v1457_v51 = vpop.f32.mrb[19].mxu0 }
 0x119   :  { %v901_v53 = vadd.f32 %v1397_v46, %v813_v45  ;;  %v1400_v54 = vadd.f32 %v1399_v50, %v1398_v47  ;;  %v1458_v55 = vadd.f32 %v1457_v51, %v1456_v49  ;;  %v840_v50 = vadd.f32 %v2325_v38, %v2330_v42 }
 0x11b   :  { %v904_v56 = vadd.f32 %v1400_v54, %v816_v52  ;;  %v2334_v57 = vadd.f32 %v1455_v48, %v901_v53 }
 0x11d   :  { %v2336_v58 = vadd.f32 %v1458_v55, %v904_v56  ;;  %v1401_v59 = vpop.f32.mrb[16].mxu1  ;;  %v1459_v60 = vpop.f32.mrb[20].mxu0 }
 0x11e   :  { %v1402_v61 = vpop.f32.mrb[17].mxu1  ;;  %v1460_v62 = vpop.f32.mrb[21].mxu0 }
 0x11f   :  { %v1403_v0 = vadd.f32 %v1402_v61, %v1401_v59  ;;  %v1404_v1 = vpop.f32.mrb[18].mxu1  ;;  %v1461_v2 = vadd.f32 %v1460_v62, %v1459_v60  ;;  %v1462_v4 = vpop.f32.mrb[22].mxu0  ;;  %v845_v62 = vadd.f32 %v2313_v3, %v2330_v42 }
 0x120   :  { %v1405_v5 = vpop.f32.mrb[19].mxu1  ;;  %v1463_v6 = vpop.f32.mrb[23].mxu0 }
 0x121   :  { %v909_v8 = vadd.f32 %v1403_v0, %v821_v63  ;;  %v1406_v9 = vadd.f32 %v1405_v5, %v1404_v1  ;;  %v1464_v10 = vadd.f32 %v1463_v6, %v1462_v4  ;;  %v848_v5 = vadd.f32 %v2315_v41, %v2330_v42 }
 0x123   :  { %v912_v11 = vadd.f32 %v1406_v9, %v824_v7  ;;  %v2340_v12 = vadd.f32 %v1461_v2, %v909_v8 }
 0x125   :  { %v2342_v13 = vadd.f32 %v1464_v10, %v912_v11  ;;  %v1407_v15 = vpop.f32.mrb[20].mxu1  ;;  %v1465_v17 = vpop.f32.mrb[24].mxu0 }
 0x126   :  { %v1408_v18 = vpop.f32.mrb[21].mxu1  ;;  %v1466_v14 = vpop.f32.mrb[25].mxu0 }
 0x127   :  { %v1409_v22 = vadd.f32 %v1408_v18, %v1407_v15  ;;  %v1410_v23 = vpop.f32.mrb[22].mxu1  ;;  %v1467_v24 = vadd.f32 %v1466_v14, %v1465_v17  ;;  %v1468_v25 = vpop.f32.mrb[26].mxu0  ;;  %v853_v14 = vadd.f32 %v2317_v16, %v2330_v42 }
 0x128   :  { %v1411_v27 = vpop.f32.mrb[23].mxu1  ;;  %v1469_v20 = vpop.f32.mrb[27].mxu0 }
 0x129   :  { %v917_v30 = vadd.f32 %v1409_v22, %v829_v19  ;;  %v1412_v31 = vadd.f32 %v1411_v27, %v1410_v23  ;;  %v1470_v33 = vadd.f32 %v1469_v20, %v1468_v25  ;;  %v856_v27 = vadd.f32 %v2319_v21, %v2330_v42 }
 0x12b   :  { %v920_v34 = vadd.f32 %v1412_v31, %v832_v29  ;;  %v2346_v36 = vadd.f32 %v1467_v24, %v917_v30 }
 0x12d   :  { %v2348_v37 = vadd.f32 %v1470_v33, %v920_v34  ;;  %v1413_v39 = vpop.f32.mrb[24].mxu1  ;;  %v1471_v40 = vpop.f32.mrb[28].mxu0 }
 0x12e   :  { %v1414_v43 = vpop.f32.mrb[25].mxu1  ;;  %v1472_v26 = vpop.f32.mrb[29].mxu0 }
 0x12f   :  { %v1415_v45 = vadd.f32 %v1414_v43, %v1413_v39  ;;  %v1416_v46 = vpop.f32.mrb[26].mxu1  ;;  %v1473_v47 = vadd.f32 %v1472_v26, %v1471_v40  ;;  %v1474_v48 = vpop.f32.mrb[30].mxu0  ;;  %v861_v26 = vadd.f32 %v2321_v28, %v2330_v42 }
 0x130   :  { %v1417_v32 = vpop.f32.mrb[27].mxu1  ;;  %v1475_v49 = vpop.f32.mrb[31].mxu0 }
 0x131   :  { %v925_v51 = vadd.f32 %v1415_v45, %v837_v44  ;;  %v1418_v52 = vadd.f32 %v1417_v32, %v1416_v46  ;;  %v1476_v53 = vadd.f32 %v1475_v49, %v1474_v48 }
 0x133   :  { %v928_v54 = vadd.f32 %v1418_v52, %v840_v50  ;;  %v2354_v55 = vadd.f32 %v1473_v47, %v925_v51 }
 0x135   :  { %v2356_v56 = vadd.f32 %v1476_v53, %v928_v54  ;;  %v1419_v59 = vpop.f32.mrb[28].mxu1  ;;  %v1477_v60 = vpop.f32.mrb[32].mxu0 }
 0x136   :  { %v1420_v35 = vpop.f32.mrb[29].mxu1  ;;  %v1478_v61 = vpop.f32.mrb[33].mxu0 }
 0x137   :  { %v1421_v63 = vadd.f32 %v1420_v35, %v1419_v59  ;;  %v1422_v0 = vpop.f32.mrb[30].mxu1  ;;  %v1479_v1 = vadd.f32 %v1478_v61, %v1477_v60  ;;  %v1480_v2 = vpop.f32.mrb[34].mxu0 }
 0x138   :  { %v1423_v38 = vpop.f32.mrb[31].mxu1  ;;  %v1481_v4 = vpop.f32.mrb[35].mxu0 }
 0x139   :  { %v933_v6 = vadd.f32 %v1421_v63, %v845_v62  ;;  %v1424_v7 = vadd.f32 %v1423_v38, %v1422_v0  ;;  %v1482_v8 = vadd.f32 %v1481_v4, %v1480_v2 }
 0x13b   :  { %v936_v9 = vadd.f32 %v1424_v7, %v848_v5  ;;  %v2362_v10 = vadd.f32 %v1479_v1, %v933_v6 }
 0x13d   :  { %v2364_v11 = vadd.f32 %v1482_v8, %v936_v9  ;;  %v1425_v15 = vpop.f32.mrb[32].mxu1  ;;  %v1483_v17 = vpop.f32.mrb[36].mxu0 }
 0x13e   :  { %v1426_v3 = vpop.f32.mrb[33].mxu1  ;;  %v1484_v18 = vpop.f32.mrb[37].mxu0 }
 0x13f   :  { %v1427_v19 = vadd.f32 %v1426_v3, %v1425_v15  ;;  %v1428_v22 = vpop.f32.mrb[34].mxu1  ;;  %v1485_v23 = vadd.f32 %v1484_v18, %v1483_v17  ;;  %v1486_v24 = vpop.f32.mrb[38].mxu0 }
 0x140   :  { %v1429_v41 = vpop.f32.mrb[35].mxu1  ;;  %v1487_v25 = vpop.f32.mrb[39].mxu0 }
 0x141   :  { %v941_v20 = vadd.f32 %v1427_v19, %v853_v14  ;;  %v1430_v29 = vadd.f32 %v1429_v41, %v1428_v22  ;;  %v1488_v30 = vadd.f32 %v1487_v25, %v1486_v24 }
 0x143   :  { %v944_v31 = vadd.f32 %v1430_v29, %v856_v27  ;;  %v2370_v33 = vadd.f32 %v1485_v23, %v941_v20 }
 0x145   :  { %v2372_v34 = vadd.f32 %v1488_v30, %v944_v31  ;;  %v1431_v39 = vpop.f32.mrb[36].mxu1  ;;  %v1489_v40 = vpop.f32.mrb[40].mxu0 }
 0x146   :  { %v1432_v16 = vpop.f32.mrb[37].mxu1  ;;  %v1490_v43 = vpop.f32.mrb[41].mxu0 }
 0x147   :  { %v1433_v44 = vadd.f32 %v1432_v16, %v1431_v39  ;;  %v1434_v45 = vpop.f32.mrb[38].mxu1  ;;  %v1491_v46 = vadd.f32 %v1490_v43, %v1489_v40  ;;  %v1492_v47 = vpop.f32.mrb[42].mxu0 }
 0x148   :  { %v1435_v21 = vpop.f32.mrb[39].mxu1  ;;  %v1493_v48 = vpop.f32.mrb[43].mxu0 }
 0x149   :  { %v949_v32 = vadd.f32 %v1433_v44, %v861_v26 }
 0x14b   :  { %v2376_v49 = vadd.f32 %v1491_v46, %v949_v32 }
 0x14d   :  { %v1511_v50 = vpop.f32.mrb[40].mxu1  ;;  %v1164_v51 = vpop.f32.mrb[44].mxu0 }
 0x14e   :  { %v1512_v52 = vpop.f32.mrb[41].mxu1  ;;  %v1586_v53 = vpop.f32.mrb[45].mxu0 }
 0x14f   :  { %v1513_v54 = vadd.f32 %v1512_v52, %v1511_v50  ;;  %v1514_v59 = vpop.f32.mrb[42].mxu1  ;;  %v1167_v60 = vpop.f32.mrb[46].mxu0 }
 0x150   :  { %v1515_v35 = vpop.f32.mrb[43].mxu1  ;;  %v1587_v61 = vpop.f32.mrb[47].mxu0 }
 0x151   :  { %v1516_v62 = vadd.f32 %v1515_v35, %v1514_v59  ;;  %v1077_v28 = vadd.f32 %v1513_v54, %v2334_v57 }
 0x153   :  { %v1165_v42 = vadd.f32 %v1164_v51, %v1077_v28  ;;  %v1080_v63 = vadd.f32 %v1516_v62, %v2336_v58 }
 0x155   :  { %v1218_v0 = vmax.f32 %v1165_v42, 0.0  ;;  %v1168_v1 = vadd.f32 %v1167_v60, %v1080_v63  ;;  %v1517_v2 = vpop.f32.mrb[44].mxu1  ;;  %v1172_v38 = vpop.f32.mrb[48].mxu0 }
 0x156   :  { %v1518_v4 = vpop.f32.mrb[45].mxu1  ;;  %v1590_v5 = vpop.f32.mrb[49].mxu0 }
 0x157   :  { %1231 = vst [vmem:[%s2433_s3] sm:$0xff] %v1218_v0  ;;  %v1219_v6 = vmax.f32 %v1168_v1, 0.0  ;;  %v1519_v7 = vadd.f32 %v1518_v4, %v1517_v2  ;;  %v1520_v8 = vpop.f32.mrb[46].mxu1  ;;  %v1175_v9 = vpop.f32.mrb[50].mxu0 }
 0x158   :  { %v1521_v15 = vpop.f32.mrb[47].mxu1  ;;  %v1591_v17 = vpop.f32.mrb[51].mxu0 }
 0x159   :  { %1232 = vst [vmem:[%s2433_s3 + $0x8] sm:$0xff] %v1219_v6  ;;  %v1522_v57 = vadd.f32 %v1521_v15, %v1520_v8  ;;  %v1085_v58 = vadd.f32 %v1519_v7, %v2340_v12 }
 0x15b   :  { %v1173_v3 = vadd.f32 %v1172_v38, %v1085_v58  ;;  %v1088_v18 = vadd.f32 %v1522_v57, %v2342_v13 }
 0x15d   :  { %v1220_v14 = vmax.f32 %v1173_v3, 0.0  ;;  %v1176_v19 = vadd.f32 %v1175_v9, %v1088_v18  ;;  %v1523_v22 = vpop.f32.mrb[48].mxu1  ;;  %v1180_v23 = vpop.f32.mrb[52].mxu0 }
 0x15e   :  { %v1524_v24 = vpop.f32.mrb[49].mxu1  ;;  %v1594_v41 = vpop.f32.mrb[53].mxu0 }
 0x15f   :  { %1233 = vst [vmem:[%s2433_s3 + $0x10] sm:$0xff] %v1220_v14  ;;  %v1221_v25 = vmax.f32 %v1176_v19, 0.0  ;;  %v1525_v27 = vadd.f32 %v1524_v24, %v1523_v22  ;;  %v1526_v20 = vpop.f32.mrb[50].mxu1  ;;  %v1183_v29 = vpop.f32.mrb[54].mxu0 }
 0x160   :  { %v1527_v30 = vpop.f32.mrb[51].mxu1  ;;  %v1595_v31 = vpop.f32.mrb[55].mxu0 }
 0x161   :  { %1234 = vst [vmem:[%s2433_s3 + $0x18] sm:$0xff] %v1221_v25  ;;  %v1528_v12 = vadd.f32 %v1527_v30, %v1526_v20  ;;  %v1093_v13 = vadd.f32 %v1525_v27, %v2346_v36 }
 0x163   :  { %v1181_v39 = vadd.f32 %v1180_v23, %v1093_v13  ;;  %v1096_v40 = vadd.f32 %v1528_v12, %v2348_v37 }
 0x165   :  { %v1222_v16 = vmax.f32 %v1181_v39, 0.0  ;;  %v1184_v43 = vadd.f32 %v1183_v29, %v1096_v40  ;;  %v1529_v26 = vpop.f32.mrb[52].mxu1  ;;  %v1188_v44 = vpop.f32.mrb[56].mxu0 }
 0x166   :  { %v1530_v45 = vpop.f32.mrb[53].mxu1  ;;  %v1598_v46 = vpop.f32.mrb[57].mxu0 }
 0x167   :  { %1235 = vst [vmem:[%s2433_s3 + $0x20] sm:$0xff] %v1222_v16  ;;  %v1223_v47 = vmax.f32 %v1184_v43, 0.0  ;;  %v1531_v21 = vadd.f32 %v1530_v45, %v1529_v26  ;;  %v1532_v48 = vpop.f32.mrb[54].mxu1  ;;  %v1191_v32 = vpop.f32.mrb[58].mxu0 }
 0x168   :  { %v1533_v50 = vpop.f32.mrb[55].mxu1  ;;  %v1599_v51 = vpop.f32.mrb[59].mxu0 }
 0x169   :  { %1236 = vst [vmem:[%s2433_s3 + $0x28] sm:$0xff] %v1223_v47  ;;  %v1534_v36 = vadd.f32 %v1533_v50, %v1532_v48  ;;  %v1101_v37 = vadd.f32 %v1531_v21, %v2354_v55 }
 0x16b   :  { %v1189_v52 = vadd.f32 %v1188_v44, %v1101_v37  ;;  %v1104_v53 = vadd.f32 %v1534_v36, %v2356_v56 }
 0x16d   :  { %v1224_v54 = vmax.f32 %v1189_v52, 0.0  ;;  %v1192_v59 = vadd.f32 %v1191_v32, %v1104_v53  ;;  %v1535_v60 = vpop.f32.mrb[56].mxu1  ;;  %v1196_v35 = vpop.f32.mrb[60].mxu0 }
 0x16e   :  { %v1536_v61 = vpop.f32.mrb[57].mxu1  ;;  %v1602_v62 = vpop.f32.mrb[61].mxu0 }
 0x16f   :  { %1237 = vst [vmem:[%s2433_s3 + $0x30] sm:$0xff] %v1224_v54  ;;  %v1225_v28 = vmax.f32 %v1192_v59, 0.0  ;;  %v1537_v42 = vadd.f32 %v1536_v61, %v1535_v60  ;;  %v1538_v63 = vpop.f32.mrb[58].mxu1  ;;  %v1199_v0 = vpop.f32.mrb[62].mxu0 }
 0x170   :  { %v1539_v1 = vpop.f32.mrb[59].mxu1  ;;  %v1603_v2 = vpop.f32.mrb[63].mxu0 }
 0x171   :  { %1238 = vst [vmem:[%s2433_s3 + $0x38] sm:$0xff] %v1225_v28  ;;  %v1540_v55 = vadd.f32 %v1539_v1, %v1538_v63  ;;  %v1109_v56 = vadd.f32 %v1537_v42, %v2362_v10 }
 0x173   :  { %v1197_v38 = vadd.f32 %v1196_v35, %v1109_v56  ;;  %v1112_v4 = vadd.f32 %v1540_v55, %v2364_v11 }
 0x175   :  { %v1226_v5 = vmax.f32 %v1197_v38, 0.0  ;;  %v1200_v6 = vadd.f32 %v1199_v0, %v1112_v4  ;;  %v1541_v7 = vpop.f32.mrb[60].mxu1  ;;  %v1204_v8 = vpop.f32.mrb[64].mxu0 }
 0x176   :  { %v1542_v9 = vpop.f32.mrb[61].mxu1  ;;  %v1606_v15 = vpop.f32.mrb[65].mxu0 }
 0x177   :  { %1239 = vst [vmem:[%s2433_s3 + $0x40] sm:$0xff] %v1226_v5  ;;  %v1227_v17 = vmax.f32 %v1200_v6, 0.0  ;;  %v1543_v57 = vadd.f32 %v1542_v9, %v1541_v7  ;;  %v1544_v58 = vpop.f32.mrb[62].mxu1  ;;  %v1207_v3 = vpop.f32.mrb[66].mxu0 }
 0x178   :  { %v1545_v18 = vpop.f32.mrb[63].mxu1  ;;  %v1607_v14 = vpop.f32.mrb[67].mxu0 }
 0x179   :  { %1240 = vst [vmem:[%s2433_s3 + $0x48] sm:$0xff] %v1227_v17  ;;  %v1546_v10 = vadd.f32 %v1545_v18, %v1544_v58  ;;  %v1117_v11 = vadd.f32 %v1543_v57, %v2370_v33 }
 0x17b   :  { %v1205_v19 = vadd.f32 %v1204_v8, %v1117_v11  ;;  %v1120_v22 = vadd.f32 %v1546_v10, %v2372_v34 }
 0x17d   :  { %v1228_v23 = vmax.f32 %v1205_v19, 0.0  ;;  %v1208_v24 = vadd.f32 %v1207_v3, %v1120_v22  ;;  %v1547_v41 = vpop.f32.mrb[64].mxu1  ;;  %v1212_v25 = vpop.f32.mrb[68].mxu0 }
 0x17e   :  { %v1548_v27 = vpop.f32.mrb[65].mxu1  ;;  %v1610_v20 = vpop.f32.mrb[69].mxu0 }
 0x17f   :  { %1241 = vst [vmem:[%s2433_s3 + $0x50] sm:$0xff] %v1228_v23  ;;  %v1229_v29 = vmax.f32 %v1208_v24, 0.0  ;;  %v1549_v30 = vadd.f32 %v1548_v27, %v1547_v41  ;;  %v1550_v31 = vpop.f32.mrb[66].mxu1  ;;  %v1215_v12 = vpop.f32.mrb[70].mxu0 }
 0x180   :  { %v1551_v13 = vpop.f32.mrb[67].mxu1  ;;  %v1611_v39 = vpop.f32.mrb[71].mxu0 }
 0x181   :  { %1242 = vst [vmem:[%s2433_s3 + $0x58] sm:$0xff] %v1229_v29  ;;  %v1125_v33 = vadd.f32 %v1549_v30, %v2376_v49 }
 0x183   :  { %v1213_v34 = vadd.f32 %v1212_v25, %v1125_v33 }
 0x185   :  { %v1230_v40 = vmax.f32 %v1213_v34, 0.0 }
 0x187   :  { %1243 = vst [vmem:[%s2433_s3 + $0x60] sm:$0xff] %v1230_v40 }

// kernel: dqn_forward.7
= control target key start
LH: loop header
LB: loop body
LE: loop exit
PB: predicated region body
PF: predicated region fallthrough
CT: control target
= control target key end

     0   :  { %vm4797_vm0 = vcmask 523264   ;;  %s10958_s1 = inlined_call_operand.vmem [shape: bf16[3136,512], index: 1, kind: input, shape index: {}]   ;;  %s10959_s0 = inlined_call_operand.vmem [shape: f32[8,3136], index: 0, kind: input, shape index: {}]   ;;  %s10960_s3 = inlined_call_operand.vmem [shape: bf16[512,128], index: 3, kind: input, shape index: {}]   ;;  %s10961_s2 = inlined_call_operand.vmem [shape: f32[1,512], index: 2, kind: input, shape index: {}]   ;;  %s10962_s4 = inlined_call_operand.vmem [shape: f32[1,128], index: 4, kind: input, shape index: {}]   ;;  %s10963_s5 = inlined_call_operand.vmem [shape: f32[8,128], index: 5, kind: output, shape index: {}]  }
   0x1   :  { %v7187_v0 = vld [vmem:[%s10958_s1 + $0x4] ss:$16 sps:$4 sm:$0xff]   ;;  %v7189_v1 = vld [vmem:[%s10958_s1 + $0xc] ss:$16 sps:$4 sm:$0xff]   ;;  %v7191_v2 = vld [vmem:[%s10958_s1] ss:$16 sps:$4 sm:$0xff]  }
   0x2   :  { %4801 = vmatprep.subr.bf16.mxu0 %v7187_v0  ;;  %v7192_v3 = vld [vmem:[%s10958_s1 + $0x8] ss:$16 sps:$4 sm:$0xff]   ;;  %5334 = vmatprep.subr.bf16.mxu1 %v7189_v1  ;;  %v7193_v4 = vld [vmem:[%s10958_s1 + $0x24] ss:$16 sps:$4 sm:$0xff]   ;;  %v7195_v5 = vld [vmem:[%s10958_s1 + $0x2c] ss:$16 sps:$4 sm:$0xff]  }
   0x3   :  { %4802 = vmatpush1.bf16.msra.mxu0 %v7191_v2  ;;  %5335 = vmatpush1.bf16.msra.mxu1 %v7192_v3  ;;  %v7197_v6 = vld [vmem:[%s10958_s1 + $0x20] ss:$16 sps:$4 sm:$0xff]   ;;  %v7198_v7 = vld [vmem:[%s10958_s1 + $0x28] ss:$16 sps:$4 sm:$0xff]   ;;  %v7199_v8 = vld [vmem:[%s10958_s1 + $0x44] ss:$16 sps:$4 sm:$0xff]  }
   0x4   :  { %4803 = vmatprep.subr.bf16.mxu0 %v7193_v4  ;;  %5336 = vmatprep.subr.bf16.mxu1 %v7195_v5  ;;  %v7201_v9 = vld [vmem:[%s10958_s1 + $0x4c] ss:$16 sps:$4 sm:$0xff]   ;;  %v7203_v10 = vld [vmem:[%s10958_s1 + $0x40] ss:$16 sps:$4 sm:$0xff]   ;;  %v7204_v11 = vld [vmem:[%s10958_s1 + $0x48] ss:$16 sps:$4 sm:$0xff]  }
   0x5   :  { %v7205_v12 = vld [vmem:[%s10958_s1 + $0x64] ss:$16 sps:$4 sm:$0xff]   ;;  %v7207_v13 = vld [vmem:[%s10958_s1 + $0x6c] ss:$16 sps:$4 sm:$0xff]   ;;  %v7209_v14 = vld [vmem:[%s10958_s1 + $0x60] ss:$16 sps:$4 sm:$0xff]  }
   0x6   :  { %v7210_v15 = vld [vmem:[%s10958_s1 + $0x68] ss:$16 sps:$4 sm:$0xff]   ;;  %v7211_v16 = vld [vmem:[%s10958_s1 + $0x84] ss:$16 sps:$4 sm:$0xff]   ;;  %v7213_v17 = vld [vmem:[%s10958_s1 + $0x8c] ss:$16 sps:$4 sm:$0xff]  }
   0x7   :  { %4804 = vmatpush1.bf16.msra.mxu0 %v7197_v6  ;;  %5337 = vmatpush1.bf16.msra.mxu1 %v7198_v7  ;;  %v7215_v18 = vld [vmem:[%s10958_s1 + $0x80] ss:$16 sps:$4 sm:$0xff]   ;;  %v7216_v19 = vld [vmem:[%s10958_s1 + $0x88] ss:$16 sps:$4 sm:$0xff]   ;;  %v7217_v20 = vld [vmem:[%s10958_s1 + $0xa4] ss:$16 sps:$4 sm:$0xff]  }
   0x8   :  { %4805 = vmatprep.subr.bf16.mxu0 %v7199_v8  ;;  %5338 = vmatprep.subr.bf16.mxu1 %v7201_v9  ;;  %v7219_v21 = vld [vmem:[%s10958_s1 + $0xac] ss:$16 sps:$4 sm:$0xff]   ;;  %v7221_v22 = vld [vmem:[%s10958_s1 + $0xa0] ss:$16 sps:$4 sm:$0xff]   ;;  %v7222_v23 = vld [vmem:[%s10958_s1 + $0xa8] ss:$16 sps:$4 sm:$0xff]  }
   0x9   :  { %v7223_v24 = vld [vmem:[%s10958_s1 + $0xc4] ss:$16 sps:$4 sm:$0xff]   ;;  %v7225_v25 = vld [vmem:[%s10958_s1 + $0xcc] ss:$16 sps:$4 sm:$0xff]   ;;  %v7227_v26 = vld [vmem:[%s10958_s1 + $0xc0] ss:$16 sps:$4 sm:$0xff]  }
   0xa   :  { %v7228_v27 = vld [vmem:[%s10958_s1 + $0xc8] ss:$16 sps:$4 sm:$0xff]   ;;  %v7229_v28 = vld [vmem:[%s10958_s1 + $0xe4] ss:$16 sps:$4 sm:$0xff]   ;;  %v7231_v29 = vld [vmem:[%s10958_s1 + $0xec] ss:$16 sps:$4 sm:$0xff]  }
   0xb   :  { %4806 = vmatpush1.bf16.msra.mxu0 %v7203_v10  ;;  %5339 = vmatpush1.bf16.msra.mxu1 %v7204_v11  ;;  %v7233_v30 = vld [vmem:[%s10958_s1 + $0xe0] ss:$16 sps:$4 sm:$0xff]   ;;  %v7234_v31 = vld [vmem:[%s10958_s1 + $0xe8] ss:$16 sps:$4 sm:$0xff]   ;;  %v7235_v32 = vld [vmem:[%s10958_s1 + $0x104] ss:$16 sps:$4 sm:$0xff]  }
   0xc   :  { %4807 = vmatprep.subr.bf16.mxu0 %v7205_v12  ;;  %5340 = vmatprep.subr.bf16.mxu1 %v7207_v13  ;;  %v7237_v33 = vld [vmem:[%s10958_s1 + $0x10c] ss:$16 sps:$4 sm:$0xff]   ;;  %v7239_v34 = vld [vmem:[%s10958_s1 + $0x100] ss:$16 sps:$4 sm:$0xff]   ;;  %v7240_v35 = vld [vmem:[%s10958_s1 + $0x108] ss:$16 sps:$4 sm:$0xff]  }
   0xd   :  { %v7241_v36 = vld [vmem:[%s10958_s1 + $0x124] ss:$16 sps:$4 sm:$0xff]   ;;  %v7243_v37 = vld [vmem:[%s10958_s1 + $0x12c] ss:$16 sps:$4 sm:$0xff]   ;;  %v7245_v38 = vld [vmem:[%s10958_s1 + $0x120] ss:$16 sps:$4 sm:$0xff]  }
   0xe   :  { %v7246_v39 = vld [vmem:[%s10958_s1 + $0x128] ss:$16 sps:$4 sm:$0xff]   ;;  %v7247_v40 = vld [vmem:[%s10958_s1 + $0x144] ss:$16 sps:$4 sm:$0xff]   ;;  %v7249_v41 = vld [vmem:[%s10958_s1 + $0x14c] ss:$16 sps:$4 sm:$0xff]  }
   0xf   :  { %4808 = vmatpush1.bf16.msra.mxu0 %v7209_v14  ;;  %5341 = vmatpush1.bf16.msra.mxu1 %v7210_v15  ;;  %v7251_v42 = vld [vmem:[%s10958_s1 + $0x140] ss:$16 sps:$4 sm:$0xff]   ;;  %v7252_v43 = vld [vmem:[%s10958_s1 + $0x148] ss:$16 sps:$4 sm:$0xff]   ;;  %v7253_v44 = vld [vmem:[%s10958_s1 + $0x164] ss:$16 sps:$4 sm:$0xff]  }
  0x10   :  { %4809 = vmatprep.subr.bf16.mxu0 %v7211_v16  ;;  %5342 = vmatprep.subr.bf16.mxu1 %v7213_v17  ;;  %v7255_v45 = vld [vmem:[%s10958_s1 + $0x16c] ss:$16 sps:$4 sm:$0xff]   ;;  %v7257_v47 = vld [vmem:[%s10958_s1 + $0x160] ss:$16 sps:$4 sm:$0xff]   ;;  %v7258_v49 = vld [vmem:[%s10958_s1 + $0x168] ss:$16 sps:$4 sm:$0xff]  }
  0x11   :  { %v22_v46 = vld [vmem:[%s10959_s0 + $0x8] sm:$0xff]  ;;  %v7259_v50 = vld [vmem:[%s10958_s1 + $0x184] ss:$16 sps:$4 sm:$0xff]   ;;  %v7263_v52 = vld [vmem:[%s10958_s1 + $0x180] ss:$16 sps:$4 sm:$0xff]  }
  0x12   :  { %v47_v48 = vpack.c.bf16 %v22_v46, %v22_v46  ;;  %v7261_v51 = vld [vmem:[%s10958_s1 + $0x18c] ss:$16 sps:$4 sm:$0xff]   ;;  %v7264_v53 = vld [vmem:[%s10958_s1 + $0x188] ss:$16 sps:$4 sm:$0xff]   ;;  %v7265_v54 = vld [vmem:[%s10958_s1 + $0x1a4] ss:$16 sps:$4 sm:$0xff]  }
  0x13   :  { %4810 = vmatpush1.bf16.msra.mxu0 %v7215_v18  ;;  %5343 = vmatpush1.bf16.msra.mxu1 %v7216_v19  ;;  %v7267_v55 = vld [vmem:[%s10958_s1 + $0x1ac] ss:$16 sps:$4 sm:$0xff]   ;;  %v7269_v56 = vld [vmem:[%s10958_s1 + $0x1a0] ss:$16 sps:$4 sm:$0xff]   ;;  %v7270_v57 = vld [vmem:[%s10958_s1 + $0x1a8] ss:$16 sps:$4 sm:$0xff]  }
  0x14   :  { %4811 = vmatprep.subr.bf16.mxu0 %v7217_v20  ;;  %5344 = vmatprep.subr.bf16.mxu1 %v7219_v21  ;;  %v7271_v58 = vld [vmem:[%s10958_s1 + $0x1c4] ss:$16 sps:$4 sm:$0xff]   ;;  %v7273_v59 = vld [vmem:[%s10958_s1 + $0x1cc] ss:$16 sps:$4 sm:$0xff]   ;;  %v7275_v60 = vld [vmem:[%s10958_s1 + $0x1c0] ss:$16 sps:$4 sm:$0xff]  }
  0x15   :  { %4833 = vmatprep.mubr.bf16.mxu0 %v47_v48  ;;  %5366 = vmatprep.mubr.bf16.mxu1 %v47_v48  ;;  %v7276_v61 = vld [vmem:[%s10958_s1 + $0x1c8] ss:$16 sps:$4 sm:$0xff]   ;;  %v7277_v62 = vld [vmem:[%s10958_s1 + $0x1e4] ss:$16 sps:$4 sm:$0xff]   ;;  %v7279_v63 = vld [vmem:[%s10958_s1 + $0x1ec] ss:$16 sps:$4 sm:$0xff]  }
  0x16   :  { %v7281_v0 = vld [vmem:[%s10958_s1 + $0x1e0] ss:$16 sps:$4 sm:$0xff]   ;;  %v7282_v1 = vld [vmem:[%s10958_s1 + $0x1e8] ss:$16 sps:$4 sm:$0xff]   ;;  %v7285_v3 = vld [vmem:[%s10958_s1 + $0x204] ss:$16 sps:$4 sm:$0xff]  }
  0x17   :  { %4812 = vmatpush1.bf16.msra.mxu0 %v7221_v22  ;;  %5345 = vmatpush1.bf16.msra.mxu1 %v7222_v23  ;;  %v21_v2 = vld [vmem:[%s10959_s0] sm:$0xff]  ;;  %v7288_v4 = vld [vmem:[%s10958_s1 + $0x20c] ss:$16 sps:$4 sm:$0xff]   ;;  %v7286_v7 = vld [vmem:[%s10958_s1 + $0x208] ss:$16 sps:$4 sm:$0xff]  }
  0x18   :  { %4813 = vmatprep.subr.bf16.mxu0 %v7223_v24  ;;  %5346 = vmatprep.subr.bf16.mxu1 %v7225_v25  ;;  %v46_v5 = vpack.c.bf16 %v21_v2, %v21_v2  ;;  %v7283_v6 = vld [vmem:[%s10958_s1 + $0x200] ss:$16 sps:$4 sm:$0xff]   ;;  %v7291_v8 = vld [vmem:[%s10958_s1 + $0x224] ss:$16 sps:$4 sm:$0xff]   ;;  %v7294_v9 = vld [vmem:[%s10958_s1 + $0x22c] ss:$16 sps:$4 sm:$0xff]  }
  0x19   :  { %v7289_v10 = vld [vmem:[%s10958_s1 + $0x220] ss:$16 sps:$4 sm:$0xff]   ;;  %v7292_v11 = vld [vmem:[%s10958_s1 + $0x228] ss:$16 sps:$4 sm:$0xff]   ;;  %v7297_v12 = vld [vmem:[%s10958_s1 + $0x244] ss:$16 sps:$4 sm:$0xff]  }
  0x1a   :  { %v7300_v13 = vld [vmem:[%s10958_s1 + $0x24c] ss:$16 sps:$4 sm:$0xff]   ;;  %v7295_v14 = vld [vmem:[%s10958_s1 + $0x240] ss:$16 sps:$4 sm:$0xff]   ;;  %v7298_v15 = vld [vmem:[%s10958_s1 + $0x248] ss:$16 sps:$4 sm:$0xff]  }
  0x1b   :  { %4814 = vmatpush1.bf16.msra.mxu0 %v7227_v26  ;;  %5347 = vmatpush1.bf16.msra.mxu1 %v7228_v27  ;;  %v7303_v16 = vld [vmem:[%s10958_s1 + $0x264] ss:$16 sps:$4 sm:$0xff]   ;;  %v7306_v17 = vld [vmem:[%s10958_s1 + $0x26c] ss:$16 sps:$4 sm:$0xff]   ;;  %v7301_v18 = vld [vmem:[%s10958_s1 + $0x260] ss:$16 sps:$4 sm:$0xff]  }
  0x1c   :  { %4815 = vmatprep.subr.bf16.mxu0 %v7229_v28  ;;  %5348 = vmatprep.subr.bf16.mxu1 %v7231_v29  ;;  %v7304_v19 = vld [vmem:[%s10958_s1 + $0x268] ss:$16 sps:$4 sm:$0xff]   ;;  %v7309_v20 = vld [vmem:[%s10958_s1 + $0x284] ss:$16 sps:$4 sm:$0xff]   ;;  %v7312_v21 = vld [vmem:[%s10958_s1 + $0x28c] ss:$16 sps:$4 sm:$0xff]  }
  0x1d   :  { %v7307_v22 = vld [vmem:[%s10958_s1 + $0x280] ss:$16 sps:$4 sm:$0xff]   ;;  %v7310_v23 = vld [vmem:[%s10958_s1 + $0x288] ss:$16 sps:$4 sm:$0xff]   ;;  %v7315_v24 = vld [vmem:[%s10958_s1 + $0x2a4] ss:$16 sps:$4 sm:$0xff]  }
  0x1e   :  { %v7318_v25 = vld [vmem:[%s10958_s1 + $0x2ac] ss:$16 sps:$4 sm:$0xff]   ;;  %v7313_v26 = vld [vmem:[%s10958_s1 + $0x2a0] ss:$16 sps:$4 sm:$0xff]   ;;  %v7316_v27 = vld [vmem:[%s10958_s1 + $0x2a8] ss:$16 sps:$4 sm:$0xff]  }
  0x1f   :  { %4816 = vmatpush1.bf16.msra.mxu0 %v7233_v30  ;;  %5349 = vmatpush1.bf16.msra.mxu1 %v7234_v31  ;;  %v7321_v28 = vld [vmem:[%s10958_s1 + $0x2c4] ss:$16 sps:$4 sm:$0xff]   ;;  %v7324_v29 = vld [vmem:[%s10958_s1 + $0x2cc] ss:$16 sps:$4 sm:$0xff]   ;;  %v7319_v31 = vld [vmem:[%s10958_s1 + $0x2c0] ss:$16 sps:$4 sm:$0xff]  }
  0x20   :  { %4817 = vmatprep.subr.bf16.mxu0 %v7235_v32  ;;  %5350 = vmatprep.subr.bf16.mxu1 %v7237_v33  ;;  %v24_v30 = vld [vmem:[%s10959_s0 + $0x18] sm:$0xff]  ;;  %v7345_v46 = vld [vmem:[%s10958_s1 + $0x344] ss:$16 sps:$4 sm:$0xff]   ;;  %v7343_v48 = vld [vmem:[%s10958_s1 + $0x340] ss:$16 sps:$4 sm:$0xff]  }
  0x21   :  { %v49_v32 = vpack.c.bf16 %v24_v30, %v24_v30  ;;  %v7322_v33 = vld [vmem:[%s10958_s1 + $0x2c8] ss:$16 sps:$4 sm:$0xff]   ;;  %v7375_v2 = vld [vmem:[%s10958_s1 + $0x3e4] ss:$16 sps:$4 sm:$0xff]  }
  0x22   :  { %v7411_v30 = vld [vmem:[%s10958_s1 + $0x4a4] ss:$16 sps:$4 sm:$0xff]  }
  0x23   :  { %4818 = vmatpush1.bf16.msra.mxu0 %v7239_v34  ;;  %5351 = vmatpush1.bf16.msra.mxu1 %v7240_v35  ;;  %v7327_v34 = vld [vmem:[%s10958_s1 + $0x2e4] ss:$16 sps:$4 sm:$0xff]   ;;  %v7330_v35 = vld [vmem:[%s10958_s1 + $0x2ec] ss:$16 sps:$4 sm:$0xff]  }
  0x24   :  { %4819 = vmatprep.subr.bf16.mxu0 %v7241_v36  ;;  %5352 = vmatprep.subr.bf16.mxu1 %v7243_v37  ;;  %v7325_v36 = vld [vmem:[%s10958_s1 + $0x2e0] ss:$16 sps:$4 sm:$0xff]   ;;  %v7328_v37 = vld [vmem:[%s10958_s1 + $0x2e8] ss:$16 sps:$4 sm:$0xff]  }
  0x27   :  { %4820 = vmatpush1.bf16.msra.mxu0 %v7245_v38  ;;  %5353 = vmatpush1.bf16.msra.mxu1 %v7246_v39  ;;  %v7333_v38 = vld [vmem:[%s10958_s1 + $0x304] ss:$16 sps:$4 sm:$0xff]   ;;  %v7336_v39 = vld [vmem:[%s10958_s1 + $0x30c] ss:$16 sps:$4 sm:$0xff]  }
  0x28   :  { %4821 = vmatprep.subr.bf16.mxu0 %v7247_v40  ;;  %5354 = vmatprep.subr.bf16.mxu1 %v7249_v41  ;;  %v7331_v40 = vld [vmem:[%s10958_s1 + $0x300] ss:$16 sps:$4 sm:$0xff]   ;;  %v7334_v41 = vld [vmem:[%s10958_s1 + $0x308] ss:$16 sps:$4 sm:$0xff]  }
  0x2b   :  { %4822 = vmatpush1.bf16.msra.mxu0 %v7251_v42  ;;  %5355 = vmatpush1.bf16.msra.mxu1 %v7252_v43  ;;  %v7339_v42 = vld [vmem:[%s10958_s1 + $0x324] ss:$16 sps:$4 sm:$0xff]   ;;  %v7342_v43 = vld [vmem:[%s10958_s1 + $0x32c] ss:$16 sps:$4 sm:$0xff]  }
  0x2c   :  { %4823 = vmatprep.subr.bf16.mxu0 %v7253_v44  ;;  %5356 = vmatprep.subr.bf16.mxu1 %v7255_v45  ;;  %v7337_v44 = vld [vmem:[%s10958_s1 + $0x320] ss:$16 sps:$4 sm:$0xff]   ;;  %v7340_v45 = vld [vmem:[%s10958_s1 + $0x328] ss:$16 sps:$4 sm:$0xff]  }
  0x2f   :  { %4824 = vmatpush1.bf16.msra.mxu0 %v7257_v47  ;;  %5357 = vmatpush1.bf16.msra.mxu1 %v7258_v49  ;;  %v7348_v47 = vld [vmem:[%s10958_s1 + $0x34c] ss:$16 sps:$4 sm:$0xff]   ;;  %v7346_v49 = vld [vmem:[%s10958_s1 + $0x348] ss:$16 sps:$4 sm:$0xff]  }
  0x30   :  { %4825 = vmatprep.subr.bf16.mxu0 %v7259_v50  ;;  %5358 = vmatprep.subr.bf16.mxu1 %v7261_v51  ;;  %v7351_v50 = vld [vmem:[%s10958_s1 + $0x364] ss:$16 sps:$4 sm:$0xff]   ;;  %v7354_v51 = vld [vmem:[%s10958_s1 + $0x36c] ss:$16 sps:$4 sm:$0xff]  }
  0x33   :  { %4826 = vmatpush1.bf16.msra.mxu0 %v7263_v52  ;;  %5359 = vmatpush1.bf16.msra.mxu1 %v7264_v53  ;;  %v7349_v52 = vld [vmem:[%s10958_s1 + $0x360] ss:$16 sps:$4 sm:$0xff]   ;;  %v7352_v53 = vld [vmem:[%s10958_s1 + $0x368] ss:$16 sps:$4 sm:$0xff]  }
  0x34   :  { %4827 = vmatprep.subr.bf16.mxu0 %v7265_v54  ;;  %5360 = vmatprep.subr.bf16.mxu1 %v7267_v55  ;;  %v7357_v54 = vld [vmem:[%s10958_s1 + $0x384] ss:$16 sps:$4 sm:$0xff]   ;;  %v7360_v55 = vld [vmem:[%s10958_s1 + $0x38c] ss:$16 sps:$4 sm:$0xff]  }
  0x37   :  { %4828 = vmatpush1.bf16.msra.mxu0 %v7269_v56  ;;  %5361 = vmatpush1.bf16.msra.mxu1 %v7270_v57  ;;  %v7355_v56 = vld [vmem:[%s10958_s1 + $0x380] ss:$16 sps:$4 sm:$0xff]   ;;  %v7358_v57 = vld [vmem:[%s10958_s1 + $0x388] ss:$16 sps:$4 sm:$0xff]  }
  0x38   :  { %4829 = vmatprep.subr.bf16.mxu0 %v7271_v58  ;;  %5362 = vmatprep.subr.bf16.mxu1 %v7273_v59  ;;  %v7363_v58 = vld [vmem:[%s10958_s1 + $0x3a4] ss:$16 sps:$4 sm:$0xff]   ;;  %v7366_v59 = vld [vmem:[%s10958_s1 + $0x3ac] ss:$16 sps:$4 sm:$0xff]  }
  0x3b   :  { %4830 = vmatpush1.bf16.msra.mxu0 %v7275_v60  ;;  %5363 = vmatpush1.bf16.msra.mxu1 %v7276_v61  ;;  %v7361_v60 = vld [vmem:[%s10958_s1 + $0x3a0] ss:$16 sps:$4 sm:$0xff]   ;;  %v7364_v61 = vld [vmem:[%s10958_s1 + $0x3a8] ss:$16 sps:$4 sm:$0xff]  }
  0x3c   :  { %4831 = vmatprep.subr.bf16.mxu0 %v7277_v62  ;;  %5364 = vmatprep.subr.bf16.mxu1 %v7279_v63  ;;  %v7369_v62 = vld [vmem:[%s10958_s1 + $0x3c4] ss:$16 sps:$4 sm:$0xff]   ;;  %v7372_v63 = vld [vmem:[%s10958_s1 + $0x3cc] ss:$16 sps:$4 sm:$0xff]  }
  0x3f   :  { %4832 = vmatpush1.bf16.msra.mxu0 %v7281_v0  ;;  %5365 = vmatpush1.bf16.msra.mxu1 %v7282_v1  ;;  %v7367_v0 = vld [vmem:[%s10958_s1 + $0x3c0] ss:$16 sps:$4 sm:$0xff]   ;;  %v7370_v1 = vld [vmem:[%s10958_s1 + $0x3c8] ss:$16 sps:$4 sm:$0xff]  }
  0x40   :  { %4842 = vmatprep.subr.bf16.mxu0 %v7285_v3  ;;  %5375 = vmatprep.subr.bf16.mxu1 %v7288_v4  ;;  %v7378_v3 = vld [vmem:[%s10958_s1 + $0x3ec] ss:$16 sps:$4 sm:$0xff]   ;;  %v7373_v4 = vld [vmem:[%s10958_s1 + $0x3e0] ss:$16 sps:$4 sm:$0xff]  }
  0x42   :  { %4834 = vmatmul.mubr.bf16.vlgmr.msra.gmra.mrb[0].mxu0 %v46_v5  ;;  %5367 = vmatmul.mubr.bf16.vlgmr.msra.gmra.mrb[0].mxu1 %v46_v5  ;;  %v7376_v5 = vld [vmem:[%s10958_s1 + $0x3e8] ss:$16 sps:$4 sm:$0xff]  }
  0x43   :  { %4843 = vmatpush1.bf16.msra.mxu0 %v7283_v6  ;;  %5376 = vmatpush1.bf16.msra.mxu1 %v7286_v7  ;;  %v7381_v6 = vld [vmem:[%s10958_s1 + $0x404] ss:$16 sps:$4 sm:$0xff]  }
  0x44   :  { %4844 = vmatprep.subr.bf16.mxu0 %v7291_v8  ;;  %5377 = vmatprep.subr.bf16.mxu1 %v7294_v9  ;;  %v23_v7 = vld [vmem:[%s10959_s0 + $0x10] sm:$0xff]  ;;  %v7384_v8 = vld [vmem:[%s10958_s1 + $0x40c] ss:$16 sps:$4 sm:$0xff]  }
  0x45   :  { %4874 = vmatprep.mubr.bf16.mxu0 %v49_v32  ;;  %5407 = vmatprep.mubr.bf16.mxu1 %v49_v32  ;;  %v7379_v9 = vld [vmem:[%s10958_s1 + $0x400] ss:$16 sps:$4 sm:$0xff]  }
  0x46   :  { %v7409_v32 = vld [vmem:[%s10958_s1 + $0x4a0] ss:$16 sps:$4 sm:$0xff]  }
  0x47   :  { %4845 = vmatpush1.bf16.msra.mxu0 %v7289_v10  ;;  %5378 = vmatpush1.bf16.msra.mxu1 %v7292_v11  ;;  %v7382_v10 = vld [vmem:[%s10958_s1 + $0x408] ss:$16 sps:$4 sm:$0xff]   ;;  %v48_v11 = vpack.c.bf16 %v23_v7, %v23_v7  ;;  %v7474_v7 = vld [vmem:[%s10958_s1 + $0x5ec] ss:$16 sps:$4 sm:$0xff]  }
  0x48   :  { %4846 = vmatprep.subr.bf16.mxu0 %v7297_v12  ;;  %5379 = vmatprep.subr.bf16.mxu1 %v7300_v13  ;;  %v7387_v12 = vld [vmem:[%s10958_s1 + $0x424] ss:$16 sps:$4 sm:$0xff]   ;;  %v7390_v13 = vld [vmem:[%s10958_s1 + $0x42c] ss:$16 sps:$4 sm:$0xff]  }
  0x4b   :  { %4847 = vmatpush1.bf16.msra.mxu0 %v7295_v14  ;;  %5380 = vmatpush1.bf16.msra.mxu1 %v7298_v15  ;;  %v26_v14 = vld [vmem:[%s10959_s0 + $0x28] sm:$0xff] }
  0x4c   :  { %4848 = vmatprep.subr.bf16.mxu0 %v7303_v16  ;;  %5381 = vmatprep.subr.bf16.mxu1 %v7306_v17  ;;  %v51_v15 = vpack.c.bf16 %v26_v14, %v26_v14  ;;  %v7385_v16 = vld [vmem:[%s10958_s1 + $0x420] ss:$16 sps:$4 sm:$0xff]   ;;  %v7388_v17 = vld [vmem:[%s10958_s1 + $0x428] ss:$16 sps:$4 sm:$0xff]  }
  0x4d   :  { %v7478_v14 = vld [vmem:[%s10958_s1 + $0x608] ss:$16 sps:$4 sm:$0xff]  }
  0x4f   :  { %4849 = vmatpush1.bf16.msra.mxu0 %v7301_v18  ;;  %5382 = vmatpush1.bf16.msra.mxu1 %v7304_v19  ;;  %v7393_v18 = vld [vmem:[%s10958_s1 + $0x444] ss:$16 sps:$4 sm:$0xff]   ;;  %v7396_v19 = vld [vmem:[%s10958_s1 + $0x44c] ss:$16 sps:$4 sm:$0xff]  }
  0x50   :  { %4850 = vmatprep.subr.bf16.mxu0 %v7309_v20  ;;  %5383 = vmatprep.subr.bf16.mxu1 %v7312_v21  ;;  %v7391_v20 = vld [vmem:[%s10958_s1 + $0x440] ss:$16 sps:$4 sm:$0xff]   ;;  %v7394_v21 = vld [vmem:[%s10958_s1 + $0x448] ss:$16 sps:$4 sm:$0xff]  }
  0x53   :  { %4851 = vmatpush1.bf16.msra.mxu0 %v7307_v22  ;;  %5384 = vmatpush1.bf16.msra.mxu1 %v7310_v23  ;;  %v7399_v22 = vld [vmem:[%s10958_s1 + $0x464] ss:$16 sps:$4 sm:$0xff]   ;;  %v7402_v23 = vld [vmem:[%s10958_s1 + $0x46c] ss:$16 sps:$4 sm:$0xff]  }
  0x54   :  { %4852 = vmatprep.subr.bf16.mxu0 %v7315_v24  ;;  %5385 = vmatprep.subr.bf16.mxu1 %v7318_v25  ;;  %v7397_v24 = vld [vmem:[%s10958_s1 + $0x460] ss:$16 sps:$4 sm:$0xff]   ;;  %v7400_v25 = vld [vmem:[%s10958_s1 + $0x468] ss:$16 sps:$4 sm:$0xff]  }
  0x57   :  { %4853 = vmatpush1.bf16.msra.mxu0 %v7313_v26  ;;  %5386 = vmatpush1.bf16.msra.mxu1 %v7316_v27  ;;  %v7405_v26 = vld [vmem:[%s10958_s1 + $0x484] ss:$16 sps:$4 sm:$0xff]   ;;  %v7408_v27 = vld [vmem:[%s10958_s1 + $0x48c] ss:$16 sps:$4 sm:$0xff]  }
  0x58   :  { %4854 = vmatprep.subr.bf16.mxu0 %v7321_v28  ;;  %5387 = vmatprep.subr.bf16.mxu1 %v7324_v29  ;;  %v7403_v28 = vld [vmem:[%s10958_s1 + $0x480] ss:$16 sps:$4 sm:$0xff]   ;;  %v7406_v29 = vld [vmem:[%s10958_s1 + $0x488] ss:$16 sps:$4 sm:$0xff]  }
  0x5b   :  { %4855 = vmatpush1.bf16.msra.mxu0 %v7319_v31  ;;  %5388 = vmatpush1.bf16.msra.mxu1 %v7322_v33  ;;  %v7414_v31 = vld [vmem:[%s10958_s1 + $0x4ac] ss:$16 sps:$4 sm:$0xff]   ;;  %v7412_v33 = vld [vmem:[%s10958_s1 + $0x4a8] ss:$16 sps:$4 sm:$0xff]  }
  0x5c   :  { %4856 = vmatprep.subr.bf16.mxu0 %v7327_v34  ;;  %5389 = vmatprep.subr.bf16.mxu1 %v7330_v35  ;;  %v7417_v34 = vld [vmem:[%s10958_s1 + $0x4c4] ss:$16 sps:$4 sm:$0xff]   ;;  %v7420_v35 = vld [vmem:[%s10958_s1 + $0x4cc] ss:$16 sps:$4 sm:$0xff]  }
  0x5f   :  { %4857 = vmatpush1.bf16.msra.mxu0 %v7325_v36  ;;  %5390 = vmatpush1.bf16.msra.mxu1 %v7328_v37  ;;  %v7415_v36 = vld [vmem:[%s10958_s1 + $0x4c0] ss:$16 sps:$4 sm:$0xff]   ;;  %v7418_v37 = vld [vmem:[%s10958_s1 + $0x4c8] ss:$16 sps:$4 sm:$0xff]  }
  0x60   :  { %4858 = vmatprep.subr.bf16.mxu0 %v7333_v38  ;;  %5391 = vmatprep.subr.bf16.mxu1 %v7336_v39  ;;  %v7423_v38 = vld [vmem:[%s10958_s1 + $0x4e4] ss:$16 sps:$4 sm:$0xff]   ;;  %v7426_v39 = vld [vmem:[%s10958_s1 + $0x4ec] ss:$16 sps:$4 sm:$0xff]  }
  0x63   :  { %4859 = vmatpush1.bf16.msra.mxu0 %v7331_v40  ;;  %5392 = vmatpush1.bf16.msra.mxu1 %v7334_v41  ;;  %v7421_v40 = vld [vmem:[%s10958_s1 + $0x4e0] ss:$16 sps:$4 sm:$0xff]   ;;  %v7424_v41 = vld [vmem:[%s10958_s1 + $0x4e8] ss:$16 sps:$4 sm:$0xff]  }
  0x64   :  { %4860 = vmatprep.subr.bf16.mxu0 %v7339_v42  ;;  %5393 = vmatprep.subr.bf16.mxu1 %v7342_v43  ;;  %v7429_v42 = vld [vmem:[%s10958_s1 + $0x504] ss:$16 sps:$4 sm:$0xff]   ;;  %v7432_v43 = vld [vmem:[%s10958_s1 + $0x50c] ss:$16 sps:$4 sm:$0xff]  }
  0x67   :  { %4861 = vmatpush1.bf16.msra.mxu0 %v7337_v44  ;;  %5394 = vmatpush1.bf16.msra.mxu1 %v7340_v45  ;;  %v7427_v44 = vld [vmem:[%s10958_s1 + $0x500] ss:$16 sps:$4 sm:$0xff]   ;;  %v7430_v45 = vld [vmem:[%s10958_s1 + $0x508] ss:$16 sps:$4 sm:$0xff]  }
  0x68   :  { %4862 = vmatprep.subr.bf16.mxu0 %v7345_v46  ;;  %5395 = vmatprep.subr.bf16.mxu1 %v7348_v47  ;;  %v7435_v46 = vld [vmem:[%s10958_s1 + $0x524] ss:$16 sps:$4 sm:$0xff]   ;;  %v7438_v47 = vld [vmem:[%s10958_s1 + $0x52c] ss:$16 sps:$4 sm:$0xff]  }
  0x6b   :  { %4863 = vmatpush1.bf16.msra.mxu0 %v7343_v48  ;;  %5396 = vmatpush1.bf16.msra.mxu1 %v7346_v49  ;;  %v7433_v48 = vld [vmem:[%s10958_s1 + $0x520] ss:$16 sps:$4 sm:$0xff]   ;;  %v7436_v49 = vld [vmem:[%s10958_s1 + $0x528] ss:$16 sps:$4 sm:$0xff]  }
  0x6c   :  { %4864 = vmatprep.subr.bf16.mxu0 %v7351_v50  ;;  %5397 = vmatprep.subr.bf16.mxu1 %v7354_v51  ;;  %v7441_v50 = vld [vmem:[%s10958_s1 + $0x544] ss:$16 sps:$4 sm:$0xff]   ;;  %v7444_v51 = vld [vmem:[%s10958_s1 + $0x54c] ss:$16 sps:$4 sm:$0xff]  }
  0x6f   :  { %4865 = vmatpush1.bf16.msra.mxu0 %v7349_v52  ;;  %5398 = vmatpush1.bf16.msra.mxu1 %v7352_v53  ;;  %v7439_v52 = vld [vmem:[%s10958_s1 + $0x540] ss:$16 sps:$4 sm:$0xff]   ;;  %v7442_v53 = vld [vmem:[%s10958_s1 + $0x548] ss:$16 sps:$4 sm:$0xff]  }
  0x70   :  { %4866 = vmatprep.subr.bf16.mxu0 %v7357_v54  ;;  %5399 = vmatprep.subr.bf16.mxu1 %v7360_v55  ;;  %v7447_v54 = vld [vmem:[%s10958_s1 + $0x564] ss:$16 sps:$4 sm:$0xff]   ;;  %v7450_v55 = vld [vmem:[%s10958_s1 + $0x56c] ss:$16 sps:$4 sm:$0xff]  }
  0x73   :  { %4867 = vmatpush1.bf16.msra.mxu0 %v7355_v56  ;;  %5400 = vmatpush1.bf16.msra.mxu1 %v7358_v57  ;;  %v7445_v56 = vld [vmem:[%s10958_s1 + $0x560] ss:$16 sps:$4 sm:$0xff]   ;;  %v7448_v57 = vld [vmem:[%s10958_s1 + $0x568] ss:$16 sps:$4 sm:$0xff]  }
  0x74   :  { %4868 = vmatprep.subr.bf16.mxu0 %v7363_v58  ;;  %5401 = vmatprep.subr.bf16.mxu1 %v7366_v59  ;;  %v7453_v58 = vld [vmem:[%s10958_s1 + $0x584] ss:$16 sps:$4 sm:$0xff]   ;;  %v7456_v59 = vld [vmem:[%s10958_s1 + $0x58c] ss:$16 sps:$4 sm:$0xff]  }
  0x77   :  { %4869 = vmatpush1.bf16.msra.mxu0 %v7361_v60  ;;  %5402 = vmatpush1.bf16.msra.mxu1 %v7364_v61  ;;  %v7451_v60 = vld [vmem:[%s10958_s1 + $0x580] ss:$16 sps:$4 sm:$0xff]   ;;  %v7454_v61 = vld [vmem:[%s10958_s1 + $0x588] ss:$16 sps:$4 sm:$0xff]  }
  0x78   :  { %4870 = vmatprep.subr.bf16.mxu0 %v7369_v62  ;;  %5403 = vmatprep.subr.bf16.mxu1 %v7372_v63  ;;  %v7459_v62 = vld [vmem:[%s10958_s1 + $0x5a4] ss:$16 sps:$4 sm:$0xff]   ;;  %v7462_v63 = vld [vmem:[%s10958_s1 + $0x5ac] ss:$16 sps:$4 sm:$0xff]  }
  0x7b   :  { %4871 = vmatpush1.bf16.msra.mxu0 %v7367_v0  ;;  %5404 = vmatpush1.bf16.msra.mxu1 %v7370_v1  ;;  %v7457_v0 = vld [vmem:[%s10958_s1 + $0x5a0] ss:$16 sps:$4 sm:$0xff]   ;;  %v7460_v1 = vld [vmem:[%s10958_s1 + $0x5a8] ss:$16 sps:$4 sm:$0xff]  }
  0x7c   :  { %4872 = vmatprep.subr.bf16.mxu0 %v7375_v2  ;;  %5405 = vmatprep.subr.bf16.mxu1 %v7378_v3  ;;  %v7465_v2 = vld [vmem:[%s10958_s1 + $0x5c4] ss:$16 sps:$4 sm:$0xff]   ;;  %v7468_v3 = vld [vmem:[%s10958_s1 + $0x5cc] ss:$16 sps:$4 sm:$0xff]  }
  0x7f   :  { %4873 = vmatpush1.bf16.msra.mxu0 %v7373_v4  ;;  %5406 = vmatpush1.bf16.msra.mxu1 %v7376_v5  ;;  %v7463_v4 = vld [vmem:[%s10958_s1 + $0x5c0] ss:$16 sps:$4 sm:$0xff]   ;;  %v7466_v5 = vld [vmem:[%s10958_s1 + $0x5c8] ss:$16 sps:$4 sm:$0xff]  }
  0x80   :  { %4883 = vmatprep.subr.bf16.mxu0 %v7381_v6  ;;  %5416 = vmatprep.subr.bf16.mxu1 %v7384_v8  ;;  %v7471_v6 = vld [vmem:[%s10958_s1 + $0x5e4] ss:$16 sps:$4 sm:$0xff]   ;;  %v7469_v8 = vld [vmem:[%s10958_s1 + $0x5e0] ss:$16 sps:$4 sm:$0xff]  }
  0x82   :  { %4875 = vmatmul.mubr.bf16.vlgmr.msra.gmra.mrb[0].mxu0 %v48_v11  ;;  %5408 = vmatmul.mubr.bf16.vlgmr.msra.gmra.mrb[0].mxu1 %v48_v11  ;;  %v25_v11 = vld [vmem:[%s10959_s0 + $0x20] sm:$0xff] }
  0x83   :  { %4884 = vmatpush1.bf16.msra.mxu0 %v7379_v9  ;;  %5417 = vmatpush1.bf16.msra.mxu1 %v7382_v10  ;;  %v7472_v9 = vld [vmem:[%s10958_s1 + $0x5e8] ss:$16 sps:$4 sm:$0xff]   ;;  %v7477_v10 = vld [vmem:[%s10958_s1 + $0x604] ss:$16 sps:$4 sm:$0xff]  }
  0x84   :  { %4885 = vmatprep.subr.bf16.mxu0 %v7387_v12  ;;  %5418 = vmatprep.subr.bf16.mxu1 %v7390_v13  ;;  %v7480_v12 = vld [vmem:[%s10958_s1 + $0x60c] ss:$16 sps:$4 sm:$0xff]   ;;  %v7475_v13 = vld [vmem:[%s10958_s1 + $0x600] ss:$16 sps:$4 sm:$0xff]  }
  0x85   :  { %4915 = vmatprep.mubr.bf16.mxu0 %v51_v15  ;;  %5448 = vmatprep.mubr.bf16.mxu1 %v51_v15  ;;  %v50_v15 = vpack.c.bf16 %v25_v11, %v25_v11  ;;  %v7570_v11 = vld [vmem:[%s10958_s1 + $0x7ec] ss:$16 sps:$4 sm:$0xff]  }
  0x87   :  { %4886 = vmatpush1.bf16.msra.mxu0 %v7385_v16  ;;  %5419 = vmatpush1.bf16.msra.mxu1 %v7388_v17  ;;  %v28_v16 = vld [vmem:[%s10959_s0 + $0x38] sm:$0xff]  ;;  %v7483_v17 = vld [vmem:[%s10958_s1 + $0x624] ss:$16 sps:$4 sm:$0xff]  }
  0x88   :  { %4887 = vmatprep.subr.bf16.mxu0 %v7393_v18  ;;  %5420 = vmatprep.subr.bf16.mxu1 %v7396_v19  ;;  %v7486_v18 = vld [vmem:[%s10958_s1 + $0x62c] ss:$16 sps:$4 sm:$0xff]   ;;  %v53_v19 = vpack.c.bf16 %v28_v16, %v28_v16 }
  0x89   :  { %v7576_v16 = vld [vmem:[%s10958_s1 + $0x80c] ss:$16 sps:$4 sm:$0xff]  }
  0x8b   :  { %4888 = vmatpush1.bf16.msra.mxu0 %v7391_v20  ;;  %5421 = vmatpush1.bf16.msra.mxu1 %v7394_v21  ;;  %v7481_v20 = vld [vmem:[%s10958_s1 + $0x620] ss:$16 sps:$4 sm:$0xff]   ;;  %v7484_v21 = vld [vmem:[%s10958_s1 + $0x628] ss:$16 sps:$4 sm:$0xff]  }
  0x8c   :  { %4889 = vmatprep.subr.bf16.mxu0 %v7399_v22  ;;  %5422 = vmatprep.subr.bf16.mxu1 %v7402_v23  ;;  %v7489_v22 = vld [vmem:[%s10958_s1 + $0x644] ss:$16 sps:$4 sm:$0xff]   ;;  %v7492_v23 = vld [vmem:[%s10958_s1 + $0x64c] ss:$16 sps:$4 sm:$0xff]  }
  0x8f   :  { %4890 = vmatpush1.bf16.msra.mxu0 %v7397_v24  ;;  %5423 = vmatpush1.bf16.msra.mxu1 %v7400_v25  ;;  %v7487_v24 = vld [vmem:[%s10958_s1 + $0x640] ss:$16 sps:$4 sm:$0xff]   ;;  %v7490_v25 = vld [vmem:[%s10958_s1 + $0x648] ss:$16 sps:$4 sm:$0xff]  }
  0x90   :  { %4891 = vmatprep.subr.bf16.mxu0 %v7405_v26  ;;  %5424 = vmatprep.subr.bf16.mxu1 %v7408_v27  ;;  %v7495_v26 = vld [vmem:[%s10958_s1 + $0x664] ss:$16 sps:$4 sm:$0xff]   ;;  %v7498_v27 = vld [vmem:[%s10958_s1 + $0x66c] ss:$16 sps:$4 sm:$0xff]  }
  0x93   :  { %4892 = vmatpush1.bf16.msra.mxu0 %v7403_v28  ;;  %5425 = vmatpush1.bf16.msra.mxu1 %v7406_v29  ;;  %v7493_v28 = vld [vmem:[%s10958_s1 + $0x660] ss:$16 sps:$4 sm:$0xff]   ;;  %v7496_v29 = vld [vmem:[%s10958_s1 + $0x668] ss:$16 sps:$4 sm:$0xff]  }
  0x94   :  { %4893 = vmatprep.subr.bf16.mxu0 %v7411_v30  ;;  %5426 = vmatprep.subr.bf16.mxu1 %v7414_v31  ;;  %v7501_v30 = vld [vmem:[%s10958_s1 + $0x684] ss:$16 sps:$4 sm:$0xff]   ;;  %v7504_v31 = vld [vmem:[%s10958_s1 + $0x68c] ss:$16 sps:$4 sm:$0xff]  }
  0x97   :  { %4894 = vmatpush1.bf16.msra.mxu0 %v7409_v32  ;;  %5427 = vmatpush1.bf16.msra.mxu1 %v7412_v33  ;;  %v7499_v32 = vld [vmem:[%s10958_s1 + $0x680] ss:$16 sps:$4 sm:$0xff]   ;;  %v7502_v33 = vld [vmem:[%s10958_s1 + $0x688] ss:$16 sps:$4 sm:$0xff]  }
  0x98   :  { %4895 = vmatprep.subr.bf16.mxu0 %v7417_v34  ;;  %5428 = vmatprep.subr.bf16.mxu1 %v7420_v35  ;;  %v7507_v34 = vld [vmem:[%s10958_s1 + $0x6a4] ss:$16 sps:$4 sm:$0xff]   ;;  %v7510_v35 = vld [vmem:[%s10958_s1 + $0x6ac] ss:$16 sps:$4 sm:$0xff]  }
  0x9b   :  { %4896 = vmatpush1.bf16.msra.mxu0 %v7415_v36  ;;  %5429 = vmatpush1.bf16.msra.mxu1 %v7418_v37  ;;  %v7505_v36 = vld [vmem:[%s10958_s1 + $0x6a0] ss:$16 sps:$4 sm:$0xff]   ;;  %v7508_v37 = vld [vmem:[%s10958_s1 + $0x6a8] ss:$16 sps:$4 sm:$0xff]  }
  0x9c   :  { %4897 = vmatprep.subr.bf16.mxu0 %v7423_v38  ;;  %5430 = vmatprep.subr.bf16.mxu1 %v7426_v39  ;;  %v7513_v38 = vld [vmem:[%s10958_s1 + $0x6c4] ss:$16 sps:$4 sm:$0xff]   ;;  %v7516_v39 = vld [vmem:[%s10958_s1 + $0x6cc] ss:$16 sps:$4 sm:$0xff]  }
  0x9f   :  { %4898 = vmatpush1.bf16.msra.mxu0 %v7421_v40  ;;  %5431 = vmatpush1.bf16.msra.mxu1 %v7424_v41  ;;  %v7511_v40 = vld [vmem:[%s10958_s1 + $0x6c0] ss:$16 sps:$4 sm:$0xff]   ;;  %v7514_v41 = vld [vmem:[%s10958_s1 + $0x6c8] ss:$16 sps:$4 sm:$0xff]  }
  0xa0   :  { %4899 = vmatprep.subr.bf16.mxu0 %v7429_v42  ;;  %5432 = vmatprep.subr.bf16.mxu1 %v7432_v43  ;;  %v7519_v42 = vld [vmem:[%s10958_s1 + $0x6e4] ss:$16 sps:$4 sm:$0xff]   ;;  %v7522_v43 = vld [vmem:[%s10958_s1 + $0x6ec] ss:$16 sps:$4 sm:$0xff]  }
  0xa3   :  { %4900 = vmatpush1.bf16.msra.mxu0 %v7427_v44  ;;  %5433 = vmatpush1.bf16.msra.mxu1 %v7430_v45  ;;  %v7517_v44 = vld [vmem:[%s10958_s1 + $0x6e0] ss:$16 sps:$4 sm:$0xff]   ;;  %v7520_v45 = vld [vmem:[%s10958_s1 + $0x6e8] ss:$16 sps:$4 sm:$0xff]  }
  0xa4   :  { %4901 = vmatprep.subr.bf16.mxu0 %v7435_v46  ;;  %5434 = vmatprep.subr.bf16.mxu1 %v7438_v47  ;;  %v7525_v46 = vld [vmem:[%s10958_s1 + $0x704] ss:$16 sps:$4 sm:$0xff]   ;;  %v7528_v47 = vld [vmem:[%s10958_s1 + $0x70c] ss:$16 sps:$4 sm:$0xff]  }
  0xa7   :  { %4902 = vmatpush1.bf16.msra.mxu0 %v7433_v48  ;;  %5435 = vmatpush1.bf16.msra.mxu1 %v7436_v49  ;;  %v7523_v48 = vld [vmem:[%s10958_s1 + $0x700] ss:$16 sps:$4 sm:$0xff]   ;;  %v7526_v49 = vld [vmem:[%s10958_s1 + $0x708] ss:$16 sps:$4 sm:$0xff]  }
  0xa8   :  { %4903 = vmatprep.subr.bf16.mxu0 %v7441_v50  ;;  %5436 = vmatprep.subr.bf16.mxu1 %v7444_v51  ;;  %v7531_v50 = vld [vmem:[%s10958_s1 + $0x724] ss:$16 sps:$4 sm:$0xff]   ;;  %v7534_v51 = vld [vmem:[%s10958_s1 + $0x72c] ss:$16 sps:$4 sm:$0xff]  }
  0xab   :  { %4904 = vmatpush1.bf16.msra.mxu0 %v7439_v52  ;;  %5437 = vmatpush1.bf16.msra.mxu1 %v7442_v53  ;;  %v7529_v52 = vld [vmem:[%s10958_s1 + $0x720] ss:$16 sps:$4 sm:$0xff]   ;;  %v7532_v53 = vld [vmem:[%s10958_s1 + $0x728] ss:$16 sps:$4 sm:$0xff]  }
  0xac   :  { %4905 = vmatprep.subr.bf16.mxu0 %v7447_v54  ;;  %5438 = vmatprep.subr.bf16.mxu1 %v7450_v55  ;;  %v7537_v54 = vld [vmem:[%s10958_s1 + $0x744] ss:$16 sps:$4 sm:$0xff]   ;;  %v7540_v55 = vld [vmem:[%s10958_s1 + $0x74c] ss:$16 sps:$4 sm:$0xff]  }
  0xaf   :  { %4906 = vmatpush1.bf16.msra.mxu0 %v7445_v56  ;;  %5439 = vmatpush1.bf16.msra.mxu1 %v7448_v57  ;;  %v7535_v56 = vld [vmem:[%s10958_s1 + $0x740] ss:$16 sps:$4 sm:$0xff]   ;;  %v7538_v57 = vld [vmem:[%s10958_s1 + $0x748] ss:$16 sps:$4 sm:$0xff]  }
  0xb0   :  { %4907 = vmatprep.subr.bf16.mxu0 %v7453_v58  ;;  %5440 = vmatprep.subr.bf16.mxu1 %v7456_v59  ;;  %v7543_v58 = vld [vmem:[%s10958_s1 + $0x764] ss:$16 sps:$4 sm:$0xff]   ;;  %v7546_v59 = vld [vmem:[%s10958_s1 + $0x76c] ss:$16 sps:$4 sm:$0xff]  }
  0xb3   :  { %4908 = vmatpush1.bf16.msra.mxu0 %v7451_v60  ;;  %5441 = vmatpush1.bf16.msra.mxu1 %v7454_v61  ;;  %v7541_v60 = vld [vmem:[%s10958_s1 + $0x760] ss:$16 sps:$4 sm:$0xff]   ;;  %v7544_v61 = vld [vmem:[%s10958_s1 + $0x768] ss:$16 sps:$4 sm:$0xff]  }
  0xb4   :  { %4909 = vmatprep.subr.bf16.mxu0 %v7459_v62  ;;  %5442 = vmatprep.subr.bf16.mxu1 %v7462_v63  ;;  %v7549_v62 = vld [vmem:[%s10958_s1 + $0x784] ss:$16 sps:$4 sm:$0xff]   ;;  %v7552_v63 = vld [vmem:[%s10958_s1 + $0x78c] ss:$16 sps:$4 sm:$0xff]  }
  0xb7   :  { %4910 = vmatpush1.bf16.msra.mxu0 %v7457_v0  ;;  %5443 = vmatpush1.bf16.msra.mxu1 %v7460_v1  ;;  %v7547_v0 = vld [vmem:[%s10958_s1 + $0x780] ss:$16 sps:$4 sm:$0xff]   ;;  %v7550_v1 = vld [vmem:[%s10958_s1 + $0x788] ss:$16 sps:$4 sm:$0xff]  }
  0xb8   :  { %4911 = vmatprep.subr.bf16.mxu0 %v7465_v2  ;;  %5444 = vmatprep.subr.bf16.mxu1 %v7468_v3  ;;  %v7555_v2 = vld [vmem:[%s10958_s1 + $0x7a4] ss:$16 sps:$4 sm:$0xff]   ;;  %v7558_v3 = vld [vmem:[%s10958_s1 + $0x7ac] ss:$16 sps:$4 sm:$0xff]  }
  0xbb   :  { %4912 = vmatpush1.bf16.msra.mxu0 %v7463_v4  ;;  %5445 = vmatpush1.bf16.msra.mxu1 %v7466_v5  ;;  %v7553_v4 = vld [vmem:[%s10958_s1 + $0x7a0] ss:$16 sps:$4 sm:$0xff]   ;;  %v7556_v5 = vld [vmem:[%s10958_s1 + $0x7a8] ss:$16 sps:$4 sm:$0xff]  }
  0xbc   :  { %4913 = vmatprep.subr.bf16.mxu0 %v7471_v6  ;;  %5446 = vmatprep.subr.bf16.mxu1 %v7474_v7  ;;  %v7561_v6 = vld [vmem:[%s10958_s1 + $0x7c4] ss:$16 sps:$4 sm:$0xff]   ;;  %v7564_v7 = vld [vmem:[%s10958_s1 + $0x7cc] ss:$16 sps:$4 sm:$0xff]  }
  0xbf   :  { %4914 = vmatpush1.bf16.msra.mxu0 %v7469_v8  ;;  %5447 = vmatpush1.bf16.msra.mxu1 %v7472_v9  ;;  %v7559_v8 = vld [vmem:[%s10958_s1 + $0x7c0] ss:$16 sps:$4 sm:$0xff]   ;;  %v7562_v9 = vld [vmem:[%s10958_s1 + $0x7c8] ss:$16 sps:$4 sm:$0xff]  }
  0xc0   :  { %4924 = vmatprep.subr.bf16.mxu0 %v7477_v10  ;;  %5457 = vmatprep.subr.bf16.mxu1 %v7480_v12  ;;  %v7567_v10 = vld [vmem:[%s10958_s1 + $0x7e4] ss:$16 sps:$4 sm:$0xff]   ;;  %v7565_v12 = vld [vmem:[%s10958_s1 + $0x7e0] ss:$16 sps:$4 sm:$0xff]  }
  0xc2   :  { %4916 = vmatmul.mubr.bf16.vlgmr.msra.gmra.mrb[0].mxu0 %v50_v15  ;;  %5449 = vmatmul.mubr.bf16.vlgmr.msra.gmra.mrb[0].mxu1 %v50_v15  ;;  %v7573_v15 = vld [vmem:[%s10958_s1 + $0x804] ss:$16 sps:$4 sm:$0xff]  }
  0xc3   :  { %4925 = vmatpush1.bf16.msra.mxu0 %v7475_v13  ;;  %5458 = vmatpush1.bf16.msra.mxu1 %v7478_v14  ;;  %v7568_v13 = vld [vmem:[%s10958_s1 + $0x7e8] ss:$16 sps:$4 sm:$0xff]   ;;  %v27_v14 = vld [vmem:[%s10959_s0 + $0x30] sm:$0xff] }
  0xc4   :  { %4926 = vmatprep.subr.bf16.mxu0 %v7483_v17  ;;  %5459 = vmatprep.subr.bf16.mxu1 %v7486_v18  ;;  %v52_v17 = vpack.c.bf16 %v27_v14, %v27_v14  ;;  %v30_v18 = vld [vmem:[%s10959_s0 + $0x48] sm:$0xff]  ;;  %v7663_v14 = vld [vmem:[%s10958_s1 + $0x9e4] ss:$16 sps:$4 sm:$0xff]  }
  0xc5   :  { %4956 = vmatprep.mubr.bf16.mxu0 %v53_v19  ;;  %5489 = vmatprep.mubr.bf16.mxu1 %v53_v19  ;;  %v7571_v19 = vld [vmem:[%s10958_s1 + $0x800] ss:$16 sps:$4 sm:$0xff]  }
  0xc7   :  { %4927 = vmatpush1.bf16.msra.mxu0 %v7481_v20  ;;  %5460 = vmatpush1.bf16.msra.mxu1 %v7484_v21  ;;  %v7574_v20 = vld [vmem:[%s10958_s1 + $0x808] ss:$16 sps:$4 sm:$0xff]   ;;  %v7579_v21 = vld [vmem:[%s10958_s1 + $0x824] ss:$16 sps:$4 sm:$0xff]  }
  0xc8   :  { %4928 = vmatprep.subr.bf16.mxu0 %v7489_v22  ;;  %5461 = vmatprep.subr.bf16.mxu1 %v7492_v23  ;;  %v7582_v22 = vld [vmem:[%s10958_s1 + $0x82c] ss:$16 sps:$4 sm:$0xff]   ;;  %v55_v23 = vpack.c.bf16 %v30_v18, %v30_v18  ;;  %v7669_v18 = vld [vmem:[%s10958_s1 + $0xa04] ss:$16 sps:$4 sm:$0xff]  }
  0xcb   :  { %4929 = vmatpush1.bf16.msra.mxu0 %v7487_v24  ;;  %5462 = vmatpush1.bf16.msra.mxu1 %v7490_v25  ;;  %v7577_v24 = vld [vmem:[%s10958_s1 + $0x820] ss:$16 sps:$4 sm:$0xff]   ;;  %v7580_v25 = vld [vmem:[%s10958_s1 + $0x828] ss:$16 sps:$4 sm:$0xff]  }
  0xcc   :  { %4930 = vmatprep.subr.bf16.mxu0 %v7495_v26  ;;  %5463 = vmatprep.subr.bf16.mxu1 %v7498_v27  ;;  %v7585_v26 = vld [vmem:[%s10958_s1 + $0x844] ss:$16 sps:$4 sm:$0xff]   ;;  %v7588_v27 = vld [vmem:[%s10958_s1 + $0x84c] ss:$16 sps:$4 sm:$0xff]  }
  0xcf   :  { %4931 = vmatpush1.bf16.msra.mxu0 %v7493_v28  ;;  %5464 = vmatpush1.bf16.msra.mxu1 %v7496_v29  ;;  %v7583_v28 = vld [vmem:[%s10958_s1 + $0x840] ss:$16 sps:$4 sm:$0xff]   ;;  %v7586_v29 = vld [vmem:[%s10958_s1 + $0x848] ss:$16 sps:$4 sm:$0xff]  }
  0xd0   :  { %4932 = vmatprep.subr.bf16.mxu0 %v7501_v30  ;;  %5465 = vmatprep.subr.bf16.mxu1 %v7504_v31  ;;  %v7591_v30 = vld [vmem:[%s10958_s1 + $0x864] ss:$16 sps:$4 sm:$0xff]   ;;  %v7594_v31 = vld [vmem:[%s10958_s1 + $0x86c] ss:$16 sps:$4 sm:$0xff]  }
  0xd3   :  { %4933 = vmatpush1.bf16.msra.mxu0 %v7499_v32  ;;  %5466 = vmatpush1.bf16.msra.mxu1 %v7502_v33  ;;  %v7589_v32 = vld [vmem:[%s10958_s1 + $0x860] ss:$16 sps:$4 sm:$0xff]   ;;  %v7592_v33 = vld [vmem:[%s10958_s1 + $0x868] ss:$16 sps:$4 sm:$0xff]  }
  0xd4   :  { %4934 = vmatprep.subr.bf16.mxu0 %v7507_v34  ;;  %5467 = vmatprep.subr.bf16.mxu1 %v7510_v35  ;;  %v7597_v34 = vld [vmem:[%s10958_s1 + $0x884] ss:$16 sps:$4 sm:$0xff]   ;;  %v7600_v35 = vld [vmem:[%s10958_s1 + $0x88c] ss:$16 sps:$4 sm:$0xff]  }
  0xd7   :  { %4935 = vmatpush1.bf16.msra.mxu0 %v7505_v36  ;;  %5468 = vmatpush1.bf16.msra.mxu1 %v7508_v37  ;;  %v7595_v36 = vld [vmem:[%s10958_s1 + $0x880] ss:$16 sps:$4 sm:$0xff]   ;;  %v7598_v37 = vld [vmem:[%s10958_s1 + $0x888] ss:$16 sps:$4 sm:$0xff]  }
  0xd8   :  { %4936 = vmatprep.subr.bf16.mxu0 %v7513_v38  ;;  %5469 = vmatprep.subr.bf16.mxu1 %v7516_v39  ;;  %v7603_v38 = vld [vmem:[%s10958_s1 + $0x8a4] ss:$16 sps:$4 sm:$0xff]   ;;  %v7606_v39 = vld [vmem:[%s10958_s1 + $0x8ac] ss:$16 sps:$4 sm:$0xff]  }
  0xdb   :  { %4937 = vmatpush1.bf16.msra.mxu0 %v7511_v40  ;;  %5470 = vmatpush1.bf16.msra.mxu1 %v7514_v41  ;;  %v7601_v40 = vld [vmem:[%s10958_s1 + $0x8a0] ss:$16 sps:$4 sm:$0xff]   ;;  %v7604_v41 = vld [vmem:[%s10958_s1 + $0x8a8] ss:$16 sps:$4 sm:$0xff]  }
  0xdc   :  { %4938 = vmatprep.subr.bf16.mxu0 %v7519_v42  ;;  %5471 = vmatprep.subr.bf16.mxu1 %v7522_v43  ;;  %v7609_v42 = vld [vmem:[%s10958_s1 + $0x8c4] ss:$16 sps:$4 sm:$0xff]   ;;  %v7612_v43 = vld [vmem:[%s10958_s1 + $0x8cc] ss:$16 sps:$4 sm:$0xff]  }
  0xdf   :  { %4939 = vmatpush1.bf16.msra.mxu0 %v7517_v44  ;;  %5472 = vmatpush1.bf16.msra.mxu1 %v7520_v45  ;;  %v7607_v44 = vld [vmem:[%s10958_s1 + $0x8c0] ss:$16 sps:$4 sm:$0xff]   ;;  %v7610_v45 = vld [vmem:[%s10958_s1 + $0x8c8] ss:$16 sps:$4 sm:$0xff]  }
  0xe0   :  { %4940 = vmatprep.subr.bf16.mxu0 %v7525_v46  ;;  %5473 = vmatprep.subr.bf16.mxu1 %v7528_v47  ;;  %v7615_v46 = vld [vmem:[%s10958_s1 + $0x8e4] ss:$16 sps:$4 sm:$0xff]   ;;  %v7618_v47 = vld [vmem:[%s10958_s1 + $0x8ec] ss:$16 sps:$4 sm:$0xff]  }
  0xe3   :  { %4941 = vmatpush1.bf16.msra.mxu0 %v7523_v48  ;;  %5474 = vmatpush1.bf16.msra.mxu1 %v7526_v49  ;;  %v7613_v48 = vld [vmem:[%s10958_s1 + $0x8e0] ss:$16 sps:$4 sm:$0xff]   ;;  %v7616_v49 = vld [vmem:[%s10958_s1 + $0x8e8] ss:$16 sps:$4 sm:$0xff]  }
  0xe4   :  { %4942 = vmatprep.subr.bf16.mxu0 %v7531_v50  ;;  %5475 = vmatprep.subr.bf16.mxu1 %v7534_v51  ;;  %v7621_v50 = vld [vmem:[%s10958_s1 + $0x904] ss:$16 sps:$4 sm:$0xff]   ;;  %v7624_v51 = vld [vmem:[%s10958_s1 + $0x90c] ss:$16 sps:$4 sm:$0xff]  }
  0xe7   :  { %4943 = vmatpush1.bf16.msra.mxu0 %v7529_v52  ;;  %5476 = vmatpush1.bf16.msra.mxu1 %v7532_v53  ;;  %v7619_v52 = vld [vmem:[%s10958_s1 + $0x900] ss:$16 sps:$4 sm:$0xff]   ;;  %v7622_v53 = vld [vmem:[%s10958_s1 + $0x908] ss:$16 sps:$4 sm:$0xff]  }
  0xe8   :  { %4944 = vmatprep.subr.bf16.mxu0 %v7537_v54  ;;  %5477 = vmatprep.subr.bf16.mxu1 %v7540_v55  ;;  %v7627_v54 = vld [vmem:[%s10958_s1 + $0x924] ss:$16 sps:$4 sm:$0xff]   ;;  %v7630_v55 = vld [vmem:[%s10958_s1 + $0x92c] ss:$16 sps:$4 sm:$0xff]  }
  0xeb   :  { %4945 = vmatpush1.bf16.msra.mxu0 %v7535_v56  ;;  %5478 = vmatpush1.bf16.msra.mxu1 %v7538_v57  ;;  %v7625_v56 = vld [vmem:[%s10958_s1 + $0x920] ss:$16 sps:$4 sm:$0xff]   ;;  %v7628_v57 = vld [vmem:[%s10958_s1 + $0x928] ss:$16 sps:$4 sm:$0xff]  }
  0xec   :  { %4946 = vmatprep.subr.bf16.mxu0 %v7543_v58  ;;  %5479 = vmatprep.subr.bf16.mxu1 %v7546_v59  ;;  %v7633_v58 = vld [vmem:[%s10958_s1 + $0x944] ss:$16 sps:$4 sm:$0xff]   ;;  %v7636_v59 = vld [vmem:[%s10958_s1 + $0x94c] ss:$16 sps:$4 sm:$0xff]  }
  0xef   :  { %4947 = vmatpush1.bf16.msra.mxu0 %v7541_v60  ;;  %5480 = vmatpush1.bf16.msra.mxu1 %v7544_v61  ;;  %v7631_v60 = vld [vmem:[%s10958_s1 + $0x940] ss:$16 sps:$4 sm:$0xff]   ;;  %v7634_v61 = vld [vmem:[%s10958_s1 + $0x948] ss:$16 sps:$4 sm:$0xff]  }
  0xf0   :  { %4948 = vmatprep.subr.bf16.mxu0 %v7549_v62  ;;  %5481 = vmatprep.subr.bf16.mxu1 %v7552_v63  ;;  %v7639_v62 = vld [vmem:[%s10958_s1 + $0x964] ss:$16 sps:$4 sm:$0xff]   ;;  %v7642_v63 = vld [vmem:[%s10958_s1 + $0x96c] ss:$16 sps:$4 sm:$0xff]  }
  0xf3   :  { %4949 = vmatpush1.bf16.msra.mxu0 %v7547_v0  ;;  %5482 = vmatpush1.bf16.msra.mxu1 %v7550_v1  ;;  %v7637_v0 = vld [vmem:[%s10958_s1 + $0x960] ss:$16 sps:$4 sm:$0xff]   ;;  %v7640_v1 = vld [vmem:[%s10958_s1 + $0x968] ss:$16 sps:$4 sm:$0xff]  }
  0xf4   :  { %4950 = vmatprep.subr.bf16.mxu0 %v7555_v2  ;;  %5483 = vmatprep.subr.bf16.mxu1 %v7558_v3  ;;  %v7645_v2 = vld [vmem:[%s10958_s1 + $0x984] ss:$16 sps:$4 sm:$0xff]   ;;  %v7648_v3 = vld [vmem:[%s10958_s1 + $0x98c] ss:$16 sps:$4 sm:$0xff]  }
  0xf7   :  { %4951 = vmatpush1.bf16.msra.mxu0 %v7553_v4  ;;  %5484 = vmatpush1.bf16.msra.mxu1 %v7556_v5  ;;  %v7643_v4 = vld [vmem:[%s10958_s1 + $0x980] ss:$16 sps:$4 sm:$0xff]   ;;  %v7646_v5 = vld [vmem:[%s10958_s1 + $0x988] ss:$16 sps:$4 sm:$0xff]  }
  0xf8   :  { %4952 = vmatprep.subr.bf16.mxu0 %v7561_v6  ;;  %5485 = vmatprep.subr.bf16.mxu1 %v7564_v7  ;;  %v7651_v6 = vld [vmem:[%s10958_s1 + $0x9a4] ss:$16 sps:$4 sm:$0xff]   ;;  %v7654_v7 = vld [vmem:[%s10958_s1 + $0x9ac] ss:$16 sps:$4 sm:$0xff]  }
  0xfb   :  { %4953 = vmatpush1.bf16.msra.mxu0 %v7559_v8  ;;  %5486 = vmatpush1.bf16.msra.mxu1 %v7562_v9  ;;  %v7649_v8 = vld [vmem:[%s10958_s1 + $0x9a0] ss:$16 sps:$4 sm:$0xff]   ;;  %v7652_v9 = vld [vmem:[%s10958_s1 + $0x9a8] ss:$16 sps:$4 sm:$0xff]  }
  0xfc   :  { %4954 = vmatprep.subr.bf16.mxu0 %v7567_v10  ;;  %5487 = vmatprep.subr.bf16.mxu1 %v7570_v11  ;;  %v7657_v10 = vld [vmem:[%s10958_s1 + $0x9c4] ss:$16 sps:$4 sm:$0xff]   ;;  %v7660_v11 = vld [vmem:[%s10958_s1 + $0x9cc] ss:$16 sps:$4 sm:$0xff]  }
  0xff   :  { %4955 = vmatpush1.bf16.msra.mxu0 %v7565_v12  ;;  %5488 = vmatpush1.bf16.msra.mxu1 %v7568_v13  ;;  %v7655_v12 = vld [vmem:[%s10958_s1 + $0x9c0] ss:$16 sps:$4 sm:$0xff]   ;;  %v7658_v13 = vld [vmem:[%s10958_s1 + $0x9c8] ss:$16 sps:$4 sm:$0xff]  }
 0x100   :  { %4965 = vmatprep.subr.bf16.mxu0 %v7573_v15  ;;  %5498 = vmatprep.subr.bf16.mxu1 %v7576_v16  ;;  %v7666_v15 = vld [vmem:[%s10958_s1 + $0x9ec] ss:$16 sps:$4 sm:$0xff]   ;;  %v7661_v16 = vld [vmem:[%s10958_s1 + $0x9e0] ss:$16 sps:$4 sm:$0xff]  }
 0x102   :  { %4957 = vmatmul.mubr.bf16.vlgmr.msra.gmra.mrb[0].mxu0 %v52_v17  ;;  %5490 = vmatmul.mubr.bf16.vlgmr.msra.gmra.mrb[0].mxu1 %v52_v17  ;;  %v7664_v17 = vld [vmem:[%s10958_s1 + $0x9e8] ss:$16 sps:$4 sm:$0xff]  }
 0x103   :  { %4966 = vmatpush1.bf16.msra.mxu0 %v7571_v19  ;;  %5499 = vmatpush1.bf16.msra.mxu1 %v7574_v20  ;;  %v29_v19 = vld [vmem:[%s10959_s0 + $0x40] sm:$0xff]  ;;  %v7672_v20 = vld [vmem:[%s10958_s1 + $0xa0c] ss:$16 sps:$4 sm:$0xff]  }
 0x104   :  { %4967 = vmatprep.subr.bf16.mxu0 %v7579_v21  ;;  %5500 = vmatprep.subr.bf16.mxu1 %v7582_v22  ;;  %v32_v21 = vld [vmem:[%s10959_s0 + $0x58] sm:$0xff]  ;;  %v54_v22 = vpack.c.bf16 %v29_v19, %v29_v19 }
 0x105   :  { %4997 = vmatprep.mubr.bf16.mxu0 %v55_v23  ;;  %5530 = vmatprep.mubr.bf16.mxu1 %v55_v23  ;;  %v7667_v23 = vld [vmem:[%s10958_s1 + $0xa00] ss:$16 sps:$4 sm:$0xff]   ;;  %v7762_v19 = vld [vmem:[%s10958_s1 + $0xbec] ss:$16 sps:$4 sm:$0xff]  }
 0x107   :  { %4968 = vmatpush1.bf16.msra.mxu0 %v7577_v24  ;;  %5501 = vmatpush1.bf16.msra.mxu1 %v7580_v25  ;;  %v7670_v24 = vld [vmem:[%s10958_s1 + $0xa08] ss:$16 sps:$4 sm:$0xff]   ;;  %v7675_v25 = vld [vmem:[%s10958_s1 + $0xa24] ss:$16 sps:$4 sm:$0xff]  }
 0x108   :  { %4969 = vmatprep.subr.bf16.mxu0 %v7585_v26  ;;  %5502 = vmatprep.subr.bf16.mxu1 %v7588_v27  ;;  %v7678_v26 = vld [vmem:[%s10958_s1 + $0xa2c] ss:$16 sps:$4 sm:$0xff]   ;;  %v57_v27 = vpack.c.bf16 %v32_v21, %v32_v21  ;;  %v7760_v21 = vld [vmem:[%s10958_s1 + $0xbe8] ss:$16 sps:$4 sm:$0xff]  }
 0x10b   :  { %4970 = vmatpush1.bf16.msra.mxu0 %v7583_v28  ;;  %5503 = vmatpush1.bf16.msra.mxu1 %v7586_v29  ;;  %v7673_v28 = vld [vmem:[%s10958_s1 + $0xa20] ss:$16 sps:$4 sm:$0xff]   ;;  %v7676_v29 = vld [vmem:[%s10958_s1 + $0xa28] ss:$16 sps:$4 sm:$0xff]  }
 0x10c   :  { %4971 = vmatprep.subr.bf16.mxu0 %v7591_v30  ;;  %5504 = vmatprep.subr.bf16.mxu1 %v7594_v31  ;;  %v7681_v30 = vld [vmem:[%s10958_s1 + $0xa44] ss:$16 sps:$4 sm:$0xff]   ;;  %v7684_v31 = vld [vmem:[%s10958_s1 + $0xa4c] ss:$16 sps:$4 sm:$0xff]  }
 0x10f   :  { %4972 = vmatpush1.bf16.msra.mxu0 %v7589_v32  ;;  %5505 = vmatpush1.bf16.msra.mxu1 %v7592_v33  ;;  %v7679_v32 = vld [vmem:[%s10958_s1 + $0xa40] ss:$16 sps:$4 sm:$0xff]   ;;  %v7682_v33 = vld [vmem:[%s10958_s1 + $0xa48] ss:$16 sps:$4 sm:$0xff]  }
 0x110   :  { %4973 = vmatprep.subr.bf16.mxu0 %v7597_v34  ;;  %5506 = vmatprep.subr.bf16.mxu1 %v7600_v35  ;;  %v7687_v34 = vld [vmem:[%s10958_s1 + $0xa64] ss:$16 sps:$4 sm:$0xff]   ;;  %v7690_v35 = vld [vmem:[%s10958_s1 + $0xa6c] ss:$16 sps:$4 sm:$0xff]  }
 0x113   :  { %4974 = vmatpush1.bf16.msra.mxu0 %v7595_v36  ;;  %5507 = vmatpush1.bf16.msra.mxu1 %v7598_v37  ;;  %v7685_v36 = vld [vmem:[%s10958_s1 + $0xa60] ss:$16 sps:$4 sm:$0xff]   ;;  %v7688_v37 = vld [vmem:[%s10958_s1 + $0xa68] ss:$16 sps:$4 sm:$0xff]  }
 0x114   :  { %4975 = vmatprep.subr.bf16.mxu0 %v7603_v38  ;;  %5508 = vmatprep.subr.bf16.mxu1 %v7606_v39  ;;  %v7693_v38 = vld [vmem:[%s10958_s1 + $0xa84] ss:$16 sps:$4 sm:$0xff]   ;;  %v7696_v39 = vld [vmem:[%s10958_s1 + $0xa8c] ss:$16 sps:$4 sm:$0xff]  }
 0x117   :  { %4976 = vmatpush1.bf16.msra.mxu0 %v7601_v40  ;;  %5509 = vmatpush1.bf16.msra.mxu1 %v7604_v41  ;;  %v7691_v40 = vld [vmem:[%s10958_s1 + $0xa80] ss:$16 sps:$4 sm:$0xff]   ;;  %v7694_v41 = vld [vmem:[%s10958_s1 + $0xa88] ss:$16 sps:$4 sm:$0xff]  }
 0x118   :  { %4977 = vmatprep.subr.bf16.mxu0 %v7609_v42  ;;  %5510 = vmatprep.subr.bf16.mxu1 %v7612_v43  ;;  %v7699_v42 = vld [vmem:[%s10958_s1 + $0xaa4] ss:$16 sps:$4 sm:$0xff]   ;;  %v7702_v43 = vld [vmem:[%s10958_s1 + $0xaac] ss:$16 sps:$4 sm:$0xff]  }
 0x11b   :  { %4978 = vmatpush1.bf16.msra.mxu0 %v7607_v44  ;;  %5511 = vmatpush1.bf16.msra.mxu1 %v7610_v45  ;;  %v7697_v44 = vld [vmem:[%s10958_s1 + $0xaa0] ss:$16 sps:$4 sm:$0xff]   ;;  %v7700_v45 = vld [vmem:[%s10958_s1 + $0xaa8] ss:$16 sps:$4 sm:$0xff]  }
 0x11c   :  { %4979 = vmatprep.subr.bf16.mxu0 %v7615_v46  ;;  %5512 = vmatprep.subr.bf16.mxu1 %v7618_v47  ;;  %v7705_v46 = vld [vmem:[%s10958_s1 + $0xac4] ss:$16 sps:$4 sm:$0xff]   ;;  %v7708_v47 = vld [vmem:[%s10958_s1 + $0xacc] ss:$16 sps:$4 sm:$0xff]  }
 0x11f   :  { %4980 = vmatpush1.bf16.msra.mxu0 %v7613_v48  ;;  %5513 = vmatpush1.bf16.msra.mxu1 %v7616_v49  ;;  %v7703_v48 = vld [vmem:[%s10958_s1 + $0xac0] ss:$16 sps:$4 sm:$0xff]   ;;  %v7706_v49 = vld [vmem:[%s10958_s1 + $0xac8] ss:$16 sps:$4 sm:$0xff]  }
 0x120   :  { %4981 = vmatprep.subr.bf16.mxu0 %v7621_v50  ;;  %5514 = vmatprep.subr.bf16.mxu1 %v7624_v51  ;;  %v7711_v50 = vld [vmem:[%s10958_s1 + $0xae4] ss:$16 sps:$4 sm:$0xff]   ;;  %v7714_v51 = vld [vmem:[%s10958_s1 + $0xaec] ss:$16 sps:$4 sm:$0xff]  }
 0x123   :  { %4982 = vmatpush1.bf16.msra.mxu0 %v7619_v52  ;;  %5515 = vmatpush1.bf16.msra.mxu1 %v7622_v53  ;;  %v7709_v52 = vld [vmem:[%s10958_s1 + $0xae0] ss:$16 sps:$4 sm:$0xff]   ;;  %v7712_v53 = vld [vmem:[%s10958_s1 + $0xae8] ss:$16 sps:$4 sm:$0xff]  }
 0x124   :  { %4983 = vmatprep.subr.bf16.mxu0 %v7627_v54  ;;  %5516 = vmatprep.subr.bf16.mxu1 %v7630_v55  ;;  %v7717_v54 = vld [vmem:[%s10958_s1 + $0xb04] ss:$16 sps:$4 sm:$0xff]   ;;  %v7720_v55 = vld [vmem:[%s10958_s1 + $0xb0c] ss:$16 sps:$4 sm:$0xff]  }
 0x127   :  { %4984 = vmatpush1.bf16.msra.mxu0 %v7625_v56  ;;  %5517 = vmatpush1.bf16.msra.mxu1 %v7628_v57  ;;  %v7715_v56 = vld [vmem:[%s10958_s1 + $0xb00] ss:$16 sps:$4 sm:$0xff]   ;;  %v7718_v57 = vld [vmem:[%s10958_s1 + $0xb08] ss:$16 sps:$4 sm:$0xff]  }
 0x128   :  { %4985 = vmatprep.subr.bf16.mxu0 %v7633_v58  ;;  %5518 = vmatprep.subr.bf16.mxu1 %v7636_v59  ;;  %v7723_v58 = vld [vmem:[%s10958_s1 + $0xb24] ss:$16 sps:$4 sm:$0xff]   ;;  %v7726_v59 = vld [vmem:[%s10958_s1 + $0xb2c] ss:$16 sps:$4 sm:$0xff]  }
 0x12b   :  { %4986 = vmatpush1.bf16.msra.mxu0 %v7631_v60  ;;  %5519 = vmatpush1.bf16.msra.mxu1 %v7634_v61  ;;  %v7721_v60 = vld [vmem:[%s10958_s1 + $0xb20] ss:$16 sps:$4 sm:$0xff]   ;;  %v7724_v61 = vld [vmem:[%s10958_s1 + $0xb28] ss:$16 sps:$4 sm:$0xff]  }
 0x12c   :  { %4987 = vmatprep.subr.bf16.mxu0 %v7639_v62  ;;  %5520 = vmatprep.subr.bf16.mxu1 %v7642_v63  ;;  %v7729_v62 = vld [vmem:[%s10958_s1 + $0xb44] ss:$16 sps:$4 sm:$0xff]   ;;  %v7732_v63 = vld [vmem:[%s10958_s1 + $0xb4c] ss:$16 sps:$4 sm:$0xff]  }
 0x12f   :  { %4988 = vmatpush1.bf16.msra.mxu0 %v7637_v0  ;;  %5521 = vmatpush1.bf16.msra.mxu1 %v7640_v1  ;;  %v7727_v0 = vld [vmem:[%s10958_s1 + $0xb40] ss:$16 sps:$4 sm:$0xff]   ;;  %v7730_v1 = vld [vmem:[%s10958_s1 + $0xb48] ss:$16 sps:$4 sm:$0xff]  }
 0x130   :  { %4989 = vmatprep.subr.bf16.mxu0 %v7645_v2  ;;  %5522 = vmatprep.subr.bf16.mxu1 %v7648_v3  ;;  %v7735_v2 = vld [vmem:[%s10958_s1 + $0xb64] ss:$16 sps:$4 sm:$0xff]   ;;  %v7738_v3 = vld [vmem:[%s10958_s1 + $0xb6c] ss:$16 sps:$4 sm:$0xff]  }
 0x133   :  { %4990 = vmatpush1.bf16.msra.mxu0 %v7643_v4  ;;  %5523 = vmatpush1.bf16.msra.mxu1 %v7646_v5  ;;  %v7733_v4 = vld [vmem:[%s10958_s1 + $0xb60] ss:$16 sps:$4 sm:$0xff]   ;;  %v7736_v5 = vld [vmem:[%s10958_s1 + $0xb68] ss:$16 sps:$4 sm:$0xff]  }
 0x134   :  { %4991 = vmatprep.subr.bf16.mxu0 %v7651_v6  ;;  %5524 = vmatprep.subr.bf16.mxu1 %v7654_v7  ;;  %v7741_v6 = vld [vmem:[%s10958_s1 + $0xb84] ss:$16 sps:$4 sm:$0xff]   ;;  %v7744_v7 = vld [vmem:[%s10958_s1 + $0xb8c] ss:$16 sps:$4 sm:$0xff]  }
 0x137   :  { %4992 = vmatpush1.bf16.msra.mxu0 %v7649_v8  ;;  %5525 = vmatpush1.bf16.msra.mxu1 %v7652_v9  ;;  %v7739_v8 = vld [vmem:[%s10958_s1 + $0xb80] ss:$16 sps:$4 sm:$0xff]   ;;  %v7742_v9 = vld [vmem:[%s10958_s1 + $0xb88] ss:$16 sps:$4 sm:$0xff]  }
 0x138   :  { %4993 = vmatprep.subr.bf16.mxu0 %v7657_v10  ;;  %5526 = vmatprep.subr.bf16.mxu1 %v7660_v11  ;;  %v7747_v10 = vld [vmem:[%s10958_s1 + $0xba4] ss:$16 sps:$4 sm:$0xff]   ;;  %v7750_v11 = vld [vmem:[%s10958_s1 + $0xbac] ss:$16 sps:$4 sm:$0xff]  }
 0x13b   :  { %4994 = vmatpush1.bf16.msra.mxu0 %v7655_v12  ;;  %5527 = vmatpush1.bf16.msra.mxu1 %v7658_v13  ;;  %v7745_v12 = vld [vmem:[%s10958_s1 + $0xba0] ss:$16 sps:$4 sm:$0xff]   ;;  %v7748_v13 = vld [vmem:[%s10958_s1 + $0xba8] ss:$16 sps:$4 sm:$0xff]  }
 0x13c   :  { %4995 = vmatprep.subr.bf16.mxu0 %v7663_v14  ;;  %5528 = vmatprep.subr.bf16.mxu1 %v7666_v15  ;;  %v7753_v14 = vld [vmem:[%s10958_s1 + $0xbc4] ss:$16 sps:$4 sm:$0xff]   ;;  %v7756_v15 = vld [vmem:[%s10958_s1 + $0xbcc] ss:$16 sps:$4 sm:$0xff]  }
 0x13f   :  { %4996 = vmatpush1.bf16.msra.mxu0 %v7661_v16  ;;  %5529 = vmatpush1.bf16.msra.mxu1 %v7664_v17  ;;  %v7751_v16 = vld [vmem:[%s10958_s1 + $0xbc0] ss:$16 sps:$4 sm:$0xff]   ;;  %v7754_v17 = vld [vmem:[%s10958_s1 + $0xbc8] ss:$16 sps:$4 sm:$0xff]  }
 0x140   :  { %5006 = vmatprep.subr.bf16.mxu0 %v7669_v18  ;;  %5539 = vmatprep.subr.bf16.mxu1 %v7672_v20  ;;  %v7759_v18 = vld [vmem:[%s10958_s1 + $0xbe4] ss:$16 sps:$4 sm:$0xff]   ;;  %v7757_v20 = vld [vmem:[%s10958_s1 + $0xbe0] ss:$16 sps:$4 sm:$0xff]  }
 0x142   :  { %4998 = vmatmul.mubr.bf16.vlgmr.msra.gmra.mrb[0].mxu0 %v54_v22  ;;  %5531 = vmatmul.mubr.bf16.vlgmr.msra.gmra.mrb[0].mxu1 %v54_v22  ;;  %v7765_v22 = vld [vmem:[%s10958_s1 + $0xc04] ss:$16 sps:$4 sm:$0xff]  }
 0x143   :  { %5007 = vmatpush1.bf16.msra.mxu0 %v7667_v23  ;;  %5540 = vmatpush1.bf16.msra.mxu1 %v7670_v24  ;;  %v31_v23 = vld [vmem:[%s10959_s0 + $0x50] sm:$0xff]  ;;  %v7768_v24 = vld [vmem:[%s10958_s1 + $0xc0c] ss:$16 sps:$4 sm:$0xff]  }
 0x144   :  { %5008 = vmatprep.subr.bf16.mxu0 %v7675_v25  ;;  %5541 = vmatprep.subr.bf16.mxu1 %v7678_v26  ;;  %v34_v25 = vld [vmem:[%s10959_s0 + $0x68] sm:$0xff]  ;;  %v56_v26 = vpack.c.bf16 %v31_v23, %v31_v23 }
 0x145   :  { %5038 = vmatprep.mubr.bf16.mxu0 %v57_v27  ;;  %5571 = vmatprep.mubr.bf16.mxu1 %v57_v27  ;;  %v7763_v27 = vld [vmem:[%s10958_s1 + $0xc00] ss:$16 sps:$4 sm:$0xff]   ;;  %v7858_v23 = vld [vmem:[%s10958_s1 + $0xdec] ss:$16 sps:$4 sm:$0xff]  }
 0x147   :  { %5009 = vmatpush1.bf16.msra.mxu0 %v7673_v28  ;;  %5542 = vmatpush1.bf16.msra.mxu1 %v7676_v29  ;;  %v7766_v28 = vld [vmem:[%s10958_s1 + $0xc08] ss:$16 sps:$4 sm:$0xff]   ;;  %v7771_v29 = vld [vmem:[%s10958_s1 + $0xc24] ss:$16 sps:$4 sm:$0xff]  }
 0x148   :  { %5010 = vmatprep.subr.bf16.mxu0 %v7681_v30  ;;  %5543 = vmatprep.subr.bf16.mxu1 %v7684_v31  ;;  %v7774_v30 = vld [vmem:[%s10958_s1 + $0xc2c] ss:$16 sps:$4 sm:$0xff]   ;;  %v59_v31 = vpack.c.bf16 %v34_v25, %v34_v25  ;;  %v7856_v25 = vld [vmem:[%s10958_s1 + $0xde8] ss:$16 sps:$4 sm:$0xff]  }
 0x14b   :  { %5011 = vmatpush1.bf16.msra.mxu0 %v7679_v32  ;;  %5544 = vmatpush1.bf16.msra.mxu1 %v7682_v33  ;;  %v7769_v32 = vld [vmem:[%s10958_s1 + $0xc20] ss:$16 sps:$4 sm:$0xff]   ;;  %v7772_v33 = vld [vmem:[%s10958_s1 + $0xc28] ss:$16 sps:$4 sm:$0xff]  }
 0x14c   :  { %5012 = vmatprep.subr.bf16.mxu0 %v7687_v34  ;;  %5545 = vmatprep.subr.bf16.mxu1 %v7690_v35  ;;  %v7777_v34 = vld [vmem:[%s10958_s1 + $0xc44] ss:$16 sps:$4 sm:$0xff]   ;;  %v7780_v35 = vld [vmem:[%s10958_s1 + $0xc4c] ss:$16 sps:$4 sm:$0xff]  }
 0x14f   :  { %5013 = vmatpush1.bf16.msra.mxu0 %v7685_v36  ;;  %5546 = vmatpush1.bf16.msra.mxu1 %v7688_v37  ;;  %v7775_v36 = vld [vmem:[%s10958_s1 + $0xc40] ss:$16 sps:$4 sm:$0xff]   ;;  %v7778_v37 = vld [vmem:[%s10958_s1 + $0xc48] ss:$16 sps:$4 sm:$0xff]  }
 0x150   :  { %5014 = vmatprep.subr.bf16.mxu0 %v7693_v38  ;;  %5547 = vmatprep.subr.bf16.mxu1 %v7696_v39  ;;  %v7783_v38 = vld [vmem:[%s10958_s1 + $0xc64] ss:$16 sps:$4 sm:$0xff]   ;;  %v7786_v39 = vld [vmem:[%s10958_s1 + $0xc6c] ss:$16 sps:$4 sm:$0xff]  }
 0x153   :  { %5015 = vmatpush1.bf16.msra.mxu0 %v7691_v40  ;;  %5548 = vmatpush1.bf16.msra.mxu1 %v7694_v41  ;;  %v7781_v40 = vld [vmem:[%s10958_s1 + $0xc60] ss:$16 sps:$4 sm:$0xff]   ;;  %v7784_v41 = vld [vmem:[%s10958_s1 + $0xc68] ss:$16 sps:$4 sm:$0xff]  }
 0x154   :  { %5016 = vmatprep.subr.bf16.mxu0 %v7699_v42  ;;  %5549 = vmatprep.subr.bf16.mxu1 %v7702_v43  ;;  %v7789_v42 = vld [vmem:[%s10958_s1 + $0xc84] ss:$16 sps:$4 sm:$0xff]   ;;  %v7792_v43 = vld [vmem:[%s10958_s1 + $0xc8c] ss:$16 sps:$4 sm:$0xff]  }
 0x157   :  { %5017 = vmatpush1.bf16.msra.mxu0 %v7697_v44  ;;  %5550 = vmatpush1.bf16.msra.mxu1 %v7700_v45  ;;  %v7787_v44 = vld [vmem:[%s10958_s1 + $0xc80] ss:$16 sps:$4 sm:$0xff]   ;;  %v7790_v45 = vld [vmem:[%s10958_s1 + $0xc88] ss:$16 sps:$4 sm:$0xff]  }
 0x158   :  { %5018 = vmatprep.subr.bf16.mxu0 %v7705_v46  ;;  %5551 = vmatprep.subr.bf16.mxu1 %v7708_v47  ;;  %v7795_v46 = vld [vmem:[%s10958_s1 + $0xca4] ss:$16 sps:$4 sm:$0xff]   ;;  %v7798_v47 = vld [vmem:[%s10958_s1 + $0xcac] ss:$16 sps:$4 sm:$0xff]  }
 0x15b   :  { %5019 = vmatpush1.bf16.msra.mxu0 %v7703_v48  ;;  %5552 = vmatpush1.bf16.msra.mxu1 %v7706_v49  ;;  %v7793_v48 = vld [vmem:[%s10958_s1 + $0xca0] ss:$16 sps:$4 sm:$0xff]   ;;  %v7796_v49 = vld [vmem:[%s10958_s1 + $0xca8] ss:$16 sps:$4 sm:$0xff]  }
 0x15c   :  { %5020 = vmatprep.subr.bf16.mxu0 %v7711_v50  ;;  %5553 = vmatprep.subr.bf16.mxu1 %v7714_v51  ;;  %v7801_v50 = vld [vmem:[%s10958_s1 + $0xcc4] ss:$16 sps:$4 sm:$0xff]   ;;  %v7804_v51 = vld [vmem:[%s10958_s1 + $0xccc] ss:$16 sps:$4 sm:$0xff]  }
 0x15f   :  { %5021 = vmatpush1.bf16.msra.mxu0 %v7709_v52  ;;  %5554 = vmatpush1.bf16.msra.mxu1 %v7712_v53  ;;  %v7799_v52 = vld [vmem:[%s10958_s1 + $0xcc0] ss:$16 sps:$4 sm:$0xff]   ;;  %v7802_v53 = vld [vmem:[%s10958_s1 + $0xcc8] ss:$16 sps:$4 sm:$0xff]  }
 0x160   :  { %5022 = vmatprep.subr.bf16.mxu0 %v7717_v54  ;;  %5555 = vmatprep.subr.bf16.mxu1 %v7720_v55  ;;  %v7807_v54 = vld [vmem:[%s10958_s1 + $0xce4] ss:$16 sps:$4 sm:$0xff]   ;;  %v7810_v55 = vld [vmem:[%s10958_s1 + $0xcec] ss:$16 sps:$4 sm:$0xff]  }
 0x163   :  { %5023 = vmatpush1.bf16.msra.mxu0 %v7715_v56  ;;  %5556 = vmatpush1.bf16.msra.mxu1 %v7718_v57  ;;  %v7805_v56 = vld [vmem:[%s10958_s1 + $0xce0] ss:$16 sps:$4 sm:$0xff]   ;;  %v7808_v57 = vld [vmem:[%s10958_s1 + $0xce8] ss:$16 sps:$4 sm:$0xff]  }
 0x164   :  { %5024 = vmatprep.subr.bf16.mxu0 %v7723_v58  ;;  %5557 = vmatprep.subr.bf16.mxu1 %v7726_v59  ;;  %v7813_v58 = vld [vmem:[%s10958_s1 + $0xd04] ss:$16 sps:$4 sm:$0xff]   ;;  %v7816_v59 = vld [vmem:[%s10958_s1 + $0xd0c] ss:$16 sps:$4 sm:$0xff]  }
 0x167   :  { %5025 = vmatpush1.bf16.msra.mxu0 %v7721_v60  ;;  %5558 = vmatpush1.bf16.msra.mxu1 %v7724_v61  ;;  %v7811_v60 = vld [vmem:[%s10958_s1 + $0xd00] ss:$16 sps:$4 sm:$0xff]   ;;  %v7814_v61 = vld [vmem:[%s10958_s1 + $0xd08] ss:$16 sps:$4 sm:$0xff]  }
 0x168   :  { %5026 = vmatprep.subr.bf16.mxu0 %v7729_v62  ;;  %5559 = vmatprep.subr.bf16.mxu1 %v7732_v63  ;;  %v7819_v62 = vld [vmem:[%s10958_s1 + $0xd24] ss:$16 sps:$4 sm:$0xff]   ;;  %v7822_v63 = vld [vmem:[%s10958_s1 + $0xd2c] ss:$16 sps:$4 sm:$0xff]  }
 0x16b   :  { %5027 = vmatpush1.bf16.msra.mxu0 %v7727_v0  ;;  %5560 = vmatpush1.bf16.msra.mxu1 %v7730_v1  ;;  %v7817_v0 = vld [vmem:[%s10958_s1 + $0xd20] ss:$16 sps:$4 sm:$0xff]   ;;  %v7820_v1 = vld [vmem:[%s10958_s1 + $0xd28] ss:$16 sps:$4 sm:$0xff]  }
 0x16c   :  { %5028 = vmatprep.subr.bf16.mxu0 %v7735_v2  ;;  %5561 = vmatprep.subr.bf16.mxu1 %v7738_v3  ;;  %v7825_v2 = vld [vmem:[%s10958_s1 + $0xd44] ss:$16 sps:$4 sm:$0xff]   ;;  %v7828_v3 = vld [vmem:[%s10958_s1 + $0xd4c] ss:$16 sps:$4 sm:$0xff]  }
 0x16f   :  { %5029 = vmatpush1.bf16.msra.mxu0 %v7733_v4  ;;  %5562 = vmatpush1.bf16.msra.mxu1 %v7736_v5  ;;  %v7823_v4 = vld [vmem:[%s10958_s1 + $0xd40] ss:$16 sps:$4 sm:$0xff]   ;;  %v7826_v5 = vld [vmem:[%s10958_s1 + $0xd48] ss:$16 sps:$4 sm:$0xff]  }
 0x170   :  { %5030 = vmatprep.subr.bf16.mxu0 %v7741_v6  ;;  %5563 = vmatprep.subr.bf16.mxu1 %v7744_v7  ;;  %v7831_v6 = vld [vmem:[%s10958_s1 + $0xd64] ss:$16 sps:$4 sm:$0xff]   ;;  %v7834_v7 = vld [vmem:[%s10958_s1 + $0xd6c] ss:$16 sps:$4 sm:$0xff]  }
 0x173   :  { %5031 = vmatpush1.bf16.msra.mxu0 %v7739_v8  ;;  %5564 = vmatpush1.bf16.msra.mxu1 %v7742_v9  ;;  %v7829_v8 = vld [vmem:[%s10958_s1 + $0xd60] ss:$16 sps:$4 sm:$0xff]   ;;  %v7832_v9 = vld [vmem:[%s10958_s1 + $0xd68] ss:$16 sps:$4 sm:$0xff]  }
 0x174   :  { %5032 = vmatprep.subr.bf16.mxu0 %v7747_v10  ;;  %5565 = vmatprep.subr.bf16.mxu1 %v7750_v11  ;;  %v7837_v10 = vld [vmem:[%s10958_s1 + $0xd84] ss:$16 sps:$4 sm:$0xff]   ;;  %v7840_v11 = vld [vmem:[%s10958_s1 + $0xd8c] ss:$16 sps:$4 sm:$0xff]  }
 0x177   :  { %5033 = vmatpush1.bf16.msra.mxu0 %v7745_v12  ;;  %5566 = vmatpush1.bf16.msra.mxu1 %v7748_v13  ;;  %v7835_v12 = vld [vmem:[%s10958_s1 + $0xd80] ss:$16 sps:$4 sm:$0xff]   ;;  %v7838_v13 = vld [vmem:[%s10958_s1 + $0xd88] ss:$16 sps:$4 sm:$0xff]  }
 0x178   :  { %5034 = vmatprep.subr.bf16.mxu0 %v7753_v14  ;;  %5567 = vmatprep.subr.bf16.mxu1 %v7756_v15  ;;  %v7843_v14 = vld [vmem:[%s10958_s1 + $0xda4] ss:$16 sps:$4 sm:$0xff]   ;;  %v7846_v15 = vld [vmem:[%s10958_s1 + $0xdac] ss:$16 sps:$4 sm:$0xff]  }
 0x17b   :  { %5035 = vmatpush1.bf16.msra.mxu0 %v7751_v16  ;;  %5568 = vmatpush1.bf16.msra.mxu1 %v7754_v17  ;;  %v7841_v16 = vld [vmem:[%s10958_s1 + $0xda0] ss:$16 sps:$4 sm:$0xff]   ;;  %v7844_v17 = vld [vmem:[%s10958_s1 + $0xda8] ss:$16 sps:$4 sm:$0xff]  }
 0x17c   :  { %5036 = vmatprep.subr.bf16.mxu0 %v7759_v18  ;;  %5569 = vmatprep.subr.bf16.mxu1 %v7762_v19  ;;  %v7849_v18 = vld [vmem:[%s10958_s1 + $0xdc4] ss:$16 sps:$4 sm:$0xff]   ;;  %v7852_v19 = vld [vmem:[%s10958_s1 + $0xdcc] ss:$16 sps:$4 sm:$0xff]  }
 0x17f   :  { %5037 = vmatpush1.bf16.msra.mxu0 %v7757_v20  ;;  %5570 = vmatpush1.bf16.msra.mxu1 %v7760_v21  ;;  %v7847_v20 = vld [vmem:[%s10958_s1 + $0xdc0] ss:$16 sps:$4 sm:$0xff]   ;;  %v7850_v21 = vld [vmem:[%s10958_s1 + $0xdc8] ss:$16 sps:$4 sm:$0xff]  }
 0x180   :  { %5047 = vmatprep.subr.bf16.mxu0 %v7765_v22  ;;  %5580 = vmatprep.subr.bf16.mxu1 %v7768_v24  ;;  %v7855_v22 = vld [vmem:[%s10958_s1 + $0xde4] ss:$16 sps:$4 sm:$0xff]   ;;  %v7853_v24 = vld [vmem:[%s10958_s1 + $0xde0] ss:$16 sps:$4 sm:$0xff]  }
 0x182   :  { %5039 = vmatmul.mubr.bf16.vlgmr.msra.gmra.mrb[0].mxu0 %v56_v26  ;;  %5572 = vmatmul.mubr.bf16.vlgmr.msra.gmra.mrb[0].mxu1 %v56_v26  ;;  %v7861_v26 = vld [vmem:[%s10958_s1 + $0xe04] ss:$16 sps:$4 sm:$0xff]  }
 0x183   :  { %5048 = vmatpush1.bf16.msra.mxu0 %v7763_v27  ;;  %5581 = vmatpush1.bf16.msra.mxu1 %v7766_v28  ;;  %v33_v27 = vld [vmem:[%s10959_s0 + $0x60] sm:$0xff]  ;;  %v7864_v28 = vld [vmem:[%s10958_s1 + $0xe0c] ss:$16 sps:$4 sm:$0xff]  }
 0x184   :  { %5049 = vmatprep.subr.bf16.mxu0 %v7771_v29  ;;  %5582 = vmatprep.subr.bf16.mxu1 %v7774_v30  ;;  %v36_v29 = vld [vmem:[%s10959_s0 + $0x78] sm:$0xff]  ;;  %v58_v30 = vpack.c.bf16 %v33_v27, %v33_v27 }
 0x185   :  { %5079 = vmatprep.mubr.bf16.mxu0 %v59_v31  ;;  %5612 = vmatprep.mubr.bf16.mxu1 %v59_v31  ;;  %v7859_v31 = vld [vmem:[%s10958_s1 + $0xe00] ss:$16 sps:$4 sm:$0xff]   ;;  %v7954_v27 = vld [vmem:[%s10958_s1 + $0xfec] ss:$16 sps:$4 sm:$0xff]  }
 0x187   :  { %5050 = vmatpush1.bf16.msra.mxu0 %v7769_v32  ;;  %5583 = vmatpush1.bf16.msra.mxu1 %v7772_v33  ;;  %v7862_v32 = vld [vmem:[%s10958_s1 + $0xe08] ss:$16 sps:$4 sm:$0xff]   ;;  %v7867_v33 = vld [vmem:[%s10958_s1 + $0xe24] ss:$16 sps:$4 sm:$0xff]  }
 0x188   :  { %5051 = vmatprep.subr.bf16.mxu0 %v7777_v34  ;;  %5584 = vmatprep.subr.bf16.mxu1 %v7780_v35  ;;  %v7870_v34 = vld [vmem:[%s10958_s1 + $0xe2c] ss:$16 sps:$4 sm:$0xff]   ;;  %v61_v35 = vpack.c.bf16 %v36_v29, %v36_v29  ;;  %v7952_v29 = vld [vmem:[%s10958_s1 + $0xfe8] ss:$16 sps:$4 sm:$0xff]  }
 0x18b   :  { %5052 = vmatpush1.bf16.msra.mxu0 %v7775_v36  ;;  %5585 = vmatpush1.bf16.msra.mxu1 %v7778_v37  ;;  %v7865_v36 = vld [vmem:[%s10958_s1 + $0xe20] ss:$16 sps:$4 sm:$0xff]   ;;  %v7868_v37 = vld [vmem:[%s10958_s1 + $0xe28] ss:$16 sps:$4 sm:$0xff]  }
 0x18c   :  { %5053 = vmatprep.subr.bf16.mxu0 %v7783_v38  ;;  %5586 = vmatprep.subr.bf16.mxu1 %v7786_v39  ;;  %v7873_v38 = vld [vmem:[%s10958_s1 + $0xe44] ss:$16 sps:$4 sm:$0xff]   ;;  %v7876_v39 = vld [vmem:[%s10958_s1 + $0xe4c] ss:$16 sps:$4 sm:$0xff]  }
 0x18f   :  { %5054 = vmatpush1.bf16.msra.mxu0 %v7781_v40  ;;  %5587 = vmatpush1.bf16.msra.mxu1 %v7784_v41  ;;  %v7871_v40 = vld [vmem:[%s10958_s1 + $0xe40] ss:$16 sps:$4 sm:$0xff]   ;;  %v7874_v41 = vld [vmem:[%s10958_s1 + $0xe48] ss:$16 sps:$4 sm:$0xff]  }
 0x190   :  { %5055 = vmatprep.subr.bf16.mxu0 %v7789_v42  ;;  %5588 = vmatprep.subr.bf16.mxu1 %v7792_v43  ;;  %v7879_v42 = vld [vmem:[%s10958_s1 + $0xe64] ss:$16 sps:$4 sm:$0xff]   ;;  %v7882_v43 = vld [vmem:[%s10958_s1 + $0xe6c] ss:$16 sps:$4 sm:$0xff]  }
 0x193   :  { %5056 = vmatpush1.bf16.msra.mxu0 %v7787_v44  ;;  %5589 = vmatpush1.bf16.msra.mxu1 %v7790_v45  ;;  %v7877_v44 = vld [vmem:[%s10958_s1 + $0xe60] ss:$16 sps:$4 sm:$0xff]   ;;  %v7880_v45 = vld [vmem:[%s10958_s1 + $0xe68] ss:$16 sps:$4 sm:$0xff]  }
 0x194   :  { %5057 = vmatprep.subr.bf16.mxu0 %v7795_v46  ;;  %5590 = vmatprep.subr.bf16.mxu1 %v7798_v47  ;;  %v7885_v46 = vld [vmem:[%s10958_s1 + $0xe84] ss:$16 sps:$4 sm:$0xff]   ;;  %v7888_v47 = vld [vmem:[%s10958_s1 + $0xe8c] ss:$16 sps:$4 sm:$0xff]  }
 0x197   :  { %5058 = vmatpush1.bf16.msra.mxu0 %v7793_v48  ;;  %5591 = vmatpush1.bf16.msra.mxu1 %v7796_v49  ;;  %v7883_v48 = vld [vmem:[%s10958_s1 + $0xe80] ss:$16 sps:$4 sm:$0xff]   ;;  %v7886_v49 = vld [vmem:[%s10958_s1 + $0xe88] ss:$16 sps:$4 sm:$0xff]  }
 0x198   :  { %5059 = vmatprep.subr.bf16.mxu0 %v7801_v50  ;;  %5592 = vmatprep.subr.bf16.mxu1 %v7804_v51  ;;  %v7891_v50 = vld [vmem:[%s10958_s1 + $0xea4] ss:$16 sps:$4 sm:$0xff]   ;;  %v7894_v51 = vld [vmem:[%s10958_s1 + $0xeac] ss:$16 sps:$4 sm:$0xff]  }
 0x19b   :  { %5060 = vmatpush1.bf16.msra.mxu0 %v7799_v52  ;;  %5593 = vmatpush1.bf16.msra.mxu1 %v7802_v53  ;;  %v7889_v52 = vld [vmem:[%s10958_s1 + $0xea0] ss:$16 sps:$4 sm:$0xff]   ;;  %v7892_v53 = vld [vmem:[%s10958_s1 + $0xea8] ss:$16 sps:$4 sm:$0xff]  }
 0x19c   :  { %5061 = vmatprep.subr.bf16.mxu0 %v7807_v54  ;;  %5594 = vmatprep.subr.bf16.mxu1 %v7810_v55  ;;  %v7897_v54 = vld [vmem:[%s10958_s1 + $0xec4] ss:$16 sps:$4 sm:$0xff]   ;;  %v7900_v55 = vld [vmem:[%s10958_s1 + $0xecc] ss:$16 sps:$4 sm:$0xff]  }
 0x19f   :  { %5062 = vmatpush1.bf16.msra.mxu0 %v7805_v56  ;;  %5595 = vmatpush1.bf16.msra.mxu1 %v7808_v57  ;;  %v7895_v56 = vld [vmem:[%s10958_s1 + $0xec0] ss:$16 sps:$4 sm:$0xff]   ;;  %v7898_v57 = vld [vmem:[%s10958_s1 + $0xec8] ss:$16 sps:$4 sm:$0xff]  }
 0x1a0   :  { %5063 = vmatprep.subr.bf16.mxu0 %v7813_v58  ;;  %5596 = vmatprep.subr.bf16.mxu1 %v7816_v59  ;;  %v7903_v58 = vld [vmem:[%s10958_s1 + $0xee4] ss:$16 sps:$4 sm:$0xff]   ;;  %v7906_v59 = vld [vmem:[%s10958_s1 + $0xeec] ss:$16 sps:$4 sm:$0xff]  }
 0x1a3   :  { %5064 = vmatpush1.bf16.msra.mxu0 %v7811_v60  ;;  %5597 = vmatpush1.bf16.msra.mxu1 %v7814_v61  ;;  %v7901_v60 = vld [vmem:[%s10958_s1 + $0xee0] ss:$16 sps:$4 sm:$0xff]   ;;  %v7904_v61 = vld [vmem:[%s10958_s1 + $0xee8] ss:$16 sps:$4 sm:$0xff]  }
 0x1a4   :  { %5065 = vmatprep.subr.bf16.mxu0 %v7819_v62  ;;  %5598 = vmatprep.subr.bf16.mxu1 %v7822_v63  ;;  %v7909_v62 = vld [vmem:[%s10958_s1 + $0xf04] ss:$16 sps:$4 sm:$0xff]   ;;  %v7912_v63 = vld [vmem:[%s10958_s1 + $0xf0c] ss:$16 sps:$4 sm:$0xff]  }
 0x1a7   :  { %5066 = vmatpush1.bf16.msra.mxu0 %v7817_v0  ;;  %5599 = vmatpush1.bf16.msra.mxu1 %v7820_v1  ;;  %v7907_v0 = vld [vmem:[%s10958_s1 + $0xf00] ss:$16 sps:$4 sm:$0xff]   ;;  %v7910_v1 = vld [vmem:[%s10958_s1 + $0xf08] ss:$16 sps:$4 sm:$0xff]  }
 0x1a8   :  { %5067 = vmatprep.subr.bf16.mxu0 %v7825_v2  ;;  %5600 = vmatprep.subr.bf16.mxu1 %v7828_v3  ;;  %v7915_v2 = vld [vmem:[%s10958_s1 + $0xf24] ss:$16 sps:$4 sm:$0xff]   ;;  %v7918_v3 = vld [vmem:[%s10958_s1 + $0xf2c] ss:$16 sps:$4 sm:$0xff]  }
 0x1ab   :  { %5068 = vmatpush1.bf16.msra.mxu0 %v7823_v4  ;;  %5601 = vmatpush1.bf16.msra.mxu1 %v7826_v5  ;;  %v7913_v4 = vld [vmem:[%s10958_s1 + $0xf20] ss:$16 sps:$4 sm:$0xff]   ;;  %v7916_v5 = vld [vmem:[%s10958_s1 + $0xf28] ss:$16 sps:$4 sm:$0xff]  }
 0x1ac   :  { %5069 = vmatprep.subr.bf16.mxu0 %v7831_v6  ;;  %5602 = vmatprep.subr.bf16.mxu1 %v7834_v7  ;;  %v7921_v6 = vld [vmem:[%s10958_s1 + $0xf44] ss:$16 sps:$4 sm:$0xff]   ;;  %v7924_v7 = vld [vmem:[%s10958_s1 + $0xf4c] ss:$16 sps:$4 sm:$0xff]  }
 0x1af   :  { %5070 = vmatpush1.bf16.msra.mxu0 %v7829_v8  ;;  %5603 = vmatpush1.bf16.msra.mxu1 %v7832_v9  ;;  %v7919_v8 = vld [vmem:[%s10958_s1 + $0xf40] ss:$16 sps:$4 sm:$0xff]   ;;  %v7922_v9 = vld [vmem:[%s10958_s1 + $0xf48] ss:$16 sps:$4 sm:$0xff]  }
 0x1b0   :  { %5071 = vmatprep.subr.bf16.mxu0 %v7837_v10  ;;  %5604 = vmatprep.subr.bf16.mxu1 %v7840_v11  ;;  %v7927_v10 = vld [vmem:[%s10958_s1 + $0xf64] ss:$16 sps:$4 sm:$0xff]   ;;  %v7930_v11 = vld [vmem:[%s10958_s1 + $0xf6c] ss:$16 sps:$4 sm:$0xff]  }
 0x1b3   :  { %5072 = vmatpush1.bf16.msra.mxu0 %v7835_v12  ;;  %5605 = vmatpush1.bf16.msra.mxu1 %v7838_v13  ;;  %v7925_v12 = vld [vmem:[%s10958_s1 + $0xf60] ss:$16 sps:$4 sm:$0xff]   ;;  %v7928_v13 = vld [vmem:[%s10958_s1 + $0xf68] ss:$16 sps:$4 sm:$0xff]  }
 0x1b4   :  { %5073 = vmatprep.subr.bf16.mxu0 %v7843_v14  ;;  %5606 = vmatprep.subr.bf16.mxu1 %v7846_v15  ;;  %v7933_v14 = vld [vmem:[%s10958_s1 + $0xf84] ss:$16 sps:$4 sm:$0xff]   ;;  %v7936_v15 = vld [vmem:[%s10958_s1 + $0xf8c] ss:$16 sps:$4 sm:$0xff]  }
 0x1b7   :  { %5074 = vmatpush1.bf16.msra.mxu0 %v7841_v16  ;;  %5607 = vmatpush1.bf16.msra.mxu1 %v7844_v17  ;;  %v7931_v16 = vld [vmem:[%s10958_s1 + $0xf80] ss:$16 sps:$4 sm:$0xff]   ;;  %v7934_v17 = vld [vmem:[%s10958_s1 + $0xf88] ss:$16 sps:$4 sm:$0xff]  }
 0x1b8   :  { %5075 = vmatprep.subr.bf16.mxu0 %v7849_v18  ;;  %5608 = vmatprep.subr.bf16.mxu1 %v7852_v19  ;;  %v7939_v18 = vld [vmem:[%s10958_s1 + $0xfa4] ss:$16 sps:$4 sm:$0xff]   ;;  %v7942_v19 = vld [vmem:[%s10958_s1 + $0xfac] ss:$16 sps:$4 sm:$0xff]  }
 0x1bb   :  { %5076 = vmatpush1.bf16.msra.mxu0 %v7847_v20  ;;  %5609 = vmatpush1.bf16.msra.mxu1 %v7850_v21  ;;  %v7937_v20 = vld [vmem:[%s10958_s1 + $0xfa0] ss:$16 sps:$4 sm:$0xff]   ;;  %v7940_v21 = vld [vmem:[%s10958_s1 + $0xfa8] ss:$16 sps:$4 sm:$0xff]  }
 0x1bc   :  { %5077 = vmatprep.subr.bf16.mxu0 %v7855_v22  ;;  %5610 = vmatprep.subr.bf16.mxu1 %v7858_v23  ;;  %v7945_v22 = vld [vmem:[%s10958_s1 + $0xfc4] ss:$16 sps:$4 sm:$0xff]   ;;  %v7948_v23 = vld [vmem:[%s10958_s1 + $0xfcc] ss:$16 sps:$4 sm:$0xff]  }
 0x1bf   :  { %5078 = vmatpush1.bf16.msra.mxu0 %v7853_v24  ;;  %5611 = vmatpush1.bf16.msra.mxu1 %v7856_v25  ;;  %v7943_v24 = vld [vmem:[%s10958_s1 + $0xfc0] ss:$16 sps:$4 sm:$0xff]   ;;  %v7946_v25 = vld [vmem:[%s10958_s1 + $0xfc8] ss:$16 sps:$4 sm:$0xff]  }
 0x1c0   :  { %5088 = vmatprep.subr.bf16.mxu0 %v7861_v26  ;;  %5621 = vmatprep.subr.bf16.mxu1 %v7864_v28  ;;  %v7951_v26 = vld [vmem:[%s10958_s1 + $0xfe4] ss:$16 sps:$4 sm:$0xff]   ;;  %v7949_v28 = vld [vmem:[%s10958_s1 + $0xfe0] ss:$16 sps:$4 sm:$0xff]  }
 0x1c2   :  { %5080 = vmatmul.mubr.bf16.vlgmr.msra.gmra.mrb[0].mxu0 %v58_v30  ;;  %5613 = vmatmul.mubr.bf16.vlgmr.msra.gmra.mrb[0].mxu1 %v58_v30  ;;  %v35_v30 = vld [vmem:[%s10959_s0 + $0x70] sm:$0xff] }
 0x1c3   :  { %5089 = vmatpush1.bf16.msra.mxu0 %v7859_v31  ;;  %5622 = vmatpush1.bf16.msra.mxu1 %v7862_v32  ;;  %v7957_v31 = vld [vmem:[%s10958_s1 + $0x1004] ss:$16 sps:$4 sm:$0xff]   ;;  %v7960_v32 = vld [vmem:[%s10958_s1 + $0x100c] ss:$16 sps:$4 sm:$0xff]  }
 0x1c4   :  { %5090 = vmatprep.subr.bf16.mxu0 %v7867_v33  ;;  %5623 = vmatprep.subr.bf16.mxu1 %v7870_v34  ;;  %v60_v33 = vpack.c.bf16 %v35_v30, %v35_v30  ;;  %v38_v34 = vld [vmem:[%s10959_s0 + $0x88] sm:$0xff]  ;;  %v8047_v30 = vld [vmem:[%s10958_s1 + $0x11e4] ss:$16 sps:$4 sm:$0xff]  }
 0x1c5   :  { %5120 = vmatprep.mubr.bf16.mxu0 %v61_v35  ;;  %5653 = vmatprep.mubr.bf16.mxu1 %v61_v35  ;;  %v7955_v35 = vld [vmem:[%s10958_s1 + $0x1000] ss:$16 sps:$4 sm:$0xff]  }
 0x1c7   :  { %5091 = vmatpush1.bf16.msra.mxu0 %v7865_v36  ;;  %5624 = vmatpush1.bf16.msra.mxu1 %v7868_v37  ;;  %v7958_v36 = vld [vmem:[%s10958_s1 + $0x1008] ss:$16 sps:$4 sm:$0xff]   ;;  %v7963_v37 = vld [vmem:[%s10958_s1 + $0x1024] ss:$16 sps:$4 sm:$0xff]  }
 0x1c8   :  { %5092 = vmatprep.subr.bf16.mxu0 %v7873_v38  ;;  %5625 = vmatprep.subr.bf16.mxu1 %v7876_v39  ;;  %v7966_v38 = vld [vmem:[%s10958_s1 + $0x102c] ss:$16 sps:$4 sm:$0xff]   ;;  %v63_v39 = vpack.c.bf16 %v38_v34, %v38_v34  ;;  %v37_v34 = vld [vmem:[%s10959_s0 + $0x80] sm:$0xff] }
 0x1cb   :  { %5093 = vmatpush1.bf16.msra.mxu0 %v7871_v40  ;;  %5626 = vmatpush1.bf16.msra.mxu1 %v7874_v41  ;;  %v7961_v40 = vld [vmem:[%s10958_s1 + $0x1020] ss:$16 sps:$4 sm:$0xff]   ;;  %v7964_v41 = vld [vmem:[%s10958_s1 + $0x1028] ss:$16 sps:$4 sm:$0xff]  }
 0x1cc   :  { %5094 = vmatprep.subr.bf16.mxu0 %v7879_v42  ;;  %5627 = vmatprep.subr.bf16.mxu1 %v7882_v43  ;;  %v7969_v42 = vld [vmem:[%s10958_s1 + $0x1044] ss:$16 sps:$4 sm:$0xff]   ;;  %v7972_v43 = vld [vmem:[%s10958_s1 + $0x104c] ss:$16 sps:$4 sm:$0xff]  }
 0x1cf   :  { %5095 = vmatpush1.bf16.msra.mxu0 %v7877_v44  ;;  %5628 = vmatpush1.bf16.msra.mxu1 %v7880_v45  ;;  %v7967_v44 = vld [vmem:[%s10958_s1 + $0x1040] ss:$16 sps:$4 sm:$0xff]   ;;  %v7970_v45 = vld [vmem:[%s10958_s1 + $0x1048] ss:$16 sps:$4 sm:$0xff]  }
 0x1d0   :  { %5096 = vmatprep.subr.bf16.mxu0 %v7885_v46  ;;  %5629 = vmatprep.subr.bf16.mxu1 %v7888_v47  ;;  %v7975_v46 = vld [vmem:[%s10958_s1 + $0x1064] ss:$16 sps:$4 sm:$0xff]   ;;  %v7978_v47 = vld [vmem:[%s10958_s1 + $0x106c] ss:$16 sps:$4 sm:$0xff]  }
 0x1d3   :  { %5097 = vmatpush1.bf16.msra.mxu0 %v7883_v48  ;;  %5630 = vmatpush1.bf16.msra.mxu1 %v7886_v49  ;;  %v7973_v48 = vld [vmem:[%s10958_s1 + $0x1060] ss:$16 sps:$4 sm:$0xff]   ;;  %v7976_v49 = vld [vmem:[%s10958_s1 + $0x1068] ss:$16 sps:$4 sm:$0xff]  }
 0x1d4   :  { %5098 = vmatprep.subr.bf16.mxu0 %v7891_v50  ;;  %5631 = vmatprep.subr.bf16.mxu1 %v7894_v51  ;;  %v7981_v50 = vld [vmem:[%s10958_s1 + $0x1084] ss:$16 sps:$4 sm:$0xff]   ;;  %v7984_v51 = vld [vmem:[%s10958_s1 + $0x108c] ss:$16 sps:$4 sm:$0xff]  }
 0x1d7   :  { %5099 = vmatpush1.bf16.msra.mxu0 %v7889_v52  ;;  %5632 = vmatpush1.bf16.msra.mxu1 %v7892_v53  ;;  %v7979_v52 = vld [vmem:[%s10958_s1 + $0x1080] ss:$16 sps:$4 sm:$0xff]   ;;  %v7982_v53 = vld [vmem:[%s10958_s1 + $0x1088] ss:$16 sps:$4 sm:$0xff]  }
 0x1d8   :  { %5100 = vmatprep.subr.bf16.mxu0 %v7897_v54  ;;  %5633 = vmatprep.subr.bf16.mxu1 %v7900_v55  ;;  %v7987_v54 = vld [vmem:[%s10958_s1 + $0x10a4] ss:$16 sps:$4 sm:$0xff]   ;;  %v7990_v55 = vld [vmem:[%s10958_s1 + $0x10ac] ss:$16 sps:$4 sm:$0xff]  }
 0x1db   :  { %5101 = vmatpush1.bf16.msra.mxu0 %v7895_v56  ;;  %5634 = vmatpush1.bf16.msra.mxu1 %v7898_v57  ;;  %v7985_v56 = vld [vmem:[%s10958_s1 + $0x10a0] ss:$16 sps:$4 sm:$0xff]   ;;  %v7988_v57 = vld [vmem:[%s10958_s1 + $0x10a8] ss:$16 sps:$4 sm:$0xff]  }
 0x1dc   :  { %5102 = vmatprep.subr.bf16.mxu0 %v7903_v58  ;;  %5635 = vmatprep.subr.bf16.mxu1 %v7906_v59  ;;  %v7993_v58 = vld [vmem:[%s10958_s1 + $0x10c4] ss:$16 sps:$4 sm:$0xff]   ;;  %v7996_v59 = vld [vmem:[%s10958_s1 + $0x10cc] ss:$16 sps:$4 sm:$0xff]  }
 0x1df   :  { %5103 = vmatpush1.bf16.msra.mxu0 %v7901_v60  ;;  %5636 = vmatpush1.bf16.msra.mxu1 %v7904_v61  ;;  %v7991_v60 = vld [vmem:[%s10958_s1 + $0x10c0] ss:$16 sps:$4 sm:$0xff]   ;;  %v7994_v61 = vld [vmem:[%s10958_s1 + $0x10c8] ss:$16 sps:$4 sm:$0xff]  }
 0x1e0   :  { %5104 = vmatprep.subr.bf16.mxu0 %v7909_v62  ;;  %5637 = vmatprep.subr.bf16.mxu1 %v7912_v63  ;;  %v7999_v62 = vld [vmem:[%s10958_s1 + $0x10e4] ss:$16 sps:$4 sm:$0xff]   ;;  %v8002_v63 = vld [vmem:[%s10958_s1 + $0x10ec] ss:$16 sps:$4 sm:$0xff]  }
 0x1e3   :  { %5105 = vmatpush1.bf16.msra.mxu0 %v7907_v0  ;;  %5638 = vmatpush1.bf16.msra.mxu1 %v7910_v1  ;;  %v7997_v0 = vld [vmem:[%s10958_s1 + $0x10e0] ss:$16 sps:$4 sm:$0xff]   ;;  %v8000_v1 = vld [vmem:[%s10958_s1 + $0x10e8] ss:$16 sps:$4 sm:$0xff]  }
 0x1e4   :  { %5106 = vmatprep.subr.bf16.mxu0 %v7915_v2  ;;  %5639 = vmatprep.subr.bf16.mxu1 %v7918_v3  ;;  %v8005_v2 = vld [vmem:[%s10958_s1 + $0x1104] ss:$16 sps:$4 sm:$0xff]   ;;  %v8008_v3 = vld [vmem:[%s10958_s1 + $0x110c] ss:$16 sps:$4 sm:$0xff]  }
 0x1e7   :  { %5107 = vmatpush1.bf16.msra.mxu0 %v7913_v4  ;;  %5640 = vmatpush1.bf16.msra.mxu1 %v7916_v5  ;;  %v8003_v4 = vld [vmem:[%s10958_s1 + $0x1100] ss:$16 sps:$4 sm:$0xff]   ;;  %v8006_v5 = vld [vmem:[%s10958_s1 + $0x1108] ss:$16 sps:$4 sm:$0xff]  }
 0x1e8   :  { %5108 = vmatprep.subr.bf16.mxu0 %v7921_v6  ;;  %5641 = vmatprep.subr.bf16.mxu1 %v7924_v7  ;;  %v8011_v6 = vld [vmem:[%s10958_s1 + $0x1124] ss:$16 sps:$4 sm:$0xff]   ;;  %v8014_v7 = vld [vmem:[%s10958_s1 + $0x112c] ss:$16 sps:$4 sm:$0xff]  }
 0x1eb   :  { %5109 = vmatpush1.bf16.msra.mxu0 %v7919_v8  ;;  %5642 = vmatpush1.bf16.msra.mxu1 %v7922_v9  ;;  %v8009_v8 = vld [vmem:[%s10958_s1 + $0x1120] ss:$16 sps:$4 sm:$0xff]   ;;  %v8012_v9 = vld [vmem:[%s10958_s1 + $0x1128] ss:$16 sps:$4 sm:$0xff]  }
 0x1ec   :  { %5110 = vmatprep.subr.bf16.mxu0 %v7927_v10  ;;  %5643 = vmatprep.subr.bf16.mxu1 %v7930_v11  ;;  %v8017_v10 = vld [vmem:[%s10958_s1 + $0x1144] ss:$16 sps:$4 sm:$0xff]   ;;  %v8020_v11 = vld [vmem:[%s10958_s1 + $0x114c] ss:$16 sps:$4 sm:$0xff]  }
 0x1ef   :  { %5111 = vmatpush1.bf16.msra.mxu0 %v7925_v12  ;;  %5644 = vmatpush1.bf16.msra.mxu1 %v7928_v13  ;;  %v8015_v12 = vld [vmem:[%s10958_s1 + $0x1140] ss:$16 sps:$4 sm:$0xff]   ;;  %v8018_v13 = vld [vmem:[%s10958_s1 + $0x1148] ss:$16 sps:$4 sm:$0xff]  }
 0x1f0   :  { %5112 = vmatprep.subr.bf16.mxu0 %v7933_v14  ;;  %5645 = vmatprep.subr.bf16.mxu1 %v7936_v15  ;;  %v8023_v14 = vld [vmem:[%s10958_s1 + $0x1164] ss:$16 sps:$4 sm:$0xff]   ;;  %v8026_v15 = vld [vmem:[%s10958_s1 + $0x116c] ss:$16 sps:$4 sm:$0xff]  }
 0x1f3   :  { %5113 = vmatpush1.bf16.msra.mxu0 %v7931_v16  ;;  %5646 = vmatpush1.bf16.msra.mxu1 %v7934_v17  ;;  %v8021_v16 = vld [vmem:[%s10958_s1 + $0x1160] ss:$16 sps:$4 sm:$0xff]   ;;  %v8024_v17 = vld [vmem:[%s10958_s1 + $0x1168] ss:$16 sps:$4 sm:$0xff]  }
 0x1f4   :  { %5114 = vmatprep.subr.bf16.mxu0 %v7939_v18  ;;  %5647 = vmatprep.subr.bf16.mxu1 %v7942_v19  ;;  %v8029_v18 = vld [vmem:[%s10958_s1 + $0x1184] ss:$16 sps:$4 sm:$0xff]   ;;  %v8032_v19 = vld [vmem:[%s10958_s1 + $0x118c] ss:$16 sps:$4 sm:$0xff]  }
 0x1f7   :  { %5115 = vmatpush1.bf16.msra.mxu0 %v7937_v20  ;;  %5648 = vmatpush1.bf16.msra.mxu1 %v7940_v21  ;;  %v8027_v20 = vld [vmem:[%s10958_s1 + $0x1180] ss:$16 sps:$4 sm:$0xff]   ;;  %v8030_v21 = vld [vmem:[%s10958_s1 + $0x1188] ss:$16 sps:$4 sm:$0xff]  }
 0x1f8   :  { %5116 = vmatprep.subr.bf16.mxu0 %v7945_v22  ;;  %5649 = vmatprep.subr.bf16.mxu1 %v7948_v23  ;;  %v8035_v22 = vld [vmem:[%s10958_s1 + $0x11a4] ss:$16 sps:$4 sm:$0xff]   ;;  %v8038_v23 = vld [vmem:[%s10958_s1 + $0x11ac] ss:$16 sps:$4 sm:$0xff]  }
 0x1fb   :  { %5117 = vmatpush1.bf16.msra.mxu0 %v7943_v24  ;;  %5650 = vmatpush1.bf16.msra.mxu1 %v7946_v25  ;;  %v8033_v24 = vld [vmem:[%s10958_s1 + $0x11a0] ss:$16 sps:$4 sm:$0xff]   ;;  %v8036_v25 = vld [vmem:[%s10958_s1 + $0x11a8] ss:$16 sps:$4 sm:$0xff]  }
 0x1fc   :  { %5118 = vmatprep.subr.bf16.mxu0 %v7951_v26  ;;  %5651 = vmatprep.subr.bf16.mxu1 %v7954_v27  ;;  %v8041_v26 = vld [vmem:[%s10958_s1 + $0x11c4] ss:$16 sps:$4 sm:$0xff]   ;;  %v8044_v27 = vld [vmem:[%s10958_s1 + $0x11cc] ss:$16 sps:$4 sm:$0xff]  }
 0x1ff   :  { %5119 = vmatpush1.bf16.msra.mxu0 %v7949_v28  ;;  %5652 = vmatpush1.bf16.msra.mxu1 %v7952_v29  ;;  %v8039_v28 = vld [vmem:[%s10958_s1 + $0x11c0] ss:$16 sps:$4 sm:$0xff]   ;;  %v8042_v29 = vld [vmem:[%s10958_s1 + $0x11c8] ss:$16 sps:$4 sm:$0xff]  }
 0x200   :  { %5129 = vmatprep.subr.bf16.mxu0 %v7957_v31  ;;  %5662 = vmatprep.subr.bf16.mxu1 %v7960_v32  ;;  %v8050_v31 = vld [vmem:[%s10958_s1 + $0x11ec] ss:$16 sps:$4 sm:$0xff]   ;;  %v8045_v32 = vld [vmem:[%s10958_s1 + $0x11e0] ss:$16 sps:$4 sm:$0xff]  }
 0x202   :  { %5121 = vmatmul.mubr.bf16.vlgmr.msra.gmra.mrb[0].mxu0 %v60_v33  ;;  %5654 = vmatmul.mubr.bf16.vlgmr.msra.gmra.mrb[0].mxu1 %v60_v33  ;;  %v8048_v33 = vld [vmem:[%s10958_s1 + $0x11e8] ss:$16 sps:$4 sm:$0xff]  }
 0x203   :  { %5130 = vmatpush1.bf16.msra.mxu0 %v7955_v35  ;;  %5663 = vmatpush1.bf16.msra.mxu1 %v7958_v36  ;;  %v8053_v35 = vld [vmem:[%s10958_s1 + $0x1204] ss:$16 sps:$4 sm:$0xff]   ;;  %v8056_v36 = vld [vmem:[%s10958_s1 + $0x120c] ss:$16 sps:$4 sm:$0xff]  }
 0x204   :  { %5131 = vmatprep.subr.bf16.mxu0 %v7963_v37  ;;  %5664 = vmatprep.subr.bf16.mxu1 %v7966_v38  ;;  %v62_v37 = vpack.c.bf16 %v37_v34, %v37_v34  ;;  %v40_v38 = vld [vmem:[%s10959_s0 + $0x98] sm:$0xff]  ;;  %v8143_v34 = vld [vmem:[%s10958_s1 + $0x13e4] ss:$16 sps:$4 sm:$0xff]  }
 0x205   :  { %5161 = vmatprep.mubr.bf16.mxu0 %v63_v39  ;;  %5694 = vmatprep.mubr.bf16.mxu1 %v63_v39  ;;  %v8051_v39 = vld [vmem:[%s10958_s1 + $0x1200] ss:$16 sps:$4 sm:$0xff]  }
 0x207   :  { %5132 = vmatpush1.bf16.msra.mxu0 %v7961_v40  ;;  %5665 = vmatpush1.bf16.msra.mxu1 %v7964_v41  ;;  %v8054_v40 = vld [vmem:[%s10958_s1 + $0x1208] ss:$16 sps:$4 sm:$0xff]   ;;  %v8059_v41 = vld [vmem:[%s10958_s1 + $0x1224] ss:$16 sps:$4 sm:$0xff]  }
 0x208   :  { %5133 = vmatprep.subr.bf16.mxu0 %v7969_v42  ;;  %5666 = vmatprep.subr.bf16.mxu1 %v7972_v43  ;;  %v8062_v42 = vld [vmem:[%s10958_s1 + $0x122c] ss:$16 sps:$4 sm:$0xff]   ;;  %v65_v43 = vpack.c.bf16 %v40_v38, %v40_v38  ;;  %v39_v38 = vld [vmem:[%s10959_s0 + $0x90] sm:$0xff] }
 0x20b   :  { %5134 = vmatpush1.bf16.msra.mxu0 %v7967_v44  ;;  %5667 = vmatpush1.bf16.msra.mxu1 %v7970_v45  ;;  %v8057_v44 = vld [vmem:[%s10958_s1 + $0x1220] ss:$16 sps:$4 sm:$0xff]   ;;  %v8060_v45 = vld [vmem:[%s10958_s1 + $0x1228] ss:$16 sps:$4 sm:$0xff]  }
 0x20c   :  { %5135 = vmatprep.subr.bf16.mxu0 %v7975_v46  ;;  %5668 = vmatprep.subr.bf16.mxu1 %v7978_v47  ;;  %v8065_v46 = vld [vmem:[%s10958_s1 + $0x1244] ss:$16 sps:$4 sm:$0xff]   ;;  %v8068_v47 = vld [vmem:[%s10958_s1 + $0x124c] ss:$16 sps:$4 sm:$0xff]  }
 0x20f   :  { %5136 = vmatpush1.bf16.msra.mxu0 %v7973_v48  ;;  %5669 = vmatpush1.bf16.msra.mxu1 %v7976_v49  ;;  %v8063_v48 = vld [vmem:[%s10958_s1 + $0x1240] ss:$16 sps:$4 sm:$0xff]   ;;  %v8066_v49 = vld [vmem:[%s10958_s1 + $0x1248] ss:$16 sps:$4 sm:$0xff]  }
 0x210   :  { %5137 = vmatprep.subr.bf16.mxu0 %v7981_v50  ;;  %5670 = vmatprep.subr.bf16.mxu1 %v7984_v51  ;;  %v8071_v50 = vld [vmem:[%s10958_s1 + $0x1264] ss:$16 sps:$4 sm:$0xff]   ;;  %v8074_v51 = vld [vmem:[%s10958_s1 + $0x126c] ss:$16 sps:$4 sm:$0xff]  }
 0x213   :  { %5138 = vmatpush1.bf16.msra.mxu0 %v7979_v52  ;;  %5671 = vmatpush1.bf16.msra.mxu1 %v7982_v53  ;;  %v8069_v52 = vld [vmem:[%s10958_s1 + $0x1260] ss:$16 sps:$4 sm:$0xff]   ;;  %v8072_v53 = vld [vmem:[%s10958_s1 + $0x1268] ss:$16 sps:$4 sm:$0xff]  }
 0x214   :  { %5139 = vmatprep.subr.bf16.mxu0 %v7987_v54  ;;  %5672 = vmatprep.subr.bf16.mxu1 %v7990_v55  ;;  %v8077_v54 = vld [vmem:[%s10958_s1 + $0x1284] ss:$16 sps:$4 sm:$0xff]   ;;  %v8080_v55 = vld [vmem:[%s10958_s1 + $0x128c] ss:$16 sps:$4 sm:$0xff]  }
 0x217   :  { %5140 = vmatpush1.bf16.msra.mxu0 %v7985_v56  ;;  %5673 = vmatpush1.bf16.msra.mxu1 %v7988_v57  ;;  %v8075_v56 = vld [vmem:[%s10958_s1 + $0x1280] ss:$16 sps:$4 sm:$0xff]   ;;  %v8078_v57 = vld [vmem:[%s10958_s1 + $0x1288] ss:$16 sps:$4 sm:$0xff]  }
 0x218   :  { %5141 = vmatprep.subr.bf16.mxu0 %v7993_v58  ;;  %5674 = vmatprep.subr.bf16.mxu1 %v7996_v59  ;;  %v8083_v58 = vld [vmem:[%s10958_s1 + $0x12a4] ss:$16 sps:$4 sm:$0xff]   ;;  %v8086_v59 = vld [vmem:[%s10958_s1 + $0x12ac] ss:$16 sps:$4 sm:$0xff]  }
 0x21b   :  { %5142 = vmatpush1.bf16.msra.mxu0 %v7991_v60  ;;  %5675 = vmatpush1.bf16.msra.mxu1 %v7994_v61  ;;  %v8081_v60 = vld [vmem:[%s10958_s1 + $0x12a0] ss:$16 sps:$4 sm:$0xff]   ;;  %v8084_v61 = vld [vmem:[%s10958_s1 + $0x12a8] ss:$16 sps:$4 sm:$0xff]  }
 0x21c   :  { %5143 = vmatprep.subr.bf16.mxu0 %v7999_v62  ;;  %5676 = vmatprep.subr.bf16.mxu1 %v8002_v63  ;;  %v8089_v62 = vld [vmem:[%s10958_s1 + $0x12c4] ss:$16 sps:$4 sm:$0xff]   ;;  %v8092_v63 = vld [vmem:[%s10958_s1 + $0x12cc] ss:$16 sps:$4 sm:$0xff]  }
 0x21f   :  { %5144 = vmatpush1.bf16.msra.mxu0 %v7997_v0  ;;  %5677 = vmatpush1.bf16.msra.mxu1 %v8000_v1  ;;  %v8087_v0 = vld [vmem:[%s10958_s1 + $0x12c0] ss:$16 sps:$4 sm:$0xff]   ;;  %v8090_v1 = vld [vmem:[%s10958_s1 + $0x12c8] ss:$16 sps:$4 sm:$0xff]  }
 0x220   :  { %5145 = vmatprep.subr.bf16.mxu0 %v8005_v2  ;;  %5678 = vmatprep.subr.bf16.mxu1 %v8008_v3  ;;  %v8095_v2 = vld [vmem:[%s10958_s1 + $0x12e4] ss:$16 sps:$4 sm:$0xff]   ;;  %v8098_v3 = vld [vmem:[%s10958_s1 + $0x12ec] ss:$16 sps:$4 sm:$0xff]  }
 0x223   :  { %5146 = vmatpush1.bf16.msra.mxu0 %v8003_v4  ;;  %5679 = vmatpush1.bf16.msra.mxu1 %v8006_v5  ;;  %v8093_v4 = vld [vmem:[%s10958_s1 + $0x12e0] ss:$16 sps:$4 sm:$0xff]   ;;  %v8096_v5 = vld [vmem:[%s10958_s1 + $0x12e8] ss:$16 sps:$4 sm:$0xff]  }
 0x224   :  { %5147 = vmatprep.subr.bf16.mxu0 %v8011_v6  ;;  %5680 = vmatprep.subr.bf16.mxu1 %v8014_v7  ;;  %v8101_v6 = vld [vmem:[%s10958_s1 + $0x1304] ss:$16 sps:$4 sm:$0xff]   ;;  %v8104_v7 = vld [vmem:[%s10958_s1 + $0x130c] ss:$16 sps:$4 sm:$0xff]  }
 0x227   :  { %5148 = vmatpush1.bf16.msra.mxu0 %v8009_v8  ;;  %5681 = vmatpush1.bf16.msra.mxu1 %v8012_v9  ;;  %v8099_v8 = vld [vmem:[%s10958_s1 + $0x1300] ss:$16 sps:$4 sm:$0xff]   ;;  %v8102_v9 = vld [vmem:[%s10958_s1 + $0x1308] ss:$16 sps:$4 sm:$0xff]  }
 0x228   :  { %5149 = vmatprep.subr.bf16.mxu0 %v8017_v10  ;;  %5682 = vmatprep.subr.bf16.mxu1 %v8020_v11  ;;  %v8107_v10 = vld [vmem:[%s10958_s1 + $0x1324] ss:$16 sps:$4 sm:$0xff]   ;;  %v8110_v11 = vld [vmem:[%s10958_s1 + $0x132c] ss:$16 sps:$4 sm:$0xff]  }
 0x22b   :  { %5150 = vmatpush1.bf16.msra.mxu0 %v8015_v12  ;;  %5683 = vmatpush1.bf16.msra.mxu1 %v8018_v13  ;;  %v8105_v12 = vld [vmem:[%s10958_s1 + $0x1320] ss:$16 sps:$4 sm:$0xff]   ;;  %v8108_v13 = vld [vmem:[%s10958_s1 + $0x1328] ss:$16 sps:$4 sm:$0xff]  }
 0x22c   :  { %5151 = vmatprep.subr.bf16.mxu0 %v8023_v14  ;;  %5684 = vmatprep.subr.bf16.mxu1 %v8026_v15  ;;  %v8113_v14 = vld [vmem:[%s10958_s1 + $0x1344] ss:$16 sps:$4 sm:$0xff]   ;;  %v8116_v15 = vld [vmem:[%s10958_s1 + $0x134c] ss:$16 sps:$4 sm:$0xff]  }
 0x22f   :  { %5152 = vmatpush1.bf16.msra.mxu0 %v8021_v16  ;;  %5685 = vmatpush1.bf16.msra.mxu1 %v8024_v17  ;;  %v8111_v16 = vld [vmem:[%s10958_s1 + $0x1340] ss:$16 sps:$4 sm:$0xff]   ;;  %v8114_v17 = vld [vmem:[%s10958_s1 + $0x1348] ss:$16 sps:$4 sm:$0xff]  }
 0x230   :  { %5153 = vmatprep.subr.bf16.mxu0 %v8029_v18  ;;  %5686 = vmatprep.subr.bf16.mxu1 %v8032_v19  ;;  %v8119_v18 = vld [vmem:[%s10958_s1 + $0x1364] ss:$16 sps:$4 sm:$0xff]   ;;  %v8122_v19 = vld [vmem:[%s10958_s1 + $0x136c] ss:$16 sps:$4 sm:$0xff]  }
 0x233   :  { %5154 = vmatpush1.bf16.msra.mxu0 %v8027_v20  ;;  %5687 = vmatpush1.bf16.msra.mxu1 %v8030_v21  ;;  %v8117_v20 = vld [vmem:[%s10958_s1 + $0x1360] ss:$16 sps:$4 sm:$0xff]   ;;  %v8120_v21 = vld [vmem:[%s10958_s1 + $0x1368] ss:$16 sps:$4 sm:$0xff]  }
 0x234   :  { %5155 = vmatprep.subr.bf16.mxu0 %v8035_v22  ;;  %5688 = vmatprep.subr.bf16.mxu1 %v8038_v23  ;;  %v8125_v22 = vld [vmem:[%s10958_s1 + $0x1384] ss:$16 sps:$4 sm:$0xff]   ;;  %v8128_v23 = vld [vmem:[%s10958_s1 + $0x138c] ss:$16 sps:$4 sm:$0xff]  }
 0x237   :  { %5156 = vmatpush1.bf16.msra.mxu0 %v8033_v24  ;;  %5689 = vmatpush1.bf16.msra.mxu1 %v8036_v25  ;;  %v8123_v24 = vld [vmem:[%s10958_s1 + $0x1380] ss:$16 sps:$4 sm:$0xff]   ;;  %v8126_v25 = vld [vmem:[%s10958_s1 + $0x1388] ss:$16 sps:$4 sm:$0xff]  }
 0x238   :  { %5157 = vmatprep.subr.bf16.mxu0 %v8041_v26  ;;  %5690 = vmatprep.subr.bf16.mxu1 %v8044_v27  ;;  %v8131_v26 = vld [vmem:[%s10958_s1 + $0x13a4] ss:$16 sps:$4 sm:$0xff]   ;;  %v8134_v27 = vld [vmem:[%s10958_s1 + $0x13ac] ss:$16 sps:$4 sm:$0xff]  }
 0x23b   :  { %5158 = vmatpush1.bf16.msra.mxu0 %v8039_v28  ;;  %5691 = vmatpush1.bf16.msra.mxu1 %v8042_v29  ;;  %v8129_v28 = vld [vmem:[%s10958_s1 + $0x13a0] ss:$16 sps:$4 sm:$0xff]   ;;  %v8132_v29 = vld [vmem:[%s10958_s1 + $0x13a8] ss:$16 sps:$4 sm:$0xff]  }
 0x23c   :  { %5159 = vmatprep.subr.bf16.mxu0 %v8047_v30  ;;  %5692 = vmatprep.subr.bf16.mxu1 %v8050_v31  ;;  %v8137_v30 = vld [vmem:[%s10958_s1 + $0x13c4] ss:$16 sps:$4 sm:$0xff]   ;;  %v8140_v31 = vld [vmem:[%s10958_s1 + $0x13cc] ss:$16 sps:$4 sm:$0xff]  }
 0x23f   :  { %5160 = vmatpush1.bf16.msra.mxu0 %v8045_v32  ;;  %5693 = vmatpush1.bf16.msra.mxu1 %v8048_v33  ;;  %v8135_v32 = vld [vmem:[%s10958_s1 + $0x13c0] ss:$16 sps:$4 sm:$0xff]   ;;  %v8138_v33 = vld [vmem:[%s10958_s1 + $0x13c8] ss:$16 sps:$4 sm:$0xff]  }
 0x240   :  { %5170 = vmatprep.subr.bf16.mxu0 %v8053_v35  ;;  %5703 = vmatprep.subr.bf16.mxu1 %v8056_v36  ;;  %v8146_v35 = vld [vmem:[%s10958_s1 + $0x13ec] ss:$16 sps:$4 sm:$0xff]   ;;  %v8141_v36 = vld [vmem:[%s10958_s1 + $0x13e0] ss:$16 sps:$4 sm:$0xff]  }
 0x242   :  { %5162 = vmatmul.mubr.bf16.vlgmr.msra.gmra.mrb[0].mxu0 %v62_v37  ;;  %5695 = vmatmul.mubr.bf16.vlgmr.msra.gmra.mrb[0].mxu1 %v62_v37  ;;  %v8144_v37 = vld [vmem:[%s10958_s1 + $0x13e8] ss:$16 sps:$4 sm:$0xff]  }
 0x243   :  { %5171 = vmatpush1.bf16.msra.mxu0 %v8051_v39  ;;  %5704 = vmatpush1.bf16.msra.mxu1 %v8054_v40  ;;  %v8149_v39 = vld [vmem:[%s10958_s1 + $0x1404] ss:$16 sps:$4 sm:$0xff]   ;;  %v8152_v40 = vld [vmem:[%s10958_s1 + $0x140c] ss:$16 sps:$4 sm:$0xff]  }
 0x244   :  { %5172 = vmatprep.subr.bf16.mxu0 %v8059_v41  ;;  %5705 = vmatprep.subr.bf16.mxu1 %v8062_v42  ;;  %v64_v41 = vpack.c.bf16 %v39_v38, %v39_v38  ;;  %v42_v42 = vld [vmem:[%s10959_s0 + $0xa8] sm:$0xff]  ;;  %v8239_v38 = vld [vmem:[%s10958_s1 + $0x15e4] ss:$16 sps:$4 sm:$0xff]  }
 0x245   :  { %5202 = vmatprep.mubr.bf16.mxu0 %v65_v43  ;;  %5735 = vmatprep.mubr.bf16.mxu1 %v65_v43  ;;  %v8147_v43 = vld [vmem:[%s10958_s1 + $0x1400] ss:$16 sps:$4 sm:$0xff]  }
 0x247   :  { %5173 = vmatpush1.bf16.msra.mxu0 %v8057_v44  ;;  %5706 = vmatpush1.bf16.msra.mxu1 %v8060_v45  ;;  %v8150_v44 = vld [vmem:[%s10958_s1 + $0x1408] ss:$16 sps:$4 sm:$0xff]   ;;  %v8155_v45 = vld [vmem:[%s10958_s1 + $0x1424] ss:$16 sps:$4 sm:$0xff]  }
 0x248   :  { %5174 = vmatprep.subr.bf16.mxu0 %v8065_v46  ;;  %5707 = vmatprep.subr.bf16.mxu1 %v8068_v47  ;;  %v8158_v46 = vld [vmem:[%s10958_s1 + $0x142c] ss:$16 sps:$4 sm:$0xff]   ;;  %v67_v47 = vpack.c.bf16 %v42_v42, %v42_v42  ;;  %v41_v42 = vld [vmem:[%s10959_s0 + $0xa0] sm:$0xff] }
 0x24b   :  { %5175 = vmatpush1.bf16.msra.mxu0 %v8063_v48  ;;  %5708 = vmatpush1.bf16.msra.mxu1 %v8066_v49  ;;  %v8153_v48 = vld [vmem:[%s10958_s1 + $0x1420] ss:$16 sps:$4 sm:$0xff]   ;;  %v8156_v49 = vld [vmem:[%s10958_s1 + $0x1428] ss:$16 sps:$4 sm:$0xff]  }
 0x24c   :  { %5176 = vmatprep.subr.bf16.mxu0 %v8071_v50  ;;  %5709 = vmatprep.subr.bf16.mxu1 %v8074_v51  ;;  %v8161_v50 = vld [vmem:[%s10958_s1 + $0x1444] ss:$16 sps:$4 sm:$0xff]   ;;  %v8164_v51 = vld [vmem:[%s10958_s1 + $0x144c] ss:$16 sps:$4 sm:$0xff]  }
 0x24f   :  { %5177 = vmatpush1.bf16.msra.mxu0 %v8069_v52  ;;  %5710 = vmatpush1.bf16.msra.mxu1 %v8072_v53  ;;  %v8159_v52 = vld [vmem:[%s10958_s1 + $0x1440] ss:$16 sps:$4 sm:$0xff]   ;;  %v8162_v53 = vld [vmem:[%s10958_s1 + $0x1448] ss:$16 sps:$4 sm:$0xff]  }
 0x250   :  { %5178 = vmatprep.subr.bf16.mxu0 %v8077_v54  ;;  %5711 = vmatprep.subr.bf16.mxu1 %v8080_v55  ;;  %v8167_v54 = vld [vmem:[%s10958_s1 + $0x1464] ss:$16 sps:$4 sm:$0xff]   ;;  %v8170_v55 = vld [vmem:[%s10958_s1 + $0x146c] ss:$16 sps:$4 sm:$0xff]  }
 0x253   :  { %5179 = vmatpush1.bf16.msra.mxu0 %v8075_v56  ;;  %5712 = vmatpush1.bf16.msra.mxu1 %v8078_v57  ;;  %v8165_v56 = vld [vmem:[%s10958_s1 + $0x1460] ss:$16 sps:$4 sm:$0xff]   ;;  %v8168_v57 = vld [vmem:[%s10958_s1 + $0x1468] ss:$16 sps:$4 sm:$0xff]  }
 0x254   :  { %5180 = vmatprep.subr.bf16.mxu0 %v8083_v58  ;;  %5713 = vmatprep.subr.bf16.mxu1 %v8086_v59  ;;  %v8173_v58 = vld [vmem:[%s10958_s1 + $0x1484] ss:$16 sps:$4 sm:$0xff]   ;;  %v8176_v59 = vld [vmem:[%s10958_s1 + $0x148c] ss:$16 sps:$4 sm:$0xff]  }
 0x257   :  { %5181 = vmatpush1.bf16.msra.mxu0 %v8081_v60  ;;  %5714 = vmatpush1.bf16.msra.mxu1 %v8084_v61  ;;  %v8171_v60 = vld [vmem:[%s10958_s1 + $0x1480] ss:$16 sps:$4 sm:$0xff]   ;;  %v8174_v61 = vld [vmem:[%s10958_s1 + $0x1488] ss:$16 sps:$4 sm:$0xff]  }
 0x258   :  { %5182 = vmatprep.subr.bf16.mxu0 %v8089_v62  ;;  %5715 = vmatprep.subr.bf16.mxu1 %v8092_v63  ;;  %v8179_v62 = vld [vmem:[%s10958_s1 + $0x14a4] ss:$16 sps:$4 sm:$0xff]   ;;  %v8182_v63 = vld [vmem:[%s10958_s1 + $0x14ac] ss:$16 sps:$4 sm:$0xff]  }
 0x25b   :  { %5183 = vmatpush1.bf16.msra.mxu0 %v8087_v0  ;;  %5716 = vmatpush1.bf16.msra.mxu1 %v8090_v1  ;;  %v8177_v0 = vld [vmem:[%s10958_s1 + $0x14a0] ss:$16 sps:$4 sm:$0xff]   ;;  %v8180_v1 = vld [vmem:[%s10958_s1 + $0x14a8] ss:$16 sps:$4 sm:$0xff]  }
 0x25c   :  { %5184 = vmatprep.subr.bf16.mxu0 %v8095_v2  ;;  %5717 = vmatprep.subr.bf16.mxu1 %v8098_v3  ;;  %v8185_v2 = vld [vmem:[%s10958_s1 + $0x14c4] ss:$16 sps:$4 sm:$0xff]   ;;  %v8188_v3 = vld [vmem:[%s10958_s1 + $0x14cc] ss:$16 sps:$4 sm:$0xff]  }
 0x25f   :  { %5185 = vmatpush1.bf16.msra.mxu0 %v8093_v4  ;;  %5718 = vmatpush1.bf16.msra.mxu1 %v8096_v5  ;;  %v8183_v4 = vld [vmem:[%s10958_s1 + $0x14c0] ss:$16 sps:$4 sm:$0xff]   ;;  %v8186_v5 = vld [vmem:[%s10958_s1 + $0x14c8] ss:$16 sps:$4 sm:$0xff]  }
 0x260   :  { %5186 = vmatprep.subr.bf16.mxu0 %v8101_v6  ;;  %5719 = vmatprep.subr.bf16.mxu1 %v8104_v7  ;;  %v8191_v6 = vld [vmem:[%s10958_s1 + $0x14e4] ss:$16 sps:$4 sm:$0xff]   ;;  %v8194_v7 = vld [vmem:[%s10958_s1 + $0x14ec] ss:$16 sps:$4 sm:$0xff]  }
 0x263   :  { %5187 = vmatpush1.bf16.msra.mxu0 %v8099_v8  ;;  %5720 = vmatpush1.bf16.msra.mxu1 %v8102_v9  ;;  %v8189_v8 = vld [vmem:[%s10958_s1 + $0x14e0] ss:$16 sps:$4 sm:$0xff]   ;;  %v8192_v9 = vld [vmem:[%s10958_s1 + $0x14e8] ss:$16 sps:$4 sm:$0xff]  }
 0x264   :  { %5188 = vmatprep.subr.bf16.mxu0 %v8107_v10  ;;  %5721 = vmatprep.subr.bf16.mxu1 %v8110_v11  ;;  %v8197_v10 = vld [vmem:[%s10958_s1 + $0x1504] ss:$16 sps:$4 sm:$0xff]   ;;  %v8200_v11 = vld [vmem:[%s10958_s1 + $0x150c] ss:$16 sps:$4 sm:$0xff]  }
 0x267   :  { %5189 = vmatpush1.bf16.msra.mxu0 %v8105_v12  ;;  %5722 = vmatpush1.bf16.msra.mxu1 %v8108_v13  ;;  %v8195_v12 = vld [vmem:[%s10958_s1 + $0x1500] ss:$16 sps:$4 sm:$0xff]   ;;  %v8198_v13 = vld [vmem:[%s10958_s1 + $0x1508] ss:$16 sps:$4 sm:$0xff]  }
 0x268   :  { %5190 = vmatprep.subr.bf16.mxu0 %v8113_v14  ;;  %5723 = vmatprep.subr.bf16.mxu1 %v8116_v15  ;;  %v8203_v14 = vld [vmem:[%s10958_s1 + $0x1524] ss:$16 sps:$4 sm:$0xff]   ;;  %v8206_v15 = vld [vmem:[%s10958_s1 + $0x152c] ss:$16 sps:$4 sm:$0xff]  }
 0x26b   :  { %5191 = vmatpush1.bf16.msra.mxu0 %v8111_v16  ;;  %5724 = vmatpush1.bf16.msra.mxu1 %v8114_v17  ;;  %v8201_v16 = vld [vmem:[%s10958_s1 + $0x1520] ss:$16 sps:$4 sm:$0xff]   ;;  %v8204_v17 = vld [vmem:[%s10958_s1 + $0x1528] ss:$16 sps:$4 sm:$0xff]  }
 0x26c   :  { %5192 = vmatprep.subr.bf16.mxu0 %v8119_v18  ;;  %5725 = vmatprep.subr.bf16.mxu1 %v8122_v19  ;;  %v8209_v18 = vld [vmem:[%s10958_s1 + $0x1544] ss:$16 sps:$4 sm:$0xff]   ;;  %v8212_v19 = vld [vmem:[%s10958_s1 + $0x154c] ss:$16 sps:$4 sm:$0xff]  }
 0x26f   :  { %5193 = vmatpush1.bf16.msra.mxu0 %v8117_v20  ;;  %5726 = vmatpush1.bf16.msra.mxu1 %v8120_v21  ;;  %v8207_v20 = vld [vmem:[%s10958_s1 + $0x1540] ss:$16 sps:$4 sm:$0xff]   ;;  %v8210_v21 = vld [vmem:[%s10958_s1 + $0x1548] ss:$16 sps:$4 sm:$0xff]  }
 0x270   :  { %5194 = vmatprep.subr.bf16.mxu0 %v8125_v22  ;;  %5727 = vmatprep.subr.bf16.mxu1 %v8128_v23  ;;  %v8215_v22 = vld [vmem:[%s10958_s1 + $0x1564] ss:$16 sps:$4 sm:$0xff]   ;;  %v8218_v23 = vld [vmem:[%s10958_s1 + $0x156c] ss:$16 sps:$4 sm:$0xff]  }
 0x273   :  { %5195 = vmatpush1.bf16.msra.mxu0 %v8123_v24  ;;  %5728 = vmatpush1.bf16.msra.mxu1 %v8126_v25  ;;  %v8213_v24 = vld [vmem:[%s10958_s1 + $0x1560] ss:$16 sps:$4 sm:$0xff]   ;;  %v8216_v25 = vld [vmem:[%s10958_s1 + $0x1568] ss:$16 sps:$4 sm:$0xff]  }
 0x274   :  { %5196 = vmatprep.subr.bf16.mxu0 %v8131_v26  ;;  %5729 = vmatprep.subr.bf16.mxu1 %v8134_v27  ;;  %v8221_v26 = vld [vmem:[%s10958_s1 + $0x1584] ss:$16 sps:$4 sm:$0xff]   ;;  %v8224_v27 = vld [vmem:[%s10958_s1 + $0x158c] ss:$16 sps:$4 sm:$0xff]  }
 0x277   :  { %5197 = vmatpush1.bf16.msra.mxu0 %v8129_v28  ;;  %5730 = vmatpush1.bf16.msra.mxu1 %v8132_v29  ;;  %v8219_v28 = vld [vmem:[%s10958_s1 + $0x1580] ss:$16 sps:$4 sm:$0xff]   ;;  %v8222_v29 = vld [vmem:[%s10958_s1 + $0x1588] ss:$16 sps:$4 sm:$0xff]  }
 0x278   :  { %5198 = vmatprep.subr.bf16.mxu0 %v8137_v30  ;;  %5731 = vmatprep.subr.bf16.mxu1 %v8140_v31  ;;  %v8227_v30 = vld [vmem:[%s10958_s1 + $0x15a4] ss:$16 sps:$4 sm:$0xff]   ;;  %v8230_v31 = vld [vmem:[%s10958_s1 + $0x15ac] ss:$16 sps:$4 sm:$0xff]  }
 0x27b   :  { %5199 = vmatpush1.bf16.msra.mxu0 %v8135_v32  ;;  %5732 = vmatpush1.bf16.msra.mxu1 %v8138_v33  ;;  %v8225_v32 = vld [vmem:[%s10958_s1 + $0x15a0] ss:$16 sps:$4 sm:$0xff]   ;;  %v8228_v33 = vld [vmem:[%s10958_s1 + $0x15a8] ss:$16 sps:$4 sm:$0xff]  }
 0x27c   :  { %5200 = vmatprep.subr.bf16.mxu0 %v8143_v34  ;;  %5733 = vmatprep.subr.bf16.mxu1 %v8146_v35  ;;  %v8233_v34 = vld [vmem:[%s10958_s1 + $0x15c4] ss:$16 sps:$4 sm:$0xff]   ;;  %v8236_v35 = vld [vmem:[%s10958_s1 + $0x15cc] ss:$16 sps:$4 sm:$0xff]  }
 0x27f   :  { %5201 = vmatpush1.bf16.msra.mxu0 %v8141_v36  ;;  %5734 = vmatpush1.bf16.msra.mxu1 %v8144_v37  ;;  %v8231_v36 = vld [vmem:[%s10958_s1 + $0x15c0] ss:$16 sps:$4 sm:$0xff]   ;;  %v8234_v37 = vld [vmem:[%s10958_s1 + $0x15c8] ss:$16 sps:$4 sm:$0xff]  }
 0x280   :  { %5211 = vmatprep.subr.bf16.mxu0 %v8149_v39  ;;  %5744 = vmatprep.subr.bf16.mxu1 %v8152_v40  ;;  %v8242_v39 = vld [vmem:[%s10958_s1 + $0x15ec] ss:$16 sps:$4 sm:$0xff]   ;;  %v8237_v40 = vld [vmem:[%s10958_s1 + $0x15e0] ss:$16 sps:$4 sm:$0xff]  }
 0x282   :  { %5203 = vmatmul.mubr.bf16.vlgmr.msra.gmra.mrb[0].mxu0 %v64_v41  ;;  %5736 = vmatmul.mubr.bf16.vlgmr.msra.gmra.mrb[0].mxu1 %v64_v41  ;;  %v8240_v41 = vld [vmem:[%s10958_s1 + $0x15e8] ss:$16 sps:$4 sm:$0xff]  }
 0x283   :  { %5212 = vmatpush1.bf16.msra.mxu0 %v8147_v43  ;;  %5745 = vmatpush1.bf16.msra.mxu1 %v8150_v44  ;;  %v8245_v43 = vld [vmem:[%s10958_s1 + $0x1604] ss:$16 sps:$4 sm:$0xff]   ;;  %v8248_v44 = vld [vmem:[%s10958_s1 + $0x160c] ss:$16 sps:$4 sm:$0xff]  }
 0x284   :  { %5213 = vmatprep.subr.bf16.mxu0 %v8155_v45  ;;  %5746 = vmatprep.subr.bf16.mxu1 %v8158_v46  ;;  %v66_v45 = vpack.c.bf16 %v41_v42, %v41_v42  ;;  %v44_v46 = vld [vmem:[%s10959_s0 + $0xb8] sm:$0xff]  ;;  %v8335_v42 = vld [vmem:[%s10958_s1 + $0x17e4] ss:$16 sps:$4 sm:$0xff]  }
 0x285   :  { %5243 = vmatprep.mubr.bf16.mxu0 %v67_v47  ;;  %5776 = vmatprep.mubr.bf16.mxu1 %v67_v47  ;;  %v8243_v47 = vld [vmem:[%s10958_s1 + $0x1600] ss:$16 sps:$4 sm:$0xff]  }
 0x287   :  { %5214 = vmatpush1.bf16.msra.mxu0 %v8153_v48  ;;  %5747 = vmatpush1.bf16.msra.mxu1 %v8156_v49  ;;  %v8246_v48 = vld [vmem:[%s10958_s1 + $0x1608] ss:$16 sps:$4 sm:$0xff]   ;;  %v8251_v49 = vld [vmem:[%s10958_s1 + $0x1624] ss:$16 sps:$4 sm:$0xff]  }
 0x288   :  { %5215 = vmatprep.subr.bf16.mxu0 %v8161_v50  ;;  %5748 = vmatprep.subr.bf16.mxu1 %v8164_v51  ;;  %v8254_v50 = vld [vmem:[%s10958_s1 + $0x162c] ss:$16 sps:$4 sm:$0xff]   ;;  %v69_v51 = vpack.c.bf16 %v44_v46, %v44_v46  ;;  %v43_v46 = vld [vmem:[%s10959_s0 + $0xb0] sm:$0xff] }
 0x28b   :  { %5216 = vmatpush1.bf16.msra.mxu0 %v8159_v52  ;;  %5749 = vmatpush1.bf16.msra.mxu1 %v8162_v53  ;;  %v8249_v52 = vld [vmem:[%s10958_s1 + $0x1620] ss:$16 sps:$4 sm:$0xff]   ;;  %v8252_v53 = vld [vmem:[%s10958_s1 + $0x1628] ss:$16 sps:$4 sm:$0xff]  }
 0x28c   :  { %5217 = vmatprep.subr.bf16.mxu0 %v8167_v54  ;;  %5750 = vmatprep.subr.bf16.mxu1 %v8170_v55  ;;  %v8257_v54 = vld [vmem:[%s10958_s1 + $0x1644] ss:$16 sps:$4 sm:$0xff]   ;;  %v8260_v55 = vld [vmem:[%s10958_s1 + $0x164c] ss:$16 sps:$4 sm:$0xff]  }
 0x28f   :  { %5218 = vmatpush1.bf16.msra.mxu0 %v8165_v56  ;;  %5751 = vmatpush1.bf16.msra.mxu1 %v8168_v57  ;;  %v8255_v56 = vld [vmem:[%s10958_s1 + $0x1640] ss:$16 sps:$4 sm:$0xff]   ;;  %v8258_v57 = vld [vmem:[%s10958_s1 + $0x1648] ss:$16 sps:$4 sm:$0xff]  }
 0x290   :  { %5219 = vmatprep.subr.bf16.mxu0 %v8173_v58  ;;  %5752 = vmatprep.subr.bf16.mxu1 %v8176_v59  ;;  %v8263_v58 = vld [vmem:[%s10958_s1 + $0x1664] ss:$16 sps:$4 sm:$0xff]   ;;  %v8266_v59 = vld [vmem:[%s10958_s1 + $0x166c] ss:$16 sps:$4 sm:$0xff]  }
 0x293   :  { %5220 = vmatpush1.bf16.msra.mxu0 %v8171_v60  ;;  %5753 = vmatpush1.bf16.msra.mxu1 %v8174_v61  ;;  %v8261_v60 = vld [vmem:[%s10958_s1 + $0x1660] ss:$16 sps:$4 sm:$0xff]   ;;  %v8264_v61 = vld [vmem:[%s10958_s1 + $0x1668] ss:$16 sps:$4 sm:$0xff]  }
 0x294   :  { %5221 = vmatprep.subr.bf16.mxu0 %v8179_v62  ;;  %5754 = vmatprep.subr.bf16.mxu1 %v8182_v63  ;;  %v8269_v62 = vld [vmem:[%s10958_s1 + $0x1684] ss:$16 sps:$4 sm:$0xff]   ;;  %v8272_v63 = vld [vmem:[%s10958_s1 + $0x168c] ss:$16 sps:$4 sm:$0xff]  }
 0x297   :  { %5222 = vmatpush1.bf16.msra.mxu0 %v8177_v0  ;;  %5755 = vmatpush1.bf16.msra.mxu1 %v8180_v1  ;;  %v8267_v0 = vld [vmem:[%s10958_s1 + $0x1680] ss:$16 sps:$4 sm:$0xff]   ;;  %v8270_v1 = vld [vmem:[%s10958_s1 + $0x1688] ss:$16 sps:$4 sm:$0xff]  }
 0x298   :  { %5223 = vmatprep.subr.bf16.mxu0 %v8185_v2  ;;  %5756 = vmatprep.subr.bf16.mxu1 %v8188_v3  ;;  %v8275_v2 = vld [vmem:[%s10958_s1 + $0x16a4] ss:$16 sps:$4 sm:$0xff]   ;;  %v8278_v3 = vld [vmem:[%s10958_s1 + $0x16ac] ss:$16 sps:$4 sm:$0xff]  }
 0x29b   :  { %5224 = vmatpush1.bf16.msra.mxu0 %v8183_v4  ;;  %5757 = vmatpush1.bf16.msra.mxu1 %v8186_v5  ;;  %v8273_v4 = vld [vmem:[%s10958_s1 + $0x16a0] ss:$16 sps:$4 sm:$0xff]   ;;  %v8276_v5 = vld [vmem:[%s10958_s1 + $0x16a8] ss:$16 sps:$4 sm:$0xff]  }
 0x29c   :  { %5225 = vmatprep.subr.bf16.mxu0 %v8191_v6  ;;  %5758 = vmatprep.subr.bf16.mxu1 %v8194_v7  ;;  %v8281_v6 = vld [vmem:[%s10958_s1 + $0x16c4] ss:$16 sps:$4 sm:$0xff]   ;;  %v8284_v7 = vld [vmem:[%s10958_s1 + $0x16cc] ss:$16 sps:$4 sm:$0xff]  }
 0x29f   :  { %5226 = vmatpush1.bf16.msra.mxu0 %v8189_v8  ;;  %5759 = vmatpush1.bf16.msra.mxu1 %v8192_v9  ;;  %v8279_v8 = vld [vmem:[%s10958_s1 + $0x16c0] ss:$16 sps:$4 sm:$0xff]   ;;  %v8282_v9 = vld [vmem:[%s10958_s1 + $0x16c8] ss:$16 sps:$4 sm:$0xff]  }
 0x2a0   :  { %5227 = vmatprep.subr.bf16.mxu0 %v8197_v10  ;;  %5760 = vmatprep.subr.bf16.mxu1 %v8200_v11  ;;  %v8287_v10 = vld [vmem:[%s10958_s1 + $0x16e4] ss:$16 sps:$4 sm:$0xff]   ;;  %v8290_v11 = vld [vmem:[%s10958_s1 + $0x16ec] ss:$16 sps:$4 sm:$0xff]  }
 0x2a3   :  { %5228 = vmatpush1.bf16.msra.mxu0 %v8195_v12  ;;  %5761 = vmatpush1.bf16.msra.mxu1 %v8198_v13  ;;  %v8285_v12 = vld [vmem:[%s10958_s1 + $0x16e0] ss:$16 sps:$4 sm:$0xff]   ;;  %v8288_v13 = vld [vmem:[%s10958_s1 + $0x16e8] ss:$16 sps:$4 sm:$0xff]  }
 0x2a4   :  { %5229 = vmatprep.subr.bf16.mxu0 %v8203_v14  ;;  %5762 = vmatprep.subr.bf16.mxu1 %v8206_v15  ;;  %v8293_v14 = vld [vmem:[%s10958_s1 + $0x1704] ss:$16 sps:$4 sm:$0xff]   ;;  %v8296_v15 = vld [vmem:[%s10958_s1 + $0x170c] ss:$16 sps:$4 sm:$0xff]  }
 0x2a7   :  { %5230 = vmatpush1.bf16.msra.mxu0 %v8201_v16  ;;  %5763 = vmatpush1.bf16.msra.mxu1 %v8204_v17  ;;  %v8291_v16 = vld [vmem:[%s10958_s1 + $0x1700] ss:$16 sps:$4 sm:$0xff]   ;;  %v8294_v17 = vld [vmem:[%s10958_s1 + $0x1708] ss:$16 sps:$4 sm:$0xff]  }
 0x2a8   :  { %5231 = vmatprep.subr.bf16.mxu0 %v8209_v18  ;;  %5764 = vmatprep.subr.bf16.mxu1 %v8212_v19  ;;  %v8299_v18 = vld [vmem:[%s10958_s1 + $0x1724] ss:$16 sps:$4 sm:$0xff]   ;;  %v8302_v19 = vld [vmem:[%s10958_s1 + $0x172c] ss:$16 sps:$4 sm:$0xff]  }
 0x2ab   :  { %5232 = vmatpush1.bf16.msra.mxu0 %v8207_v20  ;;  %5765 = vmatpush1.bf16.msra.mxu1 %v8210_v21  ;;  %v8297_v20 = vld [vmem:[%s10958_s1 + $0x1720] ss:$16 sps:$4 sm:$0xff]   ;;  %v8300_v21 = vld [vmem:[%s10958_s1 + $0x1728] ss:$16 sps:$4 sm:$0xff]  }
 0x2ac   :  { %5233 = vmatprep.subr.bf16.mxu0 %v8215_v22  ;;  %5766 = vmatprep.subr.bf16.mxu1 %v8218_v23  ;;  %v8305_v22 = vld [vmem:[%s10958_s1 + $0x1744] ss:$16 sps:$4 sm:$0xff]   ;;  %v8308_v23 = vld [vmem:[%s10958_s1 + $0x174c] ss:$16 sps:$4 sm:$0xff]  }
 0x2af   :  { %5234 = vmatpush1.bf16.msra.mxu0 %v8213_v24  ;;  %5767 = vmatpush1.bf16.msra.mxu1 %v8216_v25  ;;  %v8303_v24 = vld [vmem:[%s10958_s1 + $0x1740] ss:$16 sps:$4 sm:$0xff]   ;;  %v8306_v25 = vld [vmem:[%s10958_s1 + $0x1748] ss:$16 sps:$4 sm:$0xff]  }
 0x2b0   :  { %5235 = vmatprep.subr.bf16.mxu0 %v8221_v26  ;;  %5768 = vmatprep.subr.bf16.mxu1 %v8224_v27  ;;  %v8311_v26 = vld [vmem:[%s10958_s1 + $0x1764] ss:$16 sps:$4 sm:$0xff]   ;;  %v8314_v27 = vld [vmem:[%s10958_s1 + $0x176c] ss:$16 sps:$4 sm:$0xff]  }
 0x2b3   :  { %5236 = vmatpush1.bf16.msra.mxu0 %v8219_v28  ;;  %5769 = vmatpush1.bf16.msra.mxu1 %v8222_v29  ;;  %v8309_v28 = vld [vmem:[%s10958_s1 + $0x1760] ss:$16 sps:$4 sm:$0xff]   ;;  %v8312_v29 = vld [vmem:[%s10958_s1 + $0x1768] ss:$16 sps:$4 sm:$0xff]  }
 0x2b4   :  { %5237 = vmatprep.subr.bf16.mxu0 %v8227_v30  ;;  %5770 = vmatprep.subr.bf16.mxu1 %v8230_v31  ;;  %v8317_v30 = vld [vmem:[%s10958_s1 + $0x1784] ss:$16 sps:$4 sm:$0xff]   ;;  %v8320_v31 = vld [vmem:[%s10958_s1 + $0x178c] ss:$16 sps:$4 sm:$0xff]  }
 0x2b7   :  { %5238 = vmatpush1.bf16.msra.mxu0 %v8225_v32  ;;  %5771 = vmatpush1.bf16.msra.mxu1 %v8228_v33  ;;  %v8315_v32 = vld [vmem:[%s10958_s1 + $0x1780] ss:$16 sps:$4 sm:$0xff]   ;;  %v8318_v33 = vld [vmem:[%s10958_s1 + $0x1788] ss:$16 sps:$4 sm:$0xff]  }
 0x2b8   :  { %5239 = vmatprep.subr.bf16.mxu0 %v8233_v34  ;;  %5772 = vmatprep.subr.bf16.mxu1 %v8236_v35  ;;  %v8323_v34 = vld [vmem:[%s10958_s1 + $0x17a4] ss:$16 sps:$4 sm:$0xff]   ;;  %v8326_v35 = vld [vmem:[%s10958_s1 + $0x17ac] ss:$16 sps:$4 sm:$0xff]  }
 0x2bb   :  { %5240 = vmatpush1.bf16.msra.mxu0 %v8231_v36  ;;  %5773 = vmatpush1.bf16.msra.mxu1 %v8234_v37  ;;  %v8321_v36 = vld [vmem:[%s10958_s1 + $0x17a0] ss:$16 sps:$4 sm:$0xff]   ;;  %v8324_v37 = vld [vmem:[%s10958_s1 + $0x17a8] ss:$16 sps:$4 sm:$0xff]  }
 0x2bc   :  { %5241 = vmatprep.subr.bf16.mxu0 %v8239_v38  ;;  %5774 = vmatprep.subr.bf16.mxu1 %v8242_v39  ;;  %v8329_v38 = vld [vmem:[%s10958_s1 + $0x17c4] ss:$16 sps:$4 sm:$0xff]   ;;  %v8332_v39 = vld [vmem:[%s10958_s1 + $0x17cc] ss:$16 sps:$4 sm:$0xff]  }
 0x2bf   :  { %5242 = vmatpush1.bf16.msra.mxu0 %v8237_v40  ;;  %5775 = vmatpush1.bf16.msra.mxu1 %v8240_v41  ;;  %v8327_v40 = vld [vmem:[%s10958_s1 + $0x17c0] ss:$16 sps:$4 sm:$0xff]   ;;  %v8330_v41 = vld [vmem:[%s10958_s1 + $0x17c8] ss:$16 sps:$4 sm:$0xff]  }
 0x2c0   :  { %5252 = vmatprep.subr.bf16.mxu0 %v8245_v43  ;;  %5785 = vmatprep.subr.bf16.mxu1 %v8248_v44  ;;  %v8338_v43 = vld [vmem:[%s10958_s1 + $0x17ec] ss:$16 sps:$4 sm:$0xff]   ;;  %v8333_v44 = vld [vmem:[%s10958_s1 + $0x17e0] ss:$16 sps:$4 sm:$0xff]  }
 0x2c2   :  { %5244 = vmatmul.mubr.bf16.vlgmr.msra.gmra.mrb[0].mxu0 %v66_v45  ;;  %5777 = vmatmul.mubr.bf16.vlgmr.msra.gmra.mrb[0].mxu1 %v66_v45  ;;  %v8336_v45 = vld [vmem:[%s10958_s1 + $0x17e8] ss:$16 sps:$4 sm:$0xff]  }
 0x2c3   :  { %5253 = vmatpush1.bf16.msra.mxu0 %v8243_v47  ;;  %5786 = vmatpush1.bf16.msra.mxu1 %v8246_v48  ;;  %v8341_v47 = vld [vmem:[%s10958_s1 + $0x1804] ss:$16 sps:$4 sm:$0xff]   ;;  %v8344_v48 = vld [vmem:[%s10958_s1 + $0x180c] ss:$16 sps:$4 sm:$0xff]  }
 0x2c4   :  { %5254 = vmatprep.subr.bf16.mxu0 %v8251_v49  ;;  %5787 = vmatprep.subr.bf16.mxu1 %v8254_v50  ;;  %v68_v49 = vpack.c.bf16 %v43_v46, %v43_v46  ;;  %v8339_v50 = vld [vmem:[%s10958_s1 + $0x1800] ss:$16 sps:$4 sm:$0xff]  }
 0x2c5   :  { %5284 = vmatprep.mubr.bf16.mxu0 %v69_v51  ;;  %5817 = vmatprep.mubr.bf16.mxu1 %v69_v51  ;;  %v8342_v51 = vld [vmem:[%s10958_s1 + $0x1808] ss:$16 sps:$4 sm:$0xff]  }
 0x2c7   :  { %5255 = vmatpush1.bf16.msra.mxu0 %v8249_v52  ;;  %5788 = vmatpush1.bf16.msra.mxu1 %v8252_v53  ;;  %v8347_v52 = vld [vmem:[%s10958_s1 + $0x1824] ss:$16 sps:$4 sm:$0xff]   ;;  %v8350_v53 = vld [vmem:[%s10958_s1 + $0x182c] ss:$16 sps:$4 sm:$0xff]  }
 0x2c8   :  { %5256 = vmatprep.subr.bf16.mxu0 %v8257_v54  ;;  %5789 = vmatprep.subr.bf16.mxu1 %v8260_v55  ;;  %v8345_v54 = vld [vmem:[%s10958_s1 + $0x1820] ss:$16 sps:$4 sm:$0xff]   ;;  %v8348_v55 = vld [vmem:[%s10958_s1 + $0x1828] ss:$16 sps:$4 sm:$0xff]  }
 0x2cb   :  { %5257 = vmatpush1.bf16.msra.mxu0 %v8255_v56  ;;  %5790 = vmatpush1.bf16.msra.mxu1 %v8258_v57  ;;  %v8353_v56 = vld [vmem:[%s10958_s1 + $0x1844] ss:$16 sps:$4 sm:$0xff]   ;;  %v8356_v57 = vld [vmem:[%s10958_s1 + $0x184c] ss:$16 sps:$4 sm:$0xff]  }
 0x2cc   :  { %5258 = vmatprep.subr.bf16.mxu0 %v8263_v58  ;;  %5791 = vmatprep.subr.bf16.mxu1 %v8266_v59  ;;  %v8395_v58 = vmov 0   ;;  %v8351_v59 = vld [vmem:[%s10958_s1 + $0x1840] ss:$16 sps:$4 sm:$0xff]  }
 0x2cf   :  { %5259 = vmatpush1.bf16.msra.mxu0 %v8261_v60  ;;  %5792 = vmatpush1.bf16.msra.mxu1 %v8264_v61  ;;  %v8354_v60 = vld [vmem:[%s10958_s1 + $0x1848] ss:$16 sps:$4 sm:$0xff]   ;;  %v8359_v61 = vld [vmem:[%s10958_s1 + $0x1864] ss:$16 sps:$4 sm:$0xff]  }
 0x2d0   :  { %5260 = vmatprep.subr.bf16.mxu0 %v8269_v62  ;;  %5793 = vmatprep.subr.bf16.mxu1 %v8272_v63  ;;  %v8362_v62 = vld [vmem:[%s10958_s1 + $0x186c] ss:$16 sps:$4 sm:$0xff]   ;;  %v8357_v63 = vld [vmem:[%s10958_s1 + $0x1860] ss:$16 sps:$4 sm:$0xff]  }
 0x2d3   :  { %5261 = vmatpush1.bf16.msra.mxu0 %v8267_v0  ;;  %5794 = vmatpush1.bf16.msra.mxu1 %v8270_v1  ;;  %v8360_v0 = vld [vmem:[%s10958_s1 + $0x1868] ss:$16 sps:$4 sm:$0xff]   ;;  %v45_v1 = vld [vmem:[%s10959_s0 + $0xc0] sm:$0xff] }
 0x2d4   :  { %5262 = vmatprep.subr.bf16.mxu0 %v8275_v2  ;;  %5795 = vmatprep.subr.bf16.mxu1 %v8278_v3  ;;  %v8363_v2 = vld [vmem:[%s10960_s3 + $0x40] sm:$0xff]  }
 0x2d5   :  { %v8364_v3 = vld [vmem:[%s10960_s3 + $0xc0] sm:$0xff]  }
 0x2d7   :  { %5263 = vmatpush1.bf16.msra.mxu0 %v8273_v4  ;;  %5796 = vmatpush1.bf16.msra.mxu1 %v8276_v5  ;;  %v70_v4 = vpack.c.bf16 %v45_v1, %v45_v1  ;;  %v8365_v5 = vld [vmem:[%s10960_s3] sm:$0xff]  }
 0x2d8   :  { %5264 = vmatprep.subr.bf16.mxu0 %v8281_v6  ;;  %5797 = vmatprep.subr.bf16.mxu1 %v8284_v7  ;;  %v8366_v6 = vld [vmem:[%s10960_s3 + $0x80] sm:$0xff]   ;;  %v8367_v7 = vld [vmem:[%s10960_s3 + $0x48] sm:$0xff]  }
 0x2db   :  { %5265 = vmatpush1.bf16.msra.mxu0 %v8279_v8  ;;  %5798 = vmatpush1.bf16.msra.mxu1 %v8282_v9  ;;  %v8368_v8 = vld [vmem:[%s10960_s3 + $0xc8] sm:$0xff]  }
 0x2dc   :  { %5266 = vmatprep.subr.bf16.mxu0 %v8287_v10  ;;  %5799 = vmatprep.subr.bf16.mxu1 %v8290_v11  ;;  %v8369_v9 = vld [vmem:[%s10960_s3 + $0x8] sm:$0xff]   ;;  %v8371_v11 = vld [vmem:[%s10960_s3 + $0x50] sm:$0xff]  }
 0x2dd   :  { %v8370_v10 = vld [vmem:[%s10960_s3 + $0x88] sm:$0xff]  }
 0x2df   :  { %5267 = vmatpush1.bf16.msra.mxu0 %v8285_v12  ;;  %5800 = vmatpush1.bf16.msra.mxu1 %v8288_v13  ;;  %v8372_v12 = vld [vmem:[%s10960_s3 + $0xd0] sm:$0xff]  }
 0x2e0   :  { %5268 = vmatprep.subr.bf16.mxu0 %v8293_v14  ;;  %5801 = vmatprep.subr.bf16.mxu1 %v8296_v15  ;;  %v8373_v13 = vld [vmem:[%s10960_s3 + $0x10] sm:$0xff]   ;;  %v8375_v15 = vld [vmem:[%s10960_s3 + $0x58] sm:$0xff]  }
 0x2e1   :  { %v8374_v14 = vld [vmem:[%s10960_s3 + $0x90] sm:$0xff]  }
 0x2e3   :  { %5269 = vmatpush1.bf16.msra.mxu0 %v8291_v16  ;;  %5802 = vmatpush1.bf16.msra.mxu1 %v8294_v17  ;;  %v8376_v16 = vld [vmem:[%s10960_s3 + $0xd8] sm:$0xff]  }
 0x2e4   :  { %5270 = vmatprep.subr.bf16.mxu0 %v8299_v18  ;;  %5803 = vmatprep.subr.bf16.mxu1 %v8302_v19  ;;  %v8377_v17 = vld [vmem:[%s10960_s3 + $0x18] sm:$0xff]   ;;  %v8379_v19 = vld [vmem:[%s10960_s3 + $0x60] sm:$0xff]  }
 0x2e5   :  { %v8378_v18 = vld [vmem:[%s10960_s3 + $0x98] sm:$0xff]  }
 0x2e7   :  { %5271 = vmatpush1.bf16.msra.mxu0 %v8297_v20  ;;  %5804 = vmatpush1.bf16.msra.mxu1 %v8300_v21  ;;  %v8380_v20 = vld [vmem:[%s10960_s3 + $0xe0] sm:$0xff]  }
 0x2e8   :  { %5272 = vmatprep.subr.bf16.mxu0 %v8305_v22  ;;  %5805 = vmatprep.subr.bf16.mxu1 %v8308_v23  ;;  %v8381_v21 = vld [vmem:[%s10960_s3 + $0x20] sm:$0xff]   ;;  %v8383_v23 = vld [vmem:[%s10960_s3 + $0x68] sm:$0xff]  }
 0x2e9   :  { %v8382_v22 = vld [vmem:[%s10960_s3 + $0xa0] sm:$0xff]  }
 0x2eb   :  { %5273 = vmatpush1.bf16.msra.mxu0 %v8303_v24  ;;  %5806 = vmatpush1.bf16.msra.mxu1 %v8306_v25  ;;  %v8384_v24 = vld [vmem:[%s10960_s3 + $0xe8] sm:$0xff]  }
 0x2ec   :  { %5274 = vmatprep.subr.bf16.mxu0 %v8311_v26  ;;  %5807 = vmatprep.subr.bf16.mxu1 %v8314_v27  ;;  %v8385_v25 = vld [vmem:[%s10960_s3 + $0x28] sm:$0xff]   ;;  %v8387_v27 = vld [vmem:[%s10960_s3 + $0x70] sm:$0xff]  }
 0x2ed   :  { %v8386_v26 = vld [vmem:[%s10960_s3 + $0xa8] sm:$0xff]  }
 0x2ef   :  { %5275 = vmatpush1.bf16.msra.mxu0 %v8309_v28  ;;  %5808 = vmatpush1.bf16.msra.mxu1 %v8312_v29  ;;  %v8388_v28 = vld [vmem:[%s10960_s3 + $0xf0] sm:$0xff]  }
 0x2f0   :  { %5276 = vmatprep.subr.bf16.mxu0 %v8317_v30  ;;  %5809 = vmatprep.subr.bf16.mxu1 %v8320_v31  ;;  %v8389_v29 = vld [vmem:[%s10960_s3 + $0x30] sm:$0xff]   ;;  %v8391_v31 = vld [vmem:[%s10960_s3 + $0x78] sm:$0xff]  }
 0x2f1   :  { %v8390_v30 = vld [vmem:[%s10960_s3 + $0xb0] sm:$0xff]  }
 0x2f3   :  { %5277 = vmatpush1.bf16.msra.mxu0 %v8315_v32  ;;  %5810 = vmatpush1.bf16.msra.mxu1 %v8318_v33  ;;  %v8392_v32 = vld [vmem:[%s10960_s3 + $0xf8] sm:$0xff]  }
 0x2f4   :  { %5278 = vmatprep.subr.bf16.mxu0 %v8323_v34  ;;  %5811 = vmatprep.subr.bf16.mxu1 %v8326_v35  ;;  %v8393_v33 = vld [vmem:[%s10960_s3 + $0x38] sm:$0xff]   ;;  %v857_v35 = vlaneseq }
 0x2f5   :  { %v8394_v34 = vld [vmem:[%s10960_s3 + $0xb8] sm:$0xff]  }
 0x2f7   :  { %5279 = vmatpush1.bf16.msra.mxu0 %v8321_v36  ;;  %5812 = vmatpush1.bf16.msra.mxu1 %v8324_v37  ;;  %v858_v36 = vshrl.u32 %v857_v35, 7 }
 0x2f8   :  { %5280 = vmatprep.subr.bf16.mxu0 %v8329_v38  ;;  %5813 = vmatprep.subr.bf16.mxu1 %v8332_v39  ;;  %v855_v39 = vld [vmem:[%s10961_s2] sm:$0xf] }
 0x2f9   :  { %v859_v37 = vsub.s32 0, %v858_v36  ;;  %v867_v38 = vsub.s32 2, %v858_v36 }
 0x2fb   :  { %5281 = vmatpush1.bf16.msra.mxu0 %v8327_v40  ;;  %5814 = vmatpush1.bf16.msra.mxu1 %v8330_v41  ;;  %v863_v40 = vsub.s32 1, %v858_v36  ;;  %v871_v41 = vsub.s32 3, %v858_v36 }
 0x2fc   :  { %5282 = vmatprep.subr.bf16.mxu0 %v8335_v42  ;;  %5815 = vmatprep.subr.bf16.mxu1 %v8338_v43  ;;  %v860_v42 = vrot.slane %v855_v39, %v859_v37  ;;  %v868_v43 = vrot.slane %v855_v39, %v867_v38 }
 0x2ff   :  { %5283 = vmatpush1.bf16.msra.mxu0 %v8333_v44  ;;  %5816 = vmatpush1.bf16.msra.mxu1 %v8336_v45  ;;  %v864_v44 = vrot.slane %v855_v39, %v863_v40  ;;  %v872_v45 = vrot.slane %v855_v39, %v871_v41 }
 0x300   :  { %5293 = vmatprep.subr.bf16.mxu0 %v8341_v47  ;;  %5826 = vmatprep.subr.bf16.mxu1 %v8344_v48 }
 0x302   :  { %5285 = vmatmul.mubr.bf16.vlgmr.msra.gmra.mrb[0].mxu0 %v68_v49  ;;  %5818 = vmatmul.mubr.bf16.vlgmr.msra.gmra.mrb[0].mxu1 %v68_v49 }
 0x303   :  { %5294 = vmatpush1.bf16.msra.mxu0 %v8339_v50  ;;  %5827 = vmatpush1.bf16.msra.mxu1 %v8342_v51 }
 0x304   :  { %5295 = vmatprep.subr.bf16.mxu0 %v8347_v52  ;;  %5828 = vmatprep.subr.bf16.mxu1 %v8350_v53 }
 0x305   :  { %5325 = vmatprep.mubr.bf16.mxu0 %v8395_v58  ;;  %5858 = vmatprep.mubr.bf16.mxu1 %v8395_v58 }
 0x307   :  { %5296 = vmatpush1.bf16.msra.mxu0 %v8345_v54  ;;  %5829 = vmatpush1.bf16.msra.mxu1 %v8348_v55 }
 0x308   :  { %5297 = vmatprep.subr.bf16.mxu0 %v8353_v56  ;;  %5830 = vmatprep.subr.bf16.mxu1 %v8356_v57 }
 0x30b   :  { %5298 = vmatpush1.bf16.msra.mxu0 %v8351_v59  ;;  %5831 = vmatpush1.bf16.msra.mxu1 %v8354_v60 }
 0x30c   :  { %5299 = vmatprep.subr.bf16.mxu0 %v8359_v61  ;;  %5832 = vmatprep.subr.bf16.mxu1 %v8362_v62 }
 0x30f   :  { %5300 = vmatpush1.bf16.msra.mxu0 %v8357_v63  ;;  %5833 = vmatpush1.bf16.msra.mxu1 %v8360_v0 }
 0x310   :  { %7042 = vmatprep.subr.bf16.mxu0 %v8363_v2  ;;  %7064 = vmatprep.subr.bf16.mxu1 %v8364_v3 }
 0x312   :  { %7007 = vmatmul.mubr.msk.bf16.vlgmr.msra.gmra.mrb[0].mxu0 %vm4797_vm0, %v70_v4  ;;  %7008 = vmatmul.mubr.msk.bf16.vlgmr.msra.gmra.mrb[0].mxu1 %vm4797_vm0, %v70_v4  ;;  %v7009_v4 = vld [vmem:[%s10962_s4] ss:$0 sm:$0xff] }
 0x313   :  { %7043 = vmatpush3.bf16.msra.mxu0 %v8365_v5  ;;  %7065 = vmatpush3.bf16.msra.mxu1 %v8366_v6 }
 0x314   :  { %7044 = vmatprep.subr.bf16.mxu0 %v8367_v7  ;;  %7066 = vmatprep.subr.bf16.mxu1 %v8368_v8 }
 0x317   :  { %7045 = vmatpush3.bf16.msra.mxu0 %v8369_v9  ;;  %7067 = vmatpush3.bf16.msra.mxu1 %v8370_v10 }
 0x318   :  { %7046 = vmatprep.subr.bf16.mxu0 %v8371_v11  ;;  %7068 = vmatprep.subr.bf16.mxu1 %v8372_v12 }
 0x31b   :  { %7047 = vmatpush3.bf16.msra.mxu0 %v8373_v13  ;;  %7069 = vmatpush3.bf16.msra.mxu1 %v8374_v14 }
 0x31c   :  { %7048 = vmatprep.subr.bf16.mxu0 %v8375_v15  ;;  %7070 = vmatprep.subr.bf16.mxu1 %v8376_v16 }
 0x31f   :  { %7049 = vmatpush3.bf16.msra.mxu0 %v8377_v17  ;;  %7071 = vmatpush3.bf16.msra.mxu1 %v8378_v18 }
 0x320   :  { %7050 = vmatprep.subr.bf16.mxu0 %v8379_v19  ;;  %7072 = vmatprep.subr.bf16.mxu1 %v8380_v20 }
 0x323   :  { %7051 = vmatpush3.bf16.msra.mxu0 %v8381_v21  ;;  %7073 = vmatpush3.bf16.msra.mxu1 %v8382_v22 }
 0x324   :  { %7052 = vmatprep.subr.bf16.mxu0 %v8383_v23  ;;  %7074 = vmatprep.subr.bf16.mxu1 %v8384_v24 }
 0x327   :  { %7053 = vmatpush3.bf16.msra.mxu0 %v8385_v25  ;;  %7075 = vmatpush3.bf16.msra.mxu1 %v8386_v26 }
 0x328   :  { %7054 = vmatprep.subr.bf16.mxu0 %v8387_v27  ;;  %7076 = vmatprep.subr.bf16.mxu1 %v8388_v28 }
 0x32b   :  { %7055 = vmatpush3.bf16.msra.mxu0 %v8389_v29  ;;  %7077 = vmatpush3.bf16.msra.mxu1 %v8390_v30 }
 0x32c   :  { %7056 = vmatprep.subr.bf16.mxu0 %v8391_v31  ;;  %7078 = vmatprep.subr.bf16.mxu1 %v8392_v32 }
 0x32f   :  { %7057 = vmatpush3.bf16.msra.mxu0 %v8393_v33  ;;  %7079 = vmatpush3.bf16.msra.mxu1 %v8394_v34 }
 0x3e5   :  { %v5327_v46 = vpop.f32.mrb[0].mxu0  ;;  %v5860_v47 = vpop.f32.mrb[0].mxu1 }
 0x3e6   :  { %v7086_v48 = vadd.f32 %v5327_v46, %v860_v42  ;;  %v7088_v49 = vadd.f32 %v5860_v47, %v868_v43  ;;  %v5329_v50 = vpop.f32.mrb[1].mxu0  ;;  %v5862_v51 = vpop.f32.mrb[1].mxu1 }
 0x3e7   :  { %v7087_v52 = vadd.f32 %v5329_v50, %v864_v44  ;;  %v7089_v53 = vadd.f32 %v5862_v51, %v872_v45  ;;  %v5331_v54 = vpop.f32.mrb[2].mxu0  ;;  %v5864_v55 = vpop.f32.mrb[2].mxu1 }
 0x3e8   :  { %v5867_v56 = vmax.f32 %v7086_v48, 0.0  ;;  %v5869_v57 = vmax.f32 %v7088_v49, 0.0  ;;  %v5332_v58 = vpop.f32.mrb[3].mxu0  ;;  %v5865_v59 = vpop.f32.mrb[3].mxu1 }
 0x3e9   :  { %v5868_v60 = vmax.f32 %v7087_v52, 0.0  ;;  %v5870_v61 = vmax.f32 %v7089_v53, 0.0 }
 0x3ea   :  { %v5871_v0 = vpack.c.bf16 %v5867_v56, %v5867_v56  ;;  %v5873_v1 = vpack.c.bf16 %v5869_v57, %v5869_v57 }
 0x3eb   :  { %v5872_v62 = vpack.c.bf16 %v5868_v60, %v5868_v60  ;;  %v5874_v63 = vpack.c.bf16 %v5870_v61, %v5870_v61 }
 0x3ed   :  { %6170 = vmatprep.mubr.bf16.mxu0 %v5872_v62  ;;  %6210 = vmatprep.mubr.bf16.mxu1 %v5874_v63 }
 0x3ee   :  { %6171 = vmatmul.mubr.bf16.vlgmr.msra.gmra.mrb[4].mxu0 %v5871_v0  ;;  %6211 = vmatmul.mubr.bf16.vlgmr.msra.gmra.mrb[4].mxu1 %v5873_v1 }
 0x4c1   :  { %v7058_v2 = vpop.f32.mrb[4].mxu0  ;;  %v7080_v3 = vpop.f32.mrb[4].mxu1 }
 0x4c2   :  { %v7059_v5 = vpop.f32.mrb[5].mxu0  ;;  %v7081_v6 = vpop.f32.mrb[5].mxu1 }
 0x4c3   :  { %v7060_v7 = vadd.f32 %v7059_v5, %v7058_v2  ;;  %v7082_v8 = vadd.f32 %v7081_v6, %v7080_v3  ;;  %v7061_v9 = vpop.f32.mrb[6].mxu0  ;;  %v7083_v10 = vpop.f32.mrb[6].mxu1 }
 0x4c4   :  { %v7062_v11 = vpop.f32.mrb[7].mxu0  ;;  %v7084_v12 = vpop.f32.mrb[7].mxu1 }
 0x4c5   :  { %v6173_v13 = vadd.f32 %v7060_v7, %v7009_v4 }
 0x4c7   :  { %v6213_v14 = vadd.f32 %v7082_v8, %v6173_v13 }
 0x4c9   :  { %6218 = vst [vmem:[%s10963_s5] sm:$0xff] %v6213_v14 }

</bundles_post_ra>
